<compile_context>
chip_gen: v7x
topology: tpu7x:2x2x1
jax: 0.10.0
libtpu: 0.0.40
codegen_flags: <defaults>
</compile_context>

<pallas_src>
import jax
import jax.numpy as jnp
from jax.experimental import pallas as pl
from jax.experimental.pallas import tpu as pltpu


HIDDEN = 80  # fc1: dim->80, fc2: 80->80, fc3: 80->80 (as in the PyTorch module)


def _mlp_snake_kernel(x_ref, w1_ref, b1_ref, w2_ref, b2_ref, w3_ref, b3_ref, o_ref):
    """Forward of Vannila_FullyConnectedNet for one block of batch rows."""
    x = x_ref[...].astype(jnp.float32)

    h = jnp.dot(x, w1_ref[...].astype(jnp.float32),
                preferred_element_type=jnp.float32) + b1_ref[...].astype(jnp.float32)
    h = jnp.sin(h)                                   # Snake activation

    h = jnp.dot(h, w2_ref[...].astype(jnp.float32),
                preferred_element_type=jnp.float32) + b2_ref[...].astype(jnp.float32)
    h = jnp.sin(h)                                   # Snake activation

    o = jnp.dot(h, w3_ref[...].astype(jnp.float32),
                preferred_element_type=jnp.float32) + b3_ref[...].astype(jnp.float32)

    o_ref[...] = o.astype(o_ref.dtype)


def _round_up(x, m):
    return ((x + m - 1) // m) * m


def vannila_fully_connected_net(x, w1, b1, w2, b2, w3, b3, *, max_block_rows=4096):
    """Pallas implementation of Vannila_FullyConnectedNet.forward.

    x:  (N, dim) activations.
    w*: (in, out) weight matrices (i.e. transposed vs. torch.nn.Linear.weight).
    b*: (out,) biases.
    """
    n, dim = x.shape
    d1 = w1.shape[1]
    d2 = w2.shape[1]
    d3 = w3.shape[1]

    # Biases as (1, d) 2-D slabs so they broadcast cleanly against row blocks.
    b1_2d = b1.reshape(1, d1)
    b2_2d = b2.reshape(1, d2)
    b3_2d = b3.reshape(1, d3)

    # Batch block: multiple of 8 (f32 sublane), large (multi-MiB class) but
    # bounded so double-buffered in+out blocks stay far below v7x's VMEM.
    block_n = min(max_block_rows, _round_up(n, 8))
    # Keep >= 2 grid steps for large inputs so both v7x TensorCores get work.
    if n > 2048 and pl.cdiv(n, block_n) < 2:
        block_n = _round_up(pl.cdiv(n, 2), 8)
    grid = (pl.cdiv(n, block_n),)

    itemsize = jnp.dtype(x.dtype).itemsize
    cost = pl.CostEstimate(
        flops=2 * n * (dim * d1 + d1 * d2 + d2 * d3),
        transcendentals=n * (d1 + d2),
        bytes_accessed=(n * dim + n * d3) * itemsize
        + (w1.size + w2.size + w3.size + b1.size + b2.size + b3.size)
        * jnp.dtype(w1.dtype).itemsize,
    )

    return pl.pallas_call(
        _mlp_snake_kernel,
        out_shape=jax.ShapeDtypeStruct((n, d3), x.dtype),
        grid_spec=pltpu.PrefetchScalarGridSpec(
            num_scalar_prefetch=0,
            grid=grid,
            in_specs=[
                # Activations: blocked over batch rows.
                pl.BlockSpec((block_n, dim), lambda i: (i, 0)),
                # Weights / biases: full arrays, constant block index ->
                # DMA'd once and kept resident in VMEM across the grid.
                pl.BlockSpec((dim, d1), lambda i: (0, 0)),
                pl.BlockSpec((1, d1), lambda i: (0, 0)),
                pl.BlockSpec((d1, d2), lambda i: (0, 0)),
                pl.BlockSpec((1, d2), lambda i: (0, 0)),
                pl.BlockSpec((d2, d3), lambda i: (0, 0)),
                pl.BlockSpec((1, d3), lambda i: (0, 0)),
            ],
            out_specs=pl.BlockSpec((block_n, d3), lambda i: (i, 0)),
        ),
        compiler_params=pltpu.CompilerParams(
            dimension_semantics=("parallel",),
        ),
        cost_estimate=cost,
    )(x, w1, b1_2d, w2, b2_2d, w3, b3_2d)


if __name__ == "__main__":
    key = jax.random.PRNGKey(0)
    kx, k1, kb1, k2, kb2, k3, kb3 = jax.random.split(key, 7)

    dim = 2          # module default: nn.Linear(dim=2, 80)
    batch = 256      # small batch of 2-D points, as the forward implies

    x = jax.random.normal(kx, (batch, dim), dtype=jnp.float32)

    # Deterministic params mimicking torch.nn.Linear init: U(-1/sqrt(fan_in), +)
    def linear_params(kw, kb, fan_in, fan_out):
        bound = 1.0 / (fan_in ** 0.5)
        w = jax.random.uniform(kw, (fan_in, fan_out), jnp.float32, -bound, bound)
        b = jax.random.uniform(kb, (fan_out,), jnp.float32, -bound, bound)
        return w, b

    w1, b1 = linear_params(k1, kb1, dim, HIDDEN)
    w2, b2 = linear_params(k2, kb2, HIDDEN, HIDDEN)
    w3, b3 = linear_params(k3, kb3, HIDDEN, HIDDEN)

    y = vannila_fully_connected_net(x, w1, b1, w2, b2, w3, b3)
    jax.block_until_ready(y)

    # Pure-JAX reference of the PyTorch forward.
    h = jnp.sin(x @ w1 + b1)
    h = jnp.sin(h @ w2 + b2)
    ref = h @ w3 + b3

    assert y.shape == ref.shape and y.dtype == x.dtype
    max_err = float(jnp.max(jnp.abs(y - ref)))
    assert max_err < 1e-4, f"max abs error {max_err}"

    print("KERNEL_OK")
</pallas_src>

<mosaic_0001>
module attributes {stable_mosaic.version = 11 : i64} {
  func.func @_mlp_snake_kernel(%arg0: i32, %arg1: memref<256x2xf32, #tpu.memory_space<vmem>>, %arg2: memref<2x80xf32, #tpu.memory_space<vmem>>, %arg3: memref<1x80xf32, #tpu.memory_space<vmem>>, %arg4: memref<80x80xf32, #tpu.memory_space<vmem>>, %arg5: memref<1x80xf32, #tpu.memory_space<vmem>>, %arg6: memref<80x80xf32, #tpu.memory_space<vmem>>, %arg7: memref<1x80xf32, #tpu.memory_space<vmem>>, %arg8: memref<256x80xf32, #tpu.memory_space<vmem>>) attributes {dimension_semantics = [#tpu.dimension_semantics<parallel>], iteration_bounds = array<i64: 1>, scalar_prefetch = 0 : i64, scratch_operands = 0 : i64, tpu.core_type = #tpu.core_type<tc>, window_params = [{transform_indices = @transform_0, window_bounds = array<i64: 256, 2>}, {pipeline_mode = #tpu.pipeline_mode<synchronous>, transform_indices = @transform_1, window_bounds = array<i64: 2, 80>}, {pipeline_mode = #tpu.pipeline_mode<synchronous>, transform_indices = @transform_2, window_bounds = array<i64: 1, 80>}, {pipeline_mode = #tpu.pipeline_mode<synchronous>, transform_indices = @transform_3, window_bounds = array<i64: 80, 80>}, {pipeline_mode = #tpu.pipeline_mode<synchronous>, transform_indices = @transform_4, window_bounds = array<i64: 1, 80>}, {pipeline_mode = #tpu.pipeline_mode<synchronous>, transform_indices = @transform_5, window_bounds = array<i64: 80, 80>}, {pipeline_mode = #tpu.pipeline_mode<synchronous>, transform_indices = @transform_6, window_bounds = array<i64: 1, 80>}, {transform_indices = @transform_7, window_bounds = array<i64: 256, 80>}]} {
    %c0 = arith.constant 0 : index
    %c0_0 = arith.constant 0 : index
    %0 = vector.load %arg1[%c0, %c0_0] : memref<256x2xf32, #tpu.memory_space<vmem>>, vector<256x2xf32>
    %c0_1 = arith.constant 0 : index
    %c0_2 = arith.constant 0 : index
    %1 = vector.load %arg2[%c0_1, %c0_2] : memref<2x80xf32, #tpu.memory_space<vmem>>, vector<2x80xf32>
    %cst = arith.constant dense<0.000000e+00> : vector<256x80xf32>
    %2 = tpu.matmul %0, %1, %cst {dimension_numbers = #tpu.dot_dimension_numbers<[1], [0], [0], [1], [0, 0, 1, 1], [], []>} : vector<256x2xf32>, vector<2x80xf32>, vector<256x80xf32> -> vector<256x80xf32>
    %c0_3 = arith.constant 0 : index
    %c0_4 = arith.constant 0 : index
    %3 = vector.load %arg3[%c0_3, %c0_4] : memref<1x80xf32, #tpu.memory_space<vmem>>, vector<1x80xf32>
    %4 = vector.broadcast %3 : vector<1x80xf32> to vector<256x80xf32>
    %5 = arith.addf %2, %4 : vector<256x80xf32>
    %6 = math.sin %5 : vector<256x80xf32>
    %c0_5 = arith.constant 0 : index
    %c0_6 = arith.constant 0 : index
    %7 = vector.load %arg4[%c0_5, %c0_6] : memref<80x80xf32, #tpu.memory_space<vmem>>, vector<80x80xf32>
    %cst_7 = arith.constant dense<0.000000e+00> : vector<256x80xf32>
    %8 = tpu.matmul %6, %7, %cst_7 {dimension_numbers = #tpu.dot_dimension_numbers<[1], [0], [0], [1], [0, 0, 1, 1], [], []>} : vector<256x80xf32>, vector<80x80xf32>, vector<256x80xf32> -> vector<256x80xf32>
    %c0_8 = arith.constant 0 : index
    %c0_9 = arith.constant 0 : index
    %9 = vector.load %arg5[%c0_8, %c0_9] : memref<1x80xf32, #tpu.memory_space<vmem>>, vector<1x80xf32>
    %10 = vector.broadcast %9 : vector<1x80xf32> to vector<256x80xf32>
    %11 = arith.addf %8, %10 : vector<256x80xf32>
    %12 = math.sin %11 : vector<256x80xf32>
    %c0_10 = arith.constant 0 : index
    %c0_11 = arith.constant 0 : index
    %13 = vector.load %arg6[%c0_10, %c0_11] : memref<80x80xf32, #tpu.memory_space<vmem>>, vector<80x80xf32>
    %cst_12 = arith.constant dense<0.000000e+00> : vector<256x80xf32>
    %14 = tpu.matmul %12, %13, %cst_12 {dimension_numbers = #tpu.dot_dimension_numbers<[1], [0], [0], [1], [0, 0, 1, 1], [], []>} : vector<256x80xf32>, vector<80x80xf32>, vector<256x80xf32> -> vector<256x80xf32>
    %c0_13 = arith.constant 0 : index
    %c0_14 = arith.constant 0 : index
    %15 = vector.load %arg7[%c0_13, %c0_14] : memref<1x80xf32, #tpu.memory_space<vmem>>, vector<1x80xf32>
    %16 = vector.broadcast %15 : vector<1x80xf32> to vector<256x80xf32>
    %17 = arith.addf %14, %16 : vector<256x80xf32>
    %c0_15 = arith.constant 0 : index
    %c0_16 = arith.constant 0 : index
    %18 = vector.load %arg8[%c0_15, %c0_16] : memref<256x80xf32, #tpu.memory_space<vmem>>, vector<256x80xf32>
    tpu.vector_store %arg8[%c0_15, %c0_16], %17 {strides = array<i32>} : memref<256x80xf32, #tpu.memory_space<vmem>>, vector<256x80xf32>,
    return
  }
  func.func @transform_0(%arg0: i32) -> (i32, i32) {
    %c0_i32 = arith.constant 0 : i32
    %c0_i32_0 = arith.constant 0 : i32
    return %arg0, %c0_i32 : i32, i32
  }
  func.func @transform_1(%arg0: i32) -> (i32, i32) {
    %c0_i32 = arith.constant 0 : i32
    %c0_i32_0 = arith.constant 0 : i32
    %c0_i32_1 = arith.constant 0 : i32
    return %c0_i32, %c0_i32_0 : i32, i32
  }
  func.func @transform_2(%arg0: i32) -> (i32, i32) {
    %c0_i32 = arith.constant 0 : i32
    %c0_i32_0 = arith.constant 0 : i32
    %c0_i32_1 = arith.constant 0 : i32
    return %c0_i32, %c0_i32_0 : i32, i32
  }
  func.func @transform_3(%arg0: i32) -> (i32, i32) {
    %c0_i32 = arith.constant 0 : i32
    %c0_i32_0 = arith.constant 0 : i32
    %c0_i32_1 = arith.constant 0 : i32
    return %c0_i32, %c0_i32_0 : i32, i32
  }
  func.func @transform_4(%arg0: i32) -> (i32, i32) {
    %c0_i32 = arith.constant 0 : i32
    %c0_i32_0 = arith.constant 0 : i32
    %c0_i32_1 = arith.constant 0 : i32
    return %c0_i32, %c0_i32_0 : i32, i32
  }
  func.func @transform_5(%arg0: i32) -> (i32, i32) {
    %c0_i32 = arith.constant 0 : i32
    %c0_i32_0 = arith.constant 0 : i32
    %c0_i32_1 = arith.constant 0 : i32
    return %c0_i32, %c0_i32_0 : i32, i32
  }
  func.func @transform_6(%arg0: i32) -> (i32, i32) {
    %c0_i32 = arith.constant 0 : i32
    %c0_i32_0 = arith.constant 0 : i32
    %c0_i32_1 = arith.constant 0 : i32
    return %c0_i32, %c0_i32_0 : i32, i32
  }
  func.func @transform_7(%arg0: i32) -> (i32, i32) {
    %c0_i32 = arith.constant 0 : i32
    %c0_i32_0 = arith.constant 0 : i32
    return %arg0, %c0_i32 : i32, i32
  }
}

</mosaic_0001>

<bundles_post_ra>
// kernel: tpu_custom_call.1
= control target key start
LH: loop header
LB: loop body
LE: loop exit
PB: predicated region body
PF: predicated region fallthrough
CT: control target
= control target key end

     0   :  { %vm163_vm0 = vcmask 1041408   ;;  %vm66_vm1 = vcmask 15360   ;;  %s15540_s1 = inlined_call_operand.vmem [shape: f32[2,80], index: 1, kind: input, shape index: {}]   ;;  %s15541_s0 = inlined_call_operand.vmem [shape: f32[256,2], index: 0, kind: input, shape index: {}]   ;;  %s15542_s2 = inlined_call_operand.vmem [shape: f32[1,80], index: 2, kind: input, shape index: {}]   ;;  %s15543_s3 = inlined_call_operand.vmem [shape: f32[80,80], index: 3, kind: input, shape index: {}]   ;;  %s15544_s4 = inlined_call_operand.vmem [shape: f32[1,80], index: 4, kind: input, shape index: {}]   ;;  %s15545_s5 = inlined_call_operand.vmem [shape: f32[80,80], index: 5, kind: input, shape index: {}]   ;;  %s15546_s6 = inlined_call_operand.vmem [shape: f32[1,80], index: 6, kind: input, shape index: {}]   ;;  %s15547_s7 = inlined_call_operand.vmem [shape: f32[256,80], index: 7, kind: output, shape index: {}]  }
   0x1   :  { %v58_v0 = vld [vmem:[%s15540_s1] sm:$0x3]  ;;  %v27_v3 = vld [vmem:[%s15541_s0 + $0x8] sm:$0xff]  ;;  %v28_v5 = vld [vmem:[%s15541_s0 + $0x10] sm:$0xff] }
   0x2   :  { %v26_v1 = vld [vmem:[%s15541_s0] sm:$0xff]  ;;  %8234 = vmatprep.subr.msk.mxu0 %vm163_vm0, %v58_v0  ;;  %8460 = vmatprep.subr.msk.mxu1 %vm163_vm0, %v58_v0  ;;  %v43_v4 = vld [vmem:[%s15541_s0 + $0x88] sm:$0xff]  ;;  %v44_v6 = vld [vmem:[%s15541_s0 + $0x90] sm:$0xff] }
   0x3   :  { %v42_v2 = vld [vmem:[%s15541_s0 + $0x80] sm:$0xff]  ;;  %8235 = vmatpush3.msk.msra.mxu0 %vm163_vm0, %v58_v0  ;;  %8461 = vmatpush3.msk.msra.mxu1 %vm163_vm0, %v58_v0  ;;  %v29_v7 = vld [vmem:[%s15541_s0 + $0x18] sm:$0xff]  ;;  %v31_v11 = vld [vmem:[%s15541_s0 + $0x28] sm:$0xff] }
   0x4   :  { %8236 = vmatprep.mubr.msk.f32.mxu0 %vm66_vm1, %v26_v1  ;;  %8260 = vmatprep.mubr.msk.f32.mxu1 %vm66_vm1, %v42_v2  ;;  %v45_v8 = vld [vmem:[%s15541_s0 + $0x98] sm:$0xff]  ;;  %v30_v9 = vld [vmem:[%s15541_s0 + $0x20] sm:$0xff]  ;;  %v47_v12 = vld [vmem:[%s15541_s0 + $0xa8] sm:$0xff] }
   0x5   :  { %8237 = vmatmul.mubr.msk.f32.vlgmr.msra.gmra.mrb[0].mxu0 %vm66_vm1, %v27_v3  ;;  %8261 = vmatmul.mubr.msk.f32.vlgmr.msra.gmra.mrb[0].mxu1 %vm66_vm1, %v43_v4  ;;  %v46_v10 = vld [vmem:[%s15541_s0 + $0xa0] sm:$0xff]  ;;  %v32_v13 = vld [vmem:[%s15541_s0 + $0x30] sm:$0xff]  ;;  %v33_v15 = vld [vmem:[%s15541_s0 + $0x38] sm:$0xff] }
   0x6   :  { %8239 = vmatprep.mubr.msk.f32.mxu0 %vm66_vm1, %v28_v5  ;;  %8263 = vmatprep.mubr.msk.f32.mxu1 %vm66_vm1, %v44_v6  ;;  %v48_v14 = vld [vmem:[%s15541_s0 + $0xb0] sm:$0xff]  ;;  %v49_v16 = vld [vmem:[%s15541_s0 + $0xb8] sm:$0xff]  ;;  %v34_v17 = vld [vmem:[%s15541_s0 + $0x40] sm:$0xff] }
   0x7   :  { %v50_v18 = vld [vmem:[%s15541_s0 + $0xc0] sm:$0xff]  ;;  %v35_v19 = vld [vmem:[%s15541_s0 + $0x48] sm:$0xff]  ;;  %v36_v21 = vld [vmem:[%s15541_s0 + $0x50] sm:$0xff] }
   0x8   :  { %v51_v20 = vld [vmem:[%s15541_s0 + $0xc8] sm:$0xff]  ;;  %v52_v22 = vld [vmem:[%s15541_s0 + $0xd0] sm:$0xff]  ;;  %v37_v23 = vld [vmem:[%s15541_s0 + $0x58] sm:$0xff] }
   0x9   :  { %8240 = vmatmul.mubr.msk.f32.gmra.mrb[2].mxu0 %vm66_vm1, %v29_v7  ;;  %8264 = vmatmul.mubr.msk.f32.gmra.mrb[2].mxu1 %vm66_vm1, %v45_v8  ;;  %v53_v24 = vld [vmem:[%s15541_s0 + $0xd8] sm:$0xff]  ;;  %v38_v25 = vld [vmem:[%s15541_s0 + $0x60] sm:$0xff]  ;;  %v39_v27 = vld [vmem:[%s15541_s0 + $0x68] sm:$0xff] }
   0xa   :  { %8242 = vmatprep.mubr.msk.f32.mxu0 %vm66_vm1, %v30_v9  ;;  %8266 = vmatprep.mubr.msk.f32.mxu1 %vm66_vm1, %v46_v10  ;;  %v54_v26 = vld [vmem:[%s15541_s0 + $0xe0] sm:$0xff]  ;;  %v55_v28 = vld [vmem:[%s15541_s0 + $0xe8] sm:$0xff]  ;;  %v40_v29 = vld [vmem:[%s15541_s0 + $0x70] sm:$0xff] }
   0xb   :  { %v56_v30 = vld [vmem:[%s15541_s0 + $0xf0] sm:$0xff]  ;;  %v41_v31 = vld [vmem:[%s15541_s0 + $0x78] sm:$0xff]  ;;  %v9168_v33 = vld [vmem:[%s15542_s2] ss:$0 sm:$0xff] }
   0xc   :  { %v57_v32 = vld [vmem:[%s15541_s0 + $0xf8] sm:$0xff] }
   0xd   :  { %8243 = vmatmul.mubr.msk.f32.gmra.mrb[4].mxu0 %vm66_vm1, %v31_v11  ;;  %8267 = vmatmul.mubr.msk.f32.gmra.mrb[4].mxu1 %vm66_vm1, %v47_v12 }
   0xe   :  { %8245 = vmatprep.mubr.msk.f32.mxu0 %vm66_vm1, %v32_v13  ;;  %8269 = vmatprep.mubr.msk.f32.mxu1 %vm66_vm1, %v48_v14  ;;  %v15569_v14 = vmov 683565275  }
  0x11   :  { %8246 = vmatmul.mubr.msk.f32.gmra.mrb[6].mxu0 %vm66_vm1, %v33_v15  ;;  %8270 = vmatmul.mubr.msk.f32.gmra.mrb[6].mxu1 %vm66_vm1, %v49_v16  ;;  %v15564_v16 = vmov 2475754826  }
  0x12   :  { %8248 = vmatprep.mubr.msk.f32.mxu0 %vm66_vm1, %v34_v17  ;;  %8272 = vmatprep.mubr.msk.f32.mxu1 %vm66_vm1, %v50_v18 }
  0x15   :  { %8249 = vmatmul.mubr.msk.f32.gmra.mrb[8].mxu0 %vm66_vm1, %v35_v19  ;;  %8273 = vmatmul.mubr.msk.f32.gmra.mrb[8].mxu1 %vm66_vm1, %v51_v20  ;;  %v15562_v19 = vmov 2131351028  }
  0x16   :  { %8251 = vmatprep.mubr.msk.f32.mxu0 %vm66_vm1, %v36_v21  ;;  %8275 = vmatprep.mubr.msk.f32.mxu1 %vm66_vm1, %v52_v22  ;;  %v15557_v21 = vmov 2102212464  }
  0x19   :  { %8252 = vmatmul.mubr.msk.f32.gmra.mrb[10].mxu0 %vm66_vm1, %v37_v23  ;;  %8276 = vmatmul.mubr.msk.f32.gmra.mrb[10].mxu1 %vm66_vm1, %v53_v24  ;;  %v15560_v23 = vmov 920167782  }
  0x1a   :  { %8254 = vmatprep.mubr.msk.f32.mxu0 %vm66_vm1, %v38_v25  ;;  %8278 = vmatprep.mubr.msk.f32.mxu1 %vm66_vm1, %v54_v26 }
  0x1d   :  { %8255 = vmatmul.mubr.msk.f32.gmra.mrb[12].mxu0 %vm66_vm1, %v39_v27  ;;  %8279 = vmatmul.mubr.msk.f32.gmra.mrb[12].mxu1 %vm66_vm1, %v55_v28 }
  0x1e   :  { %8257 = vmatprep.mubr.msk.f32.mxu0 %vm66_vm1, %v40_v29  ;;  %8281 = vmatprep.mubr.msk.f32.mxu1 %vm66_vm1, %v56_v30  ;;  %v15554_v30 = vmov 1326507024  }
  0x21   :  { %8258 = vmatmul.mubr.msk.f32.gmra.mrb[14].mxu0 %vm66_vm1, %v41_v31  ;;  %8282 = vmatmul.mubr.msk.f32.gmra.mrb[14].mxu1 %vm66_vm1, %v57_v32 }
  0xd8   :  { %v8238_v34 = vpop.f32.mrb[0].mxu0  ;;  %v8262_v35 = vpop.f32.mrb[0].mxu1 }
  0xd9   :  { %v9171_v36 = vadd.f32 %v8238_v34, %v9168_v33  ;;  %v9174_v37 = vadd.f32 %v8262_v35, %v9168_v33  ;;  %v233_v38 = vpop.f32.mrb[1].mxu0  ;;  %v313_v39 = vpop.f32.mrb[1].mxu1 }
  0xda   :  { %v9177_v40 = vadd.f32 %v9168_v33, %v233_v38  ;;  %v9194_v57 = vadd.f32 %v9168_v33, %v313_v39 }
  0xdb   :  { %16021 = vst [vmem:[#allocation2_spill] sm:$0xff] %v9174_v37  ;;  %v15553_v41 = vand.u32 2147483647, %v9171_v36  ;;  %v499_v42 = vand.u32 2139095040, %v9171_v36  ;;  %v15551_v43 = vand.u32 2147483647, %v9174_v37 }
  0xdc   :  { %v2163_v44 = vand.u32 2139095040, %v9174_v37  ;;  %v9183_v45 = vpop.f32.mrb[2].mxu0  ;;  %v395_v48 = vand.u32 2139095040, %v9177_v40  ;;  %v15550_v51 = vand.u32 2147483647, %v9177_v40  ;;  %v9191_v54 = vpop.f32.mrb[2].mxu1 }
  0xdd   :  { %v500_v46 = vshrl.u32 %v499_v42, 23  ;;  %v503_v47 = vand.u32 8388607, %v15553_v41  ;;  %v2167_v50 = vand.u32 8388607, %v15551_v43  ;;  %16022 = vst [vmem:[#allocation3_spill] sm:$0xff] %v9194_v57 }
  0xde   :  { %v2164_v49 = vshrl.u32 %v2163_v44, 23  ;;  %v396_v53 = vshrl.u32 %v395_v48, 23  ;;  %v9196_v60 = vpop.f32.mrb[3].mxu0  ;;  %v9198_v61 = vpop.f32.mrb[3].mxu1  ;;  %v9202_v0 = vand.u32 8388607, %v15550_v51 }
  0xdf   :  { %v7799_v52 = vadd.s32 4294967169, %v500_v46  ;;  %v504_v55 = vor.u32 8388608, %v503_v47  ;;  %v2168_v62 = vor.u32 8388608, %v2167_v50  ;;  %v2059_v5 = vand.u32 2139095040, %v9194_v57 }
  0xe0   :  { %v7863_v56 = vadd.s32 4294967169, %v2164_v49  ;;  %v7795_v59 = vadd.s32 4294967169, %v396_v53  ;;  %v9204_v1 = vpop.f32.mrb[4].mxu0  ;;  %v400_v12 = vor.u32 8388608, %v9202_v0 }
  0xe1   :  { %v506_v58 = vadd.s32 1, %v7799_v52  ;;  %v9206_v4 = vshll.u32 %v504_v55, 8  ;;  %v9211_v11 = vshll.u32 %v2168_v62, 8 }
  0xe2   :  { %v2170_v63 = vadd.s32 1, %v7863_v56  ;;  %v402_v2 = vadd.s32 1, %v7795_v59 }
  0xe3   :  { %vm507_vm2 = vcmp.gt.s32.totalorder %v506_v58, 0 }
  0xe4   :  { %v508_v3 = vsel %vm507_vm2, %v506_v58, 0  ;;  %vm2171_vm3 = vcmp.gt.s32.totalorder %v2170_v63, 0  ;;  %vm403_vm4 = vcmp.gt.s32.totalorder %v402_v2, 0 }
  0xe5   :  { %v509_v6 = vshrl.u32 %v508_v3, 5  ;;  %v510_v7 = vand.u32 31, %v508_v3  ;;  %v2172_v8 = vsel %vm2171_vm3, %v2170_v63, 0  ;;  %v9216_v18 = vsel %vm403_vm4, %v402_v2, 0 }
  0xe6   :  { %v9209_v9 = vshrl.u32 %v2172_v8, 5  ;;  %v2174_v10 = vand.u32 31, %v2172_v8 }
  0xe7   :  { %v511_v13 = vsub.s32 32, %v510_v7  ;;  %v513_v15 = vshll.u32 %v15569_v14, %v510_v7  ;;  %v516_v17 = vshll.u32 %v15564_v16, %v510_v7  ;;  %v519_v20 = vshll.u32 %v15562_v19, %v510_v7 }
  0xe8   :  { %v522_v22 = vshll.u32 %v15557_v21, %v510_v7  ;;  %v525_v24 = vshll.u32 %v15560_v23, %v510_v7  ;;  %vm528_vm5 = vcmp.lt.s32.totalorder %v509_v6, 1  ;;  %vm529_vm6 = vcmp.lt.s32.totalorder %v509_v6, 2 }
  0xe9   :  { %v514_v25 = vshrl.u32 %v15564_v16, %v511_v13  ;;  %v517_v26 = vshrl.u32 %v15562_v19, %v511_v13  ;;  %v520_v27 = vshrl.u32 %v15557_v21, %v511_v13  ;;  %v512_v28 = vshrl.u32 %v15569_v14, %v511_v13 }
  0xea   :  { %v523_v29 = vshrl.u32 %v15560_v23, %v511_v13  ;;  %v526_v31 = vshrl.u32 %v15554_v30, %v511_v13  ;;  %vm530_vm7 = vcmp.lt.s32.totalorder %v509_v6, 3  ;;  %v2175_v38 = vsub.s32 32, %v2174_v10 }
  0xeb   :  { %v515_v32 = vor.u32 %v514_v25, %v513_v15  ;;  %v518_v34 = vor.u32 %v517_v26, %v516_v17  ;;  %v521_v35 = vor.u32 %v520_v27, %v519_v20  ;;  %vm531_vm8 = vcmp.lt.s32.totalorder %v509_v6, 4 }
  0xec   :  { %v524_v39 = vor.u32 %v523_v29, %v522_v22  ;;  %v527_v42 = vor.u32 %v526_v31, %v525_v24  ;;  %v2177_v44 = vshll.u32 %v15569_v14, %v2174_v10  ;;  %v2180_v55 = vshll.u32 %v15564_v16, %v2174_v10 }
  0xed   :  { %v532_v46 = vsel %vm528_vm5, %v512_v28, %v515_v32  ;;  %v533_v47 = vsel %vm531_vm8, %v521_v35, 2102212464  ;;  %v536_v48 = vsel %vm528_vm5, %v515_v32, %v518_v34  ;;  %v540_v49 = vsel %vm528_vm5, %v518_v34, %v521_v35 }
  0xee   :  { %v534_v50 = vsel %vm530_vm7, %v518_v34, %v533_v47  ;;  %v537_v52 = vsel %vm531_vm8, %v524_v39, 920167782  ;;  %v541_v53 = vsel %vm531_vm8, %v527_v42, 1326507024  ;;  %v2176_v59 = vshrl.u32 %v15569_v14, %v2175_v38 }
  0xef   :  { %v538_v56 = vsel %vm530_vm7, %v521_v35, %v537_v52  ;;  %v542_v58 = vsel %vm530_vm7, %v524_v39, %v541_v53  ;;  %v2178_v62 = vshrl.u32 %v15564_v16, %v2175_v38  ;;  %v535_v63 = vsel %vm529_vm6, %v532_v46, %v534_v50 }
  0xf0   :  { %v539_v2 = vsel %vm529_vm6, %v536_v48, %v538_v56  ;;  %v543_v3 = vsel %vm529_vm6, %v540_v49, %v542_v58  ;;  %v2181_v7 = vshrl.u32 %v15562_v19, %v2175_v38  ;;  %v2183_v24 = vshll.u32 %v15562_v19, %v2174_v10 }
  0xf1   :  { %v9242_v8 = vmul.u32.u64.low %v9206_v4, %v543_v3  ;;  %v9243_v13 = vmul.u32.u64.high %v9206_v4, %v543_v3, %v9242_v8  ;;  %v9246_v15 = vmul.u32.u64.low %v9206_v4, %v539_v2  ;;  %v9247_v17 = vmul.u32.u64.high %v9206_v4, %v539_v2, %v9246_v15 }
  0xf2   :  { %v2179_v20 = vor.u32 %v2178_v62, %v2177_v44  ;;  %v2182_v22 = vor.u32 %v2181_v7, %v2180_v55  ;;  %v2184_v25 = vshrl.u32 %v15557_v21, %v2175_v38  ;;  %v2186_v6 = vshll.u32 %v15557_v21, %v2174_v10 }
  0xf3   :  { %v2187_v26 = vshrl.u32 %v15560_v23, %v2175_v38  ;;  %v2189_v27 = vshll.u32 %v15560_v23, %v2174_v10  ;;  %v2190_v28 = vshrl.u32 %v15554_v30, %v2175_v38  ;;  %v551_v29 = vmul.u32 %v9206_v4, %v535_v63  ;;  %v9278_v63 = vpop.f32.mrb[4].mxu1 }
  0xf4   :  { %v2185_v31 = vor.u32 %v2184_v25, %v2183_v24  ;;  %vm2192_vm9 = vcmp.lt.s32.totalorder %v9209_v9, 1  ;;  %vm2193_vm10 = vcmp.lt.s32.totalorder %v9209_v9, 2  ;;  %vm553_vm11 = vc.u32 %v9243_v13, %v9246_v15 }
  0xf5   :  { %v554_v32 = vadd.s32 1, %v9247_v17  ;;  %v2188_v34 = vor.u32 %v2187_v26, %v2186_v6  ;;  %vm2194_vm12 = vcmp.lt.s32.totalorder %v9209_v9, 3  ;;  %v2191_v35 = vor.u32 %v2190_v28, %v2189_v27 }
  0xf6   :  { %vm2195_vm13 = vcmp.lt.s32.totalorder %v9209_v9, 4  ;;  %v2196_v10 = vsel %vm2192_vm9, %v2176_v59, %v2179_v20  ;;  %v2200_v38 = vsel %vm2192_vm9, %v2179_v20, %v2182_v22  ;;  %v2204_v44 = vsel %vm2192_vm9, %v2182_v22, %v2185_v31 }
  0xf7   :  { %v555_v4 = vsel %vm553_vm11, %v554_v32, %v9247_v17  ;;  %v2197_v39 = vsel %vm2195_vm13, %v2185_v31, 2102212464  ;;  %v2201_v42 = vsel %vm2195_vm13, %v2188_v34, 920167782  ;;  %v2205_v49 = vsel %vm2195_vm13, %v2191_v35, 1326507024 }
  0xf8   :  { %v556_v46 = vadd.s32 %v555_v4, %v551_v29  ;;  %v2198_v47 = vsel %vm2194_vm12, %v2182_v22, %v2197_v39  ;;  %v2202_v48 = vsel %vm2194_vm12, %v2185_v31, %v2201_v42  ;;  %v2206_v53 = vsel %vm2194_vm12, %v2188_v34, %v2205_v49 }
  0xf9   :  { %v2199_v50 = vsel %vm2193_vm10, %v2196_v10, %v2198_v47  ;;  %v2203_v52 = vsel %vm2193_vm10, %v2200_v38, %v2202_v48  ;;  %v2060_v55 = vshrl.u32 %v2059_v5, 23  ;;  %v2207_v58 = vsel %vm2193_vm10, %v2204_v44, %v2206_v53 }
  0xfa   :  { %v557_v56 = vadd.s32 536870912, %v556_v46  ;;  %v9274_v59 = vmul.u32.u64.low %v9211_v11, %v2203_v52  ;;  %v9275_v62 = vmul.u32.u64.high %v9211_v11, %v2203_v52, %v9274_v59  ;;  %v405_v7 = vshrl.u32 %v9216_v18, 5 }
  0xfb   :  { %v9281_v2 = vmul.u32.u64.low %v9211_v11, %v2207_v58  ;;  %v9282_v3 = vmul.u32.u64.high %v9211_v11, %v2207_v58, %v9281_v2  ;;  %v406_v8 = vand.u32 31, %v9216_v18  ;;  %v2215_v9 = vmul.u32 %v9211_v11, %v2199_v50 }
  0xfc   :  { %v9286_v5 = vshrl.u32 %v557_v56, 30  ;;  %v2218_v22 = vadd.s32 1, %v9275_v62  ;;  %v9293_v24 = vshll.u32 %v400_v12, 8  ;;  %v7859_v25 = vadd.s32 4294967169, %v2060_v55 }
  0xfd   :  { %v407_v17 = vsub.s32 32, %v406_v8  ;;  %vm2217_vm14 = vc.u32 %v9282_v3, %v9274_v59  ;;  %v409_v6 = vshll.u32 %v15569_v14, %v406_v8  ;;  %vm424_vm15 = vcmp.lt.s32.totalorder %v405_v7, 1 }
  0xfe   :  { %v559_v20 = vshll.u32 %v9286_v5, 30  ;;  %v2219_v11 = vsel %vm2217_vm14, %v2218_v22, %v9275_v62  ;;  %v412_v27 = vshll.u32 %v15564_v16, %v406_v8  ;;  %v415_v29 = vshll.u32 %v15562_v19, %v406_v8 }
  0xff   :  { %v410_v18 = vshrl.u32 %v15564_v16, %v407_v17  ;;  %v413_v28 = vshrl.u32 %v15562_v19, %v407_v17  ;;  %v2220_v0 = vadd.s32 %v2219_v11, %v2215_v9  ;;  %v416_v31 = vshrl.u32 %v15557_v21, %v407_v17 }
 0x100   :  { %v9299_v26 = vsub.s32 %v556_v46, %v559_v20  ;;  %v418_v35 = vshll.u32 %v15557_v21, %v406_v8  ;;  %v419_v10 = vshrl.u32 %v15560_v23, %v407_v17  ;;  %v421_v39 = vshll.u32 %v15560_v23, %v406_v8 }
 0x101   :  { %v411_v12 = vor.u32 %v410_v18, %v409_v6  ;;  %v414_v34 = vor.u32 %v413_v28, %v412_v27  ;;  %v2221_v38 = vadd.s32 536870912, %v2220_v0  ;;  %v417_v4 = vor.u32 %v416_v31, %v415_v29  ;;  %v9329_v27 = vpop.f32.mrb[5].mxu0 }
 0x102   :  { %v562_v32 = vsub.s32 0, %v9299_v26  ;;  %v422_v42 = vshrl.u32 %v15554_v30, %v407_v17  ;;  %v420_v46 = vor.u32 %v419_v10, %v418_v35  ;;  %vm426_vm0 = vcmp.lt.s32.totalorder %v405_v7, 3 }
 0x103   :  { %vm427_vm1 = vcmp.lt.s32.totalorder %v405_v7, 4  ;;  %v9312_v47 = vshrl.u32 %v2221_v38, 30  ;;  %v432_v50 = vsel %vm424_vm15, %v411_v12, %v414_v34  ;;  %v408_v53 = vshrl.u32 %v15569_v14, %v407_v17 }
 0x104   :  { %v7800_v44 = vmin.u32 %v562_v32, %v9299_v26  ;;  %v423_v48 = vor.u32 %v422_v42, %v421_v39  ;;  %v429_v49 = vsel %vm427_vm1, %v417_v4, 2102212464  ;;  %v433_v55 = vsel %vm427_vm1, %v420_v46, 920167782 }
 0x105   :  { %16023 = vst [vmem:[#allocation4_spill] sm:$0xff] %v9312_v47  ;;  %v436_v56 = vsel %vm424_vm15, %v414_v34, %v417_v4  ;;  %v2223_v58 = vshll.u32 %v9312_v47, 30  ;;  %vm425_vm2 = vcmp.lt.s32.totalorder %v405_v7, 2  ;;  %v434_v62 = vsel %vm426_vm0, %v417_v4, %v433_v55 }
 0x106   :  { %v564_v52 = vclz %v7800_v44  ;;  %v437_v2 = vsel %vm427_vm1, %v423_v48, 1326507024  ;;  %v428_v8 = vsel %vm424_vm15, %v408_v53, %v411_v12  ;;  %v430_v9 = vsel %vm426_vm0, %v414_v34, %v429_v49 }
 0x107   :  { %v435_v20 = vsel %vm425_vm2, %v432_v50, %v434_v62  ;;  %v438_v22 = vsel %vm426_vm0, %v420_v46, %v437_v2  ;;  %v9322_v6 = vsub.s32 %v2220_v0, %v2223_v58  ;;  %v431_v32 = vsel %vm425_vm2, %v428_v8, %v430_v9 }
 0x108   :  { %v439_v18 = vsel %vm425_vm2, %v436_v56, %v438_v22  ;;  %v9325_v17 = vmul.u32.u64.low %v9293_v24, %v435_v20  ;;  %v9326_v11 = vmul.u32.u64.high %v9293_v24, %v435_v20, %v9325_v17  ;;  %v7801_v28 = vadd.s32 4294967294, %v564_v52 }
 0x109   :  { %v9332_v29 = vmul.u32.u64.low %v9293_v24, %v439_v18  ;;  %v9333_v31 = vmul.u32.u64.high %v9293_v24, %v439_v18, %v9332_v29  ;;  %v2226_v12 = vsub.s32 0, %v9322_v6  ;;  %v2066_v7 = vadd.s32 1, %v7859_v25 }
 0x10a   :  { %v15549_v0 = vand.u32 2147483647, %v9194_v57  ;;  %v450_v35 = vadd.s32 1, %v9326_v11  ;;  %vm7802_vm4 = vcmp.lt.s32.totalorder %v7801_v28, 0  ;;  %v447_v10 = vmul.u32 %v9293_v24, %v431_v32 }
 0x10b   :  { %v7864_v34 = vmin.u32 %v2226_v12, %v9322_v6  ;;  %vm2067_vm3 = vcmp.gt.s32.totalorder %v2066_v7, 0  ;;  %vm449_vm5 = vc.u32 %v9333_v31, %v9325_v17  ;;  %v567_v44 = vsel %vm7802_vm4, 0, %v7801_v28 }
 0x10c   :  { %v451_v4 = vsel %vm449_vm5, %v450_v35, %v9326_v11  ;;  %v2068_v39 = vsel %vm2067_vm3, %v2066_v7, 0  ;;  %v2063_v25 = vand.u32 8388607, %v15549_v0  ;;  %v9347_v49 = vadd.f32 %v9183_v45, %v9168_v33 }
 0x10d   :  { %v2228_v38 = vclz %v7864_v34  ;;  %v452_v42 = vadd.s32 %v451_v4, %v447_v10  ;;  %v2070_v48 = vand.u32 31, %v2068_v39  ;;  %v552_v52 = vadd.s32 %v9246_v15, %v9243_v13 }
 0x10e   :  { %16024 = vst [vmem:[#allocation5_spill] sm:$0xff] %v9347_v49  ;;  %v568_v53 = vsub.s32 32, %v567_v44  ;;  %v572_v55 = vsub.s32 4294967266, %v567_v44  ;;  %v2064_v58 = vor.u32 8388608, %v2063_v25  ;;  %v15548_v2 = vand.u32 2147483647, %v9347_v49 }
 0x10f   :  { %v7865_v46 = vadd.s32 4294967294, %v2228_v38  ;;  %v453_v50 = vadd.s32 536870912, %v452_v42  ;;  %v2071_v24 = vsub.s32 32, %v2070_v48  ;;  %v2073_v62 = vshll.u32 %v15569_v14, %v2070_v48 }
 0x110   :  { %v2076_v9 = vshll.u32 %v15564_v16, %v2070_v48  ;;  %v2069_v22 = vshrl.u32 %v2068_v39, 5  ;;  %v2079_v13 = vshll.u32 %v15562_v19, %v2070_v48  ;;  %v2082_v18 = vshll.u32 %v15557_v21, %v2070_v48 }
 0x111   :  { %v9351_v56 = vshrl.u32 %v453_v50, 30  ;;  %vm7866_vm6 = vcmp.lt.s32.totalorder %v7865_v46, 0  ;;  %v2074_v45 = vshrl.u32 %v15564_v16, %v2071_v24  ;;  %v2077_v20 = vshrl.u32 %v15562_v19, %v2071_v24 }
 0x112   :  { %v2080_v15 = vshrl.u32 %v15557_v21, %v2071_v24  ;;  %v569_v11 = vshll.u32 %v9299_v26, %v567_v44  ;;  %v570_v28 = vshrl.u32 %v552_v52, %v568_v53  ;;  %v573_v29 = vadd.s32 127, %v572_v55 }
 0x113   :  { %v455_v8 = vshll.u32 %v9351_v56, 30  ;;  %v2231_v32 = vsel %vm7866_vm6, 0, %v7865_v46  ;;  %v2075_v7 = vor.u32 %v2074_v45, %v2073_v62  ;;  %v2083_v34 = vshrl.u32 %v15560_v23, %v2071_v24 }
 0x114   :  { %v2104_v35 = vshll.u32 %v2064_v58, 8  ;;  %v2078_v38 = vor.u32 %v2077_v20, %v2076_v9  ;;  %v2085_v4 = vshll.u32 %v15560_v23, %v2070_v48  ;;  %v2086_v39 = vshrl.u32 %v15554_v30, %v2071_v24 }
 0x115   :  { %v9363_v12 = vsub.s32 %v452_v42, %v455_v8  ;;  %v2072_v25 = vshrl.u32 %v15569_v14, %v2071_v24  ;;  %v2081_v26 = vor.u32 %v2080_v15, %v2079_v13  ;;  %v2084_v44 = vor.u32 %v2083_v34, %v2082_v18 }
 0x116   :  { %vm2088_vm7 = vcmp.lt.s32.totalorder %v2069_v22, 1  ;;  %v571_v42 = vor.u32 %v570_v28, %v569_v11  ;;  %v574_v50 = vshll.u32 %v573_v29, 23  ;;  %v2087_v52 = vor.u32 %v2086_v39, %v2085_v4 }
 0x117   :  { %v458_v10 = vsub.s32 0, %v9363_v12  ;;  %v2236_v53 = vsub.s32 4294967266, %v2231_v32  ;;  %vm2090_vm8 = vcmp.lt.s32.totalorder %v2069_v22, 3  ;;  %vm2091_vm9 = vcmp.lt.s32.totalorder %v2069_v22, 4 }
 0x118   :  { %v707_v55 = vand.u32 2139095040, %v9347_v49  ;;  %vm2089_vm10 = vcmp.lt.s32.totalorder %v2069_v22, 2  ;;  %v2093_v48 = vsel %vm2091_vm9, %v2081_v26, 2102212464  ;;  %v2096_v62 = vsel %vm2088_vm7, %v2075_v7, %v2078_v38 }
 0x119   :  { %v7796_v46 = vmin.u32 %v458_v10, %v9363_v12  ;;  %v2092_v24 = vsel %vm2088_vm7, %v2072_v25, %v2075_v7  ;;  %v2094_v8 = vsel %vm2090_vm8, %v2078_v38, %v2093_v48  ;;  %v2097_v45 = vsel %vm2091_vm9, %v2084_v44, 920167782 }
 0x11a   :  { %v2100_v9 = vsel %vm2088_vm7, %v2078_v38, %v2081_v26  ;;  %v575_v20 = vor.u32 4788187, %v574_v50  ;;  %v2098_v15 = vsel %vm2090_vm8, %v2081_v26, %v2097_v45  ;;  %v2101_v18 = vsel %vm2091_vm9, %v2087_v52, 1326507024  ;;  %v9386_v38 = vpop.f32.mrb[5].mxu1 }
 0x11b   :  { %v460_v58 = vclz %v7796_v46  ;;  %v2232_v11 = vsub.s32 32, %v2231_v32  ;;  %v2237_v28 = vadd.s32 127, %v2236_v53  ;;  %v2099_v29 = vsel %vm2089_vm10, %v2096_v62, %v2098_v15 }
 0x11c   :  { %v2102_v34 = vsel %vm2090_vm8, %v2084_v44, %v2101_v18  ;;  %v2095_v10 = vsel %vm2089_vm10, %v2092_v24, %v2094_v8  ;;  %v9382_v4 = vmul.u32.u64.low %v2104_v35, %v2099_v29  ;;  %v9383_v39 = vmul.u32.u64.high %v2104_v35, %v2099_v29, %v9382_v4 }
 0x11d   :  { %v7797_v13 = vadd.s32 4294967294, %v460_v58  ;;  %v2103_v7 = vsel %vm2089_vm10, %v2100_v9, %v2102_v34  ;;  %v2216_v25 = vadd.s32 %v9274_v59, %v9282_v3  ;;  %v711_v44 = vand.u32 8388607, %v15548_v2 }
 0x11e   :  { %v9390_v26 = vmul.u32.u64.low %v2104_v35, %v2103_v7  ;;  %v9391_v50 = vmul.u32.u64.high %v2104_v35, %v2103_v7, %v9390_v26  ;;  %v576_v46 = vand.u32 2147483647, %v575_v20  ;;  %v2111_v22 = vmul.u32 %v2104_v35, %v2095_v10 }
 0x11f   :  { %vm7798_vm11 = vcmp.lt.s32.totalorder %v7797_v13, 0  ;;  %v2234_v52 = vshrl.u32 %v2216_v25, %v2232_v11  ;;  %v708_v53 = vshrl.u32 %v707_v55, 23  ;;  %v578_v58 = vcvt.s32.f32 %v571_v42 }
 0x120   :  { %v2233_v48 = vshll.u32 %v9322_v6, %v2231_v32  ;;  %v2238_v62 = vshll.u32 %v2237_v28, 23  ;;  %v2114_v24 = vadd.s32 1, %v9383_v39  ;;  %v9397_v8 = vsel %vm7798_vm11, 0, %v7797_v13 }
 0x121   :  { %vm2113_vm12 = vc.u32 %v9391_v50, %v9382_v4  ;;  %v7807_v59 = vadd.s32 4294967169, %v708_v53  ;;  %v9403_v3 = vadd.f32 %v9191_v54, %v9168_v33  ;;  %v9406_v35 = vmul.f32 %v578_v58, %v576_v46 }
 0x122   :  { %v2115_v45 = vsel %vm2113_vm12, %v2114_v24, %v9383_v39  ;;  %v9408_v42 = vor.u32 %v2234_v52, %v2233_v48  ;;  %v9410_v55 = vor.u32 4788187, %v2238_v62  ;;  %v468_v9 = vsub.s32 4294967266, %v9397_v8 }
 0x123   :  { %16025 = vst [vmem:[#allocation6_spill] sm:$0xff] %v9403_v3  ;;  %v2116_v6 = vadd.s32 %v2115_v45, %v2111_v22  ;;  %v714_v32 = vadd.s32 1, %v7807_v59  ;;  %v712_v20 = vor.u32 8388608, %v711_v44  ;;  %v2371_v15 = vand.u32 2139095040, %v9403_v3 }
 0x124   :  { %v448_v54 = vadd.s32 %v9325_v17, %v9333_v31  ;;  %v580_v11 = vxor.u32 2147483648, %v9406_v35  ;;  %v2242_v28 = vcvt.s32.f32 %v9408_v42  ;;  %v2240_v10 = vand.u32 2147483647, %v9410_v55 }
 0x125   :  { %v2117_v13 = vadd.s32 536870912, %v2116_v6  ;;  %vm715_vm13 = vcmp.gt.s32.totalorder %v714_v32, 0  ;;  %v464_v7 = vsub.s32 32, %v9397_v8  ;;  %v469_v39 = vadd.s32 127, %v468_v9 }
 0x126   :  { %v716_v18 = vsel %vm715_vm13, %v714_v32, 0  ;;  %v9422_v25 = vshll.u32 %v712_v20, 8  ;;  %v15552_v17 = vand.u32 2147483647, %v9403_v3  ;;  %v2372_v31 = vshrl.u32 %v2371_v15, 23 }
 0x127   :  { %v9418_v29 = vshrl.u32 %v2117_v13, 30  ;;  %v718_v34 = vand.u32 31, %v716_v18  ;;  %v717_v46 = vshrl.u32 %v716_v18, 5  ;;  %v470_v20 = vshll.u32 %v469_v39, 23 }
 0x128   :  { %vm15623_vm14 = vcmp.lt.s32.totalorder %v9171_v36, 0  ;;  %v7871_v0 = vadd.s32 4294967169, %v2372_v31  ;;  %v9488_v42 = vadd.f32 %v9168_v33, %v9196_v60  ;;  %vm15610_vm10 = vcmp.lt.s32.totalorder %v9174_v37, 0 }
 0x129   :  { %16026 = vst [vmem:[#allocation7_spill] sm:$0xff] %v9418_v29  ;;  %v2119_v26 = vshll.u32 %v9418_v29, 30  ;;  %v719_v44 = vsub.s32 32, %v718_v34  ;;  %v721_v52 = vshll.u32 %v15569_v14, %v718_v34  ;;  %v724_v22 = vshll.u32 %v15564_v16, %v718_v34 }
 0x12a   :  { %v727_v53 = vshll.u32 %v15562_v19, %v718_v34  ;;  %v730_v24 = vshll.u32 %v15557_v21, %v718_v34  ;;  %v733_v32 = vshll.u32 %v15560_v23, %v718_v34  ;;  %vm736_vm15 = vcmp.lt.s32.totalorder %v717_v46, 1 }
 0x12b   :  { %v9429_v58 = vsub.s32 %v2116_v6, %v2119_v26  ;;  %v722_v48 = vshrl.u32 %v15564_v16, %v719_v44  ;;  %v725_v62 = vshrl.u32 %v15562_v19, %v719_v44  ;;  %v728_v59 = vshrl.u32 %v15557_v21, %v719_v44 }
 0x12c   :  { %v731_v45 = vshrl.u32 %v15560_v23, %v719_v44  ;;  %v734_v9 = vshrl.u32 %v15554_v30, %v719_v44  ;;  %v720_v43 = vshrl.u32 %v15569_v14, %v719_v44  ;;  %v2375_v34 = vand.u32 8388607, %v15552_v17 }
 0x12d   :  { %v2122_v13 = vsub.s32 0, %v9429_v58  ;;  %v723_v15 = vor.u32 %v722_v48, %v721_v52  ;;  %v726_v6 = vor.u32 %v725_v62, %v724_v22  ;;  %v729_v18 = vor.u32 %v728_v59, %v727_v53 }
 0x12e   :  { %v732_v26 = vor.u32 %v731_v45, %v730_v24  ;;  %v735_v2 = vor.u32 %v734_v9, %v733_v32  ;;  %vm737_vm0 = vcmp.lt.s32.totalorder %v717_v46, 2  ;;  %vm738_vm1 = vcmp.lt.s32.totalorder %v717_v46, 3 }
 0x12f   :  { %v7860_v51 = vmin.u32 %v2122_v13, %v9429_v58  ;;  %vm739_vm2 = vcmp.lt.s32.totalorder %v717_v46, 4  ;;  %v744_v39 = vsel %vm736_vm15, %v723_v15, %v726_v6  ;;  %v748_v62 = vsel %vm736_vm15, %v726_v6, %v729_v18 }
 0x130   :  { %v741_v22 = vsel %vm739_vm2, %v729_v18, 2102212464  ;;  %v745_v48 = vsel %vm739_vm2, %v732_v26, 920167782  ;;  %v740_v53 = vsel %vm736_vm15, %v720_v43, %v723_v15  ;;  %v749_v59 = vsel %vm739_vm2, %v735_v2, 1326507024 }
 0x131   :  { %v2124_v52 = vclz %v7860_v51  ;;  %v746_v24 = vsel %vm738_vm1, %v729_v18, %v745_v48  ;;  %v2378_v31 = vadd.s32 1, %v7871_v0  ;;  %v742_v32 = vsel %vm738_vm1, %v726_v6, %v741_v22  ;;  %v9451_v51 = vpop.f32.mrb[6].mxu0 }
 0x132   :  { %v747_v44 = vsel %vm737_vm0, %v744_v39, %v746_v24  ;;  %v750_v9 = vsel %vm738_vm1, %v732_v26, %v749_v59  ;;  %v466_v13 = vshrl.u32 %v448_v54, %v464_v7  ;;  %v465_v0 = vshll.u32 %v9363_v12, %v9397_v8 }
 0x133   :  { %v7861_v45 = vadd.s32 4294967294, %v2124_v52  ;;  %v751_v17 = vsel %vm737_vm0, %v748_v62, %v750_v9  ;;  %v9447_v41 = vmul.u32.u64.low %v9422_v25, %v747_v44  ;;  %v9448_v30 = vmul.u32.u64.high %v9422_v25, %v747_v44, %v9447_v41 }
 0x134   :  { %v9454_v43 = vmul.u32.u64.low %v9422_v25, %v751_v17  ;;  %v9455_v2 = vmul.u32.u64.high %v9422_v25, %v751_v17, %v9454_v43  ;;  %vm2379_vm4 = vcmp.gt.s32.totalorder %v2378_v31, 0  ;;  %v743_v54 = vsel %vm737_vm0, %v740_v53, %v742_v32 }
 0x135   :  { %vm7862_vm3 = vcmp.lt.s32.totalorder %v7861_v45, 0  ;;  %v2380_v7 = vsel %vm2379_vm4, %v2378_v31, 0  ;;  %v9467_v6 = vsel %vm15623_vm14, %v580_v11, %v9406_v35  ;;  %v9473_v17 = vmul.f32 %v2242_v28, %v2240_v10 }
 0x136   :  { %v9459_v15 = vsel %vm7862_vm3, 0, %v7861_v45  ;;  %v9475_v18 = vor.u32 4788187, %v470_v20  ;;  %v2376_v12 = vor.u32 8388608, %v2375_v34  ;;  %v9477_v8 = vor.u32 %v466_v13, %v465_v0 }
 0x137   :  { %v2112_v46 = vadd.s32 %v9382_v4, %v9391_v50  ;;  %v762_v26 = vadd.s32 1, %v9448_v30  ;;  %v2382_v39 = vand.u32 31, %v2380_v7  ;;  %v2132_v35 = vsub.s32 4294967266, %v9459_v15 }
 0x138   :  { %v759_v11 = vmul.u32 %v9422_v25, %v743_v54  ;;  %vm761_vm5 = vc.u32 %v9455_v2, %v9447_v41  ;;  %v472_v50 = vand.u32 2147483647, %v9475_v18  ;;  %v9495_v25 = vshll.u32 %v2376_v12, 8 }
 0x139   :  { %v763_v55 = vsel %vm761_vm5, %v762_v26, %v9448_v30  ;;  %v2383_v28 = vsub.s32 32, %v2382_v39  ;;  %v2385_v10 = vshll.u32 %v15569_v14, %v2382_v39  ;;  %v2388_v4 = vshll.u32 %v15564_v16, %v2382_v39 }
 0x13a   :  { %v764_v20 = vadd.s32 %v763_v55, %v759_v11  ;;  %v2391_v34 = vshll.u32 %v15562_v19, %v2382_v39  ;;  %v2381_v52 = vshrl.u32 %v2380_v7, 5  ;;  %v2133_v30 = vadd.s32 127, %v2132_v35 }
 0x13b   :  { %v2386_v22 = vshrl.u32 %v15564_v16, %v2383_v28  ;;  %v2389_v60 = vshrl.u32 %v15562_v19, %v2383_v28  ;;  %v2392_v48 = vshrl.u32 %v15557_v21, %v2383_v28  ;;  %v2394_v53 = vshll.u32 %v15557_v21, %v2382_v39 }
 0x13c   :  { %v765_v62 = vadd.s32 536870912, %v764_v20  ;;  %v603_v24 = vand.u32 2139095040, %v9488_v42  ;;  %v2384_v59 = vshrl.u32 %v15569_v14, %v2383_v28  ;;  %v2395_v32 = vshrl.u32 %v15560_v23, %v2383_v28 }
 0x13d   :  { %v2387_v31 = vor.u32 %v2386_v22, %v2385_v10  ;;  %v2390_v45 = vor.u32 %v2389_v60, %v2388_v4  ;;  %v2393_v9 = vor.u32 %v2392_v48, %v2391_v34  ;;  %v2397_v13 = vshll.u32 %v15560_v23, %v2382_v39 }
 0x13e   :  { %v9504_v44 = vshrl.u32 %v765_v62, 30  ;;  %v16028_v43 = vmov 1326507024   ;;  %v2128_v54 = vsub.s32 32, %v9459_v15  ;;  %v2396_v7 = vor.u32 %v2395_v32, %v2394_v53 }
 0x13f   :  { %v2398_v0 = vshrl.u32 %v16028_v43, %v2383_v28  ;;  %vm2400_vm6 = vcmp.lt.s32.totalorder %v2381_v52, 1  ;;  %vm2402_vm7 = vcmp.lt.s32.totalorder %v2381_v52, 3  ;;  %vm2401_vm8 = vcmp.lt.s32.totalorder %v2381_v52, 2 }
 0x140   :  { %16027 = vst [vmem:[#allocation8_spill] sm:$0xff] %v9504_v44  ;;  %v767_v12 = vshll.u32 %v9504_v44, 30  ;;  %vm2403_vm9 = vcmp.lt.s32.totalorder %v2381_v52, 4  ;;  %v2134_v35 = vshll.u32 %v2133_v30, 23  ;;  %v2408_v55 = vsel %vm2400_vm6, %v2387_v31, %v2390_v45 }
 0x141   :  { %v2399_v26 = vor.u32 %v2398_v0, %v2397_v13  ;;  %v2405_v11 = vsel %vm2403_vm9, %v2393_v9, 2102212464  ;;  %v2409_v10 = vsel %vm2403_vm9, %v2396_v7, 920167782  ;;  %v2404_v34 = vsel %vm2400_vm6, %v2384_v59, %v2387_v31  ;;  %v9520_v59 = vpop.f32.mrb[6].mxu1 }
 0x142   :  { %v9510_v4 = vsub.s32 %v764_v20, %v767_v12  ;;  %v2406_v39 = vsel %vm2402_vm7, %v2390_v45, %v2405_v11  ;;  %v2410_v28 = vsel %vm2402_vm7, %v2393_v9, %v2409_v10  ;;  %v2412_v60 = vsel %vm2400_vm6, %v2390_v45, %v2393_v9 }
 0x143   :  { %v2411_v22 = vsel %vm2401_vm8, %v2408_v55, %v2410_v28  ;;  %v2413_v48 = vsel %vm2403_vm9, %v2399_v26, 1326507024  ;;  %v604_v62 = vshrl.u32 %v603_v24, 23  ;;  %v2129_v30 = vshll.u32 %v9429_v58, %v9459_v15 }
 0x144   :  { %v2130_v53 = vshrl.u32 %v2112_v46, %v2128_v54  ;;  %v770_v32 = vsub.s32 0, %v9510_v4  ;;  %v2414_v20 = vsel %vm2402_vm7, %v2396_v7, %v2413_v48  ;;  %v2407_v31 = vsel %vm2401_vm8, %v2404_v34, %v2406_v39 }
 0x145   :  { %v2415_v13 = vsel %vm2401_vm8, %v2412_v60, %v2414_v20  ;;  %v9525_v45 = vmul.u32.u64.low %v9495_v25, %v2411_v22  ;;  %v9526_v9 = vmul.u32.u64.high %v9495_v25, %v2411_v22, %v9525_v45  ;;  %v2135_v24 = vor.u32 4788187, %v2134_v35 }
 0x146   :  { %v7808_v0 = vmin.u32 %v770_v32, %v9510_v4  ;;  %v9531_v58 = vmul.u32.u64.low %v9495_v25, %v2415_v13  ;;  %v9532_v15 = vmul.u32.u64.high %v9495_v25, %v2415_v13, %v9531_v58  ;;  %v16029_v46 = vand.u32 2147483647, %v9171_v36 }
 0x147   :  { %v15556_v52 = vand.u32 2147483647, %v9488_v42  ;;  %v7803_v7 = vadd.s32 4294967169, %v604_v62  ;;  %v9543_v12 = vadd.f32 %v9168_v33, %v9198_v61  ;;  %v474_v26 = vcvt.s32.f32 %v9477_v8 }
 0x148   :  { %vm9536_vm11 = vcmp.le.f32.partialorder %v16029_v46, 0.7853982  ;;  %v2131_v35 = vor.u32 %v2130_v53, %v2129_v30  ;;  %v772_v11 = vclz %v7808_v0  ;;  %v2423_v55 = vmul.u32 %v9495_v25, %v2407_v31 }
 0x149   :  { %16032 = vst [vmem:[#allocation9_spill] sm:$0xff] %v9543_v12  ;;  %v9551_v10 = vsel %vm9536_vm11, %v9171_v36, %v9467_v6  ;;  %v2244_v34 = vxor.u32 2147483648, %v9473_v17  ;;  %v2426_v39 = vadd.s32 1, %v9526_v9  ;;  %v610_v28 = vadd.s32 1, %v7803_v7 }
 0x14a   :  { %v9557_v33 = vmul.f32 %v474_v26, %v472_v50  ;;  %v2136_v61 = vand.u32 2147483647, %v2135_v24  ;;  %v7809_v8 = vadd.s32 4294967294, %v772_v11  ;;  %vm2425_vm12 = vc.u32 %v9532_v15, %v9525_v45 }
 0x14b   :  { %v2427_v25 = vsel %vm2425_vm12, %v2426_v39, %v9526_v9  ;;  %v607_v6 = vand.u32 8388607, %v15556_v52  ;;  %vm611_vm13 = vcmp.gt.s32.totalorder %v610_v28, 0  ;;  %v2267_v22 = vand.u32 2139095040, %v9543_v12 }
 0x14c   :  { %v2138_v60 = vcvt.s32.f32 %v2131_v35  ;;  %vm7810_vm15 = vcmp.lt.s32.totalorder %v7809_v8, 0  ;;  %v2428_v48 = vadd.s32 %v2427_v25, %v2423_v55  ;;  %v612_v62 = vsel %vm611_vm13, %v610_v28, 0 }
 0x14d   :  { %8724 = vcosq.f32 %v9551_v10  ;;  %v9569_v18 = vsel %vm15610_vm10, %v2244_v34, %v9473_v17  ;;  %v9571_v50 = vsel %vm7810_vm15, 0, %v7809_v8  ;;  %v614_v30 = vand.u32 31, %v612_v62 }
 0x14e   :  { %v476_v53 = vxor.u32 2147483648, %v9557_v33  ;;  %v9574_v32 = vmul.f32 %v2138_v60, %v2136_v61  ;;  %v760_v20 = vadd.s32 %v9447_v41, %v9455_v2  ;;  %v2429_v31 = vadd.s32 536870912, %v2428_v48 }
 0x14f   :  { %v608_v13 = vor.u32 8388608, %v607_v6  ;;  %v615_v9 = vsub.s32 32, %v614_v30  ;;  %v15559_v24 = vand.u32 2147483647, %v9543_v12  ;;  %v2268_v0 = vshrl.u32 %v2267_v22, 23 }
 0x150   :  { %v780_v58 = vsub.s32 4294967266, %v9571_v50  ;;  %v9580_v17 = vshrl.u32 %v2429_v31, 30  ;;  %v617_v46 = vshll.u32 %v15569_v14, %v614_v30  ;;  %v620_v7 = vshll.u32 %v15564_v16, %v614_v30 }
 0x151   :  { %v618_v26 = vshrl.u32 %v15564_v16, %v615_v9  ;;  %v621_v35 = vshrl.u32 %v15562_v19, %v615_v9  ;;  %v623_v41 = vshll.u32 %v15562_v19, %v614_v30  ;;  %v624_v2 = vshrl.u32 %v15557_v21, %v615_v9  ;;  %v9619_v16 = vpop.f32.mrb[7].mxu0 }
 0x152   :  { %16033 = vst [vmem:[#allocation10_spill] sm:$0xff] %v9580_v17  ;;  %v2431_v11 = vshll.u32 %v9580_v17, 30  ;;  %v613_v55 = vshrl.u32 %v612_v62, 5  ;;  %v626_v34 = vshll.u32 %v15557_v21, %v614_v30  ;;  %v627_v39 = vshrl.u32 %v15560_v23, %v615_v9 }
 0x153   :  { %v619_v28 = vor.u32 %v618_v26, %v617_v46  ;;  %v622_v61 = vor.u32 %v621_v35, %v620_v7  ;;  %v625_v8 = vor.u32 %v624_v2, %v623_v41  ;;  %v9591_v25 = vshll.u32 %v608_v13, 8 }
 0x154   :  { %v16034_v6 = vand.u32 2147483647, %v9174_v37  ;;  %v16035_v22 = vmov 0  ;;  %v9599_v60 = vsub.s32 %v2428_v48, %v2431_v11  ;;  %v628_v31 = vor.u32 %v627_v39, %v626_v34 }
 0x155   :  { %v7867_v52 = vadd.s32 4294967169, %v2268_v0  ;;  %v2271_v62 = vand.u32 8388607, %v15559_v24  ;;  %v776_v21 = vsub.s32 32, %v9571_v50  ;;  %v781_v46 = vadd.s32 127, %v780_v58 }
 0x156   :  { %vm9595_vm0 = vcmp.le.f32.partialorder %v16034_v6, 0.7853982  ;;  %v629_v7 = vshll.u32 %v15560_v23, %v614_v30  ;;  %v630_v13 = vshrl.u32 %v16028_v43, %v615_v9  ;;  %vm15622_vm1 = vcmp.lt.s32.totalorder %v9177_v40, 0 }
 0x157   :  { %v16036_v22 = vsel %vm9595_vm0, 4294967295, %v16035_v22  ;;  %v2434_v26 = vsub.s32 0, %v9599_v60  ;;  %vm632_vm2 = vcmp.lt.s32.totalorder %v613_v55, 1  ;;  %vm634_vm3 = vcmp.lt.s32.totalorder %v613_v55, 3  ;;  %v9608_v48 = vpop.eup %8724 }
 0x158   :  { %16037 = vst [vmem:[#allocation11_spill] sm:$0xff] %v16036_v22  ;;  %vm635_vm4 = vcmp.lt.s32.totalorder %v613_v55, 4  ;;  %16038 = vst [vmem:[#allocation12_spill] sm:$0xff] %v9608_v48  ;;  %v631_v0 = vor.u32 %v630_v13, %v629_v7  ;;  %v640_v41 = vsel %vm632_vm2, %v619_v28, %v622_v61  ;;  %v616_v30 = vshrl.u32 %v15569_v14, %v615_v9 }
 0x159   :  { %v637_v35 = vsel %vm635_vm4, %v625_v8, 2102212464  ;;  %v641_v2 = vsel %vm635_vm4, %v628_v31, 920167782  ;;  %v7872_v58 = vmin.u32 %v2434_v26, %v9599_v60  ;;  %vm633_vm5 = vcmp.lt.s32.totalorder %v613_v55, 2 }
 0x15a   :  { %v642_v11 = vsel %vm634_vm3, %v625_v8, %v641_v2  ;;  %v782_v34 = vshll.u32 %v781_v46, 23  ;;  %v644_v6 = vsel %vm632_vm2, %v622_v61, %v625_v8  ;;  %v645_v24 = vsel %vm635_vm4, %v631_v0, 1326507024 }
 0x15b   :  { %v643_v39 = vsel %vm633_vm5, %v640_v41, %v642_v11  ;;  %v2436_v23 = vclz %v7872_v58  ;;  %v636_v7 = vsel %vm632_vm2, %v616_v30, %v619_v28  ;;  %v638_v13 = vsel %vm634_vm3, %v622_v61, %v637_v35  ;;  %v9661_v41 = vld [vmem:[%s15542_s2] ss:$0 sm:$0xff] }
 0x15c   :  { %v646_v19 = vsel %vm634_vm3, %v628_v31, %v645_v24  ;;  %v9623_v26 = vmul.u32.u64.low %v9591_v25, %v643_v39  ;;  %v9624_v2 = vmul.u32.u64.high %v9591_v25, %v643_v39, %v9623_v26  ;;  %v2274_v46 = vadd.s32 1, %v7867_v52 }
 0x15d   :  { %v647_v9 = vsel %vm633_vm5, %v644_v6, %v646_v19  ;;  %8726 = vsinq.f32 %v9551_v10  ;;  %v7873_v8 = vadd.s32 4294967294, %v2436_v23  ;;  %v9636_v24 = vsel %vm9595_vm0, %v9174_v37, %v9569_v18 }
 0x15e   :  { %v9629_v0 = vmul.u32.u64.low %v9591_v25, %v647_v9  ;;  %v9630_v28 = vmul.u32.u64.high %v9591_v25, %v647_v9, %v9629_v0  ;;  %v778_v19 = vshrl.u32 %v760_v20, %v776_v21  ;;  %v2272_v61 = vor.u32 8388608, %v2271_v62 }
 0x15f   :  { %vm2275_vm6 = vcmp.gt.s32.totalorder %v2274_v46, 0  ;;  %v9638_v31 = vor.u32 4788187, %v782_v34  ;;  %vm7874_vm7 = vcmp.lt.s32.totalorder %v7873_v8, 0  ;;  %v639_v52 = vsel %vm633_vm5, %v636_v7, %v638_v13 }
 0x160   :  { %v2276_v10 = vsel %vm2275_vm6, %v2274_v46, 0  ;;  %v9646_v23 = vsel %vm15622_vm1, %v476_v53, %v9557_v33  ;;  %v9649_v18 = vsel %vm7874_vm7, 0, %v7873_v8  ;;  %v658_v21 = vadd.s32 1, %v9624_v2 }
 0x161   :  { %v777_v20 = vshll.u32 %v9510_v4, %v9571_v50  ;;  %v2424_v55 = vadd.s32 %v9525_v45, %v9532_v15  ;;  %v9656_v62 = vshrl.u32 %v2276_v10, 5  ;;  %v9665_v33 = vadd.f32 %v9661_v41, %v9204_v1 }
 0x162   :  { %v2444_v53 = vsub.s32 4294967266, %v9649_v18  ;;  %v655_v58 = vmul.u32 %v9591_v25, %v639_v52  ;;  %vm657_vm8 = vc.u32 %v9630_v28, %v9623_v26  ;;  %v2278_v4 = vand.u32 31, %v2276_v10 }
 0x163   :  { %16039 = vst [vmem:[#allocation13_spill] sm:$0xff] %v9665_v33  ;;  %v9671_v45 = vor.u32 %v778_v19, %v777_v20  ;;  %v659_v50 = vsel %vm657_vm8, %v658_v21, %v9624_v2  ;;  %v9675_v30 = vshll.u32 %v2272_v61, 8  ;;  %v16040_v39 = vmov 2475754826  }
 0x164   :  { %v660_v11 = vadd.s32 %v659_v50, %v655_v58  ;;  %v2279_v34 = vsub.s32 32, %v2278_v4  ;;  %v2281_v1 = vshll.u32 %v15569_v14, %v2278_v4  ;;  %v2284_v6 = vshll.u32 %v16040_v39, %v2278_v4 }
 0x165   :  { %v2440_v25 = vsub.s32 32, %v9649_v18  ;;  %v16041_v7 = vmov 2131351028   ;;  %v16042_v9 = vmov 2102212464   ;;  %vm2296_vm9 = vcmp.lt.s32.totalorder %v9656_v62, 1 }
 0x166   :  { %v2287_v13 = vshll.u32 %v16041_v7, %v2278_v4  ;;  %v2290_v46 = vshll.u32 %v16042_v9, %v2278_v4  ;;  %v2445_v8 = vadd.s32 127, %v2444_v53  ;;  %v661_v0 = vadd.s32 536870912, %v660_v11 }
 0x167   :  { %v2282_v2 = vshrl.u32 %v16040_v39, %v2279_v34  ;;  %v2285_v19 = vshrl.u32 %v16041_v7, %v2279_v34  ;;  %v9685_v61 = vpop.eup %8726  ;;  %v2280_v52 = vshrl.u32 %v15569_v14, %v2279_v34  ;;  %v2288_v10 = vshrl.u32 %v16042_v9, %v2279_v34 }
 0x168   :  { %16043 = vst [vmem:[#allocation14_spill] sm:$0xff] %v9685_v61  ;;  %v16044_v21 = vmov 920167782   ;;  %vm2297_vm12 = vcmp.lt.s32.totalorder %v9656_v62, 2  ;;  %v9691_v58 = vshrl.u32 %v661_v0, 30  ;;  %v16047_v17 = vmov 0 }
 0x169   :  { %v2291_v20 = vshrl.u32 %v16044_v21, %v2279_v34  ;;  %v2283_v50 = vor.u32 %v2282_v2, %v2281_v1  ;;  %v2286_v15 = vor.u32 %v2285_v19, %v2284_v6  ;;  %v2293_v53 = vshll.u32 %v16044_v21, %v2278_v4 }
 0x16a   :  { %16045 = vst [vmem:[#allocation15_spill] sm:$0xff] %v9691_v58  ;;  %v16046_v35 = vand.u32 2147483647, %v9177_v40  ;;  %v2289_v22 = vor.u32 %v2288_v10, %v2287_v13  ;;  %v2294_v37 = vshrl.u32 %v16028_v43, %v2279_v34  ;;  %vm2298_vm15 = vcmp.lt.s32.totalorder %v9656_v62, 3 }
 0x16b   :  { %v2292_v14 = vor.u32 %v2291_v20, %v2290_v46  ;;  %vm15612_vm2 = vcmp.lt.s32.totalorder %v9194_v57, 0  ;;  %v2446_v0 = vshll.u32 %v2445_v8, 23  ;;  %v663_v1 = vshll.u32 %v9691_v58, 30 }
 0x16c   :  { %vm9696_vm13 = vcmp.le.f32.partialorder %v16046_v35, 0.7853982  ;;  %vm2299_vm3 = vcmp.lt.s32.totalorder %v9656_v62, 4  ;;  %v2304_v4 = vsel %vm2296_vm9, %v2283_v50, %v2286_v15  ;;  %v2295_v35 = vor.u32 %v2294_v37, %v2293_v53 }
 0x16d   :  { %v16048_v17 = vsel %vm9696_vm13, 4294967295, %v16047_v17  ;;  %v2300_v6 = vsel %vm2296_vm9, %v2280_v52, %v2283_v50  ;;  %v2301_v13 = vsel %vm2299_vm3, %v2289_v22, 2102212464  ;;  %v2305_v46 = vsel %vm2299_vm3, %v2292_v14, 920167782 }
 0x16e   :  { %16049 = vst [vmem:[#allocation16_spill] sm:$0xff] %v16048_v17  ;;  %v9709_v2 = vsub.s32 %v660_v11, %v663_v1  ;;  %v2302_v34 = vsel %vm2298_vm15, %v2286_v15, %v2301_v13  ;;  %v2306_v8 = vsel %vm2298_vm15, %v2289_v22, %v2305_v46  ;;  %v2308_v19 = vsel %vm2296_vm9, %v2286_v15, %v2289_v22  ;;  %v9735_v13 = vpop.f32.mrb[7].mxu1 }
 0x16f   :  { %v16050_v10 = vand.u32 2147483647, %v9194_v57  ;;  %v16051_v37 = vmov 0  ;;  %v2441_v52 = vshll.u32 %v9599_v60, %v9649_v18  ;;  %v2442_v11 = vshrl.u32 %v2424_v55, %v2440_v25 }
 0x170   :  { %v2307_v20 = vsel %vm2297_vm12, %v2304_v4, %v2306_v8  ;;  %v2309_v50 = vsel %vm2299_vm3, %v2295_v35, 1326507024  ;;  %v666_v53 = vsub.s32 0, %v9709_v2  ;;  %v2447_v46 = vor.u32 4788187, %v2446_v0 }
 0x171   :  { %vm9719_vm4 = vcmp.le.f32.partialorder %v16050_v10, 0.7853982  ;;  %v2310_v1 = vsel %vm2298_vm15, %v2292_v14, %v2309_v50  ;;  %v9731_v22 = vmul.u32.u64.low %v9675_v30, %v2307_v20  ;;  %v9732_v15 = vmul.u32.u64.high %v9675_v30, %v2307_v20, %v9731_v22 }
 0x172   :  { %v16052_v37 = vsel %vm9719_vm4, 4294967295, %v16051_v37  ;;  %v2303_v60 = vsel %vm2297_vm12, %v2300_v6, %v2302_v34  ;;  %v2311_v18 = vsel %vm2297_vm12, %v2308_v19, %v2310_v1  ;;  %v915_v55 = vand.u32 2139095040, %v9665_v33 }
 0x173   :  { %16053 = vst [vmem:[#allocation17_spill] sm:$0xff] %v16052_v37  ;;  %8728 = vcosq.f32 %v9636_v24  ;;  %v7804_v14 = vmin.u32 %v666_v53, %v9709_v2  ;;  %v9745_v25 = vmul.u32.u64.low %v9675_v30, %v2311_v18  ;;  %v9746_v4 = vmul.u32.u64.high %v9675_v30, %v2311_v18, %v9745_v25 }
 0x174   :  { %v786_v35 = vcvt.s32.f32 %v9671_v45  ;;  %v2443_v8 = vor.u32 %v2442_v11, %v2441_v52  ;;  %v916_v0 = vshrl.u32 %v915_v55, 23  ;;  %v9751_v6 = vadd.f32 %v9661_v41, %v9278_v63 }
 0x175   :  { %v480_v62 = vsel %vm9696_vm13, %v9177_v40, %v9646_v23  ;;  %v668_v34 = vclz %v7804_v14  ;;  %v2319_v19 = vmul.u32 %v9675_v30, %v2303_v60  ;;  %v2322_v10 = vadd.s32 1, %v9732_v15 }
 0x176   :  { %16054 = vst [vmem:[#allocation18_spill] sm:$0xff] %v9751_v6  ;;  %v16055_v20 = vxor.u32 2147483648, %v9574_v32  ;;  %v16056_v52 = vand.u32 2147483647, %v9638_v31  ;;  %v2448_v11 = vand.u32 2147483647, %v2447_v46  ;;  %8730 = vsinq.f32 %v9636_v24 }
 0x177   :  { %v7815_v50 = vadd.s32 4294967169, %v916_v0  ;;  %v7805_v53 = vadd.s32 4294967294, %v668_v34  ;;  %vm2321_vm5 = vc.u32 %v9746_v4, %v9731_v22  ;;  %v15573_v23 = vand.u32 2147483647, %v9665_v33 }
 0x178   :  { %v2141_v45 = vsel %vm15612_vm2, %v16055_v20, %v9574_v32  ;;  %v787_v63 = vmul.f32 %v786_v35, %v16056_v52  ;;  %v2450_v30 = vcvt.s32.f32 %v2443_v8  ;;  %v2323_v1 = vsel %vm2321_vm5, %v2322_v10, %v9732_v15 }
 0x179   :  { %v922_v60 = vadd.s32 1, %v7815_v50  ;;  %v2579_v18 = vand.u32 2139095040, %v9751_v6  ;;  %8732 = vcosq.f32 %v480_v62  ;;  %v2144_v32 = vsel %vm9719_vm4, %v9194_v57, %v2141_v45 }
 0x17a   :  { %vm7806_vm6 = vcmp.lt.s32.totalorder %v7805_v53, 0  ;;  %v2324_v31 = vadd.s32 %v2323_v1, %v2319_v19  ;;  %v788_v24 = vxor.u32 2147483648, %v787_v63  ;;  %v9775_v46 = vmul.f32 %v2450_v30, %v2448_v11 }
 0x17b   :  { %v9777_v55 = vsel %vm7806_vm6, 0, %v7805_v53  ;;  %vm923_vm7 = vcmp.gt.s32.totalorder %v922_v60, 0  ;;  %8734 = vsinq.f32 %v480_v62  ;;  %v919_v15 = vand.u32 8388607, %v15573_v23 }
 0x17c   :  { %v2325_v14 = vadd.s32 536870912, %v2324_v31  ;;  %8736 = vcosq.f32 %v2144_v32  ;;  %v676_v25 = vsub.s32 4294967266, %v9777_v55  ;;  %v924_v35 = vsel %vm923_vm7, %v922_v60, 0 }
 0x17d   :  { %v2580_v8 = vshrl.u32 %v2579_v18, 23  ;;  %v9782_v0 = vpop.eup %8728  ;;  %8738 = vsinq.f32 %v2144_v32  ;;  %vm15613_vm8 = vcmp.lt.s32.totalorder %v9347_v49, 0  ;;  %v656_v10 = vadd.s32 %v9623_v26, %v9630_v28 }
 0x17e   :  { %16057 = vst [vmem:[#allocation19_spill] sm:$0xff] %v9782_v0  ;;  %v9785_v34 = vshrl.u32 %v2325_v14, 30  ;;  %v9789_v19 = vsel %vm15613_vm8, %v788_v24, %v787_v63  ;;  %v926_v20 = vand.u32 31, %v924_v35  ;;  %v920_v52 = vor.u32 8388608, %v919_v15 }
 0x17f   :  { %v9798_v50 = vadd.f32 %v9661_v41, %v9329_v27  ;;  %v672_v53 = vsub.s32 32, %v9777_v55  ;;  %v677_v30 = vadd.s32 127, %v676_v25  ;;  %v7879_v1 = vadd.s32 4294967169, %v2580_v8 }
 0x180   :  { %16058 = vst [vmem:[#allocation20_spill] sm:$0xff] %v9785_v34  ;;  %v2327_v45 = vshll.u32 %v9785_v34, 30  ;;  %v927_v63 = vsub.s32 32, %v926_v20  ;;  %v9801_v60 = vpop.eup %8730  ;;  %v9805_v26 = vshrl.u32 %v924_v35, 5  ;;  %v16061_v28 = vmov 683565275  }
 0x181   :  { %16059 = vst [vmem:[#allocation21_spill] sm:$0xff] %v9798_v50  ;;  %16060 = vst [vmem:[#allocation22_spill] sm:$0xff] %v9801_v60  ;;  %v929_v32 = vshll.u32 %v16061_v28, %v926_v20  ;;  %v932_v24 = vshll.u32 %v16040_v39, %v926_v20  ;;  %v935_v15 = vshll.u32 %v16041_v7, %v926_v20  ;;  %v16063_v8 = vand.u32 2147483647, %v9347_v49 }
 0x182   :  { %v9803_v18 = vsub.s32 %v2324_v31, %v2327_v45  ;;  %v930_v14 = vshrl.u32 %v16040_v39, %v927_v63  ;;  %v933_v27 = vshrl.u32 %v16041_v7, %v927_v63  ;;  %v936_v25 = vshrl.u32 %v16042_v9, %v927_v63 }
 0x183   :  { %v9813_v23 = vpop.eup %8732  ;;  %vm9817_vm9 = vcmp.le.f32.partialorder %v16063_v8, 0.7853982  ;;  %v16064_v31 = vmov 0  ;;  %v938_v45 = vshll.u32 %v16042_v9, %v926_v20  ;;  %v939_v62 = vshrl.u32 %v16044_v21, %v927_v63 }
 0x184   :  { %16062 = vst [vmem:[#allocation23_spill] sm:$0xff] %v9813_v23  ;;  %v16065_v31 = vsel %vm9817_vm9, 4294967295, %v16064_v31  ;;  %v2330_v35 = vsub.s32 0, %v9803_v18  ;;  %v941_v11 = vshll.u32 %v16044_v21, %v926_v20  ;;  %vm15594_vm12 = vcmp.lt.s32.totalorder %v9403_v3, 0 }
 0x185   :  { %16066 = vst [vmem:[#allocation24_spill] sm:$0xff] %v16065_v31  ;;  %v931_v0 = vor.u32 %v930_v14, %v929_v32  ;;  %v934_v60 = vor.u32 %v933_v27, %v932_v24  ;;  %v937_v34 = vor.u32 %v936_v25, %v935_v15  ;;  %v942_v47 = vshrl.u32 %v16028_v43, %v927_v63  ;;  %v9827_v37 = vpop.eup %8734 }
 0x186   :  { %v678_v8 = vshll.u32 %v677_v30, 23  ;;  %v7868_v57 = vmin.u32 %v2330_v35, %v9803_v18  ;;  %v940_v29 = vor.u32 %v939_v62, %v938_v45  ;;  %v16067_v44 = vand.u32 2147483647, %v9751_v6  ;;  %v9832_v48 = vpop.eup %8736 }
 0x187   :  { %16068 = vst [vmem:[#allocation25_spill] sm:$0xff] %v9832_v48  ;;  %v674_v61 = vshrl.u32 %v656_v10, %v672_v53  ;;  %v943_v20 = vor.u32 %v942_v47, %v941_v11  ;;  %v960_v23 = vshll.u32 %v920_v52, 8  ;;  %v2586_v17 = vadd.s32 1, %v7879_v1  ;;  %v9834_v32 = vpop.eup %8738  ;;  %v9847_v53 = vpop.f32.mrb[8].mxu0 }
 0x188   :  { %v2583_v58 = vand.u32 8388607, %v16067_v44  ;;  %16069 = vst [vmem:[#allocation26_spill] sm:$0xff] %v9834_v32  ;;  %v2332_v24 = vclz %v7868_v57  ;;  %vm944_vm15 = vcmp.lt.s32.totalorder %v9805_v26, 1  ;;  %vm946_vm3 = vcmp.lt.s32.totalorder %v9805_v26, 3 }
 0x189   :  { %vm947_vm5 = vcmp.lt.s32.totalorder %v9805_v26, 4  ;;  %v952_v62 = vsel %vm944_vm15, %v931_v0, %v934_v60  ;;  %v956_v44 = vsel %vm944_vm15, %v934_v60, %v937_v34  ;;  %v673_v47 = vshll.u32 %v9709_v2, %v9777_v55 }
 0x18a   :  { %v953_v30 = vsel %vm947_vm5, %v940_v29, 920167782  ;;  %v957_v10 = vsel %vm947_vm5, %v943_v20, 1326507024  ;;  %v679_v52 = vor.u32 4788187, %v678_v8  ;;  %v928_v15 = vshrl.u32 %v16061_v28, %v927_v63 }
 0x18b   :  { %v954_v57 = vsel %vm946_vm3, %v937_v34, %v953_v30  ;;  %v2584_v11 = vor.u32 8388608, %v2583_v58  ;;  %v7869_v1 = vadd.s32 4294967294, %v2332_v24  ;;  %vm945_vm6 = vcmp.lt.s32.totalorder %v9805_v26, 2 }
 0x18c   :  { %v949_v14 = vsel %vm947_vm5, %v937_v34, 2102212464  ;;  %v958_v27 = vsel %vm946_vm3, %v940_v29, %v957_v10  ;;  %v955_v25 = vsel %vm945_vm6, %v952_v62, %v954_v57  ;;  %vm2587_vm7 = vcmp.gt.s32.totalorder %v2586_v17, 0 }
 0x18d   :  { %v959_v2 = vsel %vm945_vm6, %v956_v44, %v958_v27  ;;  %v9861_v58 = vsel %vm9817_vm9, %v9347_v49, %v9789_v19  ;;  %v675_v55 = vor.u32 %v674_v61, %v673_v47  ;;  %v16070_v29 = vxor.u32 2147483648, %v9775_v46 }
 0x18e   :  { %v9863_v34 = vmul.u32.u64.low %v960_v23, %v959_v2  ;;  %v9864_v35 = vmul.u32.u64.high %v960_v23, %v959_v2, %v9863_v34  ;;  %v948_v45 = vsel %vm944_vm15, %v928_v15, %v931_v0  ;;  %v950_v8 = vsel %vm946_vm3, %v934_v60, %v949_v14 }
 0x18f   :  { %v9871_v63 = vsel %vm15594_vm12, %v16070_v29, %v9775_v46  ;;  %v2588_v20 = vsel %vm2587_vm7, %v2586_v17, 0  ;;  %vm7870_vm5 = vcmp.lt.s32.totalorder %v7869_v1, 0  ;;  %v680_v62 = vand.u32 2147483647, %v679_v52 }
 0x190   :  { %v9877_v19 = vmul.u32.u64.low %v960_v23, %v955_v25  ;;  %v9878_v61 = vmul.u32.u64.high %v960_v23, %v955_v25, %v9877_v19  ;;  %v2590_v24 = vand.u32 31, %v2588_v20  ;;  %v2320_v30 = vadd.s32 %v9731_v22, %v9746_v4 }
 0x191   :  { %v9883_v44 = vshll.u32 %v2584_v11, 8  ;;  %v811_v46 = vand.u32 2139095040, %v9798_v50  ;;  %v682_v10 = vcvt.s32.f32 %v675_v55  ;;  %v951_v0 = vsel %vm945_vm6, %v948_v45, %v950_v8 }
 0x192   :  { %v2591_v60 = vsub.s32 32, %v2590_v24  ;;  %v2593_v17 = vshll.u32 %v16061_v28, %v2590_v24  ;;  %v9889_v47 = vsel %vm7870_vm5, 0, %v7869_v1  ;;  %vm969_vm15 = vc.u32 %v9864_v35, %v9877_v19 }
 0x193   :  { %v2589_v52 = vshrl.u32 %v2588_v20, 5  ;;  %v2596_v57 = vshll.u32 %v16040_v39, %v2590_v24  ;;  %v970_v22 = vadd.s32 1, %v9878_v61  ;;  %v2599_v26 = vshll.u32 %v16041_v7, %v2590_v24 }
 0x194   :  { %v2594_v4 = vshrl.u32 %v16040_v39, %v2591_v60  ;;  %v2597_v11 = vshrl.u32 %v16041_v7, %v2591_v60  ;;  %v683_v14 = vmul.f32 %v682_v10, %v680_v62  ;;  %v967_v27 = vmul.u32 %v960_v23, %v951_v0 }
 0x195   :  { %v2600_v15 = vshrl.u32 %v16042_v9, %v2591_v60  ;;  %v2602_v1 = vshll.u32 %v16042_v9, %v2590_v24  ;;  %v971_v25 = vsel %vm969_vm15, %v970_v22, %v9878_v61  ;;  %v2603_v34 = vshrl.u32 %v16044_v21, %v2591_v60 }
 0x196   :  { %v2595_v2 = vor.u32 %v2594_v4, %v2593_v17  ;;  %v2598_v55 = vor.u32 %v2597_v11, %v2596_v57  ;;  %v2336_v29 = vsub.s32 32, %v9889_v47  ;;  %v972_v45 = vadd.s32 %v971_v25, %v967_v27 }
 0x197   :  { %v2592_v8 = vshrl.u32 %v16061_v28, %v2591_v60  ;;  %v2605_v20 = vshll.u32 %v16044_v21, %v2590_v24  ;;  %v2601_v48 = vor.u32 %v2600_v15, %v2599_v26  ;;  %v2604_v62 = vor.u32 %v2603_v34, %v2602_v1 }
 0x198   :  { %v2606_v23 = vshrl.u32 %v16028_v43, %v2591_v60  ;;  %vm2608_vm3 = vcmp.lt.s32.totalorder %v2589_v52, 1  ;;  %v16071_v10 = vand.u32 2147483647, %v9403_v3  ;;  %v16072_v61 = vmov 0 }
 0x199   :  { %v2340_v0 = vsub.s32 4294967266, %v9889_v47  ;;  %v973_v17 = vadd.s32 536870912, %v972_v45  ;;  %vm2610_vm7 = vcmp.lt.s32.totalorder %v2589_v52, 3  ;;  %vm2611_vm5 = vcmp.lt.s32.totalorder %v2589_v52, 4 }
 0x19a   :  { %vm9908_vm6 = vcmp.le.f32.partialorder %v16071_v10, 0.7853982  ;;  %vm15621_vm15 = vcmp.lt.s32.totalorder %v9488_v42, 0  ;;  %v2607_v57 = vor.u32 %v2606_v23, %v2605_v20  ;;  %vm2609_vm12 = vcmp.lt.s32.totalorder %v2589_v52, 2 }
 0x19b   :  { %v16073_v61 = vsel %vm9908_vm6, 4294967295, %v16072_v61  ;;  %v2613_v24 = vsel %vm2611_vm5, %v2601_v48, 2102212464  ;;  %v2616_v22 = vsel %vm2608_vm3, %v2595_v2, %v2598_v55  ;;  %v9915_v60 = vshrl.u32 %v973_v17, 30 }
 0x19c   :  { %16074 = vst [vmem:[#allocation27_spill] sm:$0xff] %v16073_v61  ;;  %v2612_v4 = vsel %vm2608_vm3, %v2592_v8, %v2595_v2  ;;  %v2614_v11 = vsel %vm2610_vm7, %v2598_v55, %v2613_v24  ;;  %v2617_v26 = vsel %vm2611_vm5, %v2604_v62, 920167782  ;;  %v2620_v15 = vsel %vm2608_vm3, %v2598_v55, %v2601_v48 }
 0x19d   :  { %16075 = vst [vmem:[#allocation28_spill] sm:$0xff] %v9915_v60  ;;  %v2618_v27 = vsel %vm2610_vm7, %v2601_v48, %v2617_v26  ;;  %v2621_v1 = vsel %vm2611_vm5, %v2607_v57, 1326507024  ;;  %v812_v25 = vshrl.u32 %v811_v46, 23  ;;  %v684_v34 = vxor.u32 2147483648, %v683_v14  ;;  %v9931_v26 = vpop.f32.mrb[8].mxu1 }
 0x19e   :  { %v975_v20 = vshll.u32 %v9915_v60, 30  ;;  %v2619_v23 = vsel %vm2609_vm12, %v2616_v22, %v2618_v27  ;;  %v2622_v10 = vsel %vm2610_vm7, %v2604_v62, %v2621_v1  ;;  %v2615_v17 = vsel %vm2609_vm12, %v2612_v4, %v2614_v11 }
 0x19f   :  { %v2623_v2 = vsel %vm2609_vm12, %v2620_v15, %v2622_v10  ;;  %v9927_v8 = vmul.u32.u64.low %v9883_v44, %v2619_v23  ;;  %v9928_v24 = vmul.u32.u64.high %v9883_v44, %v2619_v23, %v9927_v8  ;;  %v2341_v48 = vadd.s32 127, %v2340_v0 }
 0x1a0   :  { %v9933_v46 = vsub.s32 %v972_v45, %v975_v20  ;;  %v9936_v55 = vmul.u32.u64.low %v9883_v44, %v2623_v2  ;;  %v9937_v57 = vmul.u32.u64.high %v9883_v44, %v2623_v2, %v9936_v55  ;;  %8740 = vcosq.f32 %v9861_v58 }
 0x1a1   :  { %v2338_v62 = vshrl.u32 %v2320_v30, %v2336_v29  ;;  %v15595_v52 = vand.u32 2147483647, %v9798_v50  ;;  %v7811_v22 = vadd.s32 4294967169, %v812_v25  ;;  %8742 = vsinq.f32 %v9861_v58 }
 0x1a2   :  { %v16076_v4 = vand.u32 2147483647, %v9488_v42  ;;  %v16077_v11 = vmov 0  ;;  %v978_v45 = vsub.s32 0, %v9933_v46  ;;  %v2631_v0 = vmul.u32 %v9883_v44, %v2615_v17 }
 0x1a3   :  { %v9954_v30 = vsel %vm9908_vm6, %v9403_v3, %v9871_v63  ;;  %v2337_v29 = vshll.u32 %v9803_v18, %v9889_v47  ;;  %v2634_v58 = vadd.s32 1, %v9928_v24  ;;  %v818_v27 = vadd.s32 1, %v7811_v22 }
 0x1a4   :  { %vm9944_vm12 = vcmp.le.f32.partialorder %v16076_v4, 0.7853982  ;;  %v685_v15 = vsel %vm15621_vm15, %v684_v34, %v683_v14  ;;  %v2342_v1 = vshll.u32 %v2341_v48, 23  ;;  %v7816_v25 = vmin.u32 %v978_v45, %v9933_v46 }
 0x1a5   :  { %v16078_v11 = vsel %vm9944_vm12, 4294967295, %v16077_v11  ;;  %vm2633_vm3 = vc.u32 %v9937_v57, %v9927_v8  ;;  %v9964_v44 = vor.u32 %v2338_v62, %v2337_v29  ;;  %v815_v20 = vand.u32 8388607, %v15595_v52 }
 0x1a6   :  { %16079 = vst [vmem:[#allocation29_spill] sm:$0xff] %v16078_v11  ;;  %v2635_v63 = vsel %vm2633_vm3, %v2634_v58, %v9928_v24  ;;  %vm819_vm7 = vcmp.gt.s32.totalorder %v818_v27, 0  ;;  %v980_v18 = vclz %v7816_v25  ;;  %v9971_v14 = vadd.f32 %v9661_v41, %v9386_v38 }
 0x1a7   :  { %v2636_v47 = vadd.s32 %v2635_v63, %v2631_v0  ;;  %v820_v23 = vsel %vm819_vm7, %v818_v27, 0  ;;  %8744 = vcosq.f32 %v9954_v30  ;;  %v9977_v34 = vsel %vm9944_vm12, %v9488_v42, %v685_v15 }
 0x1a8   :  { %16080 = vst [vmem:[#allocation30_spill] sm:$0xff] %v9971_v14  ;;  %v822_v10 = vand.u32 31, %v820_v23  ;;  %v9979_v17 = vor.u32 4788187, %v2342_v1  ;;  %v968_v2 = vadd.s32 %v9877_v19, %v9864_v35  ;;  %v7817_v24 = vadd.s32 4294967294, %v980_v18 }
 0x1a9   :  { %v2637_v48 = vadd.s32 536870912, %v2636_v47  ;;  %v816_v62 = vor.u32 8388608, %v815_v20  ;;  %v9987_v45 = vshrl.u32 %v820_v23, 5  ;;  %v2475_v0 = vand.u32 2139095040, %v9971_v14 }
 0x1aa   :  { %v823_v38 = vsub.s32 32, %v822_v10  ;;  %vm7818_vm5 = vcmp.lt.s32.totalorder %v7817_v24, 0  ;;  %v9990_v29 = vpop.eup %8740  ;;  %v825_v35 = vshll.u32 %v16061_v28, %v822_v10  ;;  %v828_v25 = vshll.u32 %v16040_v39, %v822_v10 }
 0x1ab   :  { %v9985_v4 = vshrl.u32 %v2637_v48, 30  ;;  %16082 = vst [vmem:[#allocation32_spill] sm:$0xff] %v9990_v29  ;;  %v9992_v58 = vsel %vm7818_vm5, 0, %v7817_v24  ;;  %v9997_v15 = vpop.eup %8742  ;;  %v831_v63 = vshll.u32 %v16041_v7, %v822_v10  ;;  %v834_v20 = vshll.u32 %v16042_v9, %v822_v10 }
 0x1ac   :  { %v826_v19 = vshrl.u32 %v16040_v39, %v823_v38  ;;  %v829_v27 = vshrl.u32 %v16041_v7, %v823_v38  ;;  %16083 = vst [vmem:[#allocation33_spill] sm:$0xff] %v9997_v15  ;;  %v988_v18 = vsub.s32 4294967266, %v9992_v58  ;;  %v832_v23 = vshrl.u32 %v16042_v9, %v823_v38 }
 0x1ad   :  { %16081 = vst [vmem:[#allocation31_spill] sm:$0xff] %v9985_v4  ;;  %v2639_v1 = vshll.u32 %v9985_v4, 30  ;;  %v835_v24 = vshrl.u32 %v16044_v21, %v823_v38  ;;  %v837_v48 = vshll.u32 %v16044_v21, %v822_v10  ;;  %v838_v4 = vshrl.u32 %v16028_v43, %v823_v38 }
 0x1ae   :  { %v827_v55 = vor.u32 %v826_v19, %v825_v35  ;;  %v830_v22 = vor.u32 %v829_v27, %v828_v25  ;;  %v2344_v61 = vand.u32 2147483647, %v9979_v17  ;;  %v833_v3 = vor.u32 %v832_v23, %v831_v63  ;;  %v10029_v63 = vpop.f32.mrb[9].mxu0 }
 0x1af   :  { %v10007_v52 = vsub.s32 %v2636_v47, %v2639_v1  ;;  %v836_v32 = vor.u32 %v835_v24, %v834_v20  ;;  %v856_v60 = vshll.u32 %v816_v62, 8  ;;  %v984_v29 = vsub.s32 32, %v9992_v58 }
 0x1b0   :  { %v839_v31 = vor.u32 %v838_v4, %v837_v48  ;;  %v2476_v49 = vshrl.u32 %v2475_v0, 23  ;;  %v989_v10 = vadd.s32 127, %v988_v18  ;;  %v824_v47 = vshrl.u32 %v16061_v28, %v823_v38 }
 0x1b1   :  { %v2642_v15 = vsub.s32 0, %v10007_v52  ;;  %v10013_v11 = vpop.eup %8744  ;;  %vm840_vm3 = vcmp.lt.s32.totalorder %v9987_v45, 1  ;;  %v16085_v35 = vand.u32 2147483647, %v9971_v14  ;;  %vm842_vm7 = vcmp.lt.s32.totalorder %v9987_v45, 3 }
 0x1b2   :  { %16084 = vst [vmem:[#allocation34_spill] sm:$0xff] %v10013_v11  ;;  %vm843_vm5 = vcmp.lt.s32.totalorder %v9987_v45, 4  ;;  %v848_v62 = vsel %vm840_vm3, %v827_v55, %v830_v22  ;;  %v852_v27 = vsel %vm840_vm3, %v830_v22, %v833_v3  ;;  %v986_v1 = vshrl.u32 %v968_v2, %v984_v29 }
 0x1b3   :  { %v2479_v19 = vand.u32 8388607, %v16085_v35  ;;  %v7880_v17 = vmin.u32 %v2642_v15, %v10007_v52  ;;  %v845_v4 = vsel %vm843_vm5, %v833_v3, 2102212464  ;;  %v849_v0 = vsel %vm843_vm5, %v836_v32, 920167782 }
 0x1b4   :  { %v853_v38 = vsel %vm843_vm5, %v839_v31, 1326507024  ;;  %vm841_vm10 = vcmp.lt.s32.totalorder %v9987_v45, 2  ;;  %v850_v15 = vsel %vm842_vm7, %v833_v3, %v849_v0  ;;  %v990_v20 = vshll.u32 %v989_v10, 23 }
 0x1b5   :  { %v2644_v25 = vclz %v7880_v17  ;;  %v851_v18 = vsel %vm841_vm10, %v848_v62, %v850_v15  ;;  %v854_v23 = vsel %vm842_vm7, %v836_v32, %v853_v38  ;;  %v7875_v24 = vadd.s32 4294967169, %v2476_v49 }
 0x1b6   :  { %v844_v31 = vsel %vm840_vm3, %v824_v47, %v827_v55  ;;  %v846_v2 = vsel %vm842_vm7, %v830_v22, %v845_v4  ;;  %v855_v3 = vsel %vm841_vm10, %v852_v27, %v854_v23  ;;  %8746 = vsinq.f32 %v9954_v30 }
 0x1b7   :  { %v7881_v48 = vadd.s32 4294967294, %v2644_v25  ;;  %v10041_v29 = vmul.u32.u64.low %v856_v60, %v855_v3  ;;  %v10042_v35 = vmul.u32.u64.high %v856_v60, %v855_v3, %v10041_v29  ;;  %v985_v49 = vshll.u32 %v9933_v46, %v9992_v58 }
 0x1b8   :  { %v10044_v10 = vmul.u32.u64.low %v856_v60, %v851_v18  ;;  %v10045_v17 = vmul.u32.u64.high %v856_v60, %v851_v18, %v10044_v10  ;;  %v2482_v32 = vadd.s32 1, %v7875_v24  ;;  %8748 = vcosq.f32 %v9977_v34 }
 0x1b9   :  { %vm7882_vm5 = vcmp.lt.s32.totalorder %v7881_v48, 0  ;;  %v16086_v55 = vcvt.s32.f32 %v9964_v44  ;;  %v847_v62 = vsel %vm841_vm10, %v844_v31, %v846_v2  ;;  %8750 = vsinq.f32 %v9977_v34 }
 0x1ba   :  { %v2647_v47 = vsel %vm7882_vm5, 0, %v7881_v48  ;;  %v10059_v4 = vor.u32 %v986_v1, %v985_v49  ;;  %v10063_v46 = vadd.f32 %v9661_v41, %v9451_v51  ;;  %v10065_v58 = vor.u32 4788187, %v990_v20 }
 0x1bb   :  { %v10054_v22 = vmul.f32 %v16086_v55, %v2344_v61  ;;  %v2652_v30 = vsub.s32 4294967266, %v2647_v47  ;;  %vm865_vm3 = vc.u32 %v10042_v35, %v10044_v10  ;;  %v866_v61 = vadd.s32 1, %v10045_v17 }
 0x1bc   :  { %16087 = vst [vmem:[#allocation35_spill] sm:$0xff] %v10063_v46  ;;  %v2480_v44 = vor.u32 8388608, %v2479_v19  ;;  %v2648_v0 = vsub.s32 32, %v2647_v47  ;;  %v863_v27 = vmul.u32 %v856_v60, %v847_v62  ;;  %vm2483_vm10 = vcmp.gt.s32.totalorder %v2482_v32, 0 }
 0x1bd   :  { %v2653_v45 = vadd.s32 127, %v2652_v30  ;;  %v2632_v38 = vadd.s32 %v9927_v8, %v9937_v57  ;;  %v867_v51 = vsel %vm865_vm3, %v866_v61, %v10045_v17  ;;  %v2484_v1 = vsel %vm2483_vm10, %v2482_v32, 0 }
 0x1be   :  { %v868_v15 = vadd.s32 %v867_v51, %v863_v27  ;;  %v1123_v18 = vand.u32 2139095040, %v10063_v46  ;;  %v992_v19 = vand.u32 2147483647, %v10065_v58  ;;  %v994_v23 = vcvt.s32.f32 %v10059_v4 }
 0x1bf   :  { %v2654_v25 = vshll.u32 %v2653_v45, 23  ;;  %v2486_v60 = vand.u32 31, %v2484_v1  ;;  %v10078_v24 = vshll.u32 %v2480_v44, 8  ;;  %v2649_v48 = vshll.u32 %v10007_v52, %v2647_v47 }
 0x1c0   :  { %v2650_v31 = vshrl.u32 %v2632_v38, %v2648_v0  ;;  %v869_v8 = vadd.s32 536870912, %v868_v15  ;;  %v2485_v57 = vshrl.u32 %v2484_v1, 5  ;;  %v10084_v49 = vpop.eup %8746  ;;  %v1124_v4 = vshrl.u32 %v1123_v18, 23 }
 0x1c1   :  { %v2487_v2 = vsub.s32 32, %v2486_v60  ;;  %v2489_v3 = vshll.u32 %v16061_v28, %v2486_v60  ;;  %v2492_v29 = vshll.u32 %v16040_v39, %v2486_v60  ;;  %v2495_v17 = vshll.u32 %v16041_v7, %v2486_v60  ;;  %16088 = vst [vmem:[#allocation36_spill] sm:$0xff] %v10084_v49 }
 0x1c2   :  { %v2655_v32 = vor.u32 4788187, %v2654_v25  ;;  %v10086_v55 = vshrl.u32 %v869_v8, 30  ;;  %v2498_v62 = vshll.u32 %v16042_v9, %v2486_v60  ;;  %v10089_v30 = vpop.eup %8748  ;;  %vm15620_vm7 = vcmp.lt.s32.totalorder %v9543_v12, 0 }
 0x1c3   :  { %16090 = vst [vmem:[#allocation38_spill] sm:$0xff] %v10089_v30  ;;  %v2490_v52 = vshrl.u32 %v16040_v39, %v2487_v2  ;;  %v2493_v47 = vshrl.u32 %v16041_v7, %v2487_v2  ;;  %v2496_v58 = vshrl.u32 %v16042_v9, %v2487_v2  ;;  %v2501_v61 = vshll.u32 %v16044_v21, %v2486_v60  ;;  %v10096_v44 = vpop.eup %8750 }
 0x1c4   :  { %16089 = vst [vmem:[#allocation37_spill] sm:$0xff] %v10086_v55  ;;  %v871_v0 = vshll.u32 %v10086_v55, 30  ;;  %v2499_v45 = vshrl.u32 %v16044_v21, %v2487_v2  ;;  %v2502_v27 = vshrl.u32 %v16028_v43, %v2487_v2  ;;  %vm2504_vm5 = vcmp.lt.s32.totalorder %v2485_v57, 1 }
 0x1c5   :  { %v2488_v38 = vshrl.u32 %v16061_v28, %v2487_v2  ;;  %v2491_v51 = vor.u32 %v2490_v52, %v2489_v3  ;;  %v2494_v1 = vor.u32 %v2493_v47, %v2492_v29  ;;  %v2497_v25 = vor.u32 %v2496_v58, %v2495_v17 }
 0x1c6   :  { %v16091_v18 = vand.u32 2147483647, %v9543_v12  ;;  %v16092_v8 = vmov 0  ;;  %v2651_v60 = vor.u32 %v2650_v31, %v2649_v48  ;;  %v10108_v34 = vsub.s32 %v868_v15, %v871_v0 }
 0x1c7   :  { %v2500_v20 = vor.u32 %v2499_v45, %v2498_v62  ;;  %vm2505_vm10 = vcmp.lt.s32.totalorder %v2485_v57, 2  ;;  %v2503_v11 = vor.u32 %v2502_v27, %v2501_v61  ;;  %vm2506_vm2 = vcmp.lt.s32.totalorder %v2485_v57, 3  ;;  %v10118_v62 = vpop.f32.mrb[9].mxu1 }
 0x1c8   :  { %vm10104_vm3 = vcmp.le.f32.partialorder %v16091_v18, 0.7853982  ;;  %vm2507_vm8 = vcmp.lt.s32.totalorder %v2485_v57, 4  ;;  %v2512_v49 = vsel %vm2504_vm5, %v2491_v51, %v2494_v1  ;;  %v874_v2 = vsub.s32 0, %v10108_v34 }
 0x1c9   :  { %v16093_v8 = vsel %vm10104_vm3, 4294967295, %v16092_v8  ;;  %v2509_v3 = vsel %vm2507_vm8, %v2497_v25, 2102212464  ;;  %v2513_v29 = vsel %vm2507_vm8, %v2500_v20, 920167782  ;;  %v7823_v17 = vadd.s32 4294967169, %v1124_v4 }
 0x1ca   :  { %16094 = vst [vmem:[#allocation39_spill] sm:$0xff] %v16093_v8  ;;  %v2656_v52 = vand.u32 2147483647, %v2655_v32  ;;  %v2508_v47 = vsel %vm2504_vm5, %v2488_v38, %v2491_v51  ;;  %v2514_v15 = vsel %vm2506_vm2, %v2497_v25, %v2513_v29  ;;  %v16095_v48 = vand.u32 2147483647, %v10063_v46 }
 0x1cb   :  { %v7812_v58 = vmin.u32 %v874_v2, %v10108_v34  ;;  %v2510_v61 = vsel %vm2506_vm2, %v2494_v1, %v2509_v3  ;;  %v2515_v0 = vsel %vm2505_vm10, %v2512_v49, %v2514_v15  ;;  %v2516_v45 = vsel %vm2504_vm5, %v2494_v1, %v2497_v25 }
 0x1cc   :  { %v1127_v31 = vand.u32 8388607, %v16095_v48  ;;  %v2658_v27 = vcvt.s32.f32 %v2651_v60  ;;  %v2517_v32 = vsel %vm2507_vm8, %v2503_v11, 1326507024  ;;  %v16096_v51 = vxor.u32 2147483648, %v10054_v22 }
 0x1cd   :  { %v10126_v4 = vmul.u32.u64.low %v10078_v24, %v2515_v0  ;;  %v10127_v38 = vmul.u32.u64.high %v10078_v24, %v2515_v0, %v10126_v4  ;;  %v876_v2 = vclz %v7812_v58  ;;  %v2518_v3 = vsel %vm2506_vm2, %v2500_v20, %v2517_v32 }
 0x1ce   :  { %v2349_v18 = vsel %vm15620_vm7, %v16096_v51, %v10054_v22  ;;  %v1130_v49 = vadd.s32 1, %v7823_v17  ;;  %v10136_v29 = vmul.f32 %v994_v23, %v992_v19  ;;  %v10138_v1 = vmul.f32 %v2658_v27, %v2656_v52 }
 0x1cf   :  { %v2511_v11 = vsel %vm2505_vm10, %v2508_v47, %v2510_v61  ;;  %v2519_v25 = vsel %vm2505_vm10, %v2516_v45, %v2518_v3  ;;  %v7813_v60 = vadd.s32 4294967294, %v876_v2  ;;  %v10149_v22 = vsel %vm10104_vm3, %v9543_v12, %v2349_v18 }
 0x1d0   :  { %v10143_v15 = vmul.u32.u64.low %v10078_v24, %v2519_v25  ;;  %v10144_v48 = vmul.u32.u64.high %v10078_v24, %v2519_v25, %v10143_v15  ;;  %vm1131_vm8 = vcmp.gt.s32.totalorder %v1130_v49, 0  ;;  %v1128_v20 = vor.u32 8388608, %v1127_v31 }
 0x1d1   :  { %v1132_v19 = vsel %vm1131_vm8, %v1130_v49, 0  ;;  %v10153_v23 = vadd.f32 %v9661_v41, %v9520_v59  ;;  %vm7814_vm2 = vcmp.lt.s32.totalorder %v7813_v60, 0  ;;  %v2530_v57 = vadd.s32 1, %v10127_v38 }
 0x1d2   :  { %v1134_v17 = vand.u32 31, %v1132_v19  ;;  %v10158_v52 = vadd.f32 %v9661_v41, %v9619_v16  ;;  %v864_v58 = vadd.s32 %v10044_v10, %v10042_v35  ;;  %v879_v61 = vsel %vm7814_vm2, 0, %v7813_v60 }
 0x1d3   :  { %16097 = vst [vmem:[#allocation40_spill] sm:$0xff] %v10153_v23  ;;  %v2527_v31 = vmul.u32 %v10078_v24, %v2511_v11  ;;  %v2660_v0 = vxor.u32 2147483648, %v10138_v1  ;;  %v880_v59 = vsub.s32 32, %v879_v61  ;;  %v884_v45 = vsub.s32 4294967266, %v879_v61 }
 0x1d4   :  { %16098 = vst [vmem:[#allocation41_spill] sm:$0xff] %v10158_v52  ;;  %vm2529_vm5 = vc.u32 %v10144_v48, %v10126_v4  ;;  %v1135_v32 = vsub.s32 32, %v1134_v17  ;;  %v10168_v16 = vshll.u32 %v1128_v20, 8  ;;  %v2787_v41 = vand.u32 2139095040, %v10153_v23 }
 0x1d5   :  { %v885_v51 = vadd.s32 127, %v884_v45  ;;  %v2531_v35 = vsel %vm2529_vm5, %v2530_v57, %v10127_v38  ;;  %v1133_v10 = vshrl.u32 %v1132_v19, 5  ;;  %v1137_v24 = vshll.u32 %v16061_v28, %v1134_v17 }
 0x1d6   :  { %v2532_v18 = vadd.s32 %v2531_v35, %v2527_v31  ;;  %v1138_v2 = vshrl.u32 %v16040_v39, %v1135_v32  ;;  %v1140_v3 = vshll.u32 %v16040_v39, %v1134_v17  ;;  %v1141_v49 = vshrl.u32 %v16041_v7, %v1135_v32 }
 0x1d7   :  { %v882_v11 = vshrl.u32 %v864_v58, %v880_v59  ;;  %v886_v25 = vshll.u32 %v885_v51, 23  ;;  %v1143_v60 = vshll.u32 %v16041_v7, %v1134_v17  ;;  %v1144_v15 = vshrl.u32 %v16042_v9, %v1135_v32 }
 0x1d8   :  { %vm15631_vm10 = vcmp.lt.s32.totalorder %v9665_v33, 0  ;;  %vm15630_vm8 = vcmp.lt.s32.totalorder %v9751_v6, 0  ;;  %v881_v38 = vshll.u32 %v10108_v34, %v879_v61  ;;  %v2533_v20 = vadd.s32 536870912, %v2532_v18 }
 0x1d9   :  { %v1146_v19 = vshll.u32 %v16042_v9, %v1134_v17  ;;  %v1147_v57 = vshrl.u32 %v16044_v21, %v1135_v32  ;;  %v887_v31 = vor.u32 4788187, %v886_v25  ;;  %v1139_v45 = vor.u32 %v1138_v2, %v1137_v24 }
 0x1da   :  { %v1142_v35 = vor.u32 %v1141_v49, %v1140_v3  ;;  %v1145_v58 = vor.u32 %v1144_v15, %v1143_v60  ;;  %v10183_v59 = vshrl.u32 %v2533_v20, 30  ;;  %v1149_v27 = vshll.u32 %v16044_v21, %v1134_v17 }
 0x1db   :  { %v1148_v51 = vor.u32 %v1147_v57, %v1146_v19  ;;  %v1150_v47 = vshrl.u32 %v16028_v43, %v1135_v32  ;;  %v883_v8 = vor.u32 %v882_v11, %v881_v38  ;;  %v1136_v12 = vshrl.u32 %v16061_v28, %v1135_v32 }
 0x1dc   :  { %16099 = vst [vmem:[#allocation42_spill] sm:$0xff] %v10183_v59  ;;  %vm1155_vm2 = vcmp.lt.s32.totalorder %v1133_v10, 4  ;;  %v2788_v34 = vshrl.u32 %v2787_v41, 23  ;;  %v16100_v61 = vand.u32 2147483647, %v9665_v33  ;;  %v16101_v55 = vmov 0 }
 0x1dd   :  { %v16104_v24 = vand.u32 2147483647, %v9751_v6  ;;  %v16105_v2 = vmov 0  ;;  %v2535_v17 = vshll.u32 %v10183_v59, 30  ;;  %v1151_v3 = vor.u32 %v1150_v47, %v1149_v27 }
 0x1de   :  { %vm10190_vm5 = vcmp.le.f32.partialorder %v16100_v61, 0.7853982  ;;  %vm1152_vm15 = vcmp.lt.s32.totalorder %v1133_v10, 1  ;;  %v1157_v32 = vsel %vm1155_vm2, %v1145_v58, 2102212464  ;;  %vm1154_vm1 = vcmp.lt.s32.totalorder %v1133_v10, 3 }
 0x1df   :  { %v16102_v55 = vsel %vm10190_vm5, 4294967295, %v16101_v55  ;;  %vm10196_vm7 = vcmp.le.f32.partialorder %v16104_v24, 0.7853982  ;;  %v888_v49 = vand.u32 2147483647, %v887_v31  ;;  %v1160_v41 = vsel %vm1152_vm15, %v1139_v45, %v1142_v35  ;;  %v10222_v24 = vpop.f32.mrb[10].mxu0 }
 0x1e0   :  { %16103 = vst [vmem:[#allocation43_spill] sm:$0xff] %v16102_v55  ;;  %v16106_v2 = vsel %vm10196_vm7, 4294967295, %v16105_v2  ;;  %v1161_v11 = vsel %vm1155_vm2, %v1148_v51, 920167782  ;;  %v10203_v25 = vsub.s32 %v2532_v18, %v2535_v17  ;;  %vm1153_vm14 = vcmp.lt.s32.totalorder %v1133_v10, 2 }
 0x1e1   :  { %16107 = vst [vmem:[#allocation44_spill] sm:$0xff] %v16106_v2  ;;  %v1162_v60 = vsel %vm1154_vm1, %v1145_v58, %v1161_v11  ;;  %v1164_v15 = vsel %vm1152_vm15, %v1142_v35, %v1145_v58  ;;  %v1156_v38 = vsel %vm1152_vm15, %v1136_v12, %v1139_v45  ;;  %v1158_v20 = vsel %vm1154_vm1, %v1142_v35, %v1157_v32 }
 0x1e2   :  { %v1163_v19 = vsel %vm1153_vm14, %v1160_v41, %v1162_v60  ;;  %v1165_v57 = vsel %vm1155_vm2, %v1151_v3, 1326507024  ;;  %v2538_v47 = vsub.s32 0, %v10203_v25  ;;  %v16108_v18 = vxor.u32 2147483648, %v10136_v29 }
 0x1e3   :  { %v1166_v27 = vsel %vm1154_vm1, %v1148_v51, %v1165_v57  ;;  %v10209_v31 = vmul.u32.u64.low %v10168_v16, %v1163_v19  ;;  %v10210_v61 = vmul.u32.u64.high %v10168_v16, %v1163_v19, %v10209_v31  ;;  %v2661_v12 = vsel %vm15630_vm8, %v2660_v0, %v10138_v1 }
 0x1e4   :  { %v997_v58 = vsel %vm15631_vm10, %v16108_v18, %v10136_v29  ;;  %v1167_v45 = vsel %vm1153_vm14, %v1164_v15, %v1166_v27  ;;  %v7887_v35 = vadd.s32 4294967169, %v2788_v34  ;;  %v890_v51 = vcvt.s32.f32 %v883_v8 }
 0x1e5   :  { %v7876_v17 = vmin.u32 %v2538_v47, %v10203_v25  ;;  %v10226_v3 = vmul.u32.u64.low %v10168_v16, %v1167_v45  ;;  %v10227_v32 = vmul.u32.u64.high %v10168_v16, %v1167_v45, %v10226_v3  ;;  %8752 = vcosq.f32 %v10149_v22 }
 0x1e6   :  { %v1159_v29 = vsel %vm1153_vm14, %v1156_v38, %v1158_v20  ;;  %v16109_v41 = vand.u32 2147483647, %v10153_v23  ;;  %v2794_v1 = vadd.s32 1, %v7887_v35  ;;  %8754 = vsinq.f32 %v10149_v22 }
 0x1e7   :  { %v10236_v0 = vmul.f32 %v890_v51, %v888_v49  ;;  %v2540_v8 = vclz %v7876_v17  ;;  %v1178_v34 = vadd.s32 1, %v10210_v61  ;;  %v10242_v60 = vsel %vm10190_vm5, %v9665_v33, %v997_v58 }
 0x1e8   :  { %v10233_v11 = vand.u32 8388607, %v16109_v41  ;;  %v10247_v10 = vsel %vm10196_vm7, %v9751_v6, %v2661_v12  ;;  %vm2795_vm14 = vcmp.gt.s32.totalorder %v2794_v1, 0  ;;  %v1019_v15 = vand.u32 2139095040, %v10158_v52 }
 0x1e9   :  { %v7877_v38 = vadd.s32 4294967294, %v2540_v8  ;;  %v1175_v22 = vmul.u32 %v10168_v16, %v1159_v29  ;;  %vm1177_vm1 = vc.u32 %v10227_v32, %v10209_v31  ;;  %v2796_v49 = vsel %vm2795_vm14, %v2794_v1, 0 }
 0x1ea   :  { %v1179_v20 = vsel %vm1177_vm1, %v1178_v34, %v10210_v61  ;;  %v2792_v19 = vor.u32 8388608, %v10233_v11  ;;  %v2798_v57 = vand.u32 31, %v2796_v49  ;;  %v892_v27 = vxor.u32 2147483648, %v10236_v0 }
 0x1eb   :  { %v2528_v18 = vadd.s32 %v10126_v4, %v10144_v48  ;;  %vm7878_vm15 = vcmp.lt.s32.totalorder %v7877_v38, 0  ;;  %v1180_v58 = vadd.s32 %v1179_v20, %v1175_v22  ;;  %v1020_v35 = vshrl.u32 %v1019_v15, 23 }
 0x1ec   :  { %v2543_v12 = vsel %vm7878_vm15, 0, %v7877_v38  ;;  %v2799_v16 = vsub.s32 32, %v2798_v57  ;;  %v2801_v45 = vshll.u32 %v16061_v28, %v2798_v57  ;;  %v2804_v3 = vshll.u32 %v16040_v39, %v2798_v57 }
 0x1ed   :  { %v2544_v51 = vsub.s32 32, %v2543_v12  ;;  %v2548_v17 = vsub.s32 4294967266, %v2543_v12  ;;  %v1181_v61 = vadd.s32 536870912, %v1180_v58  ;;  %v2797_v29 = vshrl.u32 %v2796_v49, 5 }
 0x1ee   :  { %v2802_v41 = vshrl.u32 %v16040_v39, %v2799_v16  ;;  %v2805_v11 = vshrl.u32 %v16041_v7, %v2799_v16  ;;  %v2807_v1 = vshll.u32 %v16041_v7, %v2798_v57  ;;  %v2545_v4 = vshll.u32 %v10203_v25, %v2543_v12 }
 0x1ef   :  { %v2549_v48 = vadd.s32 127, %v2548_v17  ;;  %v10265_v8 = vshrl.u32 %v1181_v61, 30  ;;  %v2808_v34 = vshrl.u32 %v16042_v9, %v2799_v16  ;;  %v10268_v15 = vpop.eup %8752  ;;  %vm15653_vm2 = vcmp.lt.s32.totalorder %v9798_v50, 0 }
 0x1f0   :  { %16111 = vst [vmem:[#allocation46_spill] sm:$0xff] %v10268_v15  ;;  %v2546_v38 = vshrl.u32 %v2528_v18, %v2544_v51  ;;  %v2803_v22 = vor.u32 %v2802_v41, %v2801_v45  ;;  %v2810_v49 = vshll.u32 %v16042_v9, %v2798_v57  ;;  %v2811_v20 = vshrl.u32 %v16044_v21, %v2799_v16  ;;  %v10273_v47 = vpop.eup %8754 }
 0x1f1   :  { %16110 = vst [vmem:[#allocation45_spill] sm:$0xff] %v10265_v8  ;;  %16112 = vst [vmem:[#allocation47_spill] sm:$0xff] %v10273_v47  ;;  %v2550_v2 = vshll.u32 %v2549_v48, 23  ;;  %v1183_v25 = vshll.u32 %v10265_v8, 30  ;;  %v2806_v12 = vor.u32 %v2805_v11, %v2804_v3  ;;  %v2809_v17 = vor.u32 %v2808_v34, %v2807_v1  ;;  %v10296_v47 = vpop.f32.mrb[10].mxu1 }
 0x1f2   :  { %v2812_v61 = vor.u32 %v2811_v20, %v2810_v49  ;;  %v2813_v6 = vshll.u32 %v16044_v21, %v2798_v57  ;;  %v2814_v59 = vshrl.u32 %v16028_v43, %v2799_v16  ;;  %vm2816_vm14 = vcmp.lt.s32.totalorder %v2797_v29, 1 }
 0x1f3   :  { %v2551_v15 = vor.u32 4788187, %v2550_v2  ;;  %v10278_v18 = vsub.s32 %v1180_v58, %v1183_v25  ;;  %v2800_v45 = vshrl.u32 %v16061_v28, %v2799_v16  ;;  %v7819_v51 = vadd.s32 4294967169, %v1020_v35 }
 0x1f4   :  { %v16113_v41 = vand.u32 2147483647, %v9798_v50  ;;  %v16114_v48 = vmov 0  ;;  %v2547_v3 = vor.u32 %v2546_v38, %v2545_v4  ;;  %v2815_v11 = vor.u32 %v2814_v59, %v2813_v6 }
 0x1f5   :  { %vm2818_vm15 = vcmp.lt.s32.totalorder %v2797_v29, 3  ;;  %vm2819_vm8 = vcmp.lt.s32.totalorder %v2797_v29, 4  ;;  %v1186_v57 = vsub.s32 0, %v10278_v18  ;;  %vm2817_vm10 = vcmp.lt.s32.totalorder %v2797_v29, 2 }
 0x1f6   :  { %vm10283_vm1 = vcmp.le.f32.partialorder %v16113_v41, 0.7853982  ;;  %v2821_v1 = vsel %vm2819_vm8, %v2809_v17, 2102212464  ;;  %v2824_v2 = vsel %vm2816_vm14, %v2803_v22, %v2806_v12  ;;  %v2825_v58 = vsel %vm2819_vm8, %v2812_v61, 920167782 }
 0x1f7   :  { %v16115_v48 = vsel %vm10283_vm1, 4294967295, %v16114_v48  ;;  %v2828_v16 = vsel %vm2816_vm14, %v2806_v12, %v2809_v17  ;;  %v2829_v35 = vsel %vm2819_vm8, %v2815_v11, 1326507024  ;;  %v2832_v34 = vshll.u32 %v2792_v19, 8 }
 0x1f8   :  { %16116 = vst [vmem:[#allocation48_spill] sm:$0xff] %v16115_v48  ;;  %v2552_v49 = vand.u32 2147483647, %v2551_v15  ;;  %v7824_v20 = vmin.u32 %v1186_v57, %v10278_v18  ;;  %v2820_v25 = vsel %vm2816_vm14, %v2800_v45, %v2803_v22  ;;  %v2826_v6 = vsel %vm2818_vm15, %v2809_v17, %v2825_v58 }
 0x1f9   :  { %v2822_v59 = vsel %vm2818_vm15, %v2806_v12, %v2821_v1  ;;  %v2827_v4 = vsel %vm2817_vm10, %v2824_v2, %v2826_v6  ;;  %v2830_v38 = vsel %vm2818_vm15, %v2812_v61, %v2829_v35  ;;  %v1026_v41 = vadd.s32 1, %v7819_v51 }
 0x1fa   :  { %v893_v19 = vsel %vm15653_vm2, %v892_v27, %v10236_v0  ;;  %v2554_v15 = vcvt.s32.f32 %v2547_v3  ;;  %v1188_v11 = vclz %v7824_v20  ;;  %v2831_v57 = vsel %vm2817_vm10, %v2828_v16, %v2830_v38 }
 0x1fb   :  { %v10302_v22 = vmul.u32.u64.low %v2832_v34, %v2831_v57  ;;  %v10303_v45 = vmul.u32.u64.high %v2832_v34, %v2831_v57, %v10302_v22  ;;  %v10305_v17 = vmul.u32.u64.low %v2832_v34, %v2827_v4  ;;  %v10306_v12 = vmul.u32.u64.high %v2832_v34, %v2827_v4, %v10305_v17 }
 0x1fc   :  { %8756 = vcosq.f32 %v10242_v60  ;;  %v7825_v61 = vadd.s32 4294967294, %v1188_v11  ;;  %v2823_v51 = vsel %vm2817_vm10, %v2820_v25, %v2822_v59  ;;  %vm1027_vm8 = vcmp.gt.s32.totalorder %v1026_v41, 0 }
 0x1fd   :  { %8758 = vsinq.f32 %v10242_v60  ;;  %v10312_v0 = vmul.f32 %v2554_v15, %v2552_v49  ;;  %v16117_v27 = vand.u32 2147483647, %v10158_v52  ;;  %v1028_v1 = vsel %vm1027_vm8, %v1026_v41, 0  ;;  %v10327_v60 = vld [vmem:[%s15542_s2] ss:$0 sm:$0xff] }
 0x1fe   :  { %8760 = vcosq.f32 %v10247_v10  ;;  %v10320_v2 = vsel %vm10283_vm1, %v9798_v50, %v893_v19  ;;  %vm7826_vm14 = vcmp.lt.s32.totalorder %v7825_v61, 0  ;;  %v1030_v58 = vand.u32 31, %v1028_v1 }
 0x1ff   :  { %v1023_v3 = vand.u32 8388607, %v16117_v27  ;;  %v1191_v29 = vsel %vm7826_vm14, 0, %v7825_v61  ;;  %v2839_v16 = vmul.u32 %v2832_v34, %v2823_v51  ;;  %vm2841_vm10 = vc.u32 %v10303_v45, %v10305_v17 }
 0x200   :  { %v10331_v35 = vadd.f32 %v10327_v60, %v9735_v13  ;;  %v1176_v49 = vadd.s32 %v10209_v31, %v10227_v32  ;;  %v1192_v20 = vsub.s32 32, %v1191_v29  ;;  %v1196_v25 = vsub.s32 4294967266, %v1191_v29 }
 0x201   :  { %v2842_v6 = vadd.s32 1, %v10306_v12  ;;  %v1024_v59 = vor.u32 8388608, %v1023_v3  ;;  %v1029_v4 = vshrl.u32 %v1028_v1, 5  ;;  %v1031_v38 = vsub.s32 32, %v1030_v58 }
 0x202   :  { %16118 = vst [vmem:[#allocation49_spill] sm:$0xff] %v10331_v35  ;;  %v1197_v41 = vadd.s32 127, %v1196_v25  ;;  %v1033_v15 = vshll.u32 %v16061_v28, %v1030_v58  ;;  %v1036_v13 = vshll.u32 %v16040_v39, %v1030_v58  ;;  %v1039_v32 = vshll.u32 %v16041_v7, %v1030_v58 }
 0x203   :  { %v2843_v19 = vsel %vm2841_vm10, %v2842_v6, %v10306_v12  ;;  %v1034_v57 = vshrl.u32 %v16040_v39, %v1031_v38  ;;  %v1037_v31 = vshrl.u32 %v16041_v7, %v1031_v38  ;;  %v1194_v22 = vshrl.u32 %v1176_v49, %v1192_v20 }
 0x204   :  { %v2844_v11 = vadd.s32 %v2843_v19, %v2839_v16  ;;  %v1040_v61 = vshrl.u32 %v16042_v9, %v1031_v38  ;;  %v1042_v51 = vshll.u32 %v16042_v9, %v1030_v58  ;;  %v1043_v27 = vshrl.u32 %v16044_v21, %v1031_v38 }
 0x205   :  { %v1035_v12 = vor.u32 %v1034_v57, %v1033_v15  ;;  %v1038_v1 = vor.u32 %v1037_v31, %v1036_v13  ;;  %v10346_v25 = vshll.u32 %v1024_v59, 8  ;;  %v1193_v16 = vshll.u32 %v10278_v18, %v1191_v29 }
 0x206   :  { %v2845_v3 = vadd.s32 536870912, %v2844_v11  ;;  %v10348_v6 = vpop.eup %8756  ;;  %v1198_v19 = vshll.u32 %v1197_v41, 23  ;;  %v1041_v34 = vor.u32 %v1040_v61, %v1039_v32  ;;  %v1044_v8 = vor.u32 %v1043_v27, %v1042_v51 }
 0x207   :  { %16119 = vst [vmem:[#allocation50_spill] sm:$0xff] %v10348_v6  ;;  %v10351_v55 = vpop.eup %8758  ;;  %v1045_v20 = vshll.u32 %v16044_v21, %v1030_v58  ;;  %v1046_v33 = vshrl.u32 %v16028_v43, %v1031_v38  ;;  %v2683_v15 = vand.u32 2139095040, %v10331_v35  ;;  %v1195_v59 = vor.u32 %v1194_v22, %v1193_v16 }
 0x208   :  { %16120 = vst [vmem:[#allocation51_spill] sm:$0xff] %v10351_v55  ;;  %v10353_v49 = vshrl.u32 %v2845_v3, 30  ;;  %v10358_v13 = vpop.eup %8760  ;;  %v1032_v57 = vshrl.u32 %v16061_v28, %v1031_v38  ;;  %vm1048_vm15 = vcmp.lt.s32.totalorder %v1029_v4, 1  ;;  %vm1051_vm8 = vcmp.lt.s32.totalorder %v1029_v4, 4 }
 0x209   :  { %16122 = vst [vmem:[#allocation53_spill] sm:$0xff] %v10358_v13  ;;  %v1047_v29 = vor.u32 %v1046_v33, %v1045_v20  ;;  %v1053_v41 = vsel %vm1051_vm8, %v1041_v34, 2102212464  ;;  %v1056_v31 = vsel %vm1048_vm15, %v1035_v12, %v1038_v1  ;;  %v1199_v32 = vor.u32 4788187, %v1198_v19  ;;  %v10364_v13 = vpop.f32.mrb[11].mxu0 }
 0x20a   :  { %16121 = vst [vmem:[#allocation52_spill] sm:$0xff] %v10353_v49  ;;  %v2847_v18 = vshll.u32 %v10353_v49, 30  ;;  %vm1050_vm14 = vcmp.lt.s32.totalorder %v1029_v4, 3  ;;  %v1057_v61 = vsel %vm1051_vm8, %v1044_v8, 920167782  ;;  %v1060_v58 = vsel %vm1048_vm15, %v1038_v1, %v1041_v34 }
 0x20b   :  { %vm1049_vm10 = vcmp.lt.s32.totalorder %v1029_v4, 2  ;;  %v1058_v27 = vsel %vm1050_vm14, %v1041_v34, %v1057_v61  ;;  %v1061_v3 = vsel %vm1051_vm8, %v1047_v29, 1326507024  ;;  %v1052_v22 = vsel %vm1048_vm15, %v1032_v57, %v1035_v12 }
 0x20c   :  { %v10362_v51 = vsub.s32 %v2844_v11, %v2847_v18  ;;  %v1054_v38 = vsel %vm1050_vm14, %v1038_v1, %v1053_v41  ;;  %v1059_v16 = vsel %vm1049_vm10, %v1056_v31, %v1058_v27  ;;  %v1062_v6 = vsel %vm1050_vm14, %v1044_v8, %v1061_v3 }
 0x20d   :  { %v1063_v33 = vsel %vm1049_vm10, %v1060_v58, %v1062_v6  ;;  %v10368_v20 = vmul.u32.u64.low %v10346_v25, %v1059_v16  ;;  %v10369_v19 = vmul.u32.u64.high %v10346_v25, %v1059_v16, %v10368_v20  ;;  %v1200_v55 = vand.u32 2147483647, %v1199_v32 }
 0x20e   :  { %v2850_v49 = vsub.s32 0, %v10362_v51  ;;  %v10373_v11 = vmul.u32.u64.low %v10346_v25, %v1063_v33  ;;  %v10374_v4 = vmul.u32.u64.high %v10346_v25, %v1063_v33, %v10373_v11  ;;  %v2684_v34 = vshrl.u32 %v2683_v15, 23 }
 0x20f   :  { %v1055_v12 = vsel %vm1049_vm10, %v1052_v22, %v1054_v38  ;;  %v15643_v1 = vand.u32 2147483647, %v10331_v35  ;;  %v10380_v8 = vadd.f32 %v10327_v60, %v9847_v53  ;;  %8762 = vsinq.f32 %v10247_v10 }
 0x210   :  { %v7888_v18 = vmin.u32 %v2850_v49, %v10362_v51  ;;  %vm15652_vm15 = vcmp.lt.s32.totalorder %v9971_v14, 0  ;;  %v1202_v6 = vcvt.s32.f32 %v1195_v59  ;;  %v7883_v57 = vadd.s32 4294967169, %v2684_v34 }
 0x211   :  { %16123 = vst [vmem:[#allocation54_spill] sm:$0xff] %v10380_v8  ;;  %8764 = vcosq.f32 %v10320_v2  ;;  %v16124_v15 = vxor.u32 2147483648, %v10312_v0  ;;  %v1074_v41 = vadd.s32 1, %v10369_v19  ;;  %v1071_v53 = vmul.u32 %v10346_v25, %v1055_v12 }
 0x212   :  { %v2852_v29 = vclz %v7888_v18  ;;  %v10391_v31 = vmul.f32 %v1202_v6, %v1200_v55  ;;  %vm1073_vm8 = vc.u32 %v10374_v4, %v10368_v20  ;;  %v2690_v10 = vadd.s32 1, %v7883_v57 }
 0x213   :  { %v2557_v49 = vsel %vm15652_vm15, %v16124_v15, %v10312_v0  ;;  %v1075_v32 = vsel %vm1073_vm8, %v1074_v41, %v10369_v19  ;;  %v2687_v61 = vand.u32 8388607, %v15643_v1  ;;  %v1331_v58 = vand.u32 2139095040, %v10380_v8 }
 0x214   :  { %v7889_v59 = vadd.s32 4294967294, %v2852_v29  ;;  %8766 = vsinq.f32 %v10320_v2  ;;  %v16125_v0 = vand.u32 2147483647, %v9971_v14  ;;  %v16126_v55 = vmov 0 }
 0x215   :  { %v1076_v25 = vadd.s32 %v1075_v32, %v1071_v53  ;;  %vm2691_vm10 = vcmp.gt.s32.totalorder %v2690_v10, 0  ;;  %v2840_v3 = vadd.s32 %v10305_v17, %v10303_v45  ;;  %v2688_v11 = vor.u32 8388608, %v2687_v61 }
 0x216   :  { %vm10403_vm14 = vcmp.le.f32.partialorder %v16125_v0, 0.7853982  ;;  %vm7890_vm8 = vcmp.lt.s32.totalorder %v7889_v59, 0  ;;  %v2692_v22 = vsel %vm2691_vm10, %v2690_v10, 0  ;;  %v1332_v18 = vshrl.u32 %v1331_v58, 23 }
 0x217   :  { %v16127_v55 = vsel %vm10403_vm14, 4294967295, %v16126_v55  ;;  %v10410_v27 = vsel %vm10403_vm14, %v9971_v14, %v2557_v49  ;;  %v2855_v38 = vsel %vm7890_vm8, 0, %v7889_v59  ;;  %v1077_v16 = vadd.s32 536870912, %v1076_v25 }
 0x218   :  { %16128 = vst [vmem:[#allocation55_spill] sm:$0xff] %v16127_v55  ;;  %v2694_v33 = vand.u32 31, %v2692_v22  ;;  %v2860_v19 = vsub.s32 4294967266, %v2855_v38  ;;  %v2693_v17 = vshrl.u32 %v2692_v22, 5  ;;  %v2856_v53 = vsub.s32 32, %v2855_v38 }
 0x219   :  { %v10416_v12 = vshrl.u32 %v1077_v16, 30  ;;  %v10422_v41 = vpop.eup %8762  ;;  %v10431_v16 = vshll.u32 %v2688_v11, 8  ;;  %vm15655_vm10 = vcmp.lt.s32.totalorder %v10063_v46, 0  ;;  %8768 = vcosq.f32 %v10410_v27 }
 0x21a   :  { %v2695_v6 = vsub.s32 32, %v2694_v33  ;;  %v2697_v57 = vshll.u32 %v16061_v28, %v2694_v33  ;;  %v2700_v15 = vshll.u32 %v16040_v39, %v2694_v33  ;;  %v2861_v45 = vadd.s32 127, %v2860_v19  ;;  %16130 = vst [vmem:[#allocation57_spill] sm:$0xff] %v10422_v41 }
 0x21b   :  { %16129 = vst [vmem:[#allocation56_spill] sm:$0xff] %v10416_v12  ;;  %v2703_v49 = vshll.u32 %v16041_v7, %v2694_v33  ;;  %v2706_v29 = vshll.u32 %v16042_v9, %v2694_v33  ;;  %v1079_v10 = vshll.u32 %v10416_v12, 30  ;;  %v10427_v61 = vpop.eup %8764  ;;  %v2709_v2 = vshll.u32 %v16044_v21, %v2694_v33 }
 0x21c   :  { %v2698_v59 = vshrl.u32 %v16040_v39, %v2695_v6  ;;  %v2701_v32 = vshrl.u32 %v16041_v7, %v2695_v6  ;;  %16131 = vst [vmem:[#allocation58_spill] sm:$0xff] %v10427_v61  ;;  %v2862_v58 = vshll.u32 %v2861_v45, 23  ;;  %v2704_v0 = vshrl.u32 %v16042_v9, %v2695_v6 }
 0x21d   :  { %v2707_v22 = vshrl.u32 %v16044_v21, %v2695_v6  ;;  %v10433_v19 = vsub.s32 %v1076_v25, %v1079_v10  ;;  %v2696_v41 = vshrl.u32 %v16061_v28, %v2695_v6  ;;  %v7831_v12 = vadd.s32 4294967169, %v1332_v18 }
 0x21e   :  { %v2699_v1 = vor.u32 %v2698_v59, %v2697_v57  ;;  %v2702_v34 = vor.u32 %v2701_v32, %v2700_v15  ;;  %v2705_v55 = vor.u32 %v2704_v0, %v2703_v49  ;;  %v10438_v45 = vpop.eup %8766  ;;  %v2858_v61 = vshrl.u32 %v2840_v3, %v2856_v53 }
 0x21f   :  { %v2708_v14 = vor.u32 %v2707_v22, %v2706_v29  ;;  %16132 = vst [vmem:[#allocation59_spill] sm:$0xff] %v10438_v45  ;;  %v1082_v48 = vsub.s32 0, %v10433_v19  ;;  %v2710_v11 = vshrl.u32 %v16028_v43, %v2695_v6  ;;  %vm2712_vm8 = vcmp.lt.s32.totalorder %v2693_v17, 1 }
 0x220   :  { %v2863_v25 = vor.u32 4788187, %v2862_v58  ;;  %vm2713_vm15 = vcmp.lt.s32.totalorder %v2693_v17, 2  ;;  %vm2714_vm2 = vcmp.lt.s32.totalorder %v2693_v17, 3  ;;  %vm2715_vm7 = vcmp.lt.s32.totalorder %v2693_v17, 4 }
 0x221   :  { %v7820_v33 = vmin.u32 %v1082_v48, %v10433_v19  ;;  %v2711_v57 = vor.u32 %v2710_v11, %v2709_v2  ;;  %v2717_v15 = vsel %vm2715_vm7, %v2705_v55, 2102212464  ;;  %v2720_v10 = vsel %vm2712_vm8, %v2699_v1, %v2702_v34 }
 0x222   :  { %v2857_v49 = vshll.u32 %v10362_v51, %v2855_v38  ;;  %v2716_v18 = vsel %vm2712_vm8, %v2696_v41, %v2699_v1  ;;  %v2721_v29 = vsel %vm2715_vm7, %v2708_v14, 920167782  ;;  %v2724_v59 = vsel %vm2712_vm8, %v2702_v34, %v2705_v55  ;;  %v10454_v38 = vpop.f32.mrb[11].mxu1 }
 0x223   :  { %v1084_v3 = vclz %v7820_v33  ;;  %v2718_v53 = vsel %vm2714_vm2, %v2702_v34, %v2717_v15  ;;  %v2722_v6 = vsel %vm2714_vm2, %v2705_v55, %v2721_v29  ;;  %v2725_v32 = vsel %vm2715_vm7, %v2711_v57, 1326507024 }
 0x224   :  { %v2859_v58 = vor.u32 %v2858_v61, %v2857_v49  ;;  %v2864_v0 = vand.u32 2147483647, %v2863_v25  ;;  %v2723_v22 = vsel %vm2713_vm15, %v2720_v10, %v2722_v6  ;;  %v2726_v48 = vsel %vm2714_vm2, %v2708_v14, %v2725_v32 }
 0x225   :  { %v7821_v2 = vadd.s32 4294967294, %v1084_v3  ;;  %v2727_v11 = vsel %vm2713_vm15, %v2724_v59, %v2726_v48  ;;  %v10450_v51 = vmul.u32.u64.low %v10431_v16, %v2723_v22  ;;  %v10451_v1 = vmul.u32.u64.high %v10431_v16, %v2723_v22, %v10450_v51 }
 0x226   :  { %v2719_v34 = vsel %vm2713_vm15, %v2716_v18, %v2718_v53  ;;  %v10458_v55 = vmul.u32.u64.low %v10431_v16, %v2727_v11  ;;  %v10459_v41 = vmul.u32.u64.high %v10431_v16, %v2727_v11, %v10458_v55  ;;  %v1338_v61 = vadd.s32 1, %v7831_v12 }
 0x227   :  { %v16133_v14 = vand.u32 2147483647, %v10063_v46  ;;  %v16134_v25 = vmov 0  ;;  %v16137_v33 = vxor.u32 2147483648, %v10391_v31  ;;  %vm7822_vm2 = vcmp.lt.s32.totalorder %v7821_v2, 0 }
 0x228   :  { %v2866_v57 = vcvt.s32.f32 %v2859_v58  ;;  %v1072_v15 = vadd.s32 %v10368_v20, %v10374_v4  ;;  %v1087_v12 = vsel %vm7822_vm2, 0, %v7821_v2  ;;  %vm1339_vm15 = vcmp.gt.s32.totalorder %v1338_v61, 0 }
 0x229   :  { %vm10464_vm7 = vcmp.le.f32.partialorder %v16133_v14, 0.7853982  ;;  %v1205_v17 = vsel %vm15655_vm10, %v16137_v33, %v10391_v31  ;;  %v1088_v10 = vsub.s32 32, %v1087_v12  ;;  %v1092_v49 = vsub.s32 4294967266, %v1087_v12 }
 0x22a   :  { %v16135_v25 = vsel %vm10464_vm7, 4294967295, %v16134_v25  ;;  %v2735_v18 = vmul.u32 %v10431_v16, %v2719_v34  ;;  %v16138_v29 = vand.u32 2147483647, %v10380_v8  ;;  %vm15661_vm8 = vcmp.lt.s32.totalorder %v10153_v23, 0 }
 0x22b   :  { %16136 = vst [vmem:[#allocation60_spill] sm:$0xff] %v16135_v25  ;;  %v2867_v3 = vmul.f32 %v2866_v57, %v2864_v0  ;;  %vm2737_vm10 = vc.u32 %v10459_v41, %v10450_v51  ;;  %v2738_v31 = vadd.s32 1, %v10451_v1  ;;  %v1340_v53 = vsel %vm1339_vm15, %v1338_v61, 0 }
 0x22c   :  { %v1335_v59 = vand.u32 8388607, %v16138_v29  ;;  %v10485_v20 = vsel %vm10464_vm7, %v10063_v46, %v1205_v17  ;;  %v1090_v4 = vshrl.u32 %v1072_v15, %v1088_v10  ;;  %v1093_v6 = vadd.s32 127, %v1092_v49  ;;  %v10507_v10 = vpop.eup %8768 }
 0x22d   :  { %v1342_v16 = vand.u32 31, %v1340_v53  ;;  %v1089_v32 = vshll.u32 %v10433_v19, %v1087_v12  ;;  %v2739_v58 = vsel %vm2737_vm10, %v2738_v31, %v10451_v1  ;;  %v10491_v0 = vadd.f32 %v10327_v60, %v9931_v26  ;;  %16140 = vst [vmem:[#allocation62_spill] sm:$0xff] %v10507_v10 }
 0x22e   :  { %v10495_v22 = vadd.f32 %v10327_v60, %v10029_v63  ;;  %v1094_v48 = vshll.u32 %v1093_v6, 23  ;;  %v2740_v2 = vadd.s32 %v2739_v58, %v2735_v18  ;;  %v1336_v11 = vor.u32 8388608, %v1335_v59 }
 0x22f   :  { %16139 = vst [vmem:[#allocation61_spill] sm:$0xff] %v10491_v0  ;;  %v1343_v34 = vsub.s32 32, %v1342_v16  ;;  %v2868_v55 = vxor.u32 2147483648, %v2867_v3  ;;  %v1091_v61 = vor.u32 %v1090_v4, %v1089_v32  ;;  %v10497_v14 = vshrl.u32 %v1340_v53, 5 }
 0x230   :  { %v1345_v19 = vshll.u32 %v16061_v28, %v1342_v16  ;;  %v2741_v33 = vadd.s32 536870912, %v2740_v2  ;;  %v1348_v1 = vshll.u32 %v16040_v39, %v1342_v16  ;;  %v1351_v26 = vshll.u32 %v16041_v7, %v1342_v16 }
 0x231   :  { %v1354_v17 = vshll.u32 %v16042_v9, %v1342_v16  ;;  %v1346_v63 = vshrl.u32 %v16040_v39, %v1343_v34  ;;  %v1349_v57 = vshrl.u32 %v16041_v7, %v1343_v34  ;;  %v1352_v15 = vshrl.u32 %v16042_v9, %v1343_v34 }
 0x232   :  { %v1355_v12 = vshrl.u32 %v16044_v21, %v1343_v34  ;;  %v1095_v49 = vor.u32 4788187, %v1094_v48  ;;  %v10509_v18 = vshrl.u32 %v2741_v33, 30  ;;  %v1357_v29 = vshll.u32 %v16044_v21, %v1342_v16 }
 0x233   :  { %v1358_v59 = vshrl.u32 %v16028_v43, %v1343_v34  ;;  %v1347_v31 = vor.u32 %v1346_v63, %v1345_v19  ;;  %v1350_v53 = vor.u32 %v1349_v57, %v1348_v1  ;;  %v1353_v4 = vor.u32 %v1352_v15, %v1351_v26  ;;  %v10531_v26 = vpop.f32.mrb[12].mxu0 }
 0x234   :  { %16141 = vst [vmem:[#allocation63_spill] sm:$0xff] %v10509_v18  ;;  %v1356_v6 = vor.u32 %v1355_v12, %v1354_v17  ;;  %v2869_v32 = vsel %vm15661_vm8, %v2868_v55, %v2867_v3  ;;  %v2743_v58 = vshll.u32 %v10509_v18, 30  ;;  %v1376_v46 = vshll.u32 %v1336_v11, 8 }
 0x235   :  { %v1359_v25 = vor.u32 %v1358_v59, %v1357_v29  ;;  %v1098_v45 = vcvt.s32.f32 %v1091_v61  ;;  %vm1360_vm10 = vcmp.lt.s32.totalorder %v10497_v14, 1  ;;  %v15663_v48 = vand.u32 2147483647, %v10491_v0 }
 0x236   :  { %v2995_v16 = vand.u32 2139095040, %v10491_v0  ;;  %v1096_v33 = vand.u32 2147483647, %v1095_v49  ;;  %v10519_v10 = vsub.s32 %v2740_v2, %v2743_v58  ;;  %vm1363_vm2 = vcmp.lt.s32.totalorder %v10497_v14, 4 }
 0x237   :  { %v1368_v19 = vsel %vm1360_vm10, %v1347_v31, %v1350_v53  ;;  %vm1362_vm15 = vcmp.lt.s32.totalorder %v10497_v14, 3  ;;  %v1369_v3 = vsel %vm1363_vm2, %v1356_v6, 920167782  ;;  %v1372_v11 = vsel %vm1360_vm10, %v1350_v53, %v1353_v4 }
 0x238   :  { %v1373_v55 = vsel %vm1363_vm2, %v1359_v25, 1326507024  ;;  %v2746_v61 = vsub.s32 0, %v10519_v10  ;;  %vm1361_vm8 = vcmp.lt.s32.totalorder %v10497_v14, 2  ;;  %v1365_v1 = vsel %vm1363_vm2, %v1353_v4, 2102212464 }
 0x239   :  { %v1370_v2 = vsel %vm1362_vm15, %v1353_v4, %v1369_v3  ;;  %v1344_v17 = vshrl.u32 %v16061_v28, %v1343_v34  ;;  %v1374_v57 = vsel %vm1362_vm15, %v1356_v6, %v1373_v55  ;;  %v2999_v25 = vand.u32 8388607, %v15663_v48 }
 0x23a   :  { %v1371_v63 = vsel %vm1361_vm8, %v1368_v19, %v1370_v2  ;;  %v1099_v15 = vmul.f32 %v1098_v45, %v1096_v33  ;;  %v7884_v12 = vmin.u32 %v2746_v61, %v10519_v10  ;;  %v1375_v49 = vsel %vm1361_vm8, %v1372_v11, %v1374_v57 }
 0x23b   :  { %v2996_v29 = vshrl.u32 %v2995_v16, 23  ;;  %v1364_v59 = vsel %vm1360_vm10, %v1344_v17, %v1347_v31  ;;  %v1366_v34 = vsel %vm1362_vm15, %v1350_v53, %v1365_v1  ;;  %8770 = vsinq.f32 %v10410_v27 }
 0x23c   :  { %v10547_v4 = vmul.u32.u64.low %v1376_v46, %v1375_v49  ;;  %v10548_v58 = vmul.u32.u64.high %v1376_v46, %v1375_v49, %v10547_v4  ;;  %v2748_v6 = vclz %v7884_v12  ;;  %v16142_v33 = vand.u32 2147483647, %v10153_v23 }
 0x23d   :  { %v10550_v19 = vmul.u32.u64.low %v1376_v46, %v1371_v63  ;;  %v10551_v3 = vmul.u32.u64.high %v1376_v46, %v1371_v63, %v10550_v19  ;;  %v7895_v45 = vadd.s32 4294967169, %v2996_v29  ;;  %v16143_v16 = vmov 0 }
 0x23e   :  { %vm10557_vm2 = vcmp.le.f32.partialorder %v16142_v33, 0.7853982  ;;  %v1227_v31 = vand.u32 2139095040, %v10495_v22  ;;  %8772 = vcosq.f32 %v10485_v20  ;;  %v7885_v53 = vadd.s32 4294967294, %v2748_v6 }
 0x23f   :  { %v16144_v16 = vsel %vm10557_vm2, 4294967295, %v16143_v16  ;;  %v1367_v11 = vsel %vm1361_vm8, %v1364_v59, %v1366_v34  ;;  %v3002_v55 = vadd.s32 1, %v7895_v45  ;;  %v10569_v27 = vsel %vm10557_vm2, %v10153_v23, %v2869_v32 }
 0x240   :  { %16145 = vst [vmem:[#allocation64_spill] sm:$0xff] %v16144_v16  ;;  %v1100_v61 = vxor.u32 2147483648, %v1099_v15  ;;  %vm1385_vm15 = vc.u32 %v10548_v58, %v10550_v19  ;;  %v3000_v1 = vor.u32 8388608, %v2999_v25  ;;  %vm7886_vm10 = vcmp.lt.s32.totalorder %v7885_v53, 0 }
 0x241   :  { %v1386_v2 = vadd.s32 1, %v10551_v3  ;;  %vm3003_vm14 = vcmp.gt.s32.totalorder %v3002_v55, 0  ;;  %v1228_v17 = vshrl.u32 %v1227_v31, 23  ;;  %8774 = vsinq.f32 %v10485_v20 }
 0x242   :  { %v2751_v14 = vsel %vm7886_vm10, 0, %v7885_v53  ;;  %v1383_v63 = vmul.u32 %v1376_v46, %v1367_v11  ;;  %v3004_v57 = vsel %vm3003_vm14, %v3002_v55, 0  ;;  %8776 = vcosq.f32 %v10569_v27 }
 0x243   :  { %v2736_v32 = vadd.s32 %v10450_v51, %v10459_v41  ;;  %v2756_v12 = vsub.s32 4294967266, %v2751_v14  ;;  %v1387_v49 = vsel %vm1385_vm15, %v1386_v2, %v10551_v3  ;;  %vm16146_vm8 = vcmp.lt.s32.totalorder %v10158_v52, 0 }
 0x244   :  { %v10581_v25 = vsel %vm16146_vm8, %v1100_v61, %v1099_v15  ;;  %v1388_v29 = vadd.s32 %v1387_v49, %v1383_v63  ;;  %v3006_v59 = vand.u32 31, %v3004_v57  ;;  %v10583_v34 = vshll.u32 %v3000_v1, 8 }
 0x245   :  { %v2752_v20 = vsub.s32 32, %v2751_v14  ;;  %v2757_v4 = vadd.s32 127, %v2756_v12  ;;  %v7827_v6 = vadd.s32 4294967169, %v1228_v17  ;;  %v2753_v3 = vshll.u32 %v10519_v10, %v2751_v14  ;;  %v10591_v11 = vpop.eup %8770 }
 0x246   :  { %v1389_v45 = vadd.s32 536870912, %v1388_v29  ;;  %v3007_v33 = vsub.s32 32, %v3006_v59  ;;  %v3009_v51 = vshll.u32 %v16061_v28, %v3006_v59  ;;  %v3012_v41 = vshll.u32 %v16040_v39, %v3006_v59  ;;  %16147 = vst [vmem:[#allocation65_spill] sm:$0xff] %v10591_v11 }
 0x247   :  { %v3005_v31 = vshrl.u32 %v3004_v57, 5  ;;  %v3015_v15 = vshll.u32 %v16041_v7, %v3006_v59  ;;  %v3018_v53 = vshll.u32 %v16042_v9, %v3006_v59  ;;  %v2758_v55 = vshll.u32 %v2757_v4, 23 }
 0x248   :  { %v10593_v61 = vshrl.u32 %v1389_v45, 30  ;;  %v3010_v1 = vshrl.u32 %v16040_v39, %v3007_v33  ;;  %v3013_v2 = vshrl.u32 %v16041_v7, %v3007_v33  ;;  %v10597_v17 = vpop.eup %8772  ;;  %v2754_v63 = vshrl.u32 %v2736_v32, %v2752_v20 }
 0x249   :  { %16149 = vst [vmem:[#allocation67_spill] sm:$0xff] %v10597_v17  ;;  %v3016_v12 = vshrl.u32 %v16042_v9, %v3007_v33  ;;  %v3019_v10 = vshrl.u32 %v16044_v21, %v3007_v33  ;;  %v1234_v14 = vadd.s32 1, %v7827_v6  ;;  %v16150_v57 = vand.u32 2147483647, %v10158_v52 }
 0x24a   :  { %16148 = vst [vmem:[#allocation66_spill] sm:$0xff] %v10593_v61  ;;  %v16151_v49 = vmov 0  ;;  %v1391_v4 = vshll.u32 %v10593_v61, 30  ;;  %v3011_v45 = vor.u32 %v3010_v1, %v3009_v51  ;;  %v3014_v48 = vor.u32 %v3013_v2, %v3012_v41 }
 0x24b   :  { %vm10603_vm14 = vcmp.le.f32.partialorder %v16150_v57, 0.7853982  ;;  %v3021_v46 = vshll.u32 %v16044_v21, %v3006_v59  ;;  %v3008_v16 = vshrl.u32 %v16061_v28, %v3007_v33  ;;  %v3017_v32 = vor.u32 %v3016_v12, %v3015_v15  ;;  %v10611_v18 = vpop.eup %8774 }
 0x24c   :  { %v16152_v49 = vsel %vm10603_vm14, 4294967295, %v16151_v49  ;;  %v3020_v20 = vor.u32 %v3019_v10, %v3018_v53  ;;  %v3022_v23 = vshrl.u32 %v16028_v43, %v3007_v33  ;;  %16154 = vst [vmem:[#allocation69_spill] sm:$0xff] %v10611_v18  ;;  %v2759_v6 = vor.u32 4788187, %v2758_v55  ;;  %v10615_v57 = vpop.eup %8776 }
 0x24d   :  { %16153 = vst [vmem:[#allocation68_spill] sm:$0xff] %v16152_v49  ;;  %v10613_v11 = vsub.s32 %v1388_v29, %v1391_v4  ;;  %vm3024_vm10 = vcmp.lt.s32.totalorder %v3005_v31, 1  ;;  %vm3026_vm15 = vcmp.lt.s32.totalorder %v3005_v31, 3  ;;  %16155 = vst [vmem:[#allocation70_spill] sm:$0xff] %v10615_v57  ;;  %v2755_v61 = vor.u32 %v2754_v63, %v2753_v3 }
 0x24e   :  { %v3023_v51 = vor.u32 %v3022_v23, %v3021_v46  ;;  %vm3025_vm8 = vcmp.lt.s32.totalorder %v3005_v31, 2  ;;  %vm3027_vm2 = vcmp.lt.s32.totalorder %v3005_v31, 4  ;;  %v3032_v15 = vsel %vm3024_vm10, %v3011_v45, %v3014_v48 }
 0x24f   :  { %v1394_v59 = vsub.s32 0, %v10613_v11  ;;  %v3029_v41 = vsel %vm3027_vm2, %v3017_v32, 2102212464  ;;  %v3033_v53 = vsel %vm3027_vm2, %v3020_v20, 920167782  ;;  %v3028_v1 = vsel %vm3024_vm10, %v3008_v16, %v3011_v45  ;;  %v10630_v45 = vpop.f32.mrb[12].mxu1 }
 0x250   :  { %v3030_v33 = vsel %vm3026_vm15, %v3014_v48, %v3029_v41  ;;  %v3034_v55 = vsel %vm3026_vm15, %v3017_v32, %v3033_v53  ;;  %v3036_v29 = vsel %vm3024_vm10, %v3014_v48, %v3017_v32  ;;  %v2760_v2 = vand.u32 2147483647, %v2759_v6 }
 0x251   :  { %v7832_v12 = vmin.u32 %v1394_v59, %v10613_v11  ;;  %v3035_v10 = vsel %vm3025_vm8, %v3032_v15, %v3034_v55  ;;  %v3037_v3 = vsel %vm3027_vm2, %v3023_v51, 1326507024  ;;  %v16156_v16 = vand.u32 2147483647, %v10495_v22 }
 0x252   :  { %v3038_v23 = vsel %vm3026_vm15, %v3020_v20, %v3037_v3  ;;  %v10624_v46 = vmul.u32.u64.low %v10583_v34, %v3035_v10  ;;  %v10625_v63 = vmul.u32.u64.high %v10583_v34, %v3035_v10, %v10624_v46  ;;  %v2762_v41 = vcvt.s32.f32 %v2755_v61 }
 0x253   :  { %v1231_v4 = vand.u32 8388607, %v16156_v16  ;;  %v1396_v48 = vclz %v7832_v12  ;;  %v3031_v32 = vsel %vm3025_vm8, %v3028_v1, %v3030_v33  ;;  %v3039_v6 = vsel %vm3025_vm8, %v3036_v29, %v3038_v23 }
 0x254   :  { %v10638_v20 = vsel %vm10603_vm14, %v10158_v52, %v10581_v25  ;;  %v10641_v51 = vmul.u32.u64.low %v10583_v34, %v3039_v6  ;;  %v10642_v59 = vmul.u32.u64.high %v10583_v34, %v3039_v6, %v10641_v51  ;;  %vm1235_vm2 = vcmp.gt.s32.totalorder %v1234_v14, 0 }
 0x255   :  { %8778 = vsinq.f32 %v10569_v27  ;;  %v10645_v15 = vmul.f32 %v2762_v41, %v2760_v2  ;;  %v7833_v61 = vadd.s32 4294967294, %v1396_v48  ;;  %v1236_v53 = vsel %vm1235_vm2, %v1234_v14, 0 }
 0x256   :  { %v3047_v31 = vmul.u32 %v10583_v34, %v3031_v32  ;;  %v3050_v1 = vadd.s32 1, %v10625_v63  ;;  %v1232_v33 = vor.u32 8388608, %v1231_v4  ;;  %v1238_v55 = vand.u32 31, %v1236_v53 }
 0x257   :  { %8780 = vcosq.f32 %v10638_v20  ;;  %vm7834_vm10 = vcmp.lt.s32.totalorder %v7833_v61, 0  ;;  %v10652_v25 = vadd.f32 %v10327_v60, %v10118_v62  ;;  %v1384_v27 = vadd.s32 %v10550_v19, %v10548_v58 }
 0x258   :  { %v1399_v29 = vsel %vm7834_vm10, 0, %v7833_v61  ;;  %vm3049_vm15 = vc.u32 %v10642_v59, %v10624_v46  ;;  %v1239_v14 = vsub.s32 32, %v1238_v55  ;;  %v10662_v16 = vshll.u32 %v1232_v33, 8 }
 0x259   :  { %16157 = vst [vmem:[#allocation71_spill] sm:$0xff] %v10652_v25  ;;  %v1404_v2 = vsub.s32 4294967266, %v1399_v29  ;;  %v3051_v12 = vsel %vm3049_vm15, %v3050_v1, %v10625_v63  ;;  %v1400_v3 = vsub.s32 32, %v1399_v29  ;;  %v1241_v58 = vshll.u32 %v16061_v28, %v1238_v55 }
 0x25a   :  { %v3052_v23 = vadd.s32 %v3051_v12, %v3047_v31  ;;  %v1242_v62 = vshrl.u32 %v16040_v39, %v1239_v14  ;;  %v1244_v19 = vshll.u32 %v16040_v39, %v1238_v55  ;;  %v1245_v41 = vshrl.u32 %v16041_v7, %v1239_v14 }
 0x25b   :  { %v1405_v4 = vadd.s32 127, %v1404_v2  ;;  %v1237_v32 = vshrl.u32 %v1236_v53, 5  ;;  %v1247_v6 = vshll.u32 %v16041_v7, %v1238_v55  ;;  %v1248_v63 = vshrl.u32 %v16042_v9, %v1239_v14 }
 0x25c   :  { %v3053_v48 = vadd.s32 536870912, %v3052_v23  ;;  %v1243_v61 = vor.u32 %v1242_v62, %v1241_v58  ;;  %v1246_v31 = vor.u32 %v1245_v41, %v1244_v19  ;;  %v2891_v1 = vand.u32 2139095040, %v10652_v25 }
 0x25d   :  { %v1406_v51 = vshll.u32 %v1405_v4, 23  ;;  %v1249_v2 = vor.u32 %v1248_v63, %v1247_v6  ;;  %v1250_v12 = vshll.u32 %v16042_v9, %v1238_v55  ;;  %v1251_v34 = vshrl.u32 %v16044_v21, %v1239_v14 }
 0x25e   :  { %v10670_v33 = vshrl.u32 %v3053_v48, 30  ;;  %v1401_v53 = vshll.u32 %v10613_v11, %v1399_v29  ;;  %v1402_v57 = vshrl.u32 %v1384_v27, %v1400_v3  ;;  %v1253_v17 = vshll.u32 %v16044_v21, %v1238_v55 }
 0x25f   :  { %v10674_v10 = vpop.eup %8778  ;;  %v1254_v4 = vshrl.u32 %v16028_v43, %v1239_v14  ;;  %v1407_v62 = vor.u32 4788187, %v1406_v51  ;;  %v1240_v19 = vshrl.u32 %v16061_v28, %v1239_v14  ;;  %v1252_v41 = vor.u32 %v1251_v34, %v1250_v12 }
 0x260   :  { %16158 = vst [vmem:[#allocation72_spill] sm:$0xff] %v10670_v33  ;;  %16159 = vst [vmem:[#allocation73_spill] sm:$0xff] %v10674_v10  ;;  %v3055_v58 = vshll.u32 %v10670_v33, 30  ;;  %vm1256_vm8 = vcmp.lt.s32.totalorder %v1237_v32, 1  ;;  %vm1258_vm2 = vcmp.lt.s32.totalorder %v1237_v32, 3  ;;  %vm1259_vm10 = vcmp.lt.s32.totalorder %v1237_v32, 4 }
 0x261   :  { %v10681_v48 = vpop.eup %8780  ;;  %v1255_v6 = vor.u32 %v1254_v4, %v1253_v17  ;;  %v1261_v11 = vsel %vm1259_vm10, %v1249_v2, 2102212464  ;;  %v1264_v27 = vsel %vm1256_vm8, %v1243_v61, %v1246_v31  ;;  %v1265_v29 = vsel %vm1259_vm10, %v1252_v41, 920167782  ;;  %v10688_v17 = vpop.f32.mrb[13].mxu0 }
 0x262   :  { %16160 = vst [vmem:[#allocation74_spill] sm:$0xff] %v10681_v48  ;;  %v10683_v63 = vsub.s32 %v3052_v23, %v3055_v58  ;;  %v1403_v55 = vor.u32 %v1402_v57, %v1401_v53  ;;  %vm1257_vm15 = vcmp.lt.s32.totalorder %v1237_v32, 2  ;;  %v1266_v3 = vsel %vm1258_vm2, %v1249_v2, %v1265_v29 }
 0x263   :  { %v1268_v51 = vsel %vm1256_vm8, %v1246_v31, %v1249_v2  ;;  %v1260_v14 = vsel %vm1256_vm8, %v1240_v19, %v1243_v61  ;;  %v1267_v34 = vsel %vm1257_vm15, %v1264_v27, %v1266_v3  ;;  %v1269_v12 = vsel %vm1259_vm10, %v1255_v6, 1326507024 }
 0x264   :  { %v3058_v33 = vsub.s32 0, %v10683_v63  ;;  %v1262_v4 = vsel %vm1258_vm2, %v1246_v31, %v1261_v11  ;;  %v1270_v23 = vsel %vm1258_vm2, %v1252_v41, %v1269_v12  ;;  %v1408_v57 = vand.u32 2147483647, %v1407_v62 }
 0x265   :  { %v10693_v58 = vmul.u32.u64.low %v10662_v16, %v1267_v34  ;;  %v10694_v10 = vmul.u32.u64.high %v10662_v16, %v1267_v34, %v10693_v58  ;;  %v1271_v53 = vsel %vm1257_vm15, %v1268_v51, %v1270_v23  ;;  %v2892_v61 = vshrl.u32 %v2891_v1, 23 }
 0x266   :  { %v7896_v2 = vmin.u32 %v3058_v33, %v10683_v63  ;;  %v10700_v19 = vmul.u32.u64.low %v10662_v16, %v1271_v53  ;;  %v10701_v6 = vmul.u32.u64.high %v10662_v16, %v1271_v53, %v10700_v19  ;;  %v16161_v27 = vand.u32 2147483647, %v10652_v25 }
 0x267   :  { %v10707_v41 = vadd.f32 %v10327_v60, %v10222_v24  ;;  %v1410_v11 = vcvt.s32.f32 %v1403_v55  ;;  %v1263_v62 = vsel %vm1257_vm15, %v1260_v14, %v1262_v4  ;;  %v7891_v3 = vadd.s32 4294967169, %v2892_v61 }
 0x268   :  { %v2895_v31 = vand.u32 8388607, %v16161_v27  ;;  %v3060_v29 = vclz %v7896_v2  ;;  %8782 = vsinq.f32 %v10638_v20  ;;  %v16163_v1 = vand.u32 2147483647, %v10331_v35 }
 0x269   :  { %16162 = vst [vmem:[#allocation75_spill] sm:$0xff] %v10707_v41  ;;  %v16164_v33 = vmov 0  ;;  %vm15686_vm2 = vcmp.lt.s32.totalorder %v10331_v35, 0  ;;  %v1282_v51 = vadd.s32 1, %v10694_v10  ;;  %v16167_v24 = vxor.u32 2147483648, %v10645_v15 }
 0x26a   :  { %vm10713_vm8 = vcmp.le.f32.partialorder %v16163_v1, 0.7853982  ;;  %v10724_v55 = vmul.f32 %v1410_v11, %v1408_v57  ;;  %v7897_v14 = vadd.s32 4294967294, %v3060_v29  ;;  %v2898_v20 = vadd.s32 1, %v7891_v3 }
 0x26b   :  { %v16165_v33 = vsel %vm10713_vm8, 4294967295, %v16164_v33  ;;  %v2765_v32 = vsel %vm15686_vm2, %v16167_v24, %v10645_v15  ;;  %v1279_v34 = vmul.u32 %v10662_v16, %v1263_v62  ;;  %vm1281_vm10 = vc.u32 %v10701_v6, %v10693_v58 }
 0x26c   :  { %16166 = vst [vmem:[#allocation76_spill] sm:$0xff] %v16165_v33  ;;  %v2896_v12 = vor.u32 8388608, %v2895_v31  ;;  %v15679_v4 = vand.u32 2147483647, %v10707_v41  ;;  %vm7898_vm15 = vcmp.lt.s32.totalorder %v7897_v14, 0  ;;  %v1283_v23 = vsel %vm1281_vm10, %v1282_v51, %v10694_v10 }
 0x26d   :  { %vm2899_vm6 = vcmp.gt.s32.totalorder %v2898_v20, 0  ;;  %v1539_v2 = vand.u32 2139095040, %v10707_v41  ;;  %v10735_v15 = vsel %vm10713_vm8, %v10331_v35, %v2765_v32  ;;  %v3063_v57 = vsel %vm7898_vm15, 0, %v7897_v14 }
 0x26e   :  { %v1284_v53 = vadd.s32 %v1283_v23, %v1279_v34  ;;  %v2900_v16 = vsel %vm2899_vm6, %v2898_v20, 0  ;;  %v3048_v19 = vadd.s32 %v10624_v46, %v10642_v59  ;;  %v3064_v27 = vsub.s32 32, %v3063_v57 }
 0x26f   :  { %v3068_v31 = vsub.s32 4294967266, %v3063_v57  ;;  %v2902_v10 = vand.u32 31, %v2900_v16  ;;  %v10740_v29 = vshll.u32 %v2896_v12, 8  ;;  %v10744_v62 = vand.u32 8388607, %v15679_v4 }
 0x270   :  { %v1285_v11 = vadd.s32 536870912, %v1284_v53  ;;  %v2901_v1 = vshrl.u32 %v2900_v16, 5  ;;  %v1540_v51 = vshrl.u32 %v1539_v2, 23  ;;  %v10748_v24 = vadd.f32 %v10327_v60, %v10296_v47 }
 0x271   :  { %v3069_v3 = vadd.s32 127, %v3068_v31  ;;  %v2903_v46 = vsub.s32 32, %v2902_v10  ;;  %v2905_v59 = vshll.u32 %v16061_v28, %v2902_v10  ;;  %v2908_v14 = vshll.u32 %v16040_v39, %v2902_v10 }
 0x272   :  { %16168 = vst [vmem:[#allocation77_spill] sm:$0xff] %v10748_v24  ;;  %v10750_v32 = vshrl.u32 %v1285_v11, 30  ;;  %v3065_v20 = vshll.u32 %v10683_v63, %v3063_v57  ;;  %v3066_v34 = vshrl.u32 %v3048_v19, %v3064_v27  ;;  %v2911_v12 = vshll.u32 %v16041_v7, %v2902_v10  ;;  %v10757_v16 = vpop.eup %8782 }
 0x273   :  { %v2914_v23 = vshll.u32 %v16042_v9, %v2902_v10  ;;  %16170 = vst [vmem:[#allocation79_spill] sm:$0xff] %v10757_v16  ;;  %v3070_v2 = vshll.u32 %v3069_v3, 23  ;;  %v2906_v60 = vshrl.u32 %v16040_v39, %v2903_v46  ;;  %v2909_v31 = vshrl.u32 %v16041_v7, %v2903_v46 }
 0x274   :  { %16169 = vst [vmem:[#allocation78_spill] sm:$0xff] %v10750_v32  ;;  %v1287_v47 = vshll.u32 %v10750_v32, 30  ;;  %v2912_v11 = vshrl.u32 %v16042_v9, %v2903_v46  ;;  %v2915_v4 = vshrl.u32 %v16044_v21, %v2903_v46  ;;  %v2917_v27 = vshll.u32 %v16044_v21, %v2902_v10 }
 0x275   :  { %v2907_v57 = vor.u32 %v2906_v60, %v2905_v59  ;;  %v2910_v19 = vor.u32 %v2909_v31, %v2908_v14  ;;  %v2904_v3 = vshrl.u32 %v16061_v28, %v2903_v46  ;;  %v2918_v35 = vshrl.u32 %v16028_v43, %v2903_v46 }
 0x276   :  { %v10765_v63 = vsub.s32 %v1284_v53, %v1287_v47  ;;  %v2913_v61 = vor.u32 %v2912_v11, %v2911_v12  ;;  %v2916_v33 = vor.u32 %v2915_v4, %v2914_v23  ;;  %v3071_v32 = vor.u32 4788187, %v3070_v2  ;;  %v10777_v2 = vpop.f32.mrb[13].mxu1 }
 0x277   :  { %vm2922_vm2 = vcmp.lt.s32.totalorder %v2901_v1, 3  ;;  %vm2923_vm6 = vcmp.lt.s32.totalorder %v2901_v1, 4  ;;  %v3067_v48 = vor.u32 %v3066_v34, %v3065_v20  ;;  %v2919_v49 = vor.u32 %v2918_v35, %v2917_v27 }
 0x278   :  { %v1290_v18 = vsub.s32 0, %v10765_v63  ;;  %v2925_v16 = vsel %vm2923_vm6, %v2913_v61, 2102212464  ;;  %vm16171_vm15 = vcmp.lt.s32.totalorder %v2901_v1, 1  ;;  %v2929_v14 = vsel %vm2923_vm6, %v2916_v33, 920167782 }
 0x279   :  { %v2928_v53 = vsel %vm16171_vm15, %v2907_v57, %v2910_v19  ;;  %vm16172_vm10 = vmmov %vm16171_vm15  ;;  %v7839_v47 = vadd.s32 4294967169, %v1540_v51  ;;  %v2926_v46 = vsel %vm2922_vm2, %v2910_v19, %v2925_v16  ;;  %v2930_v12 = vsel %vm2922_vm2, %v2913_v61, %v2929_v14 }
 0x27a   :  { %v7828_v59 = vmin.u32 %v1290_v18, %v10765_v63  ;;  %v2932_v10 = vsel %vm16172_vm10, %v2910_v19, %v2913_v61  ;;  %vm16173_vm8 = vmmov %vm16172_vm10  ;;  %v2933_v23 = vsel %vm2923_vm6, %v2919_v49, 1326507024  ;;  %v3072_v20 = vand.u32 2147483647, %v3071_v32 }
 0x27b   :  { %v2924_v4 = vsel %vm16173_vm8, %v2904_v3, %v2907_v57  ;;  %vm16174_vm3 = vcmp.lt.s32.totalorder %v2901_v1, 2  ;;  %v2934_v60 = vsel %vm2922_vm2, %v2916_v33, %v2933_v23  ;;  %v3074_v18 = vcvt.s32.f32 %v3067_v48 }
 0x27c   :  { %v1292_v35 = vclz %v7828_v59  ;;  %v2931_v34 = vsel %vm16174_vm3, %v2928_v53, %v2930_v12  ;;  %vm16175_vm15 = vmmov %vm16174_vm3  ;;  %8784 = vcosq.f32 %v10735_v15  ;;  %v16177_v32 = vand.u32 2147483647, %v10380_v8 }
 0x27d   :  { %v2935_v31 = vsel %vm16175_vm15, %v2932_v10, %v2934_v60  ;;  %v10783_v51 = vmul.u32.u64.low %v10740_v29, %v2931_v34  ;;  %v10784_v11 = vmul.u32.u64.high %v10740_v29, %v2931_v34, %v10783_v51  ;;  %vm16176_vm8 = vmmov %vm16174_vm3  ;;  %v16178_v48 = vmov 0 }
 0x27e   :  { %v7829_v16 = vadd.s32 4294967294, %v1292_v35  ;;  %v2927_v61 = vsel %vm16176_vm8, %v2924_v4, %v2926_v46  ;;  %v10789_v49 = vmul.u32.u64.low %v10740_v29, %v2935_v31  ;;  %v10790_v57 = vmul.u32.u64.high %v10740_v29, %v2935_v31, %v10789_v49 }
 0x27f   :  { %vm10795_vm3 = vcmp.le.f32.partialorder %v16177_v32, 0.7853982  ;;  %v16181_v33 = vxor.u32 2147483648, %v10724_v55  ;;  %vm16182_vm2 = vcmp.lt.s32.totalorder %v10380_v8, 0  ;;  %v1546_v1 = vadd.s32 1, %v7839_v47 }
 0x280   :  { %v16179_v48 = vsel %vm10795_vm3, 4294967295, %v16178_v48  ;;  %v10804_v27 = vmul.f32 %v3074_v18, %v3072_v20  ;;  %vm7830_vm6 = vcmp.lt.s32.totalorder %v7829_v16, 0  ;;  %v1544_v3 = vor.u32 8388608, %v10744_v62 }
 0x281   :  { %16180 = vst [vmem:[#allocation80_spill] sm:$0xff] %v16179_v48  ;;  %v1413_v19 = vsel %vm16182_vm2, %v16181_v33, %v10724_v55  ;;  %v3203_v53 = vand.u32 2139095040, %v10748_v24  ;;  %v1295_v59 = vsel %vm7830_vm6, 0, %v7829_v16  ;;  %v2943_v14 = vmul.u32 %v10740_v29, %v2927_v61 }
 0x282   :  { %v2946_v10 = vadd.s32 1, %v10784_v11  ;;  %vm1547_vm10 = vcmp.gt.s32.totalorder %v1546_v1, 0  ;;  %v1280_v4 = vadd.s32 %v10693_v58, %v10701_v6  ;;  %v1296_v46 = vsub.s32 32, %v1295_v59 }
 0x283   :  { %v1300_v12 = vsub.s32 4294967266, %v1295_v59  ;;  %v15692_v55 = vand.u32 2147483647, %v10748_v24  ;;  %v10816_v47 = vsel %vm10795_vm3, %v10380_v8, %v1413_v19  ;;  %vm2945_vm15 = vc.u32 %v10790_v57, %v10783_v51 }
 0x284   :  { %v1548_v62 = vsel %vm1547_vm10, %v1546_v1, 0  ;;  %v3204_v29 = vshrl.u32 %v3203_v53, 23  ;;  %v1297_v23 = vshll.u32 %v10765_v63, %v1295_v59  ;;  %v1298_v20 = vshrl.u32 %v1280_v4, %v1296_v46 }
 0x285   :  { %v1301_v35 = vadd.s32 127, %v1300_v12  ;;  %v2947_v58 = vsel %vm2945_vm15, %v2946_v10, %v10784_v11  ;;  %v3076_v6 = vxor.u32 2147483648, %v10804_v27  ;;  %v1550_v60 = vand.u32 31, %v1548_v62 }
 0x286   :  { %v2948_v34 = vadd.s32 %v2947_v58, %v2943_v14  ;;  %v10823_v18 = vshll.u32 %v1544_v3, 8  ;;  %v1299_v31 = vor.u32 %v1298_v20, %v1297_v23  ;;  %v1549_v61 = vshrl.u32 %v1548_v62, 5  ;;  %v10833_v59 = vpop.eup %8784 }
 0x287   :  { %v1302_v16 = vshll.u32 %v1301_v35, 23  ;;  %v10827_v49 = vand.u32 8388607, %v15692_v55  ;;  %v1551_v33 = vsub.s32 32, %v1550_v60  ;;  %v1553_v63 = vshll.u32 %v16061_v28, %v1550_v60  ;;  %16183 = vst [vmem:[#allocation81_spill] sm:$0xff] %v10833_v59 }
 0x288   :  { %v2949_v32 = vadd.s32 536870912, %v2948_v34  ;;  %v7903_v19 = vadd.s32 4294967169, %v3204_v29  ;;  %v1306_v1 = vcvt.s32.f32 %v1299_v31  ;;  %v1556_v53 = vshll.u32 %v16040_v39, %v1550_v60 }
 0x289   :  { %v1303_v11 = vor.u32 4788187, %v1302_v16  ;;  %v1559_v3 = vshll.u32 %v16041_v7, %v1550_v60  ;;  %v1554_v10 = vshrl.u32 %v16040_v39, %v1551_v33  ;;  %v1557_v4 = vshrl.u32 %v16041_v7, %v1551_v33 }
 0x28a   :  { %v10835_v14 = vshrl.u32 %v2949_v32, 30  ;;  %v1562_v46 = vshll.u32 %v16042_v9, %v1550_v60  ;;  %v1560_v62 = vshrl.u32 %v16042_v9, %v1551_v33  ;;  %v1563_v29 = vshrl.u32 %v16044_v21, %v1551_v33 }
 0x28b   :  { %v1304_v12 = vand.u32 2147483647, %v1303_v11  ;;  %v1565_v23 = vshll.u32 %v16044_v21, %v1550_v60  ;;  %v1555_v35 = vor.u32 %v1554_v10, %v1553_v63  ;;  %v1558_v58 = vor.u32 %v1557_v4, %v1556_v53 }
 0x28c   :  { %16184 = vst [vmem:[#allocation82_spill] sm:$0xff] %v10835_v14  ;;  %v2951_v20 = vshll.u32 %v10835_v14, 30  ;;  %v1566_v31 = vshrl.u32 %v16028_v43, %v1551_v33  ;;  %v16185_v16 = vand.u32 2147483647, %v10491_v0  ;;  %v16186_v32 = vmov 0 }
 0x28d   :  { %v1552_v11 = vshrl.u32 %v16061_v28, %v1551_v33  ;;  %v1561_v55 = vor.u32 %v1560_v62, %v1559_v3  ;;  %v1564_v59 = vor.u32 %v1563_v29, %v1562_v46  ;;  %vm1568_vm6 = vcmp.lt.s32.totalorder %v1549_v61, 1 }
 0x28e   :  { %vm10847_vm2 = vcmp.le.f32.partialorder %v16185_v16, 0.7853982  ;;  %v1307_v48 = vmul.f32 %v1306_v1, %v1304_v12  ;;  %v10852_v8 = vsub.s32 %v2948_v34, %v2951_v20  ;;  %v1567_v60 = vor.u32 %v1566_v31, %v1565_v23  ;;  %v10869_v31 = vpop.f32.mrb[14].mxu0 }
 0x28f   :  { %v16187_v32 = vsel %vm10847_vm2, 4294967295, %v16186_v32  ;;  %vm1571_vm10 = vcmp.lt.s32.totalorder %v1549_v61, 4  ;;  %vm1570_vm15 = vcmp.lt.s32.totalorder %v1549_v61, 3  ;;  %v1576_v53 = vsel %vm1568_vm6, %v1555_v35, %v1558_v58 }
 0x290   :  { %16188 = vst [vmem:[#allocation83_spill] sm:$0xff] %v16187_v32  ;;  %v1573_v63 = vsel %vm1571_vm10, %v1561_v55, 2102212464  ;;  %v1577_v10 = vsel %vm1571_vm10, %v1564_v59, 920167782  ;;  %v2954_v4 = vsub.s32 0, %v10852_v8  ;;  %v1580_v14 = vsel %vm1568_vm6, %v1558_v58, %v1561_v55 }
 0x291   :  { %vm1569_vm8 = vcmp.lt.s32.totalorder %v1549_v61, 2  ;;  %v1578_v16 = vsel %vm1570_vm15, %v1561_v55, %v1577_v10  ;;  %v1572_v52 = vsel %vm1568_vm6, %v1552_v11, %v1555_v35  ;;  %v1574_v50 = vsel %vm1570_vm15, %v1558_v58, %v1573_v63 }
 0x292   :  { %v1579_v33 = vsel %vm1569_vm8, %v1576_v53, %v1578_v16  ;;  %v1581_v3 = vsel %vm1571_vm10, %v1567_v60, 1326507024  ;;  %vm16189_vm0 = vcmp.lt.s32.totalorder %v10491_v0, 0  ;;  %v7892_v1 = vmin.u32 %v2954_v4, %v10852_v8 }
 0x293   :  { %v3077_v34 = vsel %vm16189_vm0, %v3076_v6, %v10804_v27  ;;  %v1582_v46 = vsel %vm1570_vm15, %v1564_v59, %v1581_v3  ;;  %v3208_v12 = vor.u32 8388608, %v10827_v49  ;;  %v1308_v62 = vxor.u32 2147483648, %v1307_v48  ;;  %v10876_v6 = vld [vmem:[%s15542_s2] ss:$0 sm:$0xff] }
 0x294   :  { %v1583_v29 = vsel %vm1569_vm8, %v1580_v14, %v1582_v46  ;;  %v10861_v23 = vmul.u32.u64.low %v10823_v18, %v1579_v33  ;;  %v10862_v61 = vmul.u32.u64.high %v10823_v18, %v1579_v33, %v10861_v23  ;;  %v2956_v55 = vclz %v7892_v1 }
 0x295   :  { %v1575_v20 = vsel %vm1569_vm8, %v1572_v52, %v1574_v50  ;;  %v10866_v35 = vmul.u32.u64.low %v10823_v18, %v1583_v29  ;;  %v10867_v58 = vmul.u32.u64.high %v10823_v18, %v1583_v29, %v10866_v35  ;;  %8786 = vsinq.f32 %v10735_v15 }
 0x296   :  { %vm15708_vm0 = vcmp.lt.s32.totalorder %v10495_v22, 0  ;;  %v3210_v27 = vadd.s32 1, %v7903_v19  ;;  %v10880_v49 = vadd.f32 %v10876_v6, %v10364_v13  ;;  %8788 = vcosq.f32 %v10816_v47 }
 0x297   :  { %v10886_v50 = vsel %vm10847_vm2, %v10491_v0, %v3077_v34  ;;  %v2944_v52 = vadd.s32 %v10783_v51, %v10790_v57  ;;  %v7893_v15 = vadd.s32 4294967294, %v2956_v55  ;;  %v10892_v19 = vsel %vm15708_vm0, %v1308_v62, %v1307_v48 }
 0x298   :  { %v1591_v59 = vmul.u32 %v10823_v18, %v1575_v20  ;;  %v1594_v13 = vadd.s32 1, %v10862_v61  ;;  %vm3211_vm8 = vcmp.gt.s32.totalorder %v3210_v27, 0  ;;  %vm1593_vm10 = vc.u32 %v10867_v58, %v10861_v23 }
 0x299   :  { %vm7894_vm6 = vcmp.lt.s32.totalorder %v7893_v15, 0  ;;  %v3212_v14 = vsel %vm3211_vm8, %v3210_v27, 0  ;;  %v10898_v11 = vshll.u32 %v3208_v12, 8  ;;  %v1435_v18 = vand.u32 2139095040, %v10880_v49 }
 0x29a   :  { %v2959_v60 = vsel %vm7894_vm6, 0, %v7893_v15  ;;  %v1595_v51 = vsel %vm1593_vm10, %v1594_v13, %v10862_v61  ;;  %v3214_v57 = vand.u32 31, %v3212_v14  ;;  %v3213_v4 = vshrl.u32 %v3212_v14, 5 }
 0x29b   :  { %v2960_v48 = vsub.s32 32, %v2959_v60  ;;  %v2964_v53 = vsub.s32 4294967266, %v2959_v60  ;;  %v1596_v10 = vadd.s32 %v1595_v51, %v1591_v59  ;;  %v2961_v13 = vshll.u32 %v10852_v8, %v2959_v60 }
 0x29c   :  { %v3215_v16 = vsub.s32 32, %v3214_v57  ;;  %v3217_v33 = vshll.u32 %v16061_v28, %v3214_v57  ;;  %v3220_v3 = vshll.u32 %v16040_v39, %v3214_v57  ;;  %v3223_v46 = vshll.u32 %v16041_v7, %v3214_v57 }
 0x29d   :  { %v2965_v34 = vadd.s32 127, %v2964_v53  ;;  %v1597_v1 = vadd.s32 536870912, %v1596_v10  ;;  %v3226_v12 = vshll.u32 %v16042_v9, %v3214_v57  ;;  %v2962_v62 = vshrl.u32 %v2944_v52, %v2960_v48 }
 0x29e   :  { %v3218_v29 = vshrl.u32 %v16040_v39, %v3215_v16  ;;  %v3221_v61 = vshrl.u32 %v16041_v7, %v3215_v16  ;;  %v3224_v55 = vshrl.u32 %v16042_v9, %v3215_v16  ;;  %v3216_v27 = vshrl.u32 %v16061_v28, %v3215_v16 }
 0x29f   :  { %v2966_v20 = vshll.u32 %v2965_v34, 23  ;;  %v10910_v35 = vshrl.u32 %v1597_v1, 30  ;;  %v3227_v15 = vshrl.u32 %v16044_v21, %v3215_v16  ;;  %v10914_v59 = vpop.eup %8786  ;;  %v3229_v52 = vshll.u32 %v16044_v21, %v3214_v57 }
 0x2a0   :  { %16191 = vst [vmem:[#allocation85_spill] sm:$0xff] %v10914_v59  ;;  %v3219_v14 = vor.u32 %v3218_v29, %v3217_v33  ;;  %v3222_v51 = vor.u32 %v3221_v61, %v3220_v3  ;;  %v10918_v48 = vpop.eup %8788  ;;  %v3225_v34 = vor.u32 %v3224_v55, %v3223_v46  ;;  %v2963_v32 = vor.u32 %v2962_v62, %v2961_v13 }
 0x2a1   :  { %16190 = vst [vmem:[#allocation84_spill] sm:$0xff] %v10910_v35  ;;  %16192 = vst [vmem:[#allocation86_spill] sm:$0xff] %v10918_v48  ;;  %v2967_v53 = vor.u32 4788187, %v2966_v20  ;;  %v1599_v63 = vshll.u32 %v10910_v35, 30  ;;  %v3228_v1 = vor.u32 %v3227_v15, %v3226_v12  ;;  %v3230_v0 = vshrl.u32 %v16028_v43, %v3215_v16  ;;  %v10935_v15 = vpop.f32.mrb[14].mxu1 }
 0x2a2   :  { %vm3232_vm15 = vcmp.lt.s32.totalorder %v3213_v4, 1  ;;  %vm3234_vm8 = vcmp.lt.s32.totalorder %v3213_v4, 3  ;;  %vm3233_vm6 = vcmp.lt.s32.totalorder %v3213_v4, 2  ;;  %vm3235_vm10 = vcmp.lt.s32.totalorder %v3213_v4, 4 }
 0x2a3   :  { %v10922_v30 = vsub.s32 %v1596_v10, %v1599_v63  ;;  %v3236_v8 = vsel %vm3232_vm15, %v3216_v27, %v3219_v14  ;;  %v3231_v60 = vor.u32 %v3230_v0, %v3229_v52  ;;  %v3237_v33 = vsel %vm3235_vm10, %v3225_v34, 2102212464 }
 0x2a4   :  { %v3240_v57 = vsel %vm3232_vm15, %v3219_v14, %v3222_v51  ;;  %v3241_v3 = vsel %vm3235_vm10, %v3228_v1, 920167782  ;;  %v2968_v29 = vand.u32 2147483647, %v2967_v53  ;;  %v3238_v46 = vsel %vm3234_vm8, %v3222_v51, %v3237_v33 }
 0x2a5   :  { %v1602_v61 = vsub.s32 0, %v10922_v30  ;;  %v3242_v12 = vsel %vm3234_vm8, %v3225_v34, %v3241_v3  ;;  %v3244_v62 = vsel %vm3232_vm15, %v3222_v51, %v3225_v34  ;;  %v3245_v55 = vsel %vm3235_vm10, %v3231_v60, 1326507024 }
 0x2a6   :  { %v3243_v16 = vsel %vm3233_vm6, %v3240_v57, %v3242_v12  ;;  %v10930_v63 = vadd.f32 %v10876_v6, %v10454_v38  ;;  %v2970_v10 = vcvt.s32.f32 %v2963_v32  ;;  %v3239_v20 = vsel %vm3233_vm6, %v3236_v8, %v3238_v46 }
 0x2a7   :  { %v7840_v0 = vmin.u32 %v1602_v61, %v10922_v30  ;;  %v3246_v27 = vsel %vm3234_vm8, %v3228_v1, %v3245_v55  ;;  %v10939_v14 = vmul.u32.u64.low %v10898_v11, %v3243_v16  ;;  %v10940_v52 = vmul.u32.u64.high %v10898_v11, %v3243_v16, %v10939_v14 }
 0x2a8   :  { %16193 = vst [vmem:[#allocation87_spill] sm:$0xff] %v10930_v63  ;;  %v3247_v13 = vsel %vm3233_vm6, %v3244_v62, %v3246_v27  ;;  %v1436_v51 = vshrl.u32 %v1435_v18, 23  ;;  %v2971_v53 = vmul.f32 %v2970_v10, %v2968_v29  ;;  %8790 = vsinq.f32 %v10816_v47 }
 0x2a9   :  { %v1604_v38 = vclz %v7840_v0  ;;  %v10944_v32 = vmul.u32.u64.low %v10898_v11, %v3247_v13  ;;  %v10945_v34 = vmul.u32.u64.high %v10898_v11, %v3247_v13, %v10944_v32  ;;  %v16194_v1 = vand.u32 2147483647, %v10495_v22 }
 0x2aa   :  { %v16195_v8 = vmov 0  ;;  %v7835_v4 = vadd.s32 4294967169, %v1436_v51  ;;  %8792 = vcosq.f32 %v10886_v50  ;;  %v3255_v18 = vmul.u32 %v10898_v11, %v3239_v20 }
 0x2ab   :  { %vm10950_vm15 = vcmp.le.f32.partialorder %v16194_v1, 0.7853982  ;;  %v7841_v60 = vadd.s32 4294967294, %v1604_v38  ;;  %v3099_v33 = vand.u32 2139095040, %v10930_v63  ;;  %v3258_v47 = vadd.s32 1, %v10940_v52 }
 0x2ac   :  { %v16196_v8 = vsel %vm10950_vm15, 4294967295, %v16195_v8  ;;  %v10961_v57 = vsel %vm10950_vm15, %v10495_v22, %v10892_v19  ;;  %v16197_v3 = vand.u32 2147483647, %v10880_v49  ;;  %v1442_v61 = vadd.s32 1, %v7835_v4 }
 0x2ad   :  { %v2972_v46 = vxor.u32 2147483648, %v2971_v53  ;;  %v1592_v12 = vadd.s32 %v10861_v23, %v10867_v58  ;;  %vm7842_vm8 = vcmp.lt.s32.totalorder %v7841_v60, 0  ;;  %vm3257_vm6 = vc.u32 %v10945_v34, %v10939_v14 }
 0x2ae   :  { %v10966_v29 = vand.u32 8388607, %v16197_v3  ;;  %v1607_v11 = vsel %vm7842_vm8, 0, %v7841_v60  ;;  %v3259_v16 = vsel %vm3257_vm6, %v3258_v47, %v10940_v52  ;;  %vm1443_vm10 = vcmp.gt.s32.totalorder %v1442_v61, 0 }
 0x2af   :  { %v3100_v19 = vshrl.u32 %v3099_v33, 23  ;;  %v1608_v62 = vsub.s32 32, %v1607_v11  ;;  %v1612_v55 = vsub.s32 4294967266, %v1607_v11  ;;  %v3260_v10 = vadd.s32 %v3259_v16, %v3255_v18 }
 0x2b0   :  { %v15709_v0 = vand.u32 2147483647, %v10930_v63  ;;  %8794 = vsinq.f32 %v10886_v50  ;;  %vm15716_vm0 = vcmp.lt.s32.totalorder %v10652_v25, 0  ;;  %v1444_v20 = vsel %vm1443_vm10, %v1442_v61, 0 }
 0x2b1   :  { %v7899_v23 = vadd.s32 4294967169, %v3100_v19  ;;  %8796 = vcosq.f32 %v10961_v57  ;;  %v1610_v58 = vshrl.u32 %v1592_v12, %v1608_v62  ;;  %v1613_v27 = vadd.s32 127, %v1612_v55 }
 0x2b2   :  { %v3261_v13 = vadd.s32 536870912, %v3260_v10  ;;  %v10979_v52 = vsel %vm15716_vm0, %v2972_v46, %v2971_v53  ;;  %v1609_v51 = vshll.u32 %v10922_v30, %v1607_v11  ;;  %v1446_v38 = vand.u32 31, %v1444_v20  ;;  %v10993_v18 = vpop.eup %8790 }
 0x2b3   :  { %v10984_v32 = vadd.f32 %v10876_v6, %v10531_v26  ;;  %v1614_v50 = vshll.u32 %v1613_v27, 23  ;;  %v1440_v4 = vor.u32 8388608, %v10966_v29  ;;  %v10991_v60 = vand.u32 8388607, %v15709_v0  ;;  %16200 = vst [vmem:[#allocation90_spill] sm:$0xff] %v10993_v18 }
 0x2b4   :  { %v10986_v1 = vshrl.u32 %v3261_v13, 30  ;;  %v1611_v53 = vor.u32 %v1610_v58, %v1609_v51  ;;  %v1445_v33 = vshrl.u32 %v1444_v20, 5  ;;  %v1447_v47 = vsub.s32 32, %v1446_v38  ;;  %v10995_v3 = vpop.eup %8792 }
 0x2b5   :  { %16198 = vst [vmem:[#allocation88_spill] sm:$0xff] %v10984_v32  ;;  %v3106_v30 = vadd.s32 1, %v7899_v23  ;;  %16201 = vst [vmem:[#allocation91_spill] sm:$0xff] %v10995_v3  ;;  %v1449_v61 = vshll.u32 %v16061_v28, %v1446_v38  ;;  %v1452_v46 = vshll.u32 %v16040_v39, %v1446_v38  ;;  %v1455_v29 = vshll.u32 %v16041_v7, %v1446_v38 }
 0x2b6   :  { %16199 = vst [vmem:[#allocation89_spill] sm:$0xff] %v10986_v1  ;;  %v3263_v26 = vshll.u32 %v10986_v1, 30  ;;  %v1615_v12 = vor.u32 4788187, %v1614_v50  ;;  %v1450_v11 = vshrl.u32 %v16040_v39, %v1447_v47  ;;  %v1453_v16 = vshrl.u32 %v16041_v7, %v1447_v47 }
 0x2b7   :  { %v1456_v19 = vshrl.u32 %v16042_v9, %v1447_v47  ;;  %v1458_v55 = vshll.u32 %v16042_v9, %v1446_v38  ;;  %v1459_v20 = vshrl.u32 %v16044_v21, %v1447_v47  ;;  %v1461_v23 = vshll.u32 %v16044_v21, %v1446_v38 }
 0x2b8   :  { %v11004_v62 = vsub.s32 %v3260_v10, %v3263_v26  ;;  %v1451_v58 = vor.u32 %v1450_v11, %v1449_v61  ;;  %v1454_v27 = vor.u32 %v1453_v16, %v1452_v46  ;;  %v1462_v51 = vshrl.u32 %v16028_v43, %v1447_v47 }
 0x2b9   :  { %v1457_v13 = vor.u32 %v1456_v19, %v1455_v29  ;;  %v1618_v50 = vcvt.s32.f32 %v1611_v53  ;;  %v1460_v1 = vor.u32 %v1459_v20, %v1458_v55  ;;  %vm1464_vm8 = vcmp.lt.s32.totalorder %v1445_v33, 1 }
 0x2ba   :  { %v3266_v0 = vsub.s32 0, %v11004_v62  ;;  %v11011_v3 = vpop.eup %8794  ;;  %v1616_v10 = vand.u32 2147483647, %v1615_v12  ;;  %v1448_v26 = vshrl.u32 %v16061_v28, %v1447_v47  ;;  %v1463_v59 = vor.u32 %v1462_v51, %v1461_v23 }
 0x2bb   :  { %16202 = vst [vmem:[#allocation92_spill] sm:$0xff] %v11011_v3  ;;  %vm1467_vm6 = vcmp.lt.s32.totalorder %v1445_v33, 4  ;;  %v11014_v35 = vpop.eup %8796  ;;  %vm1465_vm10 = vcmp.lt.s32.totalorder %v1445_v33, 2  ;;  %v1472_v46 = vsel %vm1464_vm8, %v1451_v58, %v1454_v27  ;;  %vm1466_vm0 = vcmp.lt.s32.totalorder %v1445_v33, 3 }
 0x2bc   :  { %v7904_v38 = vmin.u32 %v3266_v0, %v11004_v62  ;;  %v1469_v61 = vsel %vm1467_vm6, %v1457_v13, 2102212464  ;;  %v1473_v53 = vsel %vm1467_vm6, %v1460_v1, 920167782  ;;  %v1476_v29 = vsel %vm1464_vm8, %v1454_v27, %v1457_v13 }
 0x2bd   :  { %v1477_v11 = vsel %vm1467_vm6, %v1463_v59, 1326507024  ;;  %v1468_v12 = vsel %vm1464_vm8, %v1448_v26, %v1451_v58  ;;  %v1470_v19 = vsel %vm1466_vm0, %v1454_v27, %v1469_v61  ;;  %v1474_v47 = vsel %vm1466_vm0, %v1457_v13, %v1473_v53 }
 0x2be   :  { %v3268_v16 = vclz %v7904_v38  ;;  %v11020_v55 = vmul.f32 %v1618_v50, %v1616_v10  ;;  %v1475_v20 = vsel %vm1465_vm10, %v1472_v46, %v1474_v47  ;;  %v1478_v23 = vsel %vm1466_vm0, %v1460_v1, %v1477_v11  ;;  %v11035_v1 = vpop.f32.mrb[15].mxu0 }
 0x2bf   :  { %v1480_v0 = vshll.u32 %v1440_v4, 8  ;;  %v1479_v3 = vsel %vm1465_vm10, %v1476_v29, %v1478_v23  ;;  %v3104_v48 = vor.u32 8388608, %v10991_v60  ;;  %vm3107_vm2 = vcmp.gt.s32.totalorder %v3106_v30, 0 }
 0x2c0   :  { %v7905_v51 = vadd.s32 4294967294, %v3268_v16  ;;  %v1471_v18 = vsel %vm1465_vm10, %v1468_v12, %v1470_v19  ;;  %v3108_v58 = vsel %vm3107_vm2, %v3106_v30, 0  ;;  %v3256_v27 = vadd.s32 %v10939_v14, %v10945_v34 }
 0x2c1   :  { %v11026_v59 = vmul.u32.u64.low %v1480_v0, %v1479_v3  ;;  %v11027_v38 = vmul.u32.u64.high %v1480_v0, %v1479_v3, %v11026_v59  ;;  %v11031_v13 = vmul.u32.u64.low %v1480_v0, %v1475_v20  ;;  %v11032_v50 = vmul.u32.u64.high %v1480_v0, %v1475_v20, %v11031_v13 }
 0x2c2   :  { %vm7906_vm8 = vcmp.lt.s32.totalorder %v7905_v51, 0  ;;  %v1620_v4 = vxor.u32 2147483648, %v11020_v55  ;;  %v3110_v10 = vand.u32 31, %v3108_v58  ;;  %v1487_v61 = vmul.u32 %v1480_v0, %v1471_v18 }
 0x2c3   :  { %v3271_v60 = vsel %vm7906_vm8, 0, %v7905_v51  ;;  %v3109_v30 = vshrl.u32 %v3108_v58, 5  ;;  %vm1489_vm2 = vc.u32 %v11027_v38, %v11031_v13  ;;  %v11042_v46 = vshll.u32 %v3104_v48, 8 }
 0x2c4   :  { %v3272_v26 = vsub.s32 32, %v3271_v60  ;;  %v3276_v3 = vsub.s32 4294967266, %v3271_v60  ;;  %v3111_v14 = vsub.s32 32, %v3110_v10  ;;  %v3113_v34 = vshll.u32 %v16061_v28, %v3110_v10 }
 0x2c5   :  { %v1490_v11 = vadd.s32 1, %v11032_v50  ;;  %v3116_v16 = vshll.u32 %v16040_v39, %v3110_v10  ;;  %v3273_v12 = vshll.u32 %v11004_v62, %v3271_v60  ;;  %v3119_v47 = vshll.u32 %v16041_v7, %v3110_v10 }
 0x2c6   :  { %v3274_v53 = vshrl.u32 %v3256_v27, %v3272_v26  ;;  %v3277_v29 = vadd.s32 127, %v3276_v3  ;;  %v3114_v18 = vshrl.u32 %v16040_v39, %v3111_v14  ;;  %v3117_v19 = vshrl.u32 %v16041_v7, %v3111_v14 }
 0x2c7   :  { %v1491_v48 = vsel %vm1489_vm2, %v1490_v11, %v11032_v50  ;;  %v3120_v23 = vshrl.u32 %v16042_v9, %v3111_v14  ;;  %v3112_v59 = vshrl.u32 %v16061_v28, %v3111_v14  ;;  %v3122_v58 = vshll.u32 %v16042_v9, %v3110_v10 }
 0x2c8   :  { %v3278_v20 = vshll.u32 %v3277_v29, 23  ;;  %v3275_v0 = vor.u32 %v3274_v53, %v3273_v12  ;;  %v1492_v51 = vadd.s32 %v1491_v48, %v1487_v61  ;;  %v16203_v62 = vand.u32 2147483647, %v10652_v25 }
 0x2c9   :  { %v16204_v27 = vmov 0  ;;  %v3115_v26 = vor.u32 %v3114_v18, %v3113_v34  ;;  %v3118_v3 = vor.u32 %v3117_v19, %v3116_v16  ;;  %v3123_v50 = vshrl.u32 %v16044_v21, %v3111_v14 }
 0x2ca   :  { %vm11057_vm10 = vcmp.le.f32.partialorder %v16203_v62, 0.7853982  ;;  %v3279_v60 = vor.u32 4788187, %v3278_v20  ;;  %v16207_v29 = vand.u32 2147483647, %v10707_v41  ;;  %v3121_v11 = vor.u32 %v3120_v23, %v3119_v47 }
 0x2cb   :  { %v16205_v27 = vsel %vm11057_vm10, 4294967295, %v16204_v27  ;;  %v16208_v53 = vmov 0  ;;  %v1493_v61 = vadd.s32 536870912, %v1492_v51  ;;  %v3125_v12 = vshll.u32 %v16044_v21, %v3110_v10 }
 0x2cc   :  { %16206 = vst [vmem:[#allocation93_spill] sm:$0xff] %v16205_v27  ;;  %vm11064_vm8 = vcmp.le.f32.partialorder %v16207_v29, 0.7853982  ;;  %v3126_v48 = vshrl.u32 %v16028_v43, %v3111_v14  ;;  %v3280_v62 = vand.u32 2147483647, %v3279_v60  ;;  %v3124_v33 = vor.u32 %v3123_v50, %v3122_v58 }
 0x2cd   :  { %v16209_v53 = vsel %vm11064_vm8, 4294967295, %v16208_v53  ;;  %vm3130_vm2 = vcmp.lt.s32.totalorder %v3109_v30, 3  ;;  %vm3131_vm0 = vcmp.lt.s32.totalorder %v3109_v30, 4  ;;  %v11070_v34 = vshrl.u32 %v1493_v61, 30 }
 0x2ce   :  { %16210 = vst [vmem:[#allocation94_spill] sm:$0xff] %v16209_v53  ;;  %v3127_v16 = vor.u32 %v3126_v48, %v3125_v12  ;;  %v3133_v18 = vsel %vm3131_vm0, %v3121_v11, 2102212464  ;;  %v3282_v19 = vcvt.s32.f32 %v3275_v0  ;;  %vm16212_vm4 = vcmp.lt.s32.totalorder %v3109_v30, 1 }
 0x2cf   :  { %16211 = vst [vmem:[#allocation95_spill] sm:$0xff] %v11070_v34  ;;  %v3132_v20 = vsel %vm16212_vm4, %v3112_v59, %v3115_v26  ;;  %vm16213_vm3 = vmmov %vm16212_vm4  ;;  %v3137_v47 = vsel %vm3131_vm0, %v3124_v33, 920167782  ;;  %v1495_v10 = vshll.u32 %v11070_v34, 30  ;;  %v3134_v14 = vsel %vm3130_vm2, %v3118_v3, %v3133_v18  ;;  %v11093_v18 = vpop.f32.mrb[15].mxu1 }
 0x2d0   :  { %v3136_v29 = vsel %vm16213_vm3, %v3115_v26, %v3118_v3  ;;  %v3138_v23 = vsel %vm3130_vm2, %v3121_v11, %v3137_v47  ;;  %vm16214_vm15 = vmmov %vm16213_vm3  ;;  %vm16215_vm6 = vcmp.lt.s32.totalorder %v10707_v41, 0  ;;  %v3283_v50 = vmul.f32 %v3282_v19, %v3280_v62 }
 0x2d1   :  { %v3140_v58 = vsel %vm16214_vm15, %v3118_v3, %v3121_v11  ;;  %v1621_v60 = vsel %vm16215_vm6, %v1620_v4, %v11020_v55  ;;  %vm16216_vm7 = vcmp.lt.s32.totalorder %v3109_v30, 2  ;;  %v3141_v59 = vsel %vm3131_vm0, %v3127_v16, 1326507024 }
 0x2d2   :  { %v3139_v0 = vsel %vm16216_vm7, %v3136_v29, %v3138_v23  ;;  %v11085_v26 = vsub.s32 %v1492_v51, %v1495_v10  ;;  %v3142_v61 = vsel %vm3130_vm2, %v3124_v33, %v3141_v59  ;;  %8798 = vsinq.f32 %v10961_v57  ;;  %vm16217_vm4 = vmmov %vm16216_vm7 }
 0x2d3   :  { %v11089_v12 = vmul.u32.u64.low %v11042_v46, %v3139_v0  ;;  %v11090_v48 = vmul.u32.u64.high %v11042_v46, %v3139_v0, %v11089_v12  ;;  %v3135_v55 = vsel %vm16217_vm4, %v3132_v20, %v3134_v14  ;;  %vm16218_vm3 = vmmov %vm16217_vm4  ;;  %v1747_v3 = vand.u32 2139095040, %v10984_v32 }
 0x2d4   :  { %v3143_v4 = vsel %vm16218_vm3, %v3140_v58, %v3142_v61  ;;  %v2976_v33 = vsel %vm11057_vm10, %v10652_v25, %v10979_v52  ;;  %v1498_v51 = vsub.s32 0, %v11085_v26  ;;  %v1624_v57 = vsel %vm11064_vm8, %v10707_v41, %v1621_v60 }
 0x2d5   :  { %v11105_v11 = vmul.u32.u64.low %v11042_v46, %v3143_v4  ;;  %v11106_v62 = vmul.u32.u64.high %v11042_v46, %v3143_v4, %v11105_v11  ;;  %v1748_v16 = vshrl.u32 %v1747_v3, 23  ;;  %v16219_v30 = vand.u32 2147483647, %v10984_v32 }
 0x2d6   :  { %v11115_v20 = vadd.f32 %v10876_v6, %v10630_v45  ;;  %v3284_v29 = vxor.u32 2147483648, %v3283_v50  ;;  %v7836_v52 = vmin.u32 %v1498_v51, %v11085_v26  ;;  %v3151_v47 = vmul.u32 %v11042_v46, %v3135_v55 }
 0x2d7   :  { %v1751_v19 = vand.u32 8388607, %v16219_v30  ;;  %v3154_v10 = vadd.s32 1, %v11090_v48  ;;  %8800 = vcosq.f32 %v2976_v33  ;;  %vm15742_vm7 = vcmp.lt.s32.totalorder %v10748_v24, 0 }
 0x2d8   :  { %16220 = vst [vmem:[#allocation96_spill] sm:$0xff] %v11115_v20  ;;  %v7847_v23 = vadd.s32 4294967169, %v1748_v16  ;;  %8802 = vsinq.f32 %v2976_v33  ;;  %v1500_v58 = vclz %v7836_v52  ;;  %vm3153_vm15 = vc.u32 %v11106_v62, %v11089_v12 }
 0x2d9   :  { %v3411_v45 = vand.u32 2139095040, %v11115_v20  ;;  %8804 = vcosq.f32 %v1624_v57  ;;  %v3155_v60 = vsel %vm3153_vm15, %v3154_v10, %v11090_v48  ;;  %v1752_v0 = vor.u32 8388608, %v1751_v19 }
 0x2da   :  { %v1754_v46 = vadd.s32 1, %v7847_v23  ;;  %v3285_v59 = vsel %vm15742_vm7, %v3284_v29, %v3283_v50  ;;  %v7837_v61 = vadd.s32 4294967294, %v1500_v58  ;;  %v3156_v55 = vadd.s32 %v3155_v60, %v3151_v47 }
 0x2db   :  { %v15725_v4 = vand.u32 2147483647, %v11115_v20  ;;  %8806 = vsinq.f32 %v1624_v57  ;;  %v16221_v3 = vand.u32 2147483647, %v10748_v24  ;;  %v16222_v33 = vmov 0 }
 0x2dc   :  { %vm1755_vm6 = vcmp.gt.s32.totalorder %v1754_v46, 0  ;;  %v3412_v51 = vshrl.u32 %v3411_v45, 23  ;;  %v1488_v48 = vadd.s32 %v11031_v13, %v11027_v38  ;;  %vm7838_vm2 = vcmp.lt.s32.totalorder %v7837_v61, 0  ;;  %v11137_v50 = vpop.eup %8798 }
 0x2dd   :  { %vm11131_vm0 = vcmp.le.f32.partialorder %v16221_v3, 0.7853982  ;;  %v3157_v11 = vadd.s32 536870912, %v3156_v55  ;;  %v1756_v16 = vsel %vm1755_vm6, %v1754_v46, 0  ;;  %v1503_v30 = vsel %vm7838_vm2, 0, %v7837_v61 }
 0x2de   :  { %v16223_v33 = vsel %vm11131_vm0, 4294967295, %v16222_v33  ;;  %v11142_v57 = vsel %vm11131_vm0, %v10748_v24, %v3285_v59  ;;  %v1758_v19 = vand.u32 31, %v1756_v16  ;;  %v11144_v29 = vshll.u32 %v1752_v0, 8 }
 0x2df   :  { %16224 = vst [vmem:[#allocation97_spill] sm:$0xff] %v16223_v33  ;;  %v1504_v52 = vsub.s32 32, %v1503_v30  ;;  %v1508_v47 = vsub.s32 4294967266, %v1503_v30  ;;  %v11146_v10 = vshrl.u32 %v3157_v11, 30  ;;  %v11150_v38 = vand.u32 8388607, %v15725_v4 }
 0x2e0   :  { %v1757_v13 = vshrl.u32 %v1756_v16, 5  ;;  %v1759_v23 = vsub.s32 32, %v1758_v19  ;;  %v1761_v58 = vshll.u32 %v16061_v28, %v1758_v19  ;;  %v7911_v45 = vadd.s32 4294967169, %v3412_v51 }
 0x2e1   :  { %16225 = vst [vmem:[#allocation98_spill] sm:$0xff] %v11146_v10  ;;  %v1509_v60 = vadd.s32 127, %v1508_v47  ;;  %v3159_v46 = vshll.u32 %v11146_v10, 30  ;;  %v1764_v59 = vshll.u32 %v16040_v39, %v1758_v19  ;;  %v1767_v0 = vshll.u32 %v16041_v7, %v1758_v19  ;;  %v11156_v61 = vpop.eup %8800 }
 0x2e2   :  { %16226 = vst [vmem:[#allocation99_spill] sm:$0xff] %v11156_v61  ;;  %v1506_v3 = vshrl.u32 %v1488_v48, %v1504_v52  ;;  %v1762_v11 = vshrl.u32 %v16040_v39, %v1759_v23  ;;  %v1765_v4 = vshrl.u32 %v16041_v7, %v1759_v23  ;;  %v1768_v16 = vshrl.u32 %v16042_v9, %v1759_v23  ;;  %v11161_v14 = vpop.eup %8802 }
 0x2e3   :  { %16227 = vst [vmem:[#allocation100_spill] sm:$0xff] %v11161_v14  ;;  %v1510_v33 = vshll.u32 %v1509_v60, 23  ;;  %v11163_v51 = vsub.s32 %v3156_v55, %v3159_v46  ;;  %v1770_v47 = vshll.u32 %v16042_v9, %v1758_v19  ;;  %v1771_v24 = vshrl.u32 %v16044_v21, %v1759_v23  ;;  %v11167_v10 = vpop.eup %8804 }
 0x2e4   :  { %16228 = vst [vmem:[#allocation101_spill] sm:$0xff] %v11167_v10  ;;  %v1505_v61 = vshll.u32 %v11085_v26, %v1503_v30  ;;  %v1763_v48 = vor.u32 %v1762_v11, %v1761_v58  ;;  %v1766_v52 = vor.u32 %v1765_v4, %v1764_v59  ;;  %v1769_v27 = vor.u32 %v1768_v16, %v1767_v0 }
 0x2e5   :  { %v1511_v25 = vor.u32 4788187, %v1510_v33  ;;  %v3162_v53 = vsub.s32 0, %v11163_v51  ;;  %v1760_v41 = vshrl.u32 %v16061_v28, %v1759_v23  ;;  %v1772_v14 = vor.u32 %v1771_v24, %v1770_v47  ;;  %v11172_v60 = vpop.eup %8806 }
 0x2e6   :  { %16229 = vst [vmem:[#allocation102_spill] sm:$0xff] %v11172_v60  ;;  %v1507_v55 = vor.u32 %v1506_v3, %v1505_v61  ;;  %v1773_v46 = vshll.u32 %v16044_v21, %v1758_v19  ;;  %v1774_v34 = vshrl.u32 %v16028_v43, %v1759_v23  ;;  %vm1776_vm4 = vcmp.lt.s32.totalorder %v1757_v13, 1 }
 0x2e7   :  { %v7900_v10 = vmin.u32 %v3162_v53, %v11163_v51  ;;  %vm1777_vm3 = vcmp.lt.s32.totalorder %v1757_v13, 2  ;;  %vm1778_vm15 = vcmp.lt.s32.totalorder %v1757_v13, 3  ;;  %vm1779_vm6 = vcmp.lt.s32.totalorder %v1757_v13, 4 }
 0x2e8   :  { %v1775_v26 = vor.u32 %v1774_v34, %v1773_v46  ;;  %v1781_v4 = vsel %vm1779_vm6, %v1769_v27, 2102212464  ;;  %v1784_v33 = vsel %vm1776_vm4, %v1763_v48, %v1766_v52  ;;  %v1785_v30 = vsel %vm1779_vm6, %v1772_v14, 920167782 }
 0x2e9   :  { %v1512_v58 = vand.u32 2147483647, %v1511_v25  ;;  %v3164_v59 = vclz %v7900_v10  ;;  %v1780_v24 = vsel %vm1776_vm4, %v1760_v41, %v1763_v48  ;;  %v1786_v0 = vsel %vm1778_vm15, %v1769_v27, %v1785_v30 }
 0x2ea   :  { %v1782_v61 = vsel %vm1778_vm15, %v1766_v52, %v1781_v4  ;;  %v1787_v19 = vsel %vm1777_vm3, %v1784_v33, %v1786_v0  ;;  %v1788_v23 = vsel %vm1776_vm4, %v1766_v52, %v1769_v27  ;;  %v1789_v3 = vsel %vm1779_vm6, %v1775_v26, 1326507024 }
 0x2eb   :  { %v1514_v11 = vcvt.s32.f32 %v1507_v55  ;;  %v7901_v53 = vadd.s32 4294967294, %v3164_v59  ;;  %v1790_v16 = vsel %vm1778_vm15, %v1772_v14, %v1789_v3  ;;  %v11183_v34 = vadd.f32 %v10876_v6, %v10688_v17 }
 0x2ec   :  { %v1791_v25 = vsel %vm1777_vm3, %v1788_v23, %v1790_v16  ;;  %v11187_v41 = vmul.u32.u64.low %v11144_v29, %v1787_v19  ;;  %v11188_v10 = vmul.u32.u64.high %v11144_v29, %v1787_v19, %v11187_v41  ;;  %v3418_v47 = vadd.s32 1, %v7911_v45 }
 0x2ed   :  { %vm7902_vm2 = vcmp.lt.s32.totalorder %v7901_v53, 0  ;;  %v1783_v27 = vsel %vm1777_vm3, %v1780_v24, %v1782_v61  ;;  %v11193_v48 = vmul.u32.u64.low %v11144_v29, %v1791_v25  ;;  %v11194_v52 = vmul.u32.u64.high %v11144_v29, %v1791_v25, %v11193_v48 }
 0x2ee   :  { %v1515_v14 = vmul.f32 %v1514_v11, %v1512_v58  ;;  %v3167_v55 = vsel %vm7902_vm2, 0, %v7901_v53  ;;  %v3416_v17 = vor.u32 8388608, %v11150_v38  ;;  %vm3419_vm4 = vcmp.gt.s32.totalorder %v3418_v47, 0 }
 0x2ef   :  { %v3152_v46 = vadd.s32 %v11089_v12, %v11106_v62  ;;  %v3168_v26 = vsub.s32 32, %v3167_v55  ;;  %v3172_v4 = vsub.s32 4294967266, %v3167_v55  ;;  %v1643_v33 = vand.u32 2139095040, %v11183_v34 }
 0x2f0   :  { %v1799_v45 = vmul.u32 %v11144_v29, %v1783_v27  ;;  %v1802_v13 = vadd.s32 1, %v11188_v10  ;;  %v3420_v30 = vsel %vm3419_vm4, %v3418_v47, 0  ;;  %v3169_v58 = vshll.u32 %v11163_v51, %v3167_v55 }
 0x2f1   :  { %v3170_v24 = vshrl.u32 %v3152_v46, %v3168_v26  ;;  %v3173_v0 = vadd.s32 127, %v3172_v4  ;;  %vm1801_vm3 = vc.u32 %v11194_v52, %v11187_v41  ;;  %vm15761_vm15 = vcmp.lt.s32.totalorder %v10880_v49, 0 }
 0x2f2   :  { %v1516_v12 = vxor.u32 2147483648, %v1515_v14  ;;  %v1803_v62 = vsel %vm1801_vm3, %v1802_v13, %v11188_v10  ;;  %v3422_v38 = vand.u32 31, %v3420_v30  ;;  %v11208_v61 = vshll.u32 %v3416_v17, 8 }
 0x2f3   :  { %v3171_v29 = vor.u32 %v3170_v24, %v3169_v58  ;;  %v3174_v19 = vshll.u32 %v3173_v0, 23  ;;  %v1804_v23 = vadd.s32 %v1803_v62, %v1799_v45  ;;  %v1644_v3 = vshrl.u32 %v1643_v33, 23 }
 0x2f4   :  { %v3421_v11 = vshrl.u32 %v3420_v30, 5  ;;  %v3423_v53 = vsub.s32 32, %v3422_v38  ;;  %v3425_v51 = vshll.u32 %v16061_v28, %v3422_v38  ;;  %v3428_v16 = vshll.u32 %v16040_v39, %v3422_v38 }
 0x2f5   :  { %v3175_v25 = vor.u32 4788187, %v3174_v19  ;;  %v1805_v47 = vadd.s32 536870912, %v1804_v23  ;;  %v3431_v27 = vshll.u32 %v16041_v7, %v3422_v38  ;;  %v3434_v48 = vshll.u32 %v16042_v9, %v3422_v38 }
 0x2f6   :  { %v16230_v10 = vand.u32 2147483647, %v10880_v49  ;;  %v3178_v17 = vcvt.s32.f32 %v3171_v29  ;;  %v3426_v46 = vshrl.u32 %v16040_v39, %v3423_v53  ;;  %v3429_v26 = vshrl.u32 %v16041_v7, %v3423_v53 }
 0x2f7   :  { %v3432_v4 = vshrl.u32 %v16042_v9, %v3423_v53  ;;  %v3176_v33 = vand.u32 2147483647, %v3175_v25  ;;  %v11223_v45 = vshrl.u32 %v1805_v47, 30  ;;  %v3435_v13 = vshrl.u32 %v16044_v21, %v3423_v53 }
 0x2f8   :  { %vm11216_vm6 = vcmp.le.f32.partialorder %v16230_v10, 0.7853982  ;;  %v3437_v30 = vshll.u32 %v16044_v21, %v3422_v38  ;;  %v3424_v58 = vshrl.u32 %v16061_v28, %v3423_v53  ;;  %v3427_v24 = vor.u32 %v3426_v46, %v3425_v51 }
 0x2f9   :  { %16233 = vst [vmem:[#allocation103_spill] sm:$0xff] %v11223_v45  ;;  %v3430_v0 = vor.u32 %v3429_v26, %v3428_v16  ;;  %v3438_v62 = vshrl.u32 %v16028_v43, %v3423_v53  ;;  %vm15747_vm2 = vcmp.lt.s32.totalorder %v10930_v63, 0  ;;  %v1807_v29 = vshll.u32 %v11223_v45, 30 }
 0x2fa   :  { %v3433_v19 = vor.u32 %v3432_v4, %v3431_v27  ;;  %v3436_v10 = vor.u32 %v3435_v13, %v3434_v48  ;;  %vm3440_vm4 = vcmp.lt.s32.totalorder %v3421_v11, 1  ;;  %v3179_v25 = vmul.f32 %v3178_v17, %v3176_v33 }
 0x2fb   :  { %v3439_v47 = vor.u32 %v3438_v62, %v3437_v30  ;;  %vm3442_vm3 = vcmp.lt.s32.totalorder %v3421_v11, 3  ;;  %vm3443_vm7 = vcmp.lt.s32.totalorder %v3421_v11, 4  ;;  %v1517_v38 = vsel %vm15761_vm15, %v1516_v12, %v1515_v14 }
 0x2fc   :  { %v11233_v59 = vsub.s32 %v1804_v23, %v1807_v29  ;;  %vm3441_vm0 = vcmp.lt.s32.totalorder %v3421_v11, 2  ;;  %v3445_v51 = vsel %vm3443_vm7, %v3433_v19, 2102212464  ;;  %v3444_v53 = vsel %vm3440_vm4, %v3424_v58, %v3427_v24 }
 0x2fd   :  { %v3448_v16 = vsel %vm3440_vm4, %v3427_v24, %v3430_v0  ;;  %v3449_v27 = vsel %vm3443_vm7, %v3436_v10, 920167782  ;;  %v7843_v48 = vadd.s32 4294967169, %v1644_v3  ;;  %v3446_v46 = vsel %vm3442_vm3, %v3430_v0, %v3445_v51 }
 0x2fe   :  { %v1810_v17 = vsub.s32 0, %v11233_v59  ;;  %v3450_v26 = vsel %vm3442_vm3, %v3433_v19, %v3449_v27  ;;  %v3452_v14 = vsel %vm3440_vm4, %v3430_v0, %v3433_v19  ;;  %8808 = vcosq.f32 %v11142_v57 }
 0x2ff   :  { %v3180_v12 = vxor.u32 2147483648, %v3179_v25  ;;  %v3451_v23 = vsel %vm3441_vm0, %v3448_v16, %v3450_v26  ;;  %v3453_v4 = vsel %vm3443_vm7, %v3439_v47, 1326507024  ;;  %v1520_v33 = vsel %vm11216_vm6, %v10880_v49, %v1517_v38 }
 0x300   :  { %v7848_v3 = vmin.u32 %v1810_v17, %v11233_v59  ;;  %v3454_v13 = vsel %vm3442_vm3, %v3436_v10, %v3453_v4  ;;  %v16234_v30 = vand.u32 2147483647, %v11183_v34  ;;  %v3447_v24 = vsel %vm3441_vm0, %v3444_v53, %v3446_v46 }
 0x301   :  { %v3455_v0 = vsel %vm3441_vm0, %v3452_v14, %v3454_v13  ;;  %v11256_v62 = vmul.u32.u64.low %v11208_v61, %v3451_v23  ;;  %v11257_v29 = vmul.u32.u64.high %v11208_v61, %v3451_v23, %v11256_v62  ;;  %v1650_v51 = vadd.s32 1, %v7843_v48 }
 0x302   :  { %v1647_v58 = vand.u32 8388607, %v16234_v30  ;;  %v1812_v19 = vclz %v7848_v3  ;;  %v11261_v47 = vmul.u32.u64.low %v11208_v61, %v3455_v0  ;;  %v11262_v38 = vmul.u32.u64.high %v11208_v61, %v3455_v0, %v11261_v47 }
 0x303   :  { %v16235_v10 = vsub.s32 4, %v9286_v5  ;;  %vm16236_vm7 = vcmp.lt.s32.totalorder %v9171_v36, 0  ;;  %8810 = vsinq.f32 %v11142_v57  ;;  %v3181_v11 = vsel %vm15747_vm2, %v3180_v12, %v3179_v25 }
 0x304   :  { %v7849_v53 = vadd.s32 4294967294, %v1812_v19  ;;  %v3463_v27 = vmul.u32 %v11208_v61, %v3447_v24  ;;  %v1648_v17 = vor.u32 8388608, %v1647_v58  ;;  %vm1651_vm0 = vcmp.gt.s32.totalorder %v1650_v51, 0 }
 0x305   :  { %v11269_v16 = vsel %vm16236_vm7, %v16235_v10, %v9286_v5  ;;  %8812 = vcosq.f32 %v1520_v33  ;;  %v16237_v48 = vand.u32 2147483647, %v10930_v63  ;;  %v16238_v46 = vmov 0 }
 0x306   :  { %v3466_v5 = vadd.s32 1, %v11257_v29  ;;  %v1652_v26 = vsel %vm1651_vm0, %v1650_v51, 0  ;;  %8814 = vsinq.f32 %v1520_v33  ;;  %v1800_v57 = vadd.s32 %v11187_v41, %v11194_v52 }
 0x307   :  { %vm11277_vm4 = vcmp.le.f32.partialorder %v16237_v48, 0.7853982  ;;  %vm7850_vm3 = vcmp.lt.s32.totalorder %v7849_v53, 0  ;;  %vm3465_vm7 = vc.u32 %v11262_v38, %v11256_v62  ;;  %v1654_v12 = vand.u32 31, %v1652_v26 }
 0x308   :  { %v16239_v46 = vsel %vm11277_vm4, 4294967295, %v16238_v46  ;;  %v11289_v61 = vsel %vm11277_vm4, %v10930_v63, %v3181_v11  ;;  %v1815_v25 = vsel %vm7850_vm3, 0, %v7849_v53  ;;  %v3467_v14 = vsel %vm3465_vm7, %v3466_v5, %v11257_v29  ;;  %v11294_v13 = vpop.eup %8808 }
 0x309   :  { %16240 = vst [vmem:[#allocation104_spill] sm:$0xff] %v16239_v46  ;;  %v1816_v23 = vsub.s32 32, %v1815_v25  ;;  %v1820_v4 = vsub.s32 4294967266, %v1815_v25  ;;  %v3468_v3 = vadd.s32 %v3467_v14, %v3463_v27  ;;  %v11292_v33 = vshll.u32 %v1648_v17, 8  ;;  %16241 = vst [vmem:[#allocation105_spill] sm:$0xff] %v11294_v13 }
 0x30a   :  { %v1817_v41 = vshll.u32 %v11233_v59, %v1815_v25  ;;  %v1653_v52 = vshrl.u32 %v1652_v26, 5  ;;  %v1655_v30 = vsub.s32 32, %v1654_v12  ;;  %v1657_v58 = vshll.u32 %v16061_v28, %v1654_v12 }
 0x30b   :  { %v1818_v24 = vshrl.u32 %v1800_v57, %v1816_v23  ;;  %v1821_v0 = vadd.s32 127, %v1820_v4  ;;  %v3469_v19 = vadd.s32 536870912, %v3468_v3  ;;  %v1660_v47 = vshll.u32 %v16040_v39, %v1654_v12 }
 0x30c   :  { %v1658_v29 = vshrl.u32 %v16040_v39, %v1655_v30  ;;  %v1661_v51 = vshrl.u32 %v16041_v7, %v1655_v30  ;;  %v1663_v10 = vshll.u32 %v16041_v7, %v1654_v12  ;;  %v1664_v11 = vshrl.u32 %v16042_v9, %v1655_v30 }
 0x30d   :  { %v1822_v53 = vshll.u32 %v1821_v0, 23  ;;  %v11303_v27 = vshrl.u32 %v3469_v19, 30  ;;  %v1666_v59 = vshll.u32 %v16042_v9, %v1654_v12  ;;  %v1667_v17 = vshrl.u32 %v16044_v21, %v1655_v30  ;;  %v11307_v48 = vpop.eup %8810 }
 0x30e   :  { %16243 = vst [vmem:[#allocation107_spill] sm:$0xff] %v11307_v48  ;;  %v1659_v5 = vor.u32 %v1658_v29, %v1657_v58  ;;  %v1662_v26 = vor.u32 %v1661_v51, %v1660_v47  ;;  %v1665_v57 = vor.u32 %v1664_v11, %v1663_v10  ;;  %v11311_v25 = vadd.f32 %v10876_v6, %v10777_v2 }
 0x30f   :  { %16242 = vst [vmem:[#allocation106_spill] sm:$0xff] %v11303_v27  ;;  %v1819_v14 = vor.u32 %v1818_v24, %v1817_v41  ;;  %v1823_v23 = vor.u32 4788187, %v1822_v53  ;;  %v3471_v4 = vshll.u32 %v11303_v27, 30  ;;  %v1668_v0 = vor.u32 %v1667_v17, %v1666_v59  ;;  %v11314_v19 = vpop.eup %8812 }
 0x310   :  { %16244 = vst [vmem:[#allocation108_spill] sm:$0xff] %v11311_v25  ;;  %v1656_v13 = vshrl.u32 %v16061_v28, %v1655_v30  ;;  %v1669_v46 = vshll.u32 %v16044_v21, %v1654_v12  ;;  %v1670_v48 = vshrl.u32 %v16028_v43, %v1655_v30  ;;  %vm1672_vm0 = vcmp.lt.s32.totalorder %v1653_v52, 1  ;;  %v11319_v58 = vpop.eup %8814 }
 0x311   :  { %v1824_v47 = vand.u32 2147483647, %v1823_v23  ;;  %v11321_v29 = vsub.s32 %v3468_v3, %v3471_v4  ;;  %vm1674_vm3 = vcmp.lt.s32.totalorder %v1653_v52, 3  ;;  %vm1675_vm7 = vcmp.lt.s32.totalorder %v1653_v52, 4 }
 0x312   :  { %v1671_v2 = vor.u32 %v1670_v48, %v1669_v46  ;;  %v1677_v6 = vsel %vm1675_vm7, %v1665_v57, 2102212464  ;;  %v1680_v41 = vsel %vm1672_vm0, %v1659_v5, %v1662_v26  ;;  %v1681_v24 = vsel %vm1675_vm7, %v1668_v0, 920167782 }
 0x313   :  { %v1826_v51 = vcvt.s32.f32 %v1819_v14  ;;  %v3474_v10 = vsub.s32 0, %v11321_v29  ;;  %vm1673_vm2 = vcmp.lt.s32.totalorder %v1653_v52, 2  ;;  %v1682_v12 = vsel %vm1674_vm3, %v1665_v57, %v1681_v24 }
 0x314   :  { %v1676_v30 = vsel %vm1672_vm0, %v1656_v13, %v1659_v5  ;;  %v1683_v11 = vsel %vm1673_vm2, %v1680_v41, %v1682_v12  ;;  %v1684_v3 = vsel %vm1672_vm0, %v1662_v26, %v1665_v57  ;;  %v1685_v53 = vsel %vm1675_vm7, %v1671_v2, 1326507024 }
 0x315   :  { %v1827_v59 = vmul.f32 %v1826_v51, %v1824_v47  ;;  %v7912_v46 = vmin.u32 %v3474_v10, %v11321_v29  ;;  %v1678_v17 = vsel %vm1674_vm3, %v1662_v26, %v1677_v6  ;;  %v1686_v48 = vsel %vm1674_vm3, %v1668_v0, %v1685_v53  ;;  %v11349_v6 = vld [vmem:[%s15542_s2] ss:$0 sm:$0xff] }
 0x316   :  { %v1687_v14 = vsel %vm1673_vm2, %v1684_v3, %v1686_v48  ;;  %v11334_v23 = vmul.u32.u64.low %v11292_v33, %v1683_v11  ;;  %v11335_v4 = vmul.u32.u64.high %v11292_v33, %v1683_v11, %v11334_v23  ;;  %v3307_v13 = vand.u32 2139095040, %v11311_v25 }
 0x317   :  { %v3476_v5 = vclz %v7912_v46  ;;  %v11340_v57 = vmul.u32.u64.low %v11292_v33, %v1687_v14  ;;  %v11341_v2 = vmul.u32.u64.high %v11292_v33, %v1687_v14, %v11340_v57  ;;  %v15748_v47 = vand.u32 2147483647, %v11311_v25 }
 0x318   :  { %8816 = vcosq.f32 %v11289_v61  ;;  %v1679_v26 = vsel %vm1673_vm2, %v1676_v30, %v1678_v17  ;;  %v3308_v0 = vshrl.u32 %v3307_v13, 23  ;;  %v11353_v41 = vadd.f32 %v11349_v6, %v10869_v31 }
 0x319   :  { %8818 = vsinq.f32 %v11289_v61  ;;  %vm15760_vm0 = vcmp.lt.s32.totalorder %v10984_v32, 0  ;;  %v7913_v52 = vadd.s32 4294967294, %v3476_v5  ;;  %v1828_v51 = vxor.u32 2147483648, %v1827_v59 }
 0x31a   :  { %v1698_v10 = vadd.s32 1, %v11335_v4  ;;  %v7907_v12 = vadd.s32 4294967169, %v3308_v0  ;;  %v11363_v30 = vadd.f32 %v11349_v6, %v10935_v15  ;;  %v1695_v31 = vmul.u32 %v11292_v33, %v1679_v26 }
 0x31b   :  { %vm7914_vm2 = vcmp.lt.s32.totalorder %v7913_v52, 0  ;;  %vm1697_vm3 = vc.u32 %v11341_v2, %v11334_v23  ;;  %v11370_v61 = vand.u32 8388607, %v15748_v47  ;;  %v1955_v46 = vand.u32 2139095040, %v11353_v41 }
 0x31c   :  { %v3479_v11 = vsel %vm7914_vm2, 0, %v7913_v52  ;;  %v1699_v3 = vsel %vm1697_vm3, %v1698_v10, %v11335_v4  ;;  %v3314_v53 = vadd.s32 1, %v7907_v12  ;;  %v3464_v15 = vadd.s32 %v11256_v62, %v11262_v38 }
 0x31d   :  { %v3480_v17 = vsub.s32 32, %v3479_v11  ;;  %v3484_v48 = vsub.s32 4294967266, %v3479_v11  ;;  %v1700_v14 = vadd.s32 %v1699_v3, %v1695_v31  ;;  %v1829_v33 = vsel %vm15760_vm0, %v1828_v51, %v1827_v59 }
 0x31e   :  { %v3481_v13 = vshll.u32 %v11321_v29, %v3479_v11  ;;  %vm3315_vm7 = vcmp.gt.s32.totalorder %v3314_v53, 0  ;;  %v11381_v5 = vadd.f32 %v11349_v6, %v11035_v1  ;;  %v3312_v52 = vor.u32 8388608, %v11370_v61 }
 0x31f   :  { %v3482_v4 = vshrl.u32 %v3464_v15, %v3480_v17  ;;  %v3485_v57 = vadd.s32 127, %v3484_v48  ;;  %v1701_v26 = vadd.s32 536870912, %v1700_v14  ;;  %v3316_v0 = vsel %vm3315_vm7, %v3314_v53, 0 }
 0x320   :  { %v3318_v62 = vand.u32 31, %v3316_v0  ;;  %v1956_v10 = vshrl.u32 %v1955_v46, 23  ;;  %v3317_v29 = vshrl.u32 %v3316_v0, 5  ;;  %v16248_v61 = vand.u32 2147483647, %v10984_v32 }
 0x321   :  { %v3483_v12 = vor.u32 %v3482_v4, %v3481_v13  ;;  %v3486_v31 = vshll.u32 %v3485_v57, 23  ;;  %v11385_v59 = vshrl.u32 %v1701_v26, 30  ;;  %v16249_v46 = vmov 0 }
 0x322   :  { %v11387_v51 = vpop.eup %8816  ;;  %v3319_v11 = vsub.s32 32, %v3318_v62  ;;  %v3321_v1 = vshll.u32 %v16061_v28, %v3318_v62  ;;  %v3324_v3 = vshll.u32 %v16040_v39, %v3318_v62  ;;  %v3327_v53 = vshll.u32 %v16041_v7, %v3318_v62 }
 0x323   :  { %16245 = vst [vmem:[#allocation109_spill] sm:$0xff] %v11385_v59  ;;  %16246 = vst [vmem:[#allocation110_spill] sm:$0xff] %v11387_v51  ;;  %v11392_v15 = vpop.eup %8818  ;;  %vm11396_vm2 = vcmp.le.f32.partialorder %v16248_v61, 0.7853982  ;;  %v3487_v17 = vor.u32 4788187, %v3486_v31  ;;  %v3490_v48 = vcvt.s32.f32 %v3483_v12  ;;  %v3330_v4 = vshll.u32 %v16042_v9, %v3318_v62 }
 0x324   :  { %16247 = vst [vmem:[#allocation111_spill] sm:$0xff] %v11392_v15  ;;  %v16250_v46 = vsel %vm11396_vm2, 4294967295, %v16249_v46  ;;  %v1703_v13 = vshll.u32 %v11385_v59, 30  ;;  %v3320_v57 = vshrl.u32 %v16061_v28, %v3319_v11  ;;  %v3322_v26 = vshrl.u32 %v16040_v39, %v3319_v11 }
 0x325   :  { %16251 = vst [vmem:[#allocation112_spill] sm:$0xff] %v16250_v46  ;;  %v3325_v0 = vshrl.u32 %v16041_v7, %v3319_v11  ;;  %v3328_v24 = vshrl.u32 %v16042_v9, %v3319_v11  ;;  %v3488_v61 = vand.u32 2147483647, %v3487_v17  ;;  %v3331_v31 = vshrl.u32 %v16044_v21, %v3319_v11 }
 0x326   :  { %v11407_v47 = vsub.s32 %v1700_v14, %v1703_v13  ;;  %v3333_v12 = vshll.u32 %v16044_v21, %v3318_v62  ;;  %v3323_v38 = vor.u32 %v3322_v26, %v3321_v1  ;;  %v3334_v15 = vshrl.u32 %v16028_v43, %v3319_v11 }
 0x327   :  { %v3326_v27 = vor.u32 %v3325_v0, %v3324_v3  ;;  %v3329_v51 = vor.u32 %v3328_v24, %v3327_v53  ;;  %v3491_v63 = vmul.f32 %v3490_v48, %v3488_v61  ;;  %v3332_v60 = vor.u32 %v3331_v31, %v3330_v4 }
 0x328   :  { %v1706_v45 = vsub.s32 0, %v11407_v47  ;;  %vm3336_vm7 = vcmp.lt.s32.totalorder %v3317_v29, 1  ;;  %v3335_v59 = vor.u32 %v3334_v15, %v3333_v12  ;;  %vm3338_vm0 = vcmp.lt.s32.totalorder %v3317_v29, 3 }
 0x329   :  { %vm3339_vm15 = vcmp.lt.s32.totalorder %v3317_v29, 4  ;;  %v7855_v17 = vadd.s32 4294967169, %v1956_v10  ;;  %v16252_v14 = vand.u32 2147483647, %v11115_v20  ;;  %v16253_v13 = vmov 0 }
 0x32a   :  { %v3492_v62 = vxor.u32 2147483648, %v3491_v63  ;;  %v7844_v24 = vmin.u32 %v1706_v45, %v11407_v47  ;;  %vm3337_vm4 = vcmp.lt.s32.totalorder %v3317_v29, 2  ;;  %v3341_v11 = vsel %vm3339_vm15, %v3329_v51, 2102212464 }
 0x32b   :  { %vm11415_vm3 = vcmp.le.f32.partialorder %v16252_v14, 0.7853982  ;;  %v3340_v1 = vsel %vm3336_vm7, %v3320_v57, %v3323_v38  ;;  %v3344_v3 = vsel %vm3336_vm7, %v3323_v38, %v3326_v27  ;;  %v3345_v53 = vsel %vm3339_vm15, %v3332_v60, 920167782 }
 0x32c   :  { %v16254_v13 = vsel %vm11415_vm3, 4294967295, %v16253_v13  ;;  %v3352_v15 = vshll.u32 %v3312_v52, 8  ;;  %v1708_v10 = vclz %v7844_v24  ;;  %v3342_v48 = vsel %vm3338_vm0, %v3326_v27, %v3341_v11 }
 0x32d   :  { %16255 = vst [vmem:[#allocation113_spill] sm:$0xff] %v16254_v13  ;;  %v3346_v4 = vsel %vm3338_vm0, %v3329_v51, %v3345_v53  ;;  %v3348_v26 = vsel %vm3336_vm7, %v3326_v27, %v3329_v51  ;;  %v11430_v45 = vsel %vm11396_vm2, %v10984_v32, %v1829_v33  ;;  %v3349_v57 = vsel %vm3339_vm15, %v3335_v59, 1326507024 }
 0x32e   :  { %v3347_v0 = vsel %vm3337_vm4, %v3344_v3, %v3346_v4  ;;  %v16256_v38 = vand.u32 2147483647, %v11353_v41  ;;  %vm16257_vm10 = vcmp.lt.s32.totalorder %v11115_v20, 0  ;;  %v7845_v31 = vadd.s32 4294967294, %v1708_v10 }
 0x32f   :  { %v3493_v52 = vsel %vm16257_vm10, %v3492_v62, %v3491_v63  ;;  %v3350_v12 = vsel %vm3338_vm0, %v3332_v60, %v3349_v57  ;;  %v1962_v14 = vadd.s32 1, %v7855_v17  ;;  %v3343_v27 = vsel %vm3337_vm4, %v3340_v1, %v3342_v48 }
 0x330   :  { %v1959_v61 = vand.u32 8388607, %v16256_v38  ;;  %v3351_v51 = vsel %vm3337_vm4, %v3348_v26, %v3350_v12  ;;  %v11441_v33 = vmul.u32.u64.low %v3352_v15, %v3347_v0  ;;  %v11442_v24 = vmul.u32.u64.high %v3352_v15, %v3347_v0, %v11441_v33 }
 0x331   :  { %vm7846_vm7 = vcmp.lt.s32.totalorder %v7845_v31, 0  ;;  %v11445_v59 = vmul.u32.u64.low %v3352_v15, %v3351_v51  ;;  %v11446_v11 = vmul.u32.u64.high %v3352_v15, %v3351_v51, %v11445_v59  ;;  %vm1963_vm15 = vcmp.gt.s32.totalorder %v1962_v14, 0 }
 0x332   :  { %8820 = vcosq.f32 %v11430_v45  ;;  %v1696_v63 = vadd.s32 %v11334_v23, %v11341_v2  ;;  %v1711_v60 = vsel %vm7846_vm7, 0, %v7845_v31  ;;  %v1964_v17 = vsel %vm1963_vm15, %v1962_v14, 0 }
 0x333   :  { %v1712_v62 = vsub.s32 32, %v1711_v60  ;;  %v1716_v1 = vsub.s32 4294967266, %v1711_v60  ;;  %v3359_v29 = vmul.u32 %v3352_v15, %v3343_v27  ;;  %v11455_v53 = vsel %vm11415_vm3, %v11115_v20, %v3493_v52 }
 0x334   :  { %v3362_v10 = vadd.s32 1, %v11442_v24  ;;  %v1960_v48 = vor.u32 8388608, %v1959_v61  ;;  %v1966_v4 = vand.u32 31, %v1964_v17  ;;  %v1713_v26 = vshll.u32 %v11407_v47, %v1711_v60 }
 0x335   :  { %v1714_v0 = vshrl.u32 %v1696_v63, %v1712_v62  ;;  %v1717_v23 = vadd.s32 127, %v1716_v1  ;;  %vm3361_vm10 = vc.u32 %v11446_v11, %v11441_v33  ;;  %v1965_v15 = vshrl.u32 %v1964_v17, 5 }
 0x336   :  { %v3363_v2 = vsel %vm3361_vm10, %v3362_v10, %v11442_v24  ;;  %v1967_v57 = vsub.s32 32, %v1966_v4  ;;  %v1969_v38 = vshll.u32 %v16061_v28, %v1966_v4  ;;  %v1972_v14 = vshll.u32 %v16040_v39, %v1966_v4 }
 0x337   :  { %v1715_v31 = vor.u32 %v1714_v0, %v1713_v26  ;;  %v1718_v52 = vshll.u32 %v1717_v23, 23  ;;  %v3364_v12 = vadd.s32 %v3363_v2, %v3359_v29  ;;  %v1975_v27 = vshll.u32 %v16041_v7, %v1966_v4 }
 0x338   :  { %v1970_v61 = vshrl.u32 %v16040_v39, %v1967_v57  ;;  %v1973_v47 = vshrl.u32 %v16041_v7, %v1967_v57  ;;  %v1976_v51 = vshrl.u32 %v16042_v9, %v1967_v57  ;;  %v1978_v60 = vshll.u32 %v16042_v9, %v1966_v4 }
 0x339   :  { %v1719_v24 = vor.u32 4788187, %v1718_v52  ;;  %v1722_v59 = vcvt.s32.f32 %v1715_v31  ;;  %v3365_v63 = vadd.s32 536870912, %v3364_v12  ;;  %v1979_v29 = vshrl.u32 %v16044_v21, %v1967_v57 }
 0x33a   :  { %v1971_v17 = vor.u32 %v1970_v61, %v1969_v38  ;;  %v1974_v62 = vor.u32 %v1973_v47, %v1972_v14  ;;  %v1977_v1 = vor.u32 %v1976_v51, %v1975_v27  ;;  %v1981_v0 = vshll.u32 %v16044_v21, %v1966_v4 }
 0x33b   :  { %v1720_v10 = vand.u32 2147483647, %v1719_v24  ;;  %v11471_v26 = vshrl.u32 %v3365_v63, 30  ;;  %v1982_v23 = vshrl.u32 %v16028_v43, %v1967_v57  ;;  %v16260_v52 = vand.u32 2147483647, %v11183_v34 }
 0x33c   :  { %v11475_v2 = vpop.eup %8820  ;;  %v16261_v31 = vmov 0  ;;  %v1968_v38 = vshrl.u32 %v16061_v28, %v1967_v57  ;;  %v1980_v14 = vor.u32 %v1979_v29, %v1978_v60  ;;  %vm1984_vm7 = vcmp.lt.s32.totalorder %v1965_v15, 1 }
 0x33d   :  { %16258 = vst [vmem:[#allocation114_spill] sm:$0xff] %v11471_v26  ;;  %16259 = vst [vmem:[#allocation115_spill] sm:$0xff] %v11475_v2  ;;  %vm11479_vm0 = vcmp.le.f32.partialorder %v16260_v52, 0.7853982  ;;  %v2000_v61 = vshll.u32 %v1960_v48, 8  ;;  %v1723_v47 = vmul.f32 %v1722_v59, %v1720_v10  ;;  %v3367_v27 = vshll.u32 %v11471_v26, 30 }
 0x33e   :  { %v16262_v31 = vsel %vm11479_vm0, 4294967295, %v16261_v31  ;;  %v1983_v51 = vor.u32 %v1982_v23, %v1981_v0  ;;  %vm1987_vm15 = vcmp.lt.s32.totalorder %v1965_v15, 4  ;;  %vm1986_vm10 = vcmp.lt.s32.totalorder %v1965_v15, 3 }
 0x33f   :  { %v1989_v4 = vsel %vm1987_vm15, %v1977_v1, 2102212464  ;;  %v1992_v24 = vsel %vm1984_vm7, %v1971_v17, %v1974_v62  ;;  %v1993_v63 = vsel %vm1987_vm15, %v1980_v14, 920167782  ;;  %v1724_v3 = vxor.u32 2147483648, %v1723_v47 }
 0x340   :  { %v11486_v52 = vsub.s32 %v3364_v12, %v3367_v27  ;;  %vm1985_vm4 = vcmp.lt.s32.totalorder %v1965_v15, 2  ;;  %v1994_v13 = vsel %vm1986_vm10, %v1977_v1, %v1993_v63  ;;  %v1996_v60 = vsel %vm1984_vm7, %v1974_v62, %v1977_v1 }
 0x341   :  { %v1995_v57 = vsel %vm1985_vm4, %v1992_v24, %v1994_v13  ;;  %v1997_v48 = vsel %vm1987_vm15, %v1983_v51, 1326507024  ;;  %v3619_v59 = vand.u32 2139095040, %v11363_v30  ;;  %v1988_v10 = vsel %vm1984_vm7, %v1968_v38, %v1971_v17 }
 0x342   :  { %v3370_v29 = vsub.s32 0, %v11486_v52  ;;  %v1990_v0 = vsel %vm1986_vm10, %v1974_v62, %v1989_v4  ;;  %v1998_v23 = vsel %vm1986_vm10, %v1980_v14, %v1997_v48  ;;  %vm16263_vm3 = vcmp.lt.s32.totalorder %v11183_v34, 0 }
 0x343   :  { %v1725_v20 = vsel %vm16263_vm3, %v1724_v3, %v1723_v47  ;;  %v1999_v12 = vsel %vm1985_vm4, %v1996_v60, %v1998_v23  ;;  %v11496_v27 = vmul.u32.u64.low %v2000_v61, %v1995_v57  ;;  %v11497_v63 = vmul.u32.u64.high %v2000_v61, %v1995_v57, %v11496_v27 }
 0x344   :  { %8822 = vsinq.f32 %v11430_v45  ;;  %v7908_v13 = vmin.u32 %v3370_v29, %v11486_v52  ;;  %v11502_v1 = vmul.u32.u64.low %v2000_v61, %v1999_v12  ;;  %v11503_v51 = vmul.u32.u64.high %v2000_v61, %v1999_v12, %v11502_v1 }
 0x345   :  { %8824 = vcosq.f32 %v11455_v53  ;;  %v1991_v17 = vsel %vm1985_vm4, %v1988_v10, %v1990_v0  ;;  %v3620_v62 = vshrl.u32 %v3619_v59, 23  ;;  %v11509_v3 = vadd.f32 %v11349_v6, %v11093_v18 }
 0x346   :  { %v1728_v38 = vsel %vm11479_vm0, %v11183_v34, %v1725_v20  ;;  %v3372_v14 = vclz %v7908_v13  ;;  %v16264_v45 = vand.u32 2147483647, %v11363_v30  ;;  %v1851_v4 = vand.u32 2139095040, %v11381_v5 }
 0x347   :  { %8826 = vsinq.f32 %v11455_v53  ;;  %v2010_v15 = vadd.s32 1, %v11497_v63  ;;  %v7919_v24 = vadd.s32 4294967169, %v3620_v62  ;;  %v15768_v57 = vand.u32 2147483647, %v11381_v5 }
 0x348   :  { %v3623_v47 = vand.u32 8388607, %v16264_v45  ;;  %v7909_v60 = vadd.s32 4294967294, %v3372_v14  ;;  %v2007_v18 = vmul.u32 %v2000_v61, %v1991_v17  ;;  %vm2009_vm3 = vc.u32 %v11503_v51, %v11496_v27 }
 0x349   :  { %v1852_v6 = vshrl.u32 %v1851_v4, 23  ;;  %8828 = vcosq.f32 %v1728_v38  ;;  %v3360_v20 = vadd.s32 %v11441_v33, %v11446_v11  ;;  %v2011_v48 = vsel %vm2009_vm3, %v2010_v15, %v11497_v63 }
 0x34a   :  { %v3626_v59 = vadd.s32 1, %v7919_v24  ;;  %vm7910_vm4 = vcmp.lt.s32.totalorder %v7909_v60, 0  ;;  %v2012_v53 = vadd.s32 %v2011_v48, %v2007_v18  ;;  %v3624_v29 = vor.u32 8388608, %v3623_v47 }
 0x34b   :  { %v7851_v10 = vadd.s32 4294967169, %v1852_v6  ;;  %v3375_v0 = vsel %vm7910_vm4, 0, %v7909_v60  ;;  %v11527_v61 = vand.u32 8388607, %v15768_v57  ;;  %v3515_v23 = vand.u32 2139095040, %v11509_v3 }
 0x34c   :  { %vm3627_vm7 = vcmp.gt.s32.totalorder %v3626_v59, 0  ;;  %8830 = vsinq.f32 %v1728_v38  ;;  %v3376_v12 = vsub.s32 32, %v3375_v0  ;;  %v3380_v13 = vsub.s32 4294967266, %v3375_v0 }
 0x34d   :  { %v2013_v1 = vadd.s32 536870912, %v2012_v53  ;;  %v3377_v33 = vshll.u32 %v11486_v52, %v3375_v0  ;;  %v3628_v11 = vsel %vm3627_vm7, %v3626_v59, 0  ;;  %v11531_v63 = vadd.s32 1, %v7851_v10 }
 0x34e   :  { %v11534_v62 = vpop.eup %8822  ;;  %v3378_v14 = vshrl.u32 %v3360_v20, %v3376_v12  ;;  %v3381_v45 = vadd.s32 127, %v3380_v13  ;;  %v11538_v4 = vshrl.u32 %v3628_v11, 5  ;;  %v3630_v38 = vand.u32 31, %v3628_v11 }
 0x34f   :  { %16265 = vst [vmem:[#allocation116_spill] sm:$0xff] %v11534_v62  ;;  %v11536_v47 = vshrl.u32 %v2013_v1, 30  ;;  %v11540_v15 = vpop.eup %8824  ;;  %v11542_v24 = vshll.u32 %v3624_v29, 8  ;;  %v1856_v52 = vor.u32 8388608, %v11527_v61  ;;  %v3516_v60 = vshrl.u32 %v3515_v23, 23 }
 0x350   :  { %16267 = vst [vmem:[#allocation118_spill] sm:$0xff] %v11540_v15  ;;  %v3379_v18 = vor.u32 %v3378_v14, %v3377_v33  ;;  %v3382_v6 = vshll.u32 %v3381_v45, 23  ;;  %vm3648_vm15 = vcmp.lt.s32.totalorder %v11538_v4, 1  ;;  %v3631_v59 = vsub.s32 32, %v3630_v38 }
 0x351   :  { %16266 = vst [vmem:[#allocation117_spill] sm:$0xff] %v11536_v47  ;;  %v2015_v48 = vshll.u32 %v11536_v47, 30  ;;  %v11547_v20 = vpop.eup %8826  ;;  %v3633_v10 = vshll.u32 %v16061_v28, %v3630_v38  ;;  %v3636_v0 = vshll.u32 %v16040_v39, %v3630_v38  ;;  %v3639_v29 = vshll.u32 %v16041_v7, %v3630_v38 }
 0x352   :  { %16268 = vst [vmem:[#allocation119_spill] sm:$0xff] %v11547_v20  ;;  %v3383_v61 = vor.u32 4788187, %v3382_v6  ;;  %v3386_v23 = vcvt.s32.f32 %v3379_v18  ;;  %v3642_v13 = vshll.u32 %v16042_v9, %v3630_v38  ;;  %v3632_v33 = vshrl.u32 %v16061_v28, %v3631_v59 }
 0x353   :  { %v11554_v12 = vsub.s32 %v2012_v53, %v2015_v48  ;;  %v11557_v1 = vpop.eup %8828  ;;  %v3634_v11 = vshrl.u32 %v16040_v39, %v3631_v59  ;;  %v3637_v14 = vshrl.u32 %v16041_v7, %v3631_v59  ;;  %v3640_v45 = vshrl.u32 %v16042_v9, %v3631_v59 }
 0x354   :  { %v16269_v57 = vand.u32 2147483647, %v11311_v25  ;;  %v16270_v17 = vmov 0  ;;  %v3384_v53 = vand.u32 2147483647, %v3383_v61  ;;  %v3643_v6 = vshrl.u32 %v16044_v21, %v3631_v59 }
 0x355   :  { %v2018_v18 = vsub.s32 0, %v11554_v12  ;;  %v3645_v48 = vshll.u32 %v16044_v21, %v3630_v38  ;;  %v3635_v15 = vor.u32 %v3634_v11, %v3633_v10  ;;  %v3638_v20 = vor.u32 %v3637_v14, %v3636_v0 }
 0x356   :  { %vm11565_vm4 = vcmp.le.f32.partialorder %v16269_v57, 0.7853982  ;;  %v3641_v26 = vor.u32 %v3640_v45, %v3639_v29  ;;  %v3646_v47 = vshrl.u32 %v16028_v43, %v3631_v59  ;;  %v11573_v2 = vpop.eup %8830  ;;  %v3387_v62 = vmul.f32 %v3386_v23, %v3384_v53 }
 0x357   :  { %v16271_v17 = vsel %vm11565_vm4, 4294967295, %v16270_v17  ;;  %v7856_v57 = vmin.u32 %v2018_v18, %v11554_v12  ;;  %v3644_v46 = vor.u32 %v3643_v6, %v3642_v13  ;;  %vm3650_vm3 = vcmp.lt.s32.totalorder %v11538_v4, 3 }
 0x358   :  { %16272 = vst [vmem:[#allocation120_spill] sm:$0xff] %v16271_v17  ;;  %v3647_v61 = vor.u32 %v3646_v47, %v3645_v48  ;;  %vm3651_vm10 = vcmp.lt.s32.totalorder %v11538_v4, 4  ;;  %v3652_v38 = vsel %vm3648_vm15, %v3632_v33, %v3635_v15  ;;  %v3388_v10 = vxor.u32 2147483648, %v3387_v62 }
 0x359   :  { %v2020_v0 = vclz %v7856_v57  ;;  %v3653_v29 = vsel %vm3651_vm10, %v3641_v26, 2102212464  ;;  %v3656_v59 = vsel %vm3648_vm15, %v3635_v15, %v3638_v20  ;;  %v3657_v13 = vsel %vm3651_vm10, %v3644_v46, 920167782 }
 0x35a   :  { %v3654_v23 = vsel %vm3650_vm3, %v3638_v20, %v3653_v29  ;;  %v3660_v47 = vsel %vm3648_vm15, %v3638_v20, %v3641_v26  ;;  %v3661_v11 = vsel %vm3651_vm10, %v3647_v61, 1326507024  ;;  %vm16273_vm7 = vcmp.lt.s32.totalorder %v11311_v25, 0 }
 0x35b   :  { %v3389_v14 = vsel %vm16273_vm7, %v3388_v10, %v3387_v62  ;;  %v2008_v33 = vadd.s32 %v11496_v27, %v11503_v51  ;;  %v7857_v45 = vadd.s32 4294967294, %v2020_v0  ;;  %v3658_v53 = vsel %vm3650_vm3, %v3641_v26, %v3657_v13 }
 0x35c   :  { %vm16274_vm2 = vcmp.lt.s32.totalorder %v11538_v4, 2  ;;  %v3662_v18 = vsel %vm3650_vm3, %v3644_v46, %v3661_v11  ;;  %v11597_v6 = vshll.u32 %v1856_v52, 8  ;;  %v11599_v20 = vadd.s32 4294967169, %v3516_v60 }
 0x35d   :  { %v3655_v15 = vsel %vm16274_vm2, %v3652_v38, %v3654_v23  ;;  %vm7858_vm15 = vcmp.lt.s32.totalorder %v7857_v45, 0  ;;  %vm16275_vm10 = vmmov %vm16274_vm2  ;;  %vm16277_vm0 = vcmp.gt.s32.totalorder %v11531_v63, 0  ;;  %v11611_v51 = vsel %vm11565_vm4, %v11311_v25, %v3389_v14 }
 0x35e   :  { %v3659_v62 = vsel %vm16275_vm10, %v3656_v59, %v3658_v53  ;;  %vm16276_vm7 = vmmov %vm16274_vm2  ;;  %v1860_v26 = vsel %vm16277_vm0, %v11531_v63, 0  ;;  %v2023_v46 = vsel %vm7858_vm15, 0, %v7857_v45  ;;  %v16278_v4 = vand.u32 2147483647, %v11509_v3 }
 0x35f   :  { %v3663_v27 = vsel %vm16276_vm7, %v3660_v47, %v3662_v18  ;;  %v2024_v48 = vsub.s32 32, %v2023_v46  ;;  %v2028_v57 = vsub.s32 4294967266, %v2023_v46  ;;  %v11617_v61 = vshrl.u32 %v1860_v26, 5 }
 0x360   :  { %v11614_v52 = vmul.u32.u64.low %v11542_v24, %v3663_v27  ;;  %v11615_v60 = vmul.u32.u64.high %v11542_v24, %v3663_v27, %v11614_v52  ;;  %v11621_v38 = vand.u32 8388607, %v16278_v4  ;;  %v3671_v0 = vmul.u32 %v11542_v24, %v3655_v15 }
 0x361   :  { %v11624_v63 = vmul.u32.u64.low %v11542_v24, %v3659_v62  ;;  %v11625_v10 = vmul.u32.u64.high %v11542_v24, %v3659_v62, %v11624_v63  ;;  %v1862_v29 = vand.u32 31, %v1860_v26  ;;  %8832 = vcosq.f32 %v11611_v51 }
 0x362   :  { %v2025_v59 = vshll.u32 %v11554_v12, %v2023_v46  ;;  %v2026_v23 = vshrl.u32 %v2008_v33, %v2024_v48  ;;  %v2029_v13 = vadd.s32 127, %v2028_v57  ;;  %vm1880_vm0 = vcmp.lt.s32.totalorder %v11617_v61, 1 }
 0x363   :  { %vm3673_vm2 = vc.u32 %v11615_v60, %v11624_v63  ;;  %v1863_v47 = vsub.s32 32, %v1862_v29  ;;  %v1865_v11 = vshll.u32 %v16061_v28, %v1862_v29  ;;  %v1868_v53 = vshll.u32 %v16040_v39, %v1862_v29 }
 0x364   :  { %v2027_v14 = vor.u32 %v2026_v23, %v2025_v59  ;;  %v2030_v45 = vshll.u32 %v2029_v13, 23  ;;  %v1871_v24 = vshll.u32 %v16041_v7, %v1862_v29  ;;  %v3674_v15 = vadd.s32 1, %v11625_v10 }
 0x365   :  { %v1864_v12 = vshrl.u32 %v16061_v28, %v1863_v47  ;;  %v1866_v33 = vshrl.u32 %v16040_v39, %v1863_v47  ;;  %v1869_v18 = vshrl.u32 %v16041_v7, %v1863_v47  ;;  %vm15790_vm3 = vcmp.lt.s32.totalorder %v11353_v41, 0 }
 0x366   :  { %v2031_v62 = vor.u32 4788187, %v2030_v45  ;;  %v2034_v27 = vcvt.s32.f32 %v2027_v14  ;;  %v1872_v26 = vshrl.u32 %v16042_v9, %v1863_v47  ;;  %v1874_v46 = vshll.u32 %v16042_v9, %v1862_v29 }
 0x367   :  { %v3675_v52 = vsel %vm3673_vm2, %v3674_v15, %v11625_v10  ;;  %v1867_v48 = vor.u32 %v1866_v33, %v1865_v11  ;;  %v1870_v57 = vor.u32 %v1869_v18, %v1868_v53  ;;  %v1875_v4 = vshrl.u32 %v16044_v21, %v1863_v47 }
 0x368   :  { %v2032_v59 = vand.u32 2147483647, %v2031_v62  ;;  %v3676_v23 = vadd.s32 %v3675_v52, %v3671_v0  ;;  %v1873_v13 = vor.u32 %v1872_v26, %v1871_v24  ;;  %v1877_v17 = vshll.u32 %v16044_v21, %v1862_v29 }
 0x369   :  { %v16279_v14 = vand.u32 2147483647, %v11353_v41  ;;  %v1876_v25 = vor.u32 %v1875_v4, %v1874_v46  ;;  %v1878_v32 = vshrl.u32 %v16028_v43, %v1863_v47  ;;  %vm1882_vm10 = vcmp.lt.s32.totalorder %v11617_v61, 3 }
 0x36a   :  { %vm1883_vm7 = vcmp.lt.s32.totalorder %v11617_v61, 4  ;;  %v2035_v10 = vmul.f32 %v2034_v27, %v2032_v59  ;;  %v3677_v11 = vadd.s32 536870912, %v3676_v23  ;;  %v1884_v0 = vsel %vm1880_vm0, %v1864_v12, %v1867_v48  ;;  %v3720_v59 = vld [vmem:[%s15543_s3] sm:$0xff] }
 0x36b   :  { %vm11652_vm15 = vcmp.le.f32.partialorder %v16279_v14, 0.7853982  ;;  %v1885_v29 = vsel %vm1883_vm7, %v1873_v13, 2102212464  ;;  %v1879_v53 = vor.u32 %v1878_v32, %v1877_v17  ;;  %v1888_v15 = vsel %vm1880_vm0, %v1867_v48, %v1870_v57  ;;  %v11669_v33 = vpop.eup %8832 }
 0x36c   :  { %v1886_v24 = vsel %vm1882_vm10, %v1870_v57, %v1885_v29  ;;  %v1889_v47 = vsel %vm1883_vm7, %v1876_v25, 920167782  ;;  %v2036_v18 = vxor.u32 2147483648, %v2035_v10  ;;  %v11671_v62 = vshrl.u32 %v3677_v11, 30  ;;  %v3724_v29 = vld [vmem:[%s15543_s3 + $0x20] sm:$0xff] }
 0x36d   :  { %vm1881_vm2 = vcmp.lt.s32.totalorder %v11617_v61, 2  ;;  %v1890_v12 = vsel %vm1882_vm10, %v1873_v13, %v1889_v47  ;;  %v1892_v17 = vsel %vm1880_vm0, %v1870_v57, %v1873_v13  ;;  %v1893_v27 = vsel %vm1883_vm7, %v1879_v53, 1326507024  ;;  %v3721_v57 = vld [vmem:[%s15543_s3 + $0x8] sm:$0xff]  ;;  %v3727_v47 = vld [vmem:[%s15543_s3 + $0x38] sm:$0xff] }
 0x36e   :  { %16282 = vst [vmem:[#allocation121_spill] sm:$0xff] %v11671_v62  ;;  %v1891_v32 = vsel %vm1881_vm2, %v1888_v15, %v1890_v12  ;;  %v3520_v26 = vor.u32 8388608, %v11621_v38  ;;  %v3679_v46 = vshll.u32 %v11671_v62, 30  ;;  %v1887_v52 = vsel %vm1881_vm2, %v1884_v0, %v1886_v24  ;;  %v3725_v53 = vld [vmem:[%s15543_s3 + $0x28] sm:$0xff]  ;;  %v3726_v15 = vld [vmem:[%s15543_s3 + $0x30] sm:$0xff] }
 0x36f   :  { %v1894_v48 = vsel %vm1882_vm10, %v1876_v25, %v1893_v27  ;;  %v3522_v4 = vadd.s32 1, %v11599_v20  ;;  %v2037_v13 = vsel %vm15790_vm3, %v2036_v18, %v2035_v10  ;;  %v3722_v25 = vld [vmem:[%s15543_s3 + $0x10] sm:$0xff]  ;;  %v3723_v20 = vld [vmem:[%s15543_s3 + $0x18] sm:$0xff]  ;;  %8834 = vsinq.f32 %v11611_v51 }
 0x370   :  { %v1895_v38 = vsel %vm1881_vm2, %v1892_v17, %v1894_v48  ;;  %v11694_v14 = vmul.u32.u64.low %v11597_v6, %v1891_v32  ;;  %v11695_v11 = vmul.u32.u64.high %v11597_v6, %v1891_v32, %v11694_v14  ;;  %v11705_v61 = vsub.s32 %v3676_v23, %v3679_v46  ;;  %v3728_v46 = vld [vmem:[%s15543_s3 + $0x40] sm:$0xff] }
 0x371   :  { %v11708_v10 = vmul.u32.u64.low %v11597_v6, %v1895_v38  ;;  %v11709_v0 = vmul.u32.u64.high %v11597_v6, %v1895_v38, %v11708_v10  ;;  %v11719_v24 = vadd.s32 %v11624_v63, %v11615_v60  ;;  %v1903_v51 = vmul.u32 %v11597_v6, %v1887_v52  ;;  %v3729_v52 = vld [vmem:[%s15543_s3 + $0x48] sm:$0xff] }
 0x372   :  { %vm3523_vm0 = vcmp.gt.s32.totalorder %v3522_v4, 0  ;;  %v8420_v23 = vpack.c.bf16 %v3721_v57, %v3720_v59  ;;  %v11731_v18 = vsel %vm11652_vm15, %v11353_v41, %v2037_v13  ;;  %v3682_v60 = vsub.s32 0, %v11705_v61 }
 0x373   :  { %v3524_v63 = vsel %vm3523_vm0, %v3522_v4, 0  ;;  %v8424_v12 = vpack.c.bf16 %v3723_v20, %v3722_v25  ;;  %v1906_v6 = vadd.s32 1, %v11695_v11  ;;  %v11735_v17 = vshll.u32 %v3520_v26, 8 }
 0x374   :  { %v3526_v32 = vand.u32 31, %v3524_v63  ;;  %8421 = vmatprep.subr.bf16.mxu1 %v8420_v23  ;;  %v8428_v27 = vpack.c.bf16 %v3725_v53, %v3724_v29  ;;  %v7920_v48 = vmin.u32 %v3682_v60, %v11705_v61  ;;  %vm1905_vm10 = vc.u32 %v11709_v0, %v11694_v14 }
 0x375   :  { %v11746_v4 = vshrl.u32 %v3524_v63, 5  ;;  %8423 = vmatpush3.bf16.msra.mxu1 %v8420_v23  ;;  %v8432_v26 = vpack.c.bf16 %v3727_v47, %v3726_v15  ;;  %v1907_v59 = vsel %vm1905_vm10, %v1906_v6, %v11695_v11  ;;  %v8436_v29 = vpack.c.bf16 %v3729_v52, %v3728_v46 }
 0x376   :  { %v3527_v57 = vsub.s32 32, %v3526_v32  ;;  %v3529_v13 = vshll.u32 %v16061_v28, %v3526_v32  ;;  %v3532_v38 = vshll.u32 %v16040_v39, %v3526_v32  ;;  %8425 = vmatprep.subr.bf16.mxu1 %v8424_v12  ;;  %v3684_v25 = vclz %v7920_v48 }
 0x377   :  { %v1908_v20 = vadd.s32 %v1907_v59, %v1903_v51  ;;  %v3535_v10 = vshll.u32 %v16041_v7, %v3526_v32  ;;  %v3538_v15 = vshll.u32 %v16042_v9, %v3526_v32  ;;  %v3541_v6 = vshll.u32 %v16044_v21, %v3526_v32 }
 0x378   :  { %v3530_v53 = vshrl.u32 %v16040_v39, %v3527_v57  ;;  %v3533_v60 = vshrl.u32 %v16041_v7, %v3527_v57  ;;  %v3536_v23 = vshrl.u32 %v16042_v9, %v3527_v57  ;;  %v7921_v11 = vadd.s32 4294967294, %v3684_v25 }
 0x379   :  { %v1909_v47 = vadd.s32 536870912, %v1908_v20  ;;  %v3539_v63 = vshrl.u32 %v16044_v21, %v3527_v57  ;;  %8427 = vmatpush3.bf16.msra.mxu1 %v8424_v12  ;;  %v3528_v51 = vshrl.u32 %v16061_v28, %v3527_v57  ;;  %v3542_v46 = vshrl.u32 %v16028_v43, %v3527_v57  ;;  %v11760_v52 = vpop.eup %8834 }
 0x37a   :  { %v3531_v48 = vor.u32 %v3530_v53, %v3529_v13  ;;  %v3534_v59 = vor.u32 %v3533_v60, %v3532_v38  ;;  %8429 = vmatprep.subr.bf16.mxu1 %v8428_v27  ;;  %vm7922_vm7 = vcmp.lt.s32.totalorder %v7921_v11, 0  ;;  %v3537_v9 = vor.u32 %v3536_v23, %v3535_v10 }
 0x37b   :  { %v11762_v7 = vshrl.u32 %v1909_v47, 30  ;;  %vm3544_vm2 = vcmp.lt.s32.totalorder %v11746_v4, 1  ;;  %v3687_v25 = vsel %vm7922_vm7, 0, %v7921_v11  ;;  %v3540_v39 = vor.u32 %v3539_v63, %v3538_v15 }
 0x37c   :  { %v3543_v62 = vor.u32 %v3542_v46, %v3541_v6  ;;  %vm3545_vm0 = vcmp.lt.s32.totalorder %v11746_v4, 2  ;;  %v3688_v12 = vsub.s32 32, %v3687_v25  ;;  %v3692_v32 = vsub.s32 4294967266, %v3687_v25 }
 0x37d   :  { %v1911_v13 = vshll.u32 %v11762_v7, 30  ;;  %vm3546_vm10 = vcmp.lt.s32.totalorder %v11746_v4, 3  ;;  %8431 = vmatpush3.bf16.msra.mxu1 %v8428_v27  ;;  %v3689_v57 = vshll.u32 %v11705_v61, %v3687_v25  ;;  %vm3547_vm3 = vcmp.lt.s32.totalorder %v11746_v4, 4 }
 0x37e   :  { %v3548_v38 = vsel %vm3544_vm2, %v3528_v51, %v3531_v48  ;;  %v3552_v10 = vsel %vm3544_vm2, %v3531_v48, %v3534_v59  ;;  %8433 = vmatprep.subr.bf16.mxu1 %v8432_v26  ;;  %v3690_v53 = vshrl.u32 %v11719_v24, %v3688_v12  ;;  %v3693_v60 = vadd.s32 127, %v3692_v32 }
 0x37f   :  { %v11775_v23 = vsub.s32 %v1908_v20, %v1911_v13  ;;  %v3549_v15 = vsel %vm3547_vm3, %v3537_v9, 2102212464  ;;  %v3553_v11 = vsel %vm3547_vm3, %v3540_v39, 920167782  ;;  %v3557_v61 = vsel %vm3547_vm3, %v3543_v62, 1326507024 }
 0x380   :  { %v3550_v27 = vsel %vm3546_vm10, %v3534_v59, %v3549_v15  ;;  %v478_v47 = vsub.s32 4, %v9351_v56  ;;  %v3691_v63 = vor.u32 %v3690_v53, %v3689_v57  ;;  %v3694_v6 = vshll.u32 %v3693_v60, 23 }
 0x381   :  { %v1914_v51 = vsub.s32 0, %v11775_v23  ;;  %v3556_v48 = vsel %vm3544_vm2, %v3534_v59, %v3537_v9  ;;  %8435 = vmatpush3.bf16.msra.mxu1 %v8432_v26  ;;  %v3551_v24 = vsel %vm3545_vm0, %v3548_v38, %v3550_v27  ;;  %v3554_v20 = vsel %vm3546_vm10, %v3537_v9, %v3553_v11 }
 0x382   :  { %v3558_v46 = vsel %vm3546_vm10, %v3540_v39, %v3557_v61  ;;  %8437 = vmatprep.subr.bf16.mxu1 %v8436_v29  ;;  %vm16283_vm3 = vcmp.lt.s32.totalorder %v9177_v40, 0  ;;  %v3695_v25 = vor.u32 4788187, %v3694_v6  ;;  %v3698_v12 = vcvt.s32.f32 %v3691_v63 }
 0x383   :  { %v479_v62 = vsel %vm16283_vm3, %v478_v47, %v9351_v56  ;;  %v7852_v32 = vmin.u32 %v1914_v51, %v11775_v23  ;;  %v3555_v26 = vsel %vm3545_vm0, %v3552_v10, %v3554_v20  ;;  %v3559_v59 = vsel %vm3545_vm0, %v3556_v48, %v3558_v46 }
 0x384   :  { %v11798_v9 = vmul.u32.u64.low %v11735_v17, %v3555_v26  ;;  %v11799_v13 = vmul.u32.u64.high %v11735_v17, %v3555_v26, %v11798_v9  ;;  %v481_v57 = vsel %vm9696_vm13, 0, %v479_v62  ;;  %v3696_v38 = vand.u32 2147483647, %v3695_v25 }
 0x385   :  { %v1916_v53 = vclz %v7852_v32  ;;  %v11804_v56 = vmul.u32.u64.low %v11735_v17, %v3559_v59  ;;  %v11805_v60 = vmul.u32.u64.high %v11735_v17, %v3559_v59, %v11804_v56  ;;  %8439 = vmatpush3.bf16.msra.mxu1 %v8436_v29  ;;  %v16285_v10 = vsel %vm9536_vm11, 0, %v11269_v16 }
 0x386   :  { %v589_v4 = vadd.s32 3, %v16285_v10  ;;  %8836 = vcosq.f32 %v11731_v18  ;;  %v485_v15 = vadd.s32 3, %v481_v57  ;;  %v16286_v27 = vand.u32 2147483647, %v11363_v30 }
 0x387   :  { %8838 = vsinq.f32 %v11731_v18  ;;  %v3699_v61 = vmul.f32 %v3698_v12, %v3696_v38  ;;  %v1904_v54 = vadd.s32 %v11694_v14, %v11709_v0  ;;  %v7853_v29 = vadd.s32 4294967294, %v1916_v53  ;;  %v16289_v18 = vld [vmem:[#allocation23_spill] sm:$0xff] }
 0x388   :  { %vm11816_vm13 = vcmp.le.f32.partialorder %v16286_v27, 0.7853982  ;;  %v3567_v16 = vmul.u32 %v11735_v17, %v3551_v24  ;;  %v3570_v47 = vadd.s32 1, %v11799_v13  ;;  %v486_v63 = vand.u32 3, %v485_v15  ;;  %v16290_v17 = vld [vmem:[#allocation14_spill] sm:$0xff] }
 0x389   :  { %v489_v6 = vxor.u32 2147483648, %v9827_v37  ;;  %v3700_v51 = vxor.u32 2147483648, %v3699_v61  ;;  %vm7854_vm11 = vcmp.lt.s32.totalorder %v7853_v29, 0  ;;  %vm3569_vm2 = vc.u32 %v11805_v60, %v11798_v9 }
 0x38a   :  { %v492_v48 = vxor.u32 2147483648, %v16289_v18  ;;  %v1919_v20 = vsel %vm7854_vm11, 0, %v7853_v29  ;;  %v3571_v46 = vsel %vm3569_vm2, %v3570_v47, %v11799_v13  ;;  %v590_v62 = vand.u32 3, %v589_v4  ;;  %v16294_v29 = vld [vmem:[#allocation15_spill] sm:$0xff] }
 0x38b   :  { %v1920_v14 = vsub.s32 32, %v1919_v20  ;;  %v1924_v0 = vsub.s32 4294967266, %v1919_v20  ;;  %vm488_vm10 = vcmp.eq.s32.totalorder %v486_v63, 0  ;;  %v593_v24 = vxor.u32 2147483648, %v16290_v17 }
 0x38c   :  { %v3572_v25 = vadd.s32 %v3571_v46, %v3567_v16  ;;  %vm487_vm3 = vcmp.lt.s32.totalorder %v486_v63, 2  ;;  %v490_v12 = vsel %vm488_vm10, %v16289_v18, %v489_v6  ;;  %vm491_vm7 = vcmp.eq.s32.totalorder %v486_v63, 2 }
 0x38d   :  { %vm16291_vm4 = vcmp.lt.s32.totalorder %v11363_v30, 0  ;;  %v1922_v26 = vshrl.u32 %v1904_v54, %v1920_v14  ;;  %v1925_v59 = vadd.s32 127, %v1924_v0  ;;  %v493_v39 = vsel %vm491_vm7, %v492_v48, %v9827_v37  ;;  %v16293_v37 = vld [vmem:[#allocation12_spill] sm:$0xff] }
 0x38e   :  { %v3701_v32 = vsel %vm16291_vm4, %v3700_v51, %v3699_v61  ;;  %v3573_v13 = vadd.s32 536870912, %v3572_v25  ;;  %vm484_vm11 = vweird.f32 %v9177_v40  ;;  %v494_v57 = vsel %vm487_vm3, %v490_v12, %v493_v39  ;;  %v16296_v48 = vld [vmem:[#allocation8_spill] sm:$0xff]  ;;  %v16299_v12 = vld [vmem:[#allocation5_spill] sm:$0xff] }
 0x38f   :  { %vm588_vm2 = vweird.f32 %v9171_v36  ;;  %v1921_v38 = vshll.u32 %v11775_v23, %v1919_v20  ;;  %v1926_v53 = vshll.u32 %v1925_v59, 23  ;;  %v495_v56 = vsel %vm484_vm11, nan, %v494_v57 }
 0x390   :  { %vm592_vm0 = vcmp.eq.s32.totalorder %v590_v62, 0  ;;  %v11836_v10 = vpop.eup %8836  ;;  %v3704_v4 = vsel %vm11816_vm13, %v11363_v30, %v3701_v32  ;;  %v11841_v15 = vshrl.u32 %v3573_v13, 30  ;;  %vm16292_vm4 = vcmask 654336   ;;  %v16303_v13 = vld [vmem:[#allocation37_spill] sm:$0xff] }
 0x391   :  { %8304 = vmatprep.mubr.msk.f32.mxu1 %vm16292_vm4, %v495_v56  ;;  %v594_v40 = vsel %vm592_vm0, %v16293_v37, %v593_v24  ;;  %v596_v27 = vxor.u32 2147483648, %v16293_v37  ;;  %v11846_v61 = vpop.eup %8838  ;;  %v1923_v23 = vor.u32 %v1922_v26, %v1921_v38  ;;  %v1927_v54 = vor.u32 4788187, %v1926_v53  ;;  %vm16298_vm3 = vmmov %vm16292_vm4 }
 0x392   :  { %vm595_vm7 = vcmp.eq.s32.totalorder %v590_v62, 2  ;;  %v686_v16 = vsub.s32 4, %v16294_v29  ;;  %v11850_v47 = vadd.s32 %v11798_v9, %v11805_v60  ;;  %v3575_v63 = vshll.u32 %v11841_v15, 30 }
 0x393   :  { %vm591_vm10 = vcmp.lt.s32.totalorder %v590_v62, 2  ;;  %v597_v6 = vsel %vm595_vm7, %v596_v27, %v16290_v17  ;;  %8840 = vcosq.f32 %v3704_v4  ;;  %vm16295_vm0 = vcmp.lt.s32.totalorder %v9488_v42, 0 }
 0x394   :  { %v598_v51 = vsel %vm591_vm10, %v594_v40, %v597_v6  ;;  %v687_v18 = vsel %vm16295_vm0, %v686_v16, %v16294_v29  ;;  %v790_v20 = vsub.s32 4, %v16296_v48  ;;  %v1928_v46 = vand.u32 2147483647, %v1927_v54  ;;  %v16304_v40 = vld [vmem:[#allocation21_spill] sm:$0xff]  ;;  %v16307_v29 = vld [vmem:[#allocation32_spill] sm:$0xff] }
 0x395   :  { %v11858_v14 = vsub.s32 %v3572_v25, %v3575_v63  ;;  %v599_v9 = vsel %vm588_vm2, nan, %v598_v51  ;;  %v689_v0 = vsel %vm9944_vm12, 0, %v687_v18  ;;  %v1930_v62 = vcvt.s32.f32 %v1923_v23  ;;  %v16301_v25 = vld [vmem:[#allocation38_spill] sm:$0xff]  ;;  %v16306_v23 = vld [vmem:[#allocation33_spill] sm:$0xff] }
 0x396   :  { %8305 = vmatmul.mubr.msk.f32.vlgmr.msra.gmra.mrb[16].mxu1 %vm16298_vm3, %v599_v9  ;;  %v693_v17 = vadd.s32 3, %v689_v0  ;;  %v697_v24 = vxor.u32 2147483648, %v10096_v44  ;;  %vm16300_vm11 = vcmp.lt.s32.totalorder %v16299_v12, 0  ;;  %v700_v59 = vxor.u32 2147483648, %v16301_v25 }
 0x397   :  { %v791_v32 = vsel %vm16300_vm11, %v790_v20, %v16296_v48  ;;  %v3578_v26 = vsub.s32 0, %v11858_v14  ;;  %v894_v57 = vsub.s32 4, %v16303_v13  ;;  %8842 = vsinq.f32 %v3704_v4 }
 0x398   :  { %v793_v36 = vsel %vm9817_vm9, 0, %v791_v32  ;;  %vm692_vm12 = vweird.f32 %v9488_v42  ;;  %v694_v38 = vand.u32 3, %v693_v17  ;;  %v1931_v56 = vmul.f32 %v1930_v62, %v1928_v46  ;;  %v16309_v46 = vld [vmem:[#allocation59_spill] sm:$0xff]  ;;  %v16310_v17 = vld [vmem:[#allocation58_spill] sm:$0xff] }
 0x399   :  { %v797_v53 = vadd.s32 3, %v793_v36  ;;  %v7916_v37 = vmin.u32 %v3578_v26, %v11858_v14  ;;  %vm796_vm2 = vweird.f32 %v16299_v12  ;;  %vm16305_vm4 = vcmp.lt.s32.totalorder %v16304_v40, 0 }
 0x39a   :  { %v895_v27 = vsel %vm16305_vm4, %v894_v57, %v16303_v13  ;;  %vm696_vm7 = vcmp.eq.s32.totalorder %v694_v38, 0  ;;  %vm699_vm10 = vcmp.eq.s32.totalorder %v694_v38, 2  ;;  %v801_v54 = vxor.u32 2147483648, %v16306_v23  ;;  %v16312_v57 = vld [vmem:[#allocation13_spill] sm:$0xff] }
 0x39b   :  { %v804_v16 = vxor.u32 2147483648, %v16307_v29  ;;  %v3580_v4 = vclz %v7916_v37  ;;  %vm695_vm9 = vcmp.lt.s32.totalorder %v694_v38, 2  ;;  %v698_v63 = vsel %vm696_vm7, %v16301_v25, %v697_v24 }
 0x39c   :  { %v701_v6 = vsel %vm699_vm10, %v700_v59, %v10096_v44  ;;  %v798_v18 = vand.u32 3, %v797_v53  ;;  %v897_v20 = vsel %vm10283_vm1, 0, %v895_v27  ;;  %v905_v9 = vxor.u32 2147483648, %v16309_v46  ;;  %v16311_v44 = vld [vmem:[#allocation28_spill] sm:$0xff] }
 0x39d   :  { %v702_v51 = vsel %vm695_vm9, %v698_v63, %v701_v6  ;;  %vm1850_vm0 = vcmp.lt.s32.totalorder %v11381_v5, 0  ;;  %v7917_v60 = vadd.s32 4294967294, %v3580_v4  ;;  %v901_v62 = vadd.s32 3, %v897_v20  ;;  %v11891_v26 = vpop.eup %8840 }
 0x39e   :  { %v703_v0 = vsel %vm692_vm12, nan, %v702_v51  ;;  %v908_v32 = vxor.u32 2147483648, %v16310_v17  ;;  %vm799_vm11 = vcmp.lt.s32.totalorder %v798_v18, 2  ;;  %vm800_vm4 = vcmp.eq.s32.totalorder %v798_v18, 0 }
 0x39f   :  { %8307 = vmatprep.mubr.msk.f32.mxu1 %vm16298_vm3, %v703_v0  ;;  %vm803_vm7 = vcmp.eq.s32.totalorder %v798_v18, 2  ;;  %v998_v24 = vsub.s32 4, %v16311_v44  ;;  %vm7918_vm1 = vcmp.lt.s32.totalorder %v7917_v60, 0  ;;  %v802_v25 = vsel %vm800_vm4, %v16307_v29, %v801_v54 }
 0x3a0   :  { %v805_v59 = vsel %vm803_vm7, %v804_v16, %v16306_v23  ;;  %v902_v39 = vand.u32 3, %v901_v62  ;;  %v1932_v42 = vxor.u32 2147483648, %v1931_v56  ;;  %v3583_v36 = vsel %vm7918_vm1, 0, %v7917_v60  ;;  %v16318_v60 = vld [vmem:[#allocation51_spill] sm:$0xff] }
 0x3a1   :  { %v806_v13 = vsel %vm799_vm11, %v802_v25, %v805_v59  ;;  %vm16313_vm12 = vcmp.lt.s32.totalorder %v16312_v57, 0  ;;  %v3584_v53 = vsub.s32 32, %v3583_v36  ;;  %v3588_v37 = vsub.s32 4294967266, %v3583_v36  ;;  %v11903_v4 = vpop.eup %8842  ;;  %v16320_v59 = vld [vmem:[#allocation56_spill] sm:$0xff] }
 0x3a2   :  { %v999_v38 = vsel %vm16313_vm12, %v998_v24, %v16311_v44  ;;  %v807_v27 = vsel %vm796_vm2, nan, %v806_v13  ;;  %vm900_vm10 = vweird.f32 %v16304_v40  ;;  %v16314_v54 = vand.u32 2147483647, %v11381_v5  ;;  %v16319_v24 = vld [vmem:[#allocation50_spill] sm:$0xff]  ;;  %v16324_v40 = vld [vmem:[#allocation79_spill] sm:$0xff]  ;;  %v16325_v13 = vld [vmem:[#allocation45_spill] sm:$0xff] }
 0x3a3   :  { %8308 = vmatmul.mubr.msk.f32.gmra.mrb[18].mxu1 %vm16298_vm3, %v807_v27  ;;  %vm903_vm11 = vcmp.lt.s32.totalorder %v902_v39, 2  ;;  %vm904_vm4 = vcmp.eq.s32.totalorder %v902_v39, 0  ;;  %vm907_vm7 = vcmp.eq.s32.totalorder %v902_v39, 2  ;;  %v1001_v16 = vsel %vm10190_vm5, 0, %v999_v38  ;;  %vm16321_vm5 = vmmov %vm16298_vm3 }
 0x3a4   :  { %vm11907_vm9 = vcmp.le.f32.partialorder %v16314_v54, 0.7853982  ;;  %v3586_v12 = vshrl.u32 %v11850_v47, %v3584_v53  ;;  %v3589_v63 = vadd.s32 127, %v3588_v37  ;;  %v906_v6 = vsel %vm904_vm4, %v16310_v17, %v905_v9  ;;  %v16322_v17 = vld [vmem:[#allocation41_spill] sm:$0xff] }
 0x3a5   :  { %v909_v51 = vsel %vm907_vm7, %v908_v32, %v16309_v46  ;;  %v3585_v18 = vshll.u32 %v11858_v14, %v3583_v36  ;;  %v1005_v20 = vadd.s32 3, %v1001_v16  ;;  %v1009_v0 = vxor.u32 2147483648, %v16318_v60  ;;  %vm16332_vm7 = vmmov %vm16321_vm5 }
 0x3a6   :  { %v910_v48 = vsel %vm903_vm11, %v906_v6, %v909_v51  ;;  %v3590_v62 = vshll.u32 %v3589_v63, 23  ;;  %v1012_v25 = vxor.u32 2147483648, %v16319_v24  ;;  %v1102_v39 = vsub.s32 4, %v16320_v59  ;;  %v16328_v6 = vld [vmem:[#allocation35_spill] sm:$0xff] }
 0x3a7   :  { %v911_v44 = vsel %vm900_vm10, nan, %v910_v48  ;;  %v1933_v47 = vsel %vm1850_vm0, %v1932_v42, %v1931_v56  ;;  %v3587_v9 = vor.u32 %v3586_v12, %v3585_v18  ;;  %vm1004_vm2 = vweird.f32 %v16312_v57  ;;  %v16327_v12 = vld [vmem:[#allocation74_spill] sm:$0xff] }
 0x3a8   :  { %8310 = vmatprep.mubr.msk.f32.mxu1 %vm16321_vm5, %v911_v44  ;;  %v1006_v14 = vand.u32 3, %v1005_v20  ;;  %v3591_v46 = vor.u32 4788187, %v3590_v62  ;;  %vm16323_vm1 = vcmp.lt.s32.totalorder %v16322_v17, 0  ;;  %v1113_v36 = vxor.u32 2147483648, %v16324_v40 }
 0x3a9   :  { %v1103_v32 = vsel %vm16323_vm1, %v1102_v39, %v16320_v59  ;;  %v1206_v38 = vsub.s32 4, %v16325_v13  ;;  %v3594_v29 = vcvt.s32.f32 %v3587_v9  ;;  %v1116_v63 = vxor.u32 2147483648, %v16327_v12  ;;  %v16334_v59 = vld [vmem:[#allocation78_spill] sm:$0xff] }
 0x3aa   :  { %vm1007_vm12 = vcmp.lt.s32.totalorder %v1006_v14, 2  ;;  %vm1008_vm10 = vcmp.eq.s32.totalorder %v1006_v14, 0  ;;  %vm1011_vm3 = vcmp.eq.s32.totalorder %v1006_v14, 2  ;;  %v1105_v56 = vsel %vm10603_vm14, 0, %v1103_v32 }
 0x3ab   :  { %v3592_v42 = vand.u32 2147483647, %v3591_v46  ;;  %v1010_v37 = vsel %vm1008_vm10, %v16319_v24, %v1009_v0  ;;  %v1013_v27 = vsel %vm1011_vm3, %v1012_v25, %v16318_v60  ;;  %v1109_v54 = vadd.s32 3, %v1105_v56  ;;  %v16330_v60 = vld [vmem:[#allocation60_spill] sm:$0xff]  ;;  %v16333_v24 = vld [vmem:[#allocation69_spill] sm:$0xff] }
 0x3ac   :  { %v1014_v16 = vsel %vm1007_vm12, %v1010_v37, %v1013_v27  ;;  %vm16329_vm11 = vcmp.lt.s32.totalorder %v16328_v6, 0  ;;  %v1936_v18 = vsel %vm11907_vm9, %v11381_v5, %v1933_v47  ;;  %vm3514_vm14 = vcmp.lt.s32.totalorder %v11509_v3, 0  ;;  %v16335_v47 = vld [vmem:[#allocation67_spill] sm:$0xff] }
 0x3ad   :  { %v1207_v51 = vsel %vm16329_vm11, %v1206_v38, %v16325_v13  ;;  %v1015_v48 = vsel %vm1004_vm2, nan, %v1014_v16  ;;  %v1110_v20 = vand.u32 3, %v1109_v54  ;;  %vm16331_vm4 = vnez %v16330_v60 }
 0x3ae   :  { %v1209_v0 = vsel %vm16331_vm4, 0, %v1207_v51  ;;  %v3595_v62 = vmul.f32 %v3594_v29, %v3592_v42  ;;  %8311 = vmatmul.mubr.msk.f32.gmra.mrb[20].mxu1 %vm16332_vm7, %v1015_v48  ;;  %v1217_v25 = vxor.u32 2147483648, %v16333_v24  ;;  %v1310_v39 = vsub.s32 4, %v16334_v59  ;;  %v16341_v29 = vld [vmem:[#allocation66_spill] sm:$0xff] }
 0x3af   :  { %v1213_v44 = vadd.s32 3, %v1209_v0  ;;  %vm1111_vm5 = vcmp.lt.s32.totalorder %v1110_v20, 2  ;;  %vm1112_vm1 = vcmp.eq.s32.totalorder %v1110_v20, 0  ;;  %vm1115_vm12 = vcmp.eq.s32.totalorder %v1110_v20, 2  ;;  %v16344_v20 = vld [vmem:[#allocation95_spill] sm:$0xff] }
 0x3b0   :  { %v1220_v9 = vxor.u32 2147483648, %v16335_v47  ;;  %v1114_v57 = vsel %vm1112_vm1, %v16327_v12, %v1113_v36  ;;  %v1117_v14 = vsel %vm1115_vm12, %v1116_v63, %v16324_v40  ;;  %vm16336_vm2 = vcmp.lt.s32.totalorder %v10495_v22, 0 }
 0x3b1   :  { %v1214_v46 = vand.u32 3, %v1213_v44  ;;  %v1311_v32 = vsel %vm16336_vm2, %v1310_v39, %v16334_v59  ;;  %8844 = vcosq.f32 %v1936_v18  ;;  %v16337_v13 = vand.u32 2147483647, %v11509_v3  ;;  %v16349_v39 = vld [vmem:[#allocation90_spill] sm:$0xff] }
 0x3b2   :  { %vm1108_vm3 = vweird.f32 %v16322_v17  ;;  %v1118_v53 = vsel %vm1111_vm5, %v1114_v57, %v1117_v14  ;;  %vm16340_vm11 = vnez %v16196_v8  ;;  %8846 = vsinq.f32 %v1936_v18  ;;  %v16342_v18 = vld [vmem:[#allocation54_spill] sm:$0xff] }
 0x3b3   :  { %vm11959_vm10 = vcmp.le.f32.partialorder %v16337_v13, 0.7853982  ;;  %v1313_v36 = vsel %vm16340_vm11, 0, %v1311_v32  ;;  %v3596_v40 = vxor.u32 2147483648, %v3595_v62  ;;  %v1119_v56 = vsel %vm1108_vm3, nan, %v1118_v53  ;;  %vm16345_vm11 = vmmov %vm16332_vm7 }
 0x3b4   :  { %vm1216_vm4 = vcmp.eq.s32.totalorder %v1214_v46, 0  ;;  %8313 = vmatprep.mubr.msk.f32.mxu1 %vm16332_vm7, %v1119_v56  ;;  %vm1219_vm1 = vcmp.eq.s32.totalorder %v1214_v46, 2  ;;  %v1317_v37 = vadd.s32 3, %v1313_v36  ;;  %v1321_v27 = vxor.u32 2147483648, %v11137_v50  ;;  %v16352_v36 = vld [vmem:[#allocation84_spill] sm:$0xff] }
 0x3b5   :  { %v1218_v42 = vsel %vm1216_vm4, %v16335_v47, %v1217_v25  ;;  %vm1215_vm12 = vcmp.lt.s32.totalorder %v1214_v46, 2  ;;  %v1221_v54 = vsel %vm1219_vm1, %v1220_v9, %v16333_v24  ;;  %v1324_v17 = vxor.u32 2147483648, %v11014_v35  ;;  %v16350_v9 = vld [vmem:[#allocation86_spill] sm:$0xff] }
 0x3b6   :  { %v1414_v8 = vsub.s32 4, %v16341_v29  ;;  %vm1212_vm5 = vweird.f32 %v16328_v6  ;;  %v1222_v16 = vsel %vm1215_vm12, %v1218_v42, %v1221_v54  ;;  %vm1316_vm2 = vweird.f32 %v10495_v22  ;;  %v16346_v6 = vld [vmem:[#allocation80_spill] sm:$0xff] }
 0x3b7   :  { %v1318_v12 = vand.u32 3, %v1317_v37  ;;  %v3597_v63 = vsel %vm3514_vm14, %v3596_v40, %v3595_v62  ;;  %v1223_v51 = vsel %vm1212_vm5, nan, %v1222_v16  ;;  %vm16343_vm3 = vcmp.lt.s32.totalorder %v16342_v18, 0 }
 0x3b8   :  { %v1415_v48 = vsel %vm16343_vm3, %v1414_v8, %v16341_v29  ;;  %v1518_v60 = vsub.s32 4, %v16344_v20  ;;  %8314 = vmatmul.mubr.msk.f32.gmra.mrb[22].mxu1 %vm16345_vm11, %v1223_v51  ;;  %vm16347_vm12 = vnez %v16346_v6  ;;  %vm16348_vm5 = vcmp.lt.s32.totalorder %v10880_v49, 0  ;;  %vm16351_vm3 = vmmov %vm16345_vm11 }
 0x3b9   :  { %vm1319_vm4 = vcmp.lt.s32.totalorder %v1318_v12, 2  ;;  %vm1320_vm7 = vcmp.eq.s32.totalorder %v1318_v12, 0  ;;  %vm1323_vm1 = vcmp.eq.s32.totalorder %v1318_v12, 2  ;;  %v1417_v0 = vsel %vm16347_vm12, 0, %v1415_v48 }
 0x3ba   :  { %v1322_v44 = vsel %vm1320_vm7, %v11014_v35, %v1321_v27  ;;  %v1325_v24 = vsel %vm1323_vm1, %v1324_v17, %v11137_v50  ;;  %v1421_v62 = vadd.s32 3, %v1417_v0  ;;  %v1519_v25 = vsel %vm16348_vm5, %v1518_v60, %v16344_v20  ;;  %v16353_v27 = vld [vmem:[#allocation75_spill] sm:$0xff]  ;;  %v16355_v17 = vld [vmem:[#allocation109_spill] sm:$0xff] }
 0x3bb   :  { %v1326_v59 = vsel %vm1319_vm4, %v1322_v44, %v1325_v24  ;;  %v1425_v47 = vxor.u32 2147483648, %v16349_v39  ;;  %v1428_v57 = vxor.u32 2147483648, %v16350_v9  ;;  %v1521_v14 = vsel %vm11216_vm6, 0, %v1519_v25  ;;  %v11999_v13 = vpop.eup %8844  ;;  %v16359_v24 = vld [vmem:[#allocation101_spill] sm:$0xff]  ;;  %v16362_v25 = vld [vmem:[#allocation103_spill] sm:$0xff] }
 0x3bc   :  { %v11995_v46 = vsel %vm11959_vm10, %v11509_v3, %v3597_v63  ;;  %v1327_v35 = vsel %vm1316_vm2, nan, %v1326_v59  ;;  %v1422_v50 = vand.u32 3, %v1421_v62  ;;  %v1525_v32 = vadd.s32 3, %v1521_v14  ;;  %v12006_v56 = vpop.eup %8846 }
 0x3bd   :  { %8316 = vmatprep.mubr.msk.f32.mxu1 %vm16351_vm3, %v1327_v35  ;;  %vm1420_vm11 = vweird.f32 %v16342_v18  ;;  %v1529_v53 = vxor.u32 2147483648, %v11319_v58  ;;  %v1532_v55 = vxor.u32 2147483648, %v11314_v19  ;;  %v1622_v40 = vsub.s32 4, %v16352_v36  ;;  %v16358_v18 = vld [vmem:[#allocation102_spill] sm:$0xff]  ;;  %v16363_v35 = vld [vmem:[#allocation88_spill] sm:$0xff] }
 0x3be   :  { %vm1423_vm6 = vcmp.lt.s32.totalorder %v1422_v50, 2  ;;  %vm1424_vm4 = vcmp.eq.s32.totalorder %v1422_v50, 0  ;;  %vm1427_vm7 = vcmp.eq.s32.totalorder %v1422_v50, 2  ;;  %v1526_v22 = vand.u32 3, %v1525_v32 }
 0x3bf   :  { %v1426_v42 = vsel %vm1424_vm4, %v16350_v9, %v1425_v47  ;;  %v1429_v37 = vsel %vm1427_vm7, %v1428_v57, %v16349_v39  ;;  %vm16354_vm2 = vcmp.lt.s32.totalorder %v16353_v27, 0  ;;  %v1726_v29 = vsub.s32 4, %v16355_v17  ;;  %vm16361_vm7 = vmmov %vm16351_vm3 }
 0x3c0   :  { %v1623_v54 = vsel %vm16354_vm2, %v1622_v40, %v16352_v36  ;;  %v1430_v8 = vsel %vm1423_vm6, %v1426_v42, %v1429_v37  ;;  %vm1527_vm1 = vcmp.lt.s32.totalorder %v1526_v22, 2  ;;  %vm1528_vm12 = vcmp.eq.s32.totalorder %v1526_v22, 0 }
 0x3c1   :  { %vm1531_vm5 = vcmp.eq.s32.totalorder %v1526_v22, 2  ;;  %v1431_v16 = vsel %vm1420_vm11, nan, %v1430_v8  ;;  %v1530_v12 = vsel %vm1528_vm12, %v11314_v19, %v1529_v53  ;;  %v1625_v48 = vsel %vm11064_vm8, 0, %v1623_v54  ;;  %v16365_v22 = vld [vmem:[#allocation112_spill] sm:$0xff]  ;;  %v16369_v8 = vld [vmem:[#allocation115_spill] sm:$0xff] }
 0x3c2   :  { %v1533_v63 = vsel %vm1531_vm5, %v1532_v55, %v11319_v58  ;;  %8317 = vmatmul.mubr.msk.f32.gmra.mrb[24].mxu1 %vm16351_vm3, %v1431_v16  ;;  %vm1524_vm4 = vweird.f32 %v10880_v49  ;;  %v1629_v60 = vadd.s32 3, %v1625_v48  ;;  %vm16357_vm6 = vcmp.lt.s32.totalorder %v11183_v34, 0  ;;  %v16368_v54 = vld [vmem:[#allocation116_spill] sm:$0xff] }
 0x3c3   :  { %v1534_v20 = vsel %vm1527_vm1, %v1530_v12, %v1533_v63  ;;  %v1727_v6 = vsel %vm16357_vm6, %v1726_v29, %v16355_v17  ;;  %v1633_v44 = vxor.u32 2147483648, %v16358_v18  ;;  %v1636_v19 = vxor.u32 2147483648, %v16359_v24  ;;  %v16370_v12 = vld [vmem:[#allocation117_spill] sm:$0xff] }
 0x3c4   :  { %v1535_v0 = vsel %vm1524_vm4, nan, %v1534_v20  ;;  %vm16360_vm11 = vnez %v16262_v31  ;;  %vm1628_vm8 = vweird.f32 %v16353_v27  ;;  %v1630_v62 = vand.u32 3, %v1629_v60  ;;  %v16373_v60 = vld [vmem:[#allocation7_spill] sm:$0xff] }
 0x3c5   :  { %v1729_v58 = vsel %vm16360_vm11, 0, %v1727_v6  ;;  %8319 = vmatprep.mubr.msk.f32.mxu1 %vm16361_vm7, %v1535_v0  ;;  %v1830_v59 = vsub.s32 4, %v16362_v25  ;;  %vm1732_vm2 = vweird.f32 %v11183_v34  ;;  %v1737_v39 = vxor.u32 2147483648, %v11573_v2 }
 0x3c6   :  { %v1733_v49 = vadd.s32 3, %v1729_v58  ;;  %v1740_v47 = vxor.u32 2147483648, %v11557_v1  ;;  %v1934_v9 = vsub.s32 4, %v11762_v7  ;;  %vm1631_vm1 = vcmp.lt.s32.totalorder %v1630_v62, 2 }
 0x3c7   :  { %vm1632_vm12 = vcmp.eq.s32.totalorder %v1630_v62, 0  ;;  %vm1635_vm5 = vcmp.eq.s32.totalorder %v1630_v62, 2  ;;  %vm16364_vm3 = vcmp.lt.s32.totalorder %v16363_v35, 0  ;;  %vm1836_vm7 = vweird.f32 %v16363_v35 }
 0x3c8   :  { %v1734_v31 = vand.u32 3, %v1733_v49  ;;  %v1634_v57 = vsel %vm1632_vm12, %v16359_v24, %v1633_v44  ;;  %v1637_v14 = vsel %vm1635_vm5, %v1636_v19, %v16358_v18  ;;  %v1831_v50 = vsel %vm16364_vm3, %v1830_v59, %v16362_v25  ;;  %v16374_v25 = vld [vmem:[#allocation3_spill] sm:$0xff] }
 0x3c9   :  { %v1935_v32 = vsel %vm1850_vm0, %v1934_v9, %v11762_v7  ;;  %v1638_v53 = vsel %vm1631_vm1, %v1634_v57, %v1637_v14  ;;  %vm16366_vm12 = vnez %v16365_v22  ;;  %vm16367_vm5 = vcmask 654336   ;;  %v16377_v9 = vld [vmem:[#allocation17_spill] sm:$0xff]  ;;  %v16379_v14 = vld [vmem:[#allocation26_spill] sm:$0xff] }
 0x3ca   :  { %vm1735_vm4 = vcmp.lt.s32.totalorder %v1734_v31, 2  ;;  %vm1736_vm6 = vcmp.eq.s32.totalorder %v1734_v31, 0  ;;  %vm1739_vm11 = vcmp.eq.s32.totalorder %v1734_v31, 2  ;;  %v1639_v55 = vsel %vm1628_vm8, nan, %v1638_v53  ;;  %vm16371_vm0 = vmmov %vm16367_vm5 }
 0x3cb   :  { %v1738_v36 = vsel %vm1736_vm6, %v11557_v1, %v1737_v39  ;;  %v1741_v40 = vsel %vm1739_vm11, %v1740_v47, %v11573_v2  ;;  %v1833_v42 = vsel %vm16366_vm12, 0, %v1831_v50  ;;  %8320 = vmatmul.mubr.msk.f32.gmra.mrb[26].mxu1 %vm16367_vm5, %v1639_v55  ;;  %v1841_v17 = vxor.u32 2147483648, %v16368_v54  ;;  %vm16376_vm12 = vmmov %vm16371_vm0 }
 0x3cc   :  { %v1742_v37 = vsel %vm1735_vm4, %v1738_v36, %v1741_v40  ;;  %v1837_v7 = vadd.s32 3, %v1833_v42  ;;  %v1937_v29 = vsel %vm11907_vm9, 0, %v1935_v32  ;;  %v1844_v16 = vxor.u32 2147483648, %v16369_v8  ;;  %v16382_v32 = vld [vmem:[#allocation25_spill] sm:$0xff] }
 0x3cd   :  { %v1743_v27 = vsel %vm1732_vm2, nan, %v1742_v37  ;;  %v1941_v1 = vadd.s32 3, %v1937_v29  ;;  %v2038_v2 = vsub.s32 4, %v16370_v12  ;;  %vm1940_vm8 = vweird.f32 %v11381_v5  ;;  %v16383_v5 = vld [vmem:[#allocation2_spill] sm:$0xff]  ;;  %v16385_v37 = vld [vmem:[#allocation11_spill] sm:$0xff] }
 0x3ce   :  { %8322 = vmatprep.mubr.msk.f32.mxu1 %vm16371_vm0, %v1743_v27  ;;  %v1838_v63 = vand.u32 3, %v1837_v7  ;;  %v1945_v51 = vxor.u32 2147483648, %v12006_v56  ;;  %v1948_v48 = vxor.u32 2147483648, %v11999_v13  ;;  %vm16372_vm9 = vcmp.lt.s32.totalorder %v11353_v41, 0 }
 0x3cf   :  { %v1942_v20 = vand.u32 3, %v1941_v1  ;;  %v2039_v34 = vsel %vm16372_vm9, %v2038_v2, %v16370_v12  ;;  %v2049_v23 = vxor.u32 2147483648, %v11846_v61  ;;  %v2142_v6 = vsub.s32 4, %v16373_v60  ;;  %v16391_v12 = vld [vmem:[#allocation22_spill] sm:$0xff] }
 0x3d0   :  { %vm1840_vm2 = vcmp.eq.s32.totalorder %v1838_v63, 0  ;;  %vm1843_vm1 = vcmp.eq.s32.totalorder %v1838_v63, 2  ;;  %v2041_v0 = vsel %vm11652_vm15, 0, %v2039_v34  ;;  %v2052_v18 = vxor.u32 2147483648, %v11836_v10 }
 0x3d1   :  { %vm1839_vm3 = vcmp.lt.s32.totalorder %v1838_v63, 2  ;;  %v1842_v44 = vsel %vm1840_vm2, %v16369_v8, %v1841_v17  ;;  %v1845_v24 = vsel %vm1843_vm1, %v1844_v16, %v16368_v54  ;;  %vm1944_vm4 = vcmp.eq.s32.totalorder %v1942_v20, 0  ;;  %v16387_v54 = vld [vmem:[#allocation20_spill] sm:$0xff]  ;;  %v16389_v8 = vld [vmem:[#allocation9_spill] sm:$0xff]  ;;  %v16392_v63 = vld [vmem:[#allocation19_spill] sm:$0xff] }
 0x3d2   :  { %v1846_v19 = vsel %vm1839_vm3, %v1842_v44, %v1845_v24  ;;  %v1946_v58 = vsel %vm1944_vm4, %v11999_v13, %v1945_v51  ;;  %vm1947_vm6 = vcmp.eq.s32.totalorder %v1942_v20, 2  ;;  %v2045_v62 = vadd.s32 3, %v2041_v0  ;;  %v16393_v51 = vld [vmem:[#allocation39_spill] sm:$0xff]  ;;  %v16396_v0 = vld [vmem:[#allocation46_spill] sm:$0xff] }
 0x3d3   :  { %v1847_v49 = vsel %vm1836_vm7, nan, %v1846_v19  ;;  %vm1943_vm11 = vcmp.lt.s32.totalorder %v1942_v20, 2  ;;  %v1949_v45 = vsel %vm1947_vm6, %v1948_v48, %v12006_v56  ;;  %vm16375_vm15 = vcmp.lt.s32.totalorder %v16374_v25, 0  ;;  %v16380_v56 = vld [vmem:[#allocation4_spill] sm:$0xff]  ;;  %vm16381_vm7 = vmmov %vm16376_vm12  ;;  %v16397_v44 = vld [vmem:[#allocation10_spill] sm:$0xff] }
 0x3d4   :  { %v2143_v59 = vsel %vm16375_vm15, %v2142_v6, %v16373_v60  ;;  %8323 = vmatmul.mubr.msk.f32.gmra.mrb[28].mxu1 %vm16376_vm12, %v1847_v49  ;;  %v1950_v39 = vsel %vm1943_vm11, %v1946_v58, %v1949_v45  ;;  %vm2044_vm5 = vweird.f32 %v11353_v41  ;;  %v2046_v47 = vand.u32 3, %v2045_v62  ;;  %vm16388_vm12 = vmmov %vm16381_vm7  ;;  %v16395_v60 = vld [vmem:[#allocation47_spill] sm:$0xff]  ;;  %v16398_v49 = vld [vmem:[#allocation6_spill] sm:$0xff] }
 0x3d5   :  { %vm16378_vm0 = vnez %v16377_v9  ;;  %v1951_v31 = vsel %vm1940_vm8, nan, %v1950_v39  ;;  %v2153_v35 = vxor.u32 2147483648, %v16379_v14  ;;  %v2246_v50 = vsub.s32 4, %v16380_v56 }
 0x3d6   :  { %v2145_v13 = vsel %vm16378_vm0, 0, %v2143_v59  ;;  %8325 = vmatprep.mubr.msk.f32.mxu1 %vm16381_vm7, %v1951_v31  ;;  %vm2047_vm9 = vcmp.lt.s32.totalorder %v2046_v47, 2  ;;  %vm2048_vm2 = vcmp.eq.s32.totalorder %v2046_v47, 0  ;;  %vm2051_vm1 = vcmp.eq.s32.totalorder %v2046_v47, 2  ;;  %v16401_v31 = vld [vmem:[#allocation27_spill] sm:$0xff] }
 0x3d7   :  { %v2149_v57 = vadd.s32 3, %v2145_v13  ;;  %v2156_v53 = vxor.u32 2147483648, %v16382_v32  ;;  %v2050_v55 = vsel %vm2048_vm2, %v11836_v10, %v2049_v23  ;;  %v2053_v36 = vsel %vm2051_vm1, %v2052_v18, %v11846_v61 }
 0x3d8   :  { %vm16384_vm8 = vcmp.lt.s32.totalorder %v16383_v5, 0  ;;  %v2054_v42 = vsel %vm2047_vm9, %v2050_v55, %v2053_v36  ;;  %vm2148_vm3 = vweird.f32 %v16374_v25  ;;  %vm16386_vm4 = vnez %v16385_v37  ;;  %v16400_v25 = vld [vmem:[#allocation42_spill] sm:$0xff] }
 0x3d9   :  { %v2150_v40 = vand.u32 3, %v2149_v57  ;;  %v2247_v22 = vsel %vm16384_vm8, %v2246_v50, %v16380_v56  ;;  %v2350_v17 = vsub.s32 4, %v16387_v54  ;;  %v2055_v29 = vsel %vm2044_vm5, nan, %v2054_v42  ;;  %v16404_v56 = vld [vmem:[#allocation30_spill] sm:$0xff] }
 0x3da   :  { %v2249_v7 = vsel %vm16386_vm4, 0, %v2247_v22  ;;  %8326 = vmatmul.mubr.msk.f32.gmra.mrb[30].mxu1 %vm16388_vm12, %v2055_v29  ;;  %vm16390_vm0 = vcmp.lt.s32.totalorder %v16389_v8, 0  ;;  %v2257_v2 = vxor.u32 2147483648, %v16391_v12  ;;  %v2260_v41 = vxor.u32 2147483648, %v16392_v63  ;;  %vm16403_vm12 = vmmov %vm16381_vm7  ;;  %v16407_v36 = vld [vmem:[#allocation34_spill] sm:$0xff] }
 0x3db   :  { %vm2151_vm6 = vcmp.lt.s32.totalorder %v2150_v40, 2  ;;  %vm2152_vm11 = vcmp.eq.s32.totalorder %v2150_v40, 0  ;;  %vm2155_vm15 = vcmp.eq.s32.totalorder %v2150_v40, 2  ;;  %v2253_v27 = vadd.s32 3, %v2249_v7  ;;  %v16411_v7 = vld [vmem:[#allocation31_spill] sm:$0xff] }
 0x3dc   :  { %v2154_v10 = vsel %vm2152_vm11, %v16382_v32, %v2153_v35  ;;  %v2157_v61 = vsel %vm2155_vm15, %v2156_v53, %v16379_v14  ;;  %v2351_v16 = vsel %vm16390_vm0, %v2350_v17, %v16387_v54  ;;  %vm16394_vm5 = vnez %v16393_v51  ;;  %v16406_v53 = vld [vmem:[#allocation36_spill] sm:$0xff]  ;;  %v16412_v17 = vld [vmem:[#allocation65_spill] sm:$0xff] }
 0x3dd   :  { %v2158_v1 = vsel %vm2151_vm6, %v2154_v10, %v2157_v61  ;;  %v2353_v48 = vsel %vm16394_vm5, 0, %v2351_v16  ;;  %8848 = vcosq.f32 %v11995_v46  ;;  %v2254_v34 = vand.u32 3, %v2253_v27  ;;  %v16413_v10 = vld [vmem:[#allocation62_spill] sm:$0xff]  ;;  %v16414_v27 = vld [vmem:[#allocation63_spill] sm:$0xff]  ;;  %v16417_v51 = vld [vmem:[#allocation49_spill] sm:$0xff] }
 0x3de   :  { %v2159_v20 = vsel %vm2148_vm3, nan, %v2158_v1  ;;  %v2357_v23 = vadd.s32 3, %v2353_v48  ;;  %vm2252_vm9 = vweird.f32 %v16383_v5  ;;  %v2361_v6 = vxor.u32 2147483648, %v16395_v60  ;;  %v16408_v5 = vld [vmem:[#allocation55_spill] sm:$0xff] }
 0x3df   :  { %8328 = vmatprep.mubr.msk.f32.mxu1 %vm16381_vm7, %v2159_v20  ;;  %v2364_v18 = vxor.u32 2147483648, %v16396_v0  ;;  %v2454_v24 = vsub.s32 4, %v16397_v44  ;;  %vm2255_vm2 = vcmp.lt.s32.totalorder %v2254_v34, 2  ;;  %vm2256_vm1 = vcmp.eq.s32.totalorder %v2254_v34, 0 }
 0x3e0   :  { %vm2259_vm8 = vcmp.eq.s32.totalorder %v2254_v34, 2  ;;  %v2358_v19 = vand.u32 3, %v2357_v23  ;;  %v2258_v58 = vsel %vm2256_vm1, %v16392_v63, %v2257_v2  ;;  %vm16399_vm3 = vcmp.lt.s32.totalorder %v16398_v49, 0  ;;  %v16415_v63 = vld [vmem:[#allocation18_spill] sm:$0xff] }
 0x3e1   :  { %v2261_v62 = vsel %vm2259_vm8, %v2260_v41, %v16391_v12  ;;  %v2455_v45 = vsel %vm16399_vm3, %v2454_v24, %v16397_v44  ;;  %v2558_v59 = vsub.s32 4, %v16400_v25  ;;  %vm16402_vm15 = vnez %v16401_v31  ;;  %v16421_v24 = vld [vmem:[#allocation57_spill] sm:$0xff] }
 0x3e2   :  { %v2262_v39 = vsel %vm2255_vm2, %v2258_v58, %v2261_v62  ;;  %vm2359_vm4 = vcmp.lt.s32.totalorder %v2358_v19, 2  ;;  %vm2360_vm6 = vcmp.eq.s32.totalorder %v2358_v19, 0  ;;  %vm2363_vm11 = vcmp.eq.s32.totalorder %v2358_v19, 2  ;;  %v16422_v58 = vld [vmem:[#allocation76_spill] sm:$0xff] }
 0x3e3   :  { %v2263_v47 = vsel %vm2252_vm9, nan, %v2262_v39  ;;  %v2362_v9 = vsel %vm2360_vm6, %v16396_v0, %v2361_v6  ;;  %v2365_v13 = vsel %vm2363_vm11, %v2364_v18, %v16395_v60  ;;  %v2457_v57 = vsel %vm16402_vm15, 0, %v2455_v45  ;;  %vm16410_vm9 = vmmov %vm16403_vm12  ;;  %v16419_v6 = vld [vmem:[#allocation44_spill] sm:$0xff]  ;;  %v16424_v45 = vld [vmem:[#allocation53_spill] sm:$0xff] }
 0x3e4   :  { %8329 = vmatmul.mubr.msk.f32.gmra.mrb[32].mxu1 %vm16403_vm12, %v2263_v47  ;;  %vm2356_vm0 = vweird.f32 %v16389_v8  ;;  %v2366_v14 = vsel %vm2359_vm4, %v2362_v9, %v2365_v13  ;;  %v2461_v35 = vadd.s32 3, %v2457_v57  ;;  %vm16405_vm5 = vcmp.lt.s32.totalorder %v16404_v56, 0  ;;  %v16425_v39 = vld [vmem:[#allocation52_spill] sm:$0xff]  ;;  %v16427_v13 = vld [vmem:[#allocation85_spill] sm:$0xff] }
 0x3e5   :  { %v2559_v50 = vsel %vm16405_vm5, %v2558_v59, %v16400_v25  ;;  %v2367_v32 = vsel %vm2356_vm0, nan, %v2366_v14  ;;  %v2465_v55 = vxor.u32 2147483648, %v16406_v53  ;;  %v2468_v40 = vxor.u32 2147483648, %v16407_v36  ;;  %v16428_v57 = vld [vmem:[#allocation81_spill] sm:$0xff] }
 0x3e6   :  { %vm16409_vm7 = vnez %v16408_v5  ;;  %8331 = vmatprep.mubr.msk.f32.mxu1 %vm16410_vm9, %v2367_v32  ;;  %vm2460_vm2 = vweird.f32 %v16398_v49  ;;  %v2462_v42 = vand.u32 3, %v2461_v35  ;;  %v2662_v54 = vsub.s32 4, %v16411_v7  ;;  %v16431_v32 = vld [vmem:[#allocation73_spill] sm:$0xff] }
 0x3e7   :  { %v2561_v22 = vsel %vm16409_vm7, 0, %v2559_v50  ;;  %vm2564_vm1 = vweird.f32 %v16404_v56  ;;  %v2569_v29 = vxor.u32 2147483648, %v16412_v17  ;;  %v2572_v61 = vxor.u32 2147483648, %v16413_v10  ;;  %v12147_v16 = vpop.eup %8848  ;;  %v16429_v50 = vld [vmem:[#allocation40_spill] sm:$0xff] }
 0x3e8   :  { %v2565_v37 = vadd.s32 3, %v2561_v22  ;;  %v2766_v8 = vsub.s32 4, %v16414_v27  ;;  %vm2463_vm8 = vcmp.lt.s32.totalorder %v2462_v42, 2  ;;  %vm2464_vm3 = vcmp.eq.s32.totalorder %v2462_v42, 0  ;;  %v16435_v22 = vld [vmem:[#allocation70_spill] sm:$0xff] }
 0x3e9   :  { %vm2467_vm4 = vcmp.eq.s32.totalorder %v2462_v42, 2  ;;  %v2466_v12 = vsel %vm2464_vm3, %v16407_v36, %v2465_v55  ;;  %vm16416_vm6 = vcmp.lt.s32.totalorder %v16415_v63, 0  ;;  %vm16418_vm11 = vcmp.lt.s32.totalorder %v16417_v51, 0  ;;  %v16432_v55 = vld [vmem:[#allocation82_spill] sm:$0xff] }
 0x3ea   :  { %v2566_v1 = vand.u32 3, %v2565_v37  ;;  %v2469_v2 = vsel %vm2467_vm4, %v2468_v40, %v16406_v53  ;;  %v2663_v41 = vsel %vm16416_vm6, %v2662_v54, %v16411_v7  ;;  %v2767_v48 = vsel %vm16418_vm11, %v2766_v8, %v16414_v27  ;;  %v16433_v40 = vld [vmem:[#allocation64_spill] sm:$0xff]  ;;  %v16436_v27 = vld [vmem:[#allocation71_spill] sm:$0xff] }
 0x3eb   :  { %v2470_v20 = vsel %vm2463_vm8, %v2466_v12, %v2469_v2  ;;  %vm2668_vm5 = vweird.f32 %v16415_v63  ;;  %vm16420_vm7 = vnez %v16419_v6  ;;  %v2673_v19 = vxor.u32 2147483648, %v16421_v24  ;;  %v16439_v2 = vld [vmem:[#allocation93_spill] sm:$0xff]  ;;  %v16444_v6 = vld [vmem:[#allocation99_spill] sm:$0xff] }
 0x3ec   :  { %vm2567_vm15 = vcmp.lt.s32.totalorder %v2566_v1, 2  ;;  %vm2568_vm12 = vcmp.eq.s32.totalorder %v2566_v1, 0  ;;  %vm2571_vm0 = vcmp.eq.s32.totalorder %v2566_v1, 2  ;;  %v2471_v34 = vsel %vm2460_vm2, nan, %v2470_v20  ;;  %vm16426_vm2 = vmmov %vm16410_vm9  ;;  %v16441_v20 = vld [vmem:[#allocation100_spill] sm:$0xff] }
 0x3ed   :  { %v2570_v23 = vsel %vm2568_vm12, %v16413_v10, %v2569_v29  ;;  %v2573_v60 = vsel %vm2571_vm0, %v2572_v61, %v16412_v17  ;;  %v2665_v0 = vsel %vm16420_vm7, 0, %v2663_v41  ;;  %8332 = vmatmul.mubr.msk.f32.gmra.mrb[34].mxu1 %vm16410_vm9, %v2471_v34  ;;  %vm16423_vm8 = vnez %v16422_v58 }
 0x3ee   :  { %v2574_v18 = vsel %vm2567_vm15, %v2570_v23, %v2573_v60  ;;  %v2669_v44 = vadd.s32 3, %v2665_v0  ;;  %v2769_v62 = vsel %vm16423_vm8, 0, %v2767_v48  ;;  %v2676_v25 = vxor.u32 2147483648, %v16424_v45  ;;  %vm16438_vm8 = vmmov %vm16426_vm2  ;;  %v16442_v23 = vld [vmem:[#allocation72_spill] sm:$0xff] }
 0x3ef   :  { %v2575_v49 = vsel %vm2564_vm1, nan, %v2574_v18  ;;  %v2773_v59 = vadd.s32 3, %v2769_v62  ;;  %v2870_v47 = vsub.s32 4, %v16425_v39  ;;  %vm2772_vm3 = vweird.f32 %v16417_v51  ;;  %v16445_v51 = vld [vmem:[#allocation61_spill] sm:$0xff]  ;;  %v16447_v62 = vld [vmem:[#allocation83_spill] sm:$0xff] }
 0x3f0   :  { %8334 = vmatprep.mubr.msk.f32.mxu1 %vm16426_vm2, %v2575_v49  ;;  %v2670_v9 = vand.u32 3, %v2669_v44  ;;  %v2777_v31 = vxor.u32 2147483648, %v16427_v13  ;;  %v2780_v14 = vxor.u32 2147483648, %v16428_v57  ;;  %vm16430_vm4 = vcmp.lt.s32.totalorder %v16429_v50, 0 }
 0x3f1   :  { %v2774_v35 = vand.u32 3, %v2773_v59  ;;  %v2871_v56 = vsel %vm16430_vm4, %v2870_v47, %v16425_v39  ;;  %v2881_v53 = vxor.u32 2147483648, %v16431_v32  ;;  %v2974_v36 = vsub.s32 4, %v16432_v55 }
 0x3f2   :  { %vm2672_vm1 = vcmp.eq.s32.totalorder %v2670_v9, 0  ;;  %vm2675_vm6 = vcmp.eq.s32.totalorder %v2670_v9, 2  ;;  %vm16434_vm11 = vnez %v16433_v40  ;;  %v2884_v42 = vxor.u32 2147483648, %v16435_v22 }
 0x3f3   :  { %v2873_v5 = vsel %vm16434_vm11, 0, %v2871_v56  ;;  %vm2671_vm15 = vcmp.lt.s32.totalorder %v2670_v9, 2  ;;  %v2674_v37 = vsel %vm2672_vm1, %v16424_v45, %v2673_v19  ;;  %v2677_v7 = vsel %vm2675_vm6, %v2676_v25, %v16421_v24  ;;  %v16449_v45 = vld [vmem:[#allocation98_spill] sm:$0xff]  ;;  %v16454_v56 = vld [vmem:[#allocation91_spill] sm:$0xff] }
 0x3f4   :  { %vm2776_vm12 = vcmp.eq.s32.totalorder %v2774_v35, 0  ;;  %v2678_v54 = vsel %vm2671_vm15, %v2674_v37, %v2677_v7  ;;  %vm2779_vm0 = vcmp.eq.s32.totalorder %v2774_v35, 2  ;;  %v2877_v29 = vadd.s32 3, %v2873_v5  ;;  %v16457_v5 = vld [vmem:[#allocation111_spill] sm:$0xff]  ;;  %v16459_v7 = vld [vmem:[#allocation89_spill] sm:$0xff] }
 0x3f5   :  { %v2778_v17 = vsel %vm2776_vm12, %v16428_v57, %v2777_v31  ;;  %v2679_v10 = vsel %vm2668_vm5, nan, %v2678_v54  ;;  %vm2775_vm7 = vcmp.lt.s32.totalorder %v2774_v35, 2  ;;  %v2781_v61 = vsel %vm2779_vm0, %v2780_v14, %v16427_v13  ;;  %vm16443_vm5 = vmmov %vm16438_vm8  ;;  %v16451_v13 = vld [vmem:[#allocation87_spill] sm:$0xff]  ;;  %v16453_v14 = vld [vmem:[#allocation92_spill] sm:$0xff] }
 0x3f6   :  { %vm16437_vm9 = vcmp.lt.s32.totalorder %v16436_v27, 0  ;;  %8335 = vmatmul.mubr.msk.f32.gmra.mrb[36].mxu1 %vm16438_vm8, %v2679_v10  ;;  %v2782_v1 = vsel %vm2775_vm7, %v2778_v17, %v2781_v61  ;;  %vm2876_vm2 = vweird.f32 %v16429_v50  ;;  %v2878_v12 = vand.u32 3, %v2877_v29  ;;  %vm16450_vm8 = vmmov %vm16443_vm5  ;;  %v16460_v10 = vld [vmem:[#allocation77_spill] sm:$0xff] }
 0x3f7   :  { %v2975_v8 = vsel %vm16437_vm9, %v2974_v36, %v16432_v55  ;;  %vm16440_vm4 = vnez %v16439_v2  ;;  %v2783_v63 = vsel %vm2772_vm3, nan, %v2782_v1  ;;  %v2985_v34 = vxor.u32 2147483648, %v16441_v20 }
 0x3f8   :  { %v2977_v41 = vsel %vm16440_vm4, 0, %v2975_v8  ;;  %v3078_v60 = vsub.s32 4, %v16442_v23  ;;  %8337 = vmatprep.mubr.msk.f32.mxu1 %vm16443_vm5, %v2783_v63  ;;  %vm2879_vm1 = vcmp.lt.s32.totalorder %v2878_v12, 2  ;;  %vm2880_vm6 = vcmp.eq.s32.totalorder %v2878_v12, 0  ;;  %v16463_v63 = vld [vmem:[#allocation97_spill] sm:$0xff] }
 0x3f9   :  { %v2981_v48 = vadd.s32 3, %v2977_v41  ;;  %vm2883_vm11 = vcmp.eq.s32.totalorder %v2878_v12, 2  ;;  %v2988_v0 = vxor.u32 2147483648, %v16444_v6  ;;  %v2882_v18 = vsel %vm2880_vm6, %v16435_v22, %v2881_v53 }
 0x3fa   :  { %v2885_v44 = vsel %vm2883_vm11, %v2884_v42, %v16431_v32  ;;  %vm16446_vm3 = vcmp.lt.s32.totalorder %v16445_v51, 0  ;;  %vm2980_vm15 = vweird.f32 %v16436_v27  ;;  %vm16448_vm12 = vnez %v16447_v62  ;;  %v16455_v32 = vld [vmem:[#allocation104_spill] sm:$0xff]  ;;  %v16458_v42 = vld [vmem:[#allocation110_spill] sm:$0xff] }
 0x3fb   :  { %v2982_v24 = vand.u32 3, %v2981_v48  ;;  %v3079_v19 = vsel %vm16446_vm3, %v3078_v60, %v16442_v23  ;;  %v2886_v58 = vsel %vm2879_vm1, %v2882_v18, %v2885_v44  ;;  %v3182_v25 = vsub.s32 4, %v16449_v45  ;;  %v16462_v27 = vld [vmem:[#allocation114_spill] sm:$0xff]  ;;  %v16466_v23 = vld [vmem:[#allocation108_spill] sm:$0xff]  ;;  %v16469_v44 = vld [vmem:[#allocation105_spill] sm:$0xff] }
 0x3fc   :  { %v3081_v49 = vsel %vm16448_vm12, 0, %v3079_v19  ;;  %v2887_v59 = vsel %vm2876_vm2, nan, %v2886_v58  ;;  %vm16452_vm4 = vcmp.lt.s32.totalorder %v16451_v13, 0  ;;  %v3089_v35 = vxor.u32 2147483648, %v16453_v14 }
 0x3fd   :  { %vm2983_vm0 = vcmp.lt.s32.totalorder %v2982_v24, 2  ;;  %vm2984_vm7 = vcmp.eq.s32.totalorder %v2982_v24, 0  ;;  %vm2987_vm9 = vcmp.eq.s32.totalorder %v2982_v24, 2  ;;  %8338 = vmatmul.mubr.msk.f32.gmra.mrb[38].mxu1 %vm16450_vm8, %v2887_v59  ;;  %v3085_v9 = vadd.s32 3, %v3081_v49  ;;  %vm16465_vm8 = vmmov %vm16443_vm5  ;;  %v16473_v49 = vld [vmem:[#allocation106_spill] sm:$0xff] }
 0x3fe   :  { %v2986_v39 = vsel %vm2984_vm7, %v16444_v6, %v2985_v34  ;;  %v2989_v47 = vsel %vm2987_vm9, %v2988_v0, %v16441_v20  ;;  %v3183_v31 = vsel %vm16452_vm4, %v3182_v25, %v16449_v45  ;;  %v3092_v50 = vxor.u32 2147483648, %v16454_v56  ;;  %v16468_v0 = vld [vmem:[#allocation107_spill] sm:$0xff] }
 0x3ff   :  { %v2990_v57 = vsel %vm2983_vm0, %v2986_v39, %v2989_v47  ;;  %vm16456_vm2 = vnez %v16455_v32  ;;  %8850 = vsinq.f32 %v11995_v46  ;;  %v3086_v36 = vand.u32 3, %v3085_v9 }
 0x400   :  { %v3185_v53 = vsel %vm16456_vm2, 0, %v3183_v31  ;;  %v2991_v55 = vsel %vm2980_vm15, nan, %v2990_v57  ;;  %vm3084_vm1 = vweird.f32 %v16445_v51  ;;  %v3193_v22 = vxor.u32 2147483648, %v16457_v5  ;;  %v16470_v51 = vld [vmem:[#allocation120_spill] sm:$0xff] }
 0x401   :  { %v3189_v40 = vadd.s32 3, %v3185_v53  ;;  %8340 = vmatprep.mubr.msk.f32.mxu1 %vm16443_vm5, %v2991_v55  ;;  %v3196_v37 = vxor.u32 2147483648, %v16458_v42  ;;  %v3286_v54 = vsub.s32 4, %v16459_v7  ;;  %vm3087_vm6 = vcmp.lt.s32.totalorder %v3086_v36, 2  ;;  %v16474_v57 = vld [vmem:[#allocation96_spill] sm:$0xff]  ;;  %v16476_v55 = vld [vmem:[#allocation113_spill] sm:$0xff] }
 0x402   :  { %vm3088_vm11 = vcmp.eq.s32.totalorder %v3086_v36, 0  ;;  %vm3091_vm3 = vcmp.eq.s32.totalorder %v3086_v36, 2  ;;  %vm16461_vm15 = vcmp.lt.s32.totalorder %v16460_v10, 0  ;;  %v3390_v8 = vsub.s32 4, %v16462_v27 }
 0x403   :  { %v3190_v17 = vand.u32 3, %v3189_v40  ;;  %v3090_v46 = vsel %vm3088_vm11, %v16454_v56, %v3089_v35  ;;  %v3093_v29 = vsel %vm3091_vm3, %v3092_v50, %v16453_v14  ;;  %v3287_v61 = vsel %vm16461_vm15, %v3286_v54, %v16459_v7  ;;  %v16480_v7 = vld [vmem:[#allocation118_spill] sm:$0xff] }
 0x404   :  { %v3094_v1 = vsel %vm3087_vm6, %v3090_v46, %v3093_v29  ;;  %vm16464_vm9 = vnez %v16463_v63  ;;  %vm3188_vm4 = vweird.f32 %v16451_v13  ;;  %vm16467_vm2 = vcmp.lt.s32.totalorder %v16466_v23, 0 }
 0x405   :  { %vm3191_vm12 = vcmp.lt.s32.totalorder %v3190_v17, 2  ;;  %vm3192_vm0 = vcmp.eq.s32.totalorder %v3190_v17, 0  ;;  %vm3195_vm7 = vcmp.eq.s32.totalorder %v3190_v17, 2  ;;  %v3095_v12 = vsel %vm3084_vm1, nan, %v3094_v1  ;;  %vm16472_vm1 = vmmov %vm16465_vm8  ;;  %v16481_v17 = vld [vmem:[#allocation121_spill] sm:$0xff] }
 0x406   :  { %v3194_v2 = vsel %vm3192_vm0, %v16458_v42, %v3193_v22  ;;  %v3197_v41 = vsel %vm3195_vm7, %v3196_v37, %v16457_v5  ;;  %v3289_v48 = vsel %vm16464_vm9, 0, %v3287_v61  ;;  %8341 = vmatmul.mubr.msk.f32.gmra.mrb[40].mxu1 %vm16465_vm8, %v3095_v12  ;;  %v3391_v60 = vsel %vm16467_vm2, %v3390_v8, %v16462_v27  ;;  %vm16478_vm2 = vmmov %vm16472_vm1  ;;  %v16479_v22 = vld [vmem:[#allocation119_spill] sm:$0xff] }
 0x407   :  { %v3198_v20 = vsel %vm3191_vm12, %v3194_v2, %v3197_v41  ;;  %v3293_v34 = vadd.s32 3, %v3289_v48  ;;  %v3297_v18 = vxor.u32 2147483648, %v16468_v0  ;;  %v3300_v24 = vxor.u32 2147483648, %v16469_v44 }
 0x408   :  { %v3199_v6 = vsel %vm3188_vm4, nan, %v3198_v20  ;;  %vm16471_vm5 = vnez %v16470_v51  ;;  %vm3292_vm6 = vweird.f32 %v16460_v10  ;;  %v3494_v45 = vsub.s32 4, %v16473_v49 }
 0x409   :  { %v3393_v19 = vsel %vm16471_vm5, 0, %v3391_v60  ;;  %8343 = vmatprep.mubr.msk.f32.mxu1 %vm16472_vm1, %v3199_v6  ;;  %v3294_v58 = vand.u32 3, %v3293_v34  ;;  %vm3396_vm11 = vweird.f32 %v16466_v23  ;;  %v3401_v25 = vxor.u32 2147483648, %v11760_v52  ;;  %v8851_v47 = vpop.eup %8850 }
 0x40a   :  { %v3397_v62 = vadd.s32 3, %v3393_v19  ;;  %v3404_v59 = vxor.u32 2147483648, %v11669_v33  ;;  %v3598_v39 = vsub.s32 4, %v11841_v15  ;;  %vm16475_vm0 = vcmp.lt.s32.totalorder %v16474_v57, 0 }
 0x40b   :  { %vm3295_vm3 = vcmp.lt.s32.totalorder %v3294_v58, 2  ;;  %vm3296_vm15 = vcmp.eq.s32.totalorder %v3294_v58, 0  ;;  %vm3299_vm12 = vcmp.eq.s32.totalorder %v3294_v58, 2  ;;  %v3495_v14 = vsel %vm16475_vm0, %v3494_v45, %v16473_v49 }
 0x40c   :  { %v3398_v9 = vand.u32 3, %v3397_v62  ;;  %v3298_v13 = vsel %vm3296_vm15, %v16469_v44, %v3297_v18  ;;  %v3301_v31 = vsel %vm3299_vm12, %v3300_v24, %v16468_v0  ;;  %v3599_v35 = vsel %vm3514_vm14, %v3598_v39, %v11841_v15  ;;  %vm16482_vm14 = vmmov %vm16472_vm1 }
 0x40d   :  { %v3302_v56 = vsel %vm3295_vm3, %v3298_v13, %v3301_v31  ;;  %vm16477_vm4 = vnez %v16476_v55  ;;  %v3505_v15 = vxor.u32 2147483648, %v16479_v22  ;;  %v3601_v42 = vsel %vm11959_vm10, 0, %v3599_v35 }
 0x40e   :  { %vm3399_vm7 = vcmp.lt.s32.totalorder %v3398_v9, 2  ;;  %vm3400_vm9 = vcmp.eq.s32.totalorder %v3398_v9, 0  ;;  %vm3403_vm8 = vcmp.eq.s32.totalorder %v3398_v9, 2  ;;  %v3303_v50 = vsel %vm3292_vm6, nan, %v3302_v56 }
 0x40f   :  { %v3402_v32 = vsel %vm3400_vm9, %v11669_v33, %v3401_v25  ;;  %v3405_v53 = vsel %vm3403_vm8, %v3404_v59, %v11760_v52  ;;  %v3497_v36 = vsel %vm16477_vm4, 0, %v3495_v14  ;;  %8344 = vmatmul.mubr.msk.f32.gmra.mrb[42].mxu1 %vm16478_vm2, %v3303_v50  ;;  %v3508_v54 = vxor.u32 2147483648, %v16480_v7 }
 0x410   :  { %v3406_v40 = vsel %vm3399_vm7, %v3402_v32, %v3405_v53  ;;  %v3501_v5 = vadd.s32 3, %v3497_v36  ;;  %v3605_v33 = vadd.s32 3, %v3601_v42  ;;  %v3702_v52 = vsub.s32 4, %v16481_v17  ;;  %vm16485_vm7 = vmmov %vm16478_vm2 }
 0x411   :  { %v3407_v37 = vsel %vm3396_vm11, nan, %v3406_v40  ;;  %v3609_v29 = vxor.u32 2147483648, %v8851_v47  ;;  %vm3500_vm5 = vweird.f32 %v16474_v57  ;;  %v3612_v61 = vxor.u32 2147483648, %v12147_v16 }
 0x412   :  { %8346 = vmatprep.mubr.msk.f32.mxu1 %vm16482_vm14, %v3407_v37  ;;  %v3502_v46 = vand.u32 3, %v3501_v5  ;;  %v3606_v10 = vand.u32 3, %v3605_v33  ;;  %vm16483_vm10 = vcmp.lt.s32.totalorder %v11363_v30, 0  ;;  %v3713_v8 = vxor.u32 2147483648, %v11903_v4  ;;  %vm16486_vm14 = vmmov %vm16485_vm7 }
 0x413   :  { %v3703_v38 = vsel %vm16483_vm10, %v3702_v52, %v16481_v17  ;;  %v3716_v11 = vxor.u32 2147483648, %v11891_v26  ;;  %vm3604_vm0 = vweird.f32 %v11509_v3  ;;  %v12307_v3 = vld [vmem:[%s15544_s4] ss:$0 sm:$0xff]  ;;  %v16488_v37 = vmov 2131351028  }
 0x414   :  { %vm3504_vm1 = vcmp.eq.s32.totalorder %v3502_v46, 0  ;;  %vm3507_vm6 = vcmp.eq.s32.totalorder %v3502_v46, 2  ;;  %v3705_v27 = vsel %vm11816_vm13, 0, %v3703_v38  ;;  %vm3503_vm11 = vcmp.lt.s32.totalorder %v3502_v46, 2  ;;  %vm16484_vm13 = vmmov %vm16478_vm2 }
 0x415   :  { %v3506_v1 = vsel %vm3504_vm1, %v16480_v7, %v3505_v15  ;;  %v3509_v12 = vsel %vm3507_vm6, %v3508_v54, %v16479_v22  ;;  %vm3608_vm3 = vcmp.eq.s32.totalorder %v3606_v10, 0  ;;  %vm3611_vm15 = vcmp.eq.s32.totalorder %v3606_v10, 2 }
 0x416   :  { %v3510_v2 = vsel %vm3503_vm11, %v3506_v1, %v3509_v12  ;;  %v3610_v41 = vsel %vm3608_vm3, %v12147_v16, %v3609_v29  ;;  %v3709_v63 = vadd.s32 3, %v3705_v27  ;;  %vm3607_vm12 = vcmp.lt.s32.totalorder %v3606_v10, 2 }
 0x417   :  { %v3511_v48 = vsel %vm3500_vm5, nan, %v3510_v2  ;;  %v3613_v20 = vsel %vm3611_vm15, %v3612_v61, %v8851_v47  ;;  %vm3708_vm2 = vweird.f32 %v11363_v30  ;;  %v16487_v15 = vmov 2475754826  }
 0x418   :  { %8347 = vmatmul.mubr.msk.f32.gmra.mrb[44].mxu1 %vm16484_vm13, %v3511_v48  ;;  %v3614_v34 = vsel %vm3607_vm12, %v3610_v41, %v3613_v20  ;;  %v3710_v23 = vand.u32 3, %v3709_v63  ;;  %v16489_v54 = vmov 2102212464  }
 0x419   :  { %v3615_v60 = vsel %vm3604_vm0, nan, %v3614_v34 }
 0x41a   :  { %8349 = vmatprep.mubr.msk.f32.mxu1 %vm16485_vm7, %v3615_v60  ;;  %vm3712_vm9 = vcmp.eq.s32.totalorder %v3710_v23, 0  ;;  %vm3715_vm8 = vcmp.eq.s32.totalorder %v3710_v23, 2  ;;  %vm3711_vm4 = vcmp.lt.s32.totalorder %v3710_v23, 2 }
 0x41b   :  { %v3714_v16 = vsel %vm3712_vm9, %v11891_v26, %v3713_v8  ;;  %v3717_v6 = vsel %vm3715_vm8, %v3716_v11, %v11903_v4 }
 0x41c   :  { %v3718_v0 = vsel %vm3711_vm4, %v3714_v16, %v3717_v6 }
 0x41d   :  { %v3719_v18 = vsel %vm3708_vm2, nan, %v3718_v0 }
 0x41e   :  { %8350 = vmatmul.mubr.msk.f32.gmra.mrb[46].mxu1 %vm16486_vm14, %v3719_v18 }
 0x469   :  { %v8306_v44 = vpop.f32.mrb[16].mxu1 }
 0x46a   :  { %v12310_v24 = vadd.f32 %v8306_v44, %v12307_v3  ;;  %v3900_v51 = vpop.f32.mrb[17].mxu1 }
 0x46b   :  { %v12313_v26 = vadd.f32 %v12307_v3, %v3900_v51 }
 0x46c   :  { %v4163_v4 = vand.u32 2147483647, %v12310_v24  ;;  %v4166_v30 = vand.u32 2139095040, %v12310_v24 }
 0x46d   :  { %v15796_v19 = vand.u32 2147483647, %v12313_v26  ;;  %v4062_v58 = vand.u32 2139095040, %v12313_v26 }
 0x46e   :  { %v4167_v62 = vshrl.u32 %v4166_v30, 23  ;;  %v4170_v49 = vand.u32 8388607, %v4163_v4 }
 0x46f   :  { %v4063_v45 = vshrl.u32 %v4062_v58, 23  ;;  %v4066_v25 = vand.u32 8388607, %v15796_v19 }
 0x470   :  { %v7960_v59 = vadd.s32 4294967169, %v4167_v62  ;;  %v4171_v9 = vor.u32 8388608, %v4170_v49 }
 0x471   :  { %v7956_v39 = vadd.s32 4294967169, %v4063_v45  ;;  %v4067_v13 = vor.u32 8388608, %v4066_v25 }
 0x472   :  { %v4173_v47 = vadd.s32 1, %v7960_v59  ;;  %v12325_v53 = vshll.u32 %v4171_v9, 8 }
 0x473   :  { %v4069_v31 = vadd.s32 1, %v7956_v39  ;;  %v12327_v55 = vshll.u32 %v4067_v13, 8 }
 0x474   :  { %vm4174_vm5 = vcmp.gt.s32.totalorder %v4173_v47, 0 }
 0x475   :  { %v4175_v57 = vsel %vm4174_vm5, %v4173_v47, 0  ;;  %vm4070_vm10 = vcmp.gt.s32.totalorder %v4069_v31, 0 }
 0x476   :  { %v8309_v14 = vpop.f32.mrb[18].mxu1  ;;  %v4176_v35 = vshrl.u32 %v4175_v57, 5  ;;  %v4177_v56 = vand.u32 31, %v4175_v57  ;;  %v4071_v50 = vsel %vm4070_vm10, %v4069_v31, 0 }
 0x477   :  { %v12323_v32 = vpop.f32.mrb[19].mxu1  ;;  %v12330_v5 = vshrl.u32 %v4071_v50, 5  ;;  %v4073_v22 = vand.u32 31, %v4071_v50 }
 0x478   :  { %v4178_v36 = vsub.s32 32, %v4177_v56  ;;  %v4180_v40 = vshll.u32 %v16061_v28, %v4177_v56  ;;  %v4183_v42 = vshll.u32 %v16487_v15, %v4177_v56  ;;  %v4186_v7 = vshll.u32 %v16488_v37, %v4177_v56 }
 0x479   :  { %v4189_v33 = vshll.u32 %v16489_v54, %v4177_v56  ;;  %v4192_v17 = vshll.u32 %v16044_v21, %v4177_v56  ;;  %vm4195_vm1 = vcmp.lt.s32.totalorder %v4176_v35, 1  ;;  %vm4196_vm6 = vcmp.lt.s32.totalorder %v4176_v35, 2 }
 0x47a   :  { %v4181_v52 = vshrl.u32 %v16487_v15, %v4178_v36  ;;  %v4184_v46 = vshrl.u32 %v16488_v37, %v4178_v36  ;;  %v4187_v29 = vshrl.u32 %v16489_v54, %v4178_v36  ;;  %v4179_v10 = vshrl.u32 %v16061_v28, %v4178_v36 }
 0x47b   :  { %v4190_v61 = vshrl.u32 %v16044_v21, %v4178_v36  ;;  %v4193_v38 = vshrl.u32 %v16028_v43, %v4178_v36  ;;  %v4074_v12 = vsub.s32 32, %v4073_v22  ;;  %vm4197_vm11 = vcmp.lt.s32.totalorder %v4176_v35, 3 }
 0x47c   :  { %v4182_v27 = vor.u32 %v4181_v52, %v4180_v40  ;;  %v4185_v8 = vor.u32 %v4184_v46, %v4183_v42  ;;  %v4188_v1 = vor.u32 %v4187_v29, %v4186_v7  ;;  %vm4198_vm3 = vcmp.lt.s32.totalorder %v4176_v35, 4 }
 0x47d   :  { %v4191_v2 = vor.u32 %v4190_v61, %v4189_v33  ;;  %v4194_v41 = vor.u32 %v4193_v38, %v4192_v17  ;;  %v4076_v16 = vshll.u32 %v16061_v28, %v4073_v22  ;;  %v4077_v44 = vshrl.u32 %v16487_v15, %v4074_v12 }
 0x47e   :  { %v4199_v63 = vsel %vm4195_vm1, %v4179_v10, %v4182_v27  ;;  %v4200_v48 = vsel %vm4198_vm3, %v4188_v1, 2102212464  ;;  %v4203_v20 = vsel %vm4195_vm1, %v4182_v27, %v4185_v8  ;;  %v4207_v11 = vsel %vm4195_vm1, %v4185_v8, %v4188_v1 }
 0x47f   :  { %v4201_v34 = vsel %vm4197_vm11, %v4185_v8, %v4200_v48  ;;  %v4204_v23 = vsel %vm4198_vm3, %v4191_v2, 920167782  ;;  %v4208_v60 = vsel %vm4198_vm3, %v4194_v41, 1326507024  ;;  %v4079_v51 = vshll.u32 %v16487_v15, %v4073_v22 }
 0x480   :  { %v4205_v0 = vsel %vm4197_vm11, %v4188_v1, %v4204_v23  ;;  %v4209_v18 = vsel %vm4197_vm11, %v4191_v2, %v4208_v60  ;;  %v4202_v58 = vsel %vm4196_vm6, %v4199_v63, %v4201_v34  ;;  %v4080_v45 = vshrl.u32 %v16488_v37, %v4074_v12 }
 0x481   :  { %v12346_v6 = vpop.f32.mrb[20].mxu1  ;;  %v4206_v62 = vsel %vm4196_vm6, %v4203_v20, %v4205_v0  ;;  %v4210_v49 = vsel %vm4196_vm6, %v4207_v11, %v4209_v18  ;;  %v4078_v9 = vor.u32 %v4077_v44, %v4076_v16  ;;  %v4082_v31 = vshll.u32 %v16488_v37, %v4073_v22 }
 0x482   :  { %v12350_v30 = vpop.f32.mrb[21].mxu1  ;;  %v12357_v25 = vmul.u32.u64.low %v12325_v53, %v4210_v49  ;;  %v12358_v59 = vmul.u32.u64.high %v12325_v53, %v4210_v49, %v12357_v25  ;;  %v12361_v39 = vmul.u32.u64.low %v12325_v53, %v4206_v62  ;;  %v12362_v47 = vmul.u32.u64.high %v12325_v53, %v4206_v62, %v12361_v39 }
 0x483   :  { %v4081_v13 = vor.u32 %v4080_v45, %v4079_v51  ;;  %v4083_v57 = vshrl.u32 %v16489_v54, %v4074_v12  ;;  %v4085_v35 = vshll.u32 %v16489_v54, %v4073_v22  ;;  %v4086_v56 = vshrl.u32 %v16044_v21, %v4074_v12 }
 0x484   :  { %v4089_v50 = vshrl.u32 %v16028_v43, %v4074_v12  ;;  %v12371_v36 = vadd.f32 %v8309_v14, %v12307_v3  ;;  %v4218_v40 = vmul.u32 %v12325_v53, %v4202_v58  ;;  %v4075_v42 = vshrl.u32 %v16061_v28, %v4074_v12 }
 0x485   :  { %v4084_v7 = vor.u32 %v4083_v57, %v4082_v31  ;;  %v4088_v33 = vshll.u32 %v16044_v21, %v4073_v22  ;;  %vm4220_vm15 = vc.u32 %v12358_v59, %v12361_v39  ;;  %v4221_v17 = vadd.s32 1, %v12362_v47 }
 0x486   :  { %16490 = vst [vmem:[#allocation16_spill] sm:$0xff] %v12371_v36  ;;  %v4087_v52 = vor.u32 %v4086_v56, %v4085_v35  ;;  %vm4091_vm12 = vcmp.lt.s32.totalorder %v12330_v5, 1  ;;  %vm4093_vm13 = vcmp.lt.s32.totalorder %v12330_v5, 3  ;;  %vm4094_vm0 = vcmp.lt.s32.totalorder %v12330_v5, 4 }
 0x487   :  { %v4090_v46 = vor.u32 %v4089_v50, %v4088_v33  ;;  %v4099_v14 = vsel %vm4091_vm12, %v4078_v9, %v4081_v13  ;;  %v4222_v53 = vsel %vm4220_vm15, %v4221_v17, %v12362_v47  ;;  %v4096_v29 = vsel %vm4094_vm0, %v4084_v7, 2102212464 }
 0x488   :  { %v4100_v10 = vsel %vm4094_vm0, %v4087_v52, 920167782  ;;  %v4103_v61 = vsel %vm4091_vm12, %v4081_v13, %v4084_v7  ;;  %v4223_v38 = vadd.s32 %v4222_v53, %v4218_v40  ;;  %vm4092_vm7 = vcmp.lt.s32.totalorder %v12330_v5, 2 }
 0x489   :  { %v4101_v27 = vsel %vm4093_vm13, %v4084_v7, %v4100_v10  ;;  %v4104_v8 = vsel %vm4094_vm0, %v4090_v46, 1326507024  ;;  %v4095_v12 = vsel %vm4091_vm12, %v4075_v42, %v4078_v9  ;;  %v4097_v2 = vsel %vm4093_vm13, %v4081_v13, %v4096_v29 }
 0x48a   :  { %v4102_v41 = vsel %vm4092_vm7, %v4099_v14, %v4101_v27  ;;  %v4105_v63 = vsel %vm4093_vm13, %v4087_v52, %v4104_v8  ;;  %v4224_v48 = vadd.s32 536870912, %v4223_v38  ;;  %v4098_v0 = vsel %vm4092_vm7, %v4095_v12, %v4097_v2 }
 0x48b   :  { %v12383_v22 = vpop.f32.mrb[22].mxu1  ;;  %v4106_v20 = vsel %vm4092_vm7, %v4103_v61, %v4105_v63  ;;  %v12395_v11 = vmul.u32.u64.low %v12327_v55, %v4102_v41  ;;  %v12396_v34 = vmul.u32.u64.high %v12327_v55, %v4102_v41, %v12395_v11  ;;  %v4374_v18 = vand.u32 2139095040, %v12371_v36 }
 0x48c   :  { %v12388_v1 = vpop.f32.mrb[23].mxu1  ;;  %v12400_v23 = vmul.u32.u64.low %v12327_v55, %v4106_v20  ;;  %v12401_v60 = vmul.u32.u64.high %v12327_v55, %v4106_v20, %v12400_v23  ;;  %v12403_v16 = vshrl.u32 %v4224_v48, 30  ;;  %v4114_v58 = vmul.u32 %v12327_v55, %v4098_v0 }
 0x48d   :  { %v4117_v5 = vadd.s32 1, %v12396_v34  ;;  %v4375_v51 = vshrl.u32 %v4374_v18, 23  ;;  %v12416_v25 = vadd.f32 %v12307_v3, %v12323_v32  ;;  %v15794_v13 = vand.u32 2147483647, %v12371_v36 }
 0x48e   :  { %v4226_v44 = vshll.u32 %v12403_v16, 30  ;;  %vm4116_vm9 = vc.u32 %v12401_v60, %v12395_v11 }
 0x48f   :  { %v4118_v49 = vsel %vm4116_vm9, %v4117_v5, %v12396_v34  ;;  %v7968_v45 = vadd.s32 4294967169, %v4375_v51  ;;  %16491 = vst [vmem:[#allocation23_spill] sm:$0xff] %v12416_v25  ;;  %v4270_v50 = vand.u32 2139095040, %v12416_v25  ;;  %v4378_v32 = vand.u32 8388607, %v15794_v13 }
 0x490   :  { %v12411_v62 = vsub.s32 %v4223_v38, %v4226_v44  ;;  %v4119_v9 = vadd.s32 %v4118_v49, %v4114_v58  ;;  %v15793_v20 = vand.u32 2147483647, %v12416_v25 }
 0x491   :  { %v4381_v57 = vadd.s32 1, %v7968_v45  ;;  %v4271_v14 = vshrl.u32 %v4270_v50, 23  ;;  %v4379_v29 = vor.u32 8388608, %v4378_v32  ;;  %v4219_v45 = vadd.s32 %v12361_v39, %v12358_v59 }
 0x492   :  { %v4229_v55 = vsub.s32 0, %v12411_v62  ;;  %v4120_v35 = vadd.s32 536870912, %v4119_v9  ;;  %v4274_v39 = vand.u32 8388607, %v15793_v20 }
 0x493   :  { %vm4382_vm8 = vcmp.gt.s32.totalorder %v4381_v57, 0  ;;  %v7964_v34 = vadd.s32 4294967169, %v4271_v14 }
 0x494   :  { %v7961_v56 = vmin.u32 %v4229_v55, %v12411_v62  ;;  %v12426_v40 = vshrl.u32 %v4120_v35, 30  ;;  %v4383_v42 = vsel %vm4382_vm8, %v4381_v57, 0  ;;  %v4419_v55 = vshll.u32 %v4379_v29, 8 }
 0x495   :  { %v12418_v47 = vpop.f32.mrb[24].mxu1  ;;  %v4385_v33 = vand.u32 31, %v4383_v42  ;;  %v4384_v63 = vshrl.u32 %v4383_v42, 5  ;;  %v12450_v57 = vadd.f32 %v12346_v6, %v12307_v3  ;;  %vm15877_vm8 = vcmp.lt.s32.totalorder %v12310_v24, 0 }
 0x496   :  { %v12421_v31 = vpop.f32.mrb[25].mxu1  ;;  %v4231_v7 = vclz %v7961_v56  ;;  %v4122_v17 = vshll.u32 %v12426_v40, 30  ;;  %v4277_v56 = vadd.s32 1, %v7964_v34 }
 0x497   :  { %v4386_v46 = vsub.s32 32, %v4385_v33  ;;  %v4388_v10 = vshll.u32 %v16061_v28, %v4385_v33  ;;  %v4391_v38 = vshll.u32 %v16487_v15, %v4385_v33  ;;  %v4397_v8 = vshll.u32 %v16489_v54, %v4385_v33  ;;  %16492 = vst [vmem:[#allocation14_spill] sm:$0xff] %v12450_v57 }
 0x498   :  { %v7962_v52 = vadd.s32 4294967294, %v4231_v7  ;;  %v12431_v53 = vsub.s32 %v4119_v9, %v4122_v17  ;;  %v4394_v48 = vshll.u32 %v16488_v37, %v4385_v33  ;;  %v4400_v58 = vshll.u32 %v16044_v21, %v4385_v33 }
 0x499   :  { %v4389_v61 = vshrl.u32 %v16487_v15, %v4386_v46  ;;  %v4392_v27 = vshrl.u32 %v16488_v37, %v4386_v46  ;;  %v4395_v2 = vshrl.u32 %v16489_v54, %v4386_v46  ;;  %v4398_v41 = vshrl.u32 %v16044_v21, %v4386_v46 }
 0x49a   :  { %vm7963_vm4 = vcmp.lt.s32.totalorder %v7962_v52, 0  ;;  %v4125_v12 = vsub.s32 0, %v12431_v53  ;;  %v4401_v49 = vshrl.u32 %v16028_v43, %v4386_v46  ;;  %vm4403_vm2 = vcmp.lt.s32.totalorder %v4384_v63, 1 }
 0x49b   :  { %v4390_v0 = vor.u32 %v4389_v61, %v4388_v10  ;;  %v4393_v18 = vor.u32 %v4392_v27, %v4391_v38  ;;  %v4399_v44 = vor.u32 %v4398_v41, %v4397_v8  ;;  %v4234_v5 = vsel %vm7963_vm4, 0, %v7962_v52 }
 0x49c   :  { %v7957_v23 = vmin.u32 %v4125_v12, %v12431_v53  ;;  %v4396_v51 = vor.u32 %v4395_v2, %v4394_v48  ;;  %v4402_v35 = vor.u32 %v4401_v49, %v4400_v58  ;;  %vm4406_vm14 = vcmp.lt.s32.totalorder %v4384_v63, 4 }
 0x49d   :  { %v4239_v50 = vsub.s32 4294967266, %v4234_v5  ;;  %vm4405_vm5 = vcmp.lt.s32.totalorder %v4384_v63, 3  ;;  %v4411_v32 = vsel %vm4403_vm2, %v4390_v0, %v4393_v18  ;;  %v4412_v42 = vsel %vm4406_vm14, %v4399_v44, 920167782 }
 0x49e   :  { %v4127_v9 = vclz %v7957_v23  ;;  %v4387_v7 = vshrl.u32 %v16061_v28, %v4386_v46  ;;  %vm4404_vm10 = vcmp.lt.s32.totalorder %v4384_v63, 2  ;;  %v4413_v59 = vsel %vm4405_vm5, %v4396_v51, %v4412_v42  ;;  %v12463_v8 = vpop.f32.mrb[26].mxu1 }
 0x49f   :  { %v4408_v6 = vsel %vm4406_vm14, %v4396_v51, 2102212464  ;;  %v4414_v17 = vsel %vm4404_vm10, %v4411_v32, %v4413_v59  ;;  %v4415_v52 = vsel %vm4403_vm2, %v4393_v18, %v4396_v51  ;;  %v4235_v14 = vsub.s32 32, %v4234_v5 }
 0x4a0   :  { %v7958_v33 = vadd.s32 4294967294, %v4127_v9  ;;  %v4416_v29 = vsel %vm4406_vm14, %v4402_v35, 1326507024  ;;  %v15792_v10 = vand.u32 2147483647, %v12450_v57  ;;  %v4582_v61 = vand.u32 2139095040, %v12450_v57 }
 0x4a1   :  { %v4240_v38 = vadd.s32 127, %v4239_v50  ;;  %v4407_v46 = vsel %vm4403_vm2, %v4387_v7, %v4390_v0  ;;  %v4417_v27 = vsel %vm4405_vm5, %v4399_v44, %v4416_v29  ;;  %vm4278_vm1 = vcmp.gt.s32.totalorder %v4277_v56, 0 }
 0x4a2   :  { %v4409_v12 = vsel %vm4405_vm5, %v4393_v18, %v4408_v6  ;;  %v4418_v2 = vsel %vm4404_vm10, %v4415_v52, %v4417_v27  ;;  %v12467_v41 = vmul.u32.u64.low %v4419_v55, %v4414_v17  ;;  %v12468_v48 = vmul.u32.u64.high %v4419_v55, %v4414_v17, %v12467_v41 }
 0x4a3   :  { %vm7959_vm6 = vcmp.lt.s32.totalorder %v7958_v33, 0  ;;  %v12471_v34 = vmul.u32.u64.low %v4419_v55, %v4418_v2  ;;  %v12472_v23 = vmul.u32.u64.high %v4419_v55, %v4418_v2, %v12471_v34  ;;  %v4275_v51 = vor.u32 8388608, %v4274_v39 }
 0x4a4   :  { %v4237_v58 = vshrl.u32 %v4219_v45, %v4235_v14  ;;  %v4279_v0 = vsel %vm4278_vm1, %v4277_v56, 0  ;;  %v4241_v49 = vshll.u32 %v4240_v38, 23  ;;  %v4410_v44 = vsel %vm4404_vm10, %v4407_v46, %v4409_v12 }
 0x4a5   :  { %v4281_v9 = vand.u32 31, %v4279_v0  ;;  %v4583_v35 = vshrl.u32 %v4582_v61, 23  ;;  %v4236_v18 = vshll.u32 %v12411_v62, %v4234_v5  ;;  %v12476_v50 = vsel %vm7959_vm6, 0, %v7958_v33 }
 0x4a6   :  { %v4429_v32 = vadd.s32 1, %v12468_v48  ;;  %v4115_v42 = vadd.s32 %v12395_v11, %v12401_v60  ;;  %v12481_v7 = vshll.u32 %v4275_v51, 8  ;;  %v12485_v45 = vand.u32 8388607, %v15792_v10 }
 0x4a7   :  { %v12487_v56 = vor.u32 %v4237_v58, %v4236_v18  ;;  %v4426_v63 = vmul.u32 %v4419_v55, %v4410_v44  ;;  %vm4428_vm11 = vc.u32 %v12472_v23, %v12467_v41  ;;  %v4282_v62 = vsub.s32 32, %v4281_v9 }
 0x4a8   :  { %v4242_v5 = vor.u32 4788187, %v4241_v49  ;;  %v4135_v59 = vsub.s32 4294967266, %v12476_v50  ;;  %v4430_v39 = vsel %vm4428_vm11, %v4429_v32, %v12468_v48  ;;  %v7976_v33 = vadd.s32 4294967169, %v4583_v35 }
 0x4a9   :  { %v4431_v11 = vadd.s32 %v4430_v39, %v4426_v63  ;;  %v4284_v60 = vshll.u32 %v16061_v28, %v4281_v9  ;;  %v4285_v6 = vshrl.u32 %v16487_v15, %v4282_v62  ;;  %v4288_v17 = vshrl.u32 %v16488_v37, %v4282_v62 }
 0x4aa   :  { %v4280_v52 = vshrl.u32 %v4279_v0, 5  ;;  %v4287_v55 = vshll.u32 %v16487_v15, %v4281_v9  ;;  %v4290_v14 = vshll.u32 %v16488_v37, %v4281_v9  ;;  %v4291_v29 = vshrl.u32 %v16489_v54, %v4282_v62 }
 0x4ab   :  { %v4432_v61 = vadd.s32 536870912, %v4431_v11  ;;  %v4286_v38 = vor.u32 %v4285_v6, %v4284_v60  ;;  %v4293_v46 = vshll.u32 %v16489_v54, %v4281_v9  ;;  %v4294_v27 = vshrl.u32 %v16044_v21, %v4282_v62 }
 0x4ac   :  { %v4289_v12 = vor.u32 %v4288_v17, %v4287_v55  ;;  %v4292_v2 = vor.u32 %v4291_v29, %v4290_v14  ;;  %v4296_v48 = vshll.u32 %v16044_v21, %v4281_v9  ;;  %v4297_v34 = vshrl.u32 %v16028_v43, %v4282_v62 }
 0x4ad   :  { %v4243_v51 = vand.u32 2147483647, %v4242_v5  ;;  %v4245_v58 = vcvt.s32.f32 %v12487_v56  ;;  %v12504_v0 = vshrl.u32 %v4432_v61, 30  ;;  %v4295_v49 = vor.u32 %v4294_v27, %v4293_v46 }
 0x4ae   :  { %v4131_v44 = vsub.s32 32, %v12476_v50  ;;  %v4136_v35 = vadd.s32 127, %v4135_v59  ;;  %v4298_v18 = vor.u32 %v4297_v34, %v4296_v48  ;;  %vm4302_vm3 = vcmp.lt.s32.totalorder %v4280_v52, 4  ;;  %v12513_v59 = vpop.f32.mrb[27].mxu1 }
 0x4af   :  { %16493 = vst [vmem:[#allocation12_spill] sm:$0xff] %v12504_v0  ;;  %v4434_v32 = vshll.u32 %v12504_v0, 30  ;;  %v4283_v63 = vshrl.u32 %v16061_v28, %v4282_v62  ;;  %vm4299_vm15 = vcmp.lt.s32.totalorder %v4280_v52, 1  ;;  %v4304_v9 = vsel %vm4302_vm3, %v4292_v2, 2102212464 }
 0x4b0   :  { %vm4301_vm12 = vcmp.lt.s32.totalorder %v4280_v52, 3  ;;  %v4307_v39 = vsel %vm4299_vm15, %v4286_v38, %v4289_v12  ;;  %v4308_v5 = vsel %vm4302_vm3, %v4295_v49, 920167782  ;;  %v4589_v56 = vadd.s32 1, %v7976_v33 }
 0x4b1   :  { %v12511_v60 = vsub.s32 %v4431_v11, %v4434_v32  ;;  %vm4300_vm13 = vcmp.lt.s32.totalorder %v4280_v52, 2  ;;  %v4303_v6 = vsel %vm4299_vm15, %v4283_v63, %v4286_v38  ;;  %v4309_v17 = vsel %vm4301_vm12, %v4292_v2, %v4308_v5 }
 0x4b2   :  { %v4305_v55 = vsel %vm4301_vm12, %v4289_v12, %v4304_v9  ;;  %v4310_v14 = vsel %vm4300_vm13, %v4307_v39, %v4309_v17  ;;  %v4311_v29 = vsel %vm4299_vm15, %v4289_v12, %v4292_v2  ;;  %v4312_v62 = vsel %vm4302_vm3, %v4298_v18, 1326507024 }
 0x4b3   :  { %v4437_v61 = vsub.s32 0, %v12511_v60  ;;  %v4313_v46 = vsel %vm4301_vm12, %v4295_v49, %v4312_v62  ;;  %v12519_v27 = vmul.u32.u64.low %v12481_v7, %v4310_v14  ;;  %v12520_v48 = vmul.u32.u64.high %v12481_v7, %v4310_v14, %v12519_v27 }
 0x4b4   :  { %v4133_v33 = vshrl.u32 %v4115_v42, %v4131_v44  ;;  %v4137_v11 = vshll.u32 %v4136_v35, 23  ;;  %v4314_v38 = vsel %vm4300_vm13, %v4311_v29, %v4313_v46  ;;  %vm4590_vm0 = vcmp.gt.s32.totalorder %v4589_v56, 0 }
 0x4b5   :  { %v7969_v34 = vmin.u32 %v4437_v61, %v12511_v60  ;;  %v12526_v32 = vmul.u32.u64.low %v12481_v7, %v4314_v38  ;;  %v12527_v12 = vmul.u32.u64.high %v12481_v7, %v4314_v38, %v12526_v32  ;;  %v4591_v2 = vsel %vm4590_vm0, %v4589_v56, 0 }
 0x4b6   :  { %v4132_v49 = vshll.u32 %v12431_v53, %v12476_v50  ;;  %v4306_v18 = vsel %vm4300_vm13, %v4303_v6, %v4305_v55  ;;  %v4593_v63 = vand.u32 31, %v4591_v2  ;;  %v12532_v9 = vmul.f32 %v4245_v58, %v4243_v51 }
 0x4b7   :  { %v4439_v42 = vclz %v7969_v34  ;;  %v4325_v44 = vadd.s32 1, %v12520_v48  ;;  %v12537_v39 = vor.u32 4788187, %v4137_v11  ;;  %v4587_v5 = vor.u32 8388608, %v12485_v45 }
 0x4b8   :  { %v12535_v35 = vor.u32 %v4133_v33, %v4132_v49  ;;  %v4594_v17 = vsub.s32 32, %v4593_v63  ;;  %v4322_v56 = vmul.u32 %v12481_v7, %v4306_v18  ;;  %vm4324_vm7 = vc.u32 %v12527_v12, %v12519_v27 }
 0x4b9   :  { %v7970_v14 = vadd.s32 4294967294, %v4439_v42  ;;  %v4596_v53 = vshll.u32 %v16061_v28, %v4593_v63  ;;  %v4326_v50 = vsel %vm4324_vm7, %v4325_v44, %v12520_v48  ;;  %v4599_v51 = vshll.u32 %v16487_v15, %v4593_v63 }
 0x4ba   :  { %v4597_v52 = vshrl.u32 %v16487_v15, %v4594_v17  ;;  %v4600_v58 = vshrl.u32 %v16488_v37, %v4594_v17  ;;  %v4327_v6 = vadd.s32 %v4326_v50, %v4322_v56  ;;  %v4603_v45 = vshrl.u32 %v16489_v54, %v4594_v17 }
 0x4bb   :  { %vm7971_vm9 = vcmp.lt.s32.totalorder %v7970_v14, 0  ;;  %v4606_v55 = vshrl.u32 %v16044_v21, %v4594_v17  ;;  %v4602_v29 = vshll.u32 %v16488_v37, %v4593_v63  ;;  %v4605_v62 = vshll.u32 %v16489_v54, %v4593_v63 }
 0x4bc   :  { %v12550_v7 = vsel %vm7971_vm9, 0, %v7970_v14  ;;  %v12556_v61 = vadd.f32 %v12307_v3, %v12350_v30  ;;  %v4328_v46 = vadd.s32 536870912, %v4327_v6  ;;  %v4592_v48 = vshrl.u32 %v4591_v2, 5 }
 0x4bd   :  { %v4598_v33 = vor.u32 %v4597_v52, %v4596_v53  ;;  %v4601_v11 = vor.u32 %v4600_v58, %v4599_v51  ;;  %v4604_v38 = vor.u32 %v4603_v45, %v4602_v29  ;;  %v4607_v34 = vor.u32 %v4606_v55, %v4605_v62 }
 0x4be   :  { %16494 = vst [vmem:[#allocation15_spill] sm:$0xff] %v12556_v61  ;;  %v4608_v32 = vshll.u32 %v16044_v21, %v4593_v63  ;;  %v4609_v49 = vshrl.u32 %v16028_v43, %v4594_v17  ;;  %v4247_v18 = vxor.u32 2147483648, %v12532_v9  ;;  %v4447_v42 = vsub.s32 4294967266, %v12550_v7 }
 0x4bf   :  { %v12562_v44 = vshrl.u32 %v4328_v46, 30  ;;  %v4139_v30 = vand.u32 2147483647, %v12537_v39  ;;  %v4141_v2 = vcvt.s32.f32 %v12535_v35  ;;  %v4627_v56 = vshll.u32 %v4587_v5, 8 }
 0x4c0   :  { %v4610_v14 = vor.u32 %v4609_v49, %v4608_v32  ;;  %vm4611_vm4 = vcmp.lt.s32.totalorder %v4592_v48, 1  ;;  %vm4614_vm2 = vcmp.lt.s32.totalorder %v4592_v48, 4  ;;  %v4478_v63 = vand.u32 2139095040, %v12556_v61 }
 0x4c1   :  { %16495 = vst [vmem:[#allocation8_spill] sm:$0xff] %v12562_v44  ;;  %v4330_v53 = vshll.u32 %v12562_v44, 30  ;;  %v4595_v50 = vshrl.u32 %v16061_v28, %v4594_v17  ;;  %v4616_v52 = vsel %vm4614_vm2, %v4604_v38, 2102212464  ;;  %v4619_v51 = vsel %vm4611_vm4, %v4598_v33, %v4601_v11 }
 0x4c2   :  { %v4620_v58 = vsel %vm4614_vm2, %v4607_v34, 920167782  ;;  %v4448_v45 = vadd.s32 127, %v4447_v42  ;;  %vm4613_vm14 = vcmp.lt.s32.totalorder %v4592_v48, 3  ;;  %v4623_v39 = vsel %vm4611_vm4, %v4601_v11, %v4604_v38 }
 0x4c3   :  { %v12570_v55 = vsub.s32 %v4327_v6, %v4330_v53  ;;  %vm4612_vm5 = vcmp.lt.s32.totalorder %v4592_v48, 2  ;;  %v4615_v35 = vsel %vm4611_vm4, %v4595_v50, %v4598_v33  ;;  %v4621_v29 = vsel %vm4613_vm14, %v4604_v38, %v4620_v58 }
 0x4c4   :  { %v4624_v5 = vsel %vm4614_vm2, %v4610_v14, 1326507024  ;;  %v4617_v46 = vsel %vm4613_vm14, %v4601_v11, %v4616_v52  ;;  %v4622_v32 = vsel %vm4612_vm5, %v4619_v51, %v4621_v29  ;;  %v4479_v13 = vshrl.u32 %v4478_v63, 23 }
 0x4c5   :  { %v4333_v62 = vsub.s32 0, %v12570_v55  ;;  %v4625_v49 = vsel %vm4613_vm14, %v4607_v34, %v4624_v5  ;;  %v12573_v20 = vmul.u32.u64.low %v4627_v56, %v4622_v32  ;;  %v12574_v17 = vmul.u32.u64.high %v4627_v56, %v4622_v32, %v12573_v20 }
 0x4c6   :  { %v4626_v10 = vsel %vm4612_vm5, %v4623_v39, %v4625_v49  ;;  %v4443_v6 = vsub.s32 32, %v12550_v7  ;;  %v4449_v33 = vshll.u32 %v4448_v45, 23  ;;  %v4618_v38 = vsel %vm4612_vm5, %v4615_v35, %v4617_v46 }
 0x4c7   :  { %v7965_v42 = vmin.u32 %v4333_v62, %v12570_v55  ;;  %v12579_v53 = vmul.u32.u64.low %v4627_v56, %v4626_v10  ;;  %v12580_v48 = vmul.u32.u64.high %v4627_v56, %v4626_v10, %v12579_v53  ;;  %v15795_v14 = vand.u32 2147483647, %v12556_v61 }
 0x4c8   :  { %v7972_v11 = vadd.s32 4294967169, %v4479_v13  ;;  %vm12585_vm10 = vcmp.le.f32.partialorder %v4163_v4, 0.7853982  ;;  %v4248_v63 = vsel %vm15877_vm8, %v4247_v18, %v12532_v9  ;;  %v4427_v50 = vadd.s32 %v12467_v41, %v12472_v23  ;;  %v12608_v18 = vpop.f32.mrb[28].mxu1 }
 0x4c9   :  { %v4335_v10 = vclz %v7965_v42  ;;  %v12594_v52 = vmul.f32 %v4141_v2, %v4139_v30  ;;  %v4637_v51 = vadd.s32 1, %v12574_v17  ;;  %v12599_v13 = vadd.f32 %v12383_v22, %v12307_v3 }
 0x4ca   :  { %v4485_v58 = vadd.s32 1, %v7972_v11  ;;  %v4445_v4 = vshrl.u32 %v4427_v50, %v4443_v6  ;;  %v4634_v39 = vmul.u32 %v4627_v56, %v4618_v38  ;;  %vm4636_vm1 = vc.u32 %v12580_v48, %v12573_v20 }
 0x4cb   :  { %16498 = vst [vmem:[#allocation29_spill] sm:$0xff] %v12599_v13  ;;  %v7966_v45 = vadd.s32 4294967294, %v4335_v10  ;;  %v12603_v9 = vor.u32 4788187, %v4449_v33  ;;  %v4638_v41 = vsel %vm4636_vm1, %v4637_v51, %v12574_v17  ;;  %v4482_v23 = vand.u32 8388607, %v15795_v14 }
 0x4cc   :  { %vm4486_vm6 = vcmp.gt.s32.totalorder %v4485_v58, 0  ;;  %v4444_v22 = vshll.u32 %v12511_v60, %v12550_v7  ;;  %v4639_v30 = vadd.s32 %v4638_v41, %v4634_v39  ;;  %v12615_v56 = vsel %vm12585_vm10, %v12310_v24, %v4248_v63 }
 0x4cd   :  { %vm7967_vm11 = vcmp.lt.s32.totalorder %v7966_v45, 0  ;;  %v4487_v2 = vsel %vm4486_vm6, %v4485_v58, 0  ;;  %v4143_v35 = vxor.u32 2147483648, %v12594_v52  ;;  %v4323_v46 = vadd.s32 %v12519_v27, %v12527_v12 }
 0x4ce   :  { %v12618_v29 = vsel %vm7967_vm11, 0, %v7966_v45  ;;  %v4489_v5 = vand.u32 31, %v4487_v2  ;;  %v12620_v62 = vor.u32 %v4445_v4, %v4444_v22  ;;  %v4640_v32 = vadd.s32 536870912, %v4639_v30 }
 0x4cf   :  { %v4483_v49 = vor.u32 8388608, %v4482_v23  ;;  %v4790_v6 = vand.u32 2139095040, %v12599_v13  ;;  %v4343_v42 = vsub.s32 4294967266, %v12618_v29  ;;  %v4488_v10 = vshrl.u32 %v4487_v2, 5 }
 0x4d0   :  { %v4490_v17 = vsub.s32 32, %v4489_v5  ;;  %v12628_v53 = vshrl.u32 %v4640_v32, 30  ;;  %v4492_v33 = vshll.u32 %v16061_v28, %v4489_v5  ;;  %v4495_v38 = vshll.u32 %v16487_v15, %v4489_v5 }
 0x4d1   :  { %v4498_v12 = vshll.u32 %v16488_v37, %v4489_v5  ;;  %v4501_v51 = vshll.u32 %v16489_v54, %v4489_v5  ;;  %v12639_v41 = vshll.u32 %v4483_v49, 8  ;;  %v4339_v23 = vsub.s32 32, %v12618_v29 }
 0x4d2   :  { %16499 = vst [vmem:[#allocation5_spill] sm:$0xff] %v12628_v53  ;;  %v4493_v11 = vshrl.u32 %v16487_v15, %v4490_v17  ;;  %v4496_v27 = vshrl.u32 %v16488_v37, %v4490_v17  ;;  %v4499_v63 = vshrl.u32 %v16489_v54, %v4490_v17  ;;  %v4642_v50 = vshll.u32 %v12628_v53, 30 }
 0x4d3   :  { %v4502_v58 = vshrl.u32 %v16044_v21, %v4490_v17  ;;  %v4344_v22 = vadd.s32 127, %v4343_v42  ;;  %v4340_v19 = vshll.u32 %v12570_v55, %v12618_v29  ;;  %v4491_v2 = vshrl.u32 %v16061_v28, %v4490_v17 }
 0x4d4   :  { %v4494_v4 = vor.u32 %v4493_v11, %v4492_v33  ;;  %v4497_v45 = vor.u32 %v4496_v27, %v4495_v38  ;;  %v4500_v39 = vor.u32 %v4499_v63, %v4498_v12  ;;  %v12642_v32 = vsub.s32 %v4639_v30, %v4642_v50 }
 0x4d5   :  { %v4503_v14 = vor.u32 %v4502_v58, %v4501_v51  ;;  %v4504_v60 = vshll.u32 %v16044_v21, %v4489_v5  ;;  %v4505_v7 = vshrl.u32 %v16028_v43, %v4490_v17  ;;  %vm4507_vm3 = vcmp.lt.s32.totalorder %v4488_v10, 1  ;;  %v12658_v51 = vpop.f32.mrb[29].mxu1 }
 0x4d6   :  { %v4645_v33 = vsub.s32 0, %v12642_v32  ;;  %vm4509_vm15 = vcmp.lt.s32.totalorder %v4488_v10, 3  ;;  %vm4510_vm12 = vcmp.lt.s32.totalorder %v4488_v10, 4  ;;  %v4515_v30 = vsel %vm4507_vm3, %v4494_v4, %v4497_v45 }
 0x4d7   :  { %v4506_v49 = vor.u32 %v4505_v7, %v4504_v60  ;;  %v4512_v38 = vsel %vm4510_vm12, %v4500_v39, 2102212464  ;;  %v4516_v42 = vsel %vm4510_vm12, %v4503_v14, 920167782  ;;  %v4345_v11 = vshll.u32 %v4344_v22, 23 }
 0x4d8   :  { %v7977_v27 = vmin.u32 %v4645_v33, %v12642_v32  ;;  %vm4508_vm13 = vcmp.lt.s32.totalorder %v4488_v10, 2  ;;  %v4517_v55 = vsel %vm4509_vm15, %v4500_v39, %v4516_v42  ;;  %v4341_v29 = vshrl.u32 %v4323_v46, %v4339_v23 }
 0x4d9   :  { %v4518_v5 = vsel %vm4508_vm13, %v4515_v30, %v4517_v55  ;;  %v4519_v17 = vsel %vm4507_vm3, %v4497_v45, %v4500_v39  ;;  %v4520_v12 = vsel %vm4510_vm12, %v4506_v49, 1326507024  ;;  %v4511_v50 = vsel %vm4507_vm3, %v4491_v2, %v4494_v4 }
 0x4da   :  { %v4647_v63 = vclz %v7977_v27  ;;  %v4513_v60 = vsel %vm4509_vm15, %v4497_v45, %v4512_v38  ;;  %v4521_v7 = vsel %vm4509_vm15, %v4503_v14, %v4520_v12  ;;  %v4791_v46 = vshrl.u32 %v4790_v6, 23 }
 0x4db   :  { %v4522_v58 = vsel %vm4508_vm13, %v4519_v17, %v4521_v7  ;;  %v12662_v22 = vmul.u32.u64.low %v12639_v41, %v4518_v5  ;;  %v12663_v33 = vmul.u32.u64.high %v12639_v41, %v4518_v5, %v12662_v22  ;;  %v4346_v23 = vor.u32 4788187, %v4345_v11 }
 0x4dc   :  { %v7978_v39 = vadd.s32 4294967294, %v4647_v63  ;;  %v12667_v49 = vmul.u32.u64.low %v12639_v41, %v4522_v58  ;;  %v12668_v30 = vmul.u32.u64.high %v12639_v41, %v4522_v58, %v12667_v49  ;;  %vm15876_vm0 = vcmp.lt.s32.totalorder %v12313_v26, 0 }
 0x4dd   :  { %v7984_v4 = vadd.s32 4294967169, %v4791_v46  ;;  %v4453_v14 = vcvt.s32.f32 %v12620_v62  ;;  %v4342_v45 = vor.u32 %v4341_v29, %v4340_v19  ;;  %v4514_v2 = vsel %vm4508_vm13, %v4511_v50, %v4513_v60 }
 0x4de   :  { %vm7979_vm7 = vcmp.lt.s32.totalorder %v7978_v39, 0  ;;  %8852 = vcosq.f32 %v12615_v56  ;;  %v4533_v6 = vadd.s32 1, %v12663_v33  ;;  %v4144_v11 = vsel %vm15876_vm0, %v4143_v35, %v12594_v52 }
 0x4df   :  { %v12674_v38 = vsel %vm7979_vm7, 0, %v7978_v39  ;;  %v4797_v42 = vadd.s32 1, %v7984_v4  ;;  %v16500_v27 = vand.u32 2147483647, %v12603_v9  ;;  %v4347_v19 = vand.u32 2147483647, %v4346_v23 }
 0x4e0   :  { %v16501_v10 = vand.u32 2147483647, %v12599_v13  ;;  %v4530_v29 = vmul.u32 %v12639_v41, %v4514_v2  ;;  %vm4532_vm9 = vc.u32 %v12668_v30, %v12662_v22  ;;  %v12693_v5 = vadd.f32 %v12307_v3, %v12388_v1 }
 0x4e1   :  { %v12684_v62 = vmul.f32 %v4453_v14, %v16500_v27  ;;  %vm4798_vm4 = vcmp.gt.s32.totalorder %v4797_v42, 0  ;;  %v4349_v17 = vcvt.s32.f32 %v4342_v45  ;;  %v4655_v52 = vsub.s32 4294967266, %v12674_v38 }
 0x4e2   :  { %v4794_v55 = vand.u32 8388607, %v16501_v10  ;;  %16502 = vst [vmem:[#allocation38_spill] sm:$0xff] %v12693_v5  ;;  %v4534_v9 = vsel %vm4532_vm9, %v4533_v6, %v12663_v33  ;;  %v4799_v35 = vsel %vm4798_vm4, %v4797_v42, 0  ;;  %8854 = vsinq.f32 %v12615_v56 }
 0x4e3   :  { %v16503_v12 = vand.u32 2147483647, %v12313_v26  ;;  %v4535_v63 = vadd.s32 %v4534_v9, %v4530_v29  ;;  %v4801_v50 = vand.u32 31, %v4799_v35  ;;  %v4455_v1 = vxor.u32 2147483648, %v12684_v62 }
 0x4e4   :  { %v12710_v60 = vmul.f32 %v4349_v17, %v4347_v19  ;;  %v4635_v56 = vadd.s32 %v12573_v20, %v12580_v48  ;;  %v4795_v58 = vor.u32 8388608, %v4794_v55  ;;  %v4686_v46 = vand.u32 2139095040, %v12693_v5 }
 0x4e5   :  { %vm12700_vm2 = vcmp.le.f32.partialorder %v16503_v12, 0.7853982  ;;  %v4536_v7 = vadd.s32 536870912, %v4535_v63  ;;  %v4802_v33 = vsub.s32 32, %v4801_v50  ;;  %v4656_v23 = vadd.s32 127, %v4655_v52 }
 0x4e6   :  { %v12707_v3 = vsel %vm12700_vm2, %v12313_v26, %v4144_v11  ;;  %v4800_v39 = vshrl.u32 %v4799_v35, 5  ;;  %v4804_v49 = vshll.u32 %v16061_v28, %v4801_v50  ;;  %v4807_v4 = vshll.u32 %v16487_v15, %v4801_v50 }
 0x4e7   :  { %v12717_v14 = vshrl.u32 %v4536_v7, 30  ;;  %v4805_v45 = vshrl.u32 %v16487_v15, %v4802_v33  ;;  %v4808_v2 = vshrl.u32 %v16488_v37, %v4802_v33  ;;  %v4810_v6 = vshll.u32 %v16488_v37, %v4801_v50 }
 0x4e8   :  { %vm15829_vm14 = vcmp.lt.s32.totalorder %v12371_v36, 0  ;;  %v4811_v20 = vshrl.u32 %v16489_v54, %v4802_v33  ;;  %v4813_v48 = vshll.u32 %v16489_v54, %v4801_v50  ;;  %v4814_v42 = vshrl.u32 %v16044_v21, %v4802_v33  ;;  %v12727_v27 = vpop.eup %8852 }
 0x4e9   :  { %16506 = vst [vmem:[#allocation24_spill] sm:$0xff] %v12717_v14  ;;  %v4816_v11 = vshll.u32 %v16044_v21, %v4801_v50  ;;  %16507 = vst [vmem:[#allocation37_spill] sm:$0xff] %v12727_v27  ;;  %v4538_v19 = vshll.u32 %v12717_v14, 30  ;;  %v4806_v10 = vor.u32 %v4805_v45, %v4804_v49  ;;  %v4809_v55 = vor.u32 %v4808_v2, %v4807_v4 }
 0x4ea   :  { %v4817_v29 = vshrl.u32 %v16028_v43, %v4802_v33  ;;  %v4651_v17 = vsub.s32 32, %v12674_v38  ;;  %v4812_v52 = vor.u32 %v4811_v20, %v4810_v6  ;;  %v4815_v9 = vor.u32 %v4814_v42, %v4813_v48 }
 0x4eb   :  { %v4835_v35 = vshll.u32 %v4795_v58, 8  ;;  %v12732_v12 = vsub.s32 %v4535_v63, %v4538_v19  ;;  %vm4819_vm5 = vcmp.lt.s32.totalorder %v4800_v39, 1  ;;  %v4687_v53 = vshrl.u32 %v4686_v46, 23 }
 0x4ec   :  { %v4818_v7 = vor.u32 %v4817_v29, %v4816_v11  ;;  %v16508_v50 = vand.u32 2147483647, %v12371_v36  ;;  %v16509_v0 = vmov 0  ;;  %v4657_v49 = vshll.u32 %v4656_v23, 23  ;;  %v12742_v2 = vpop.eup %8854 }
 0x4ed   :  { %v4803_v4 = vshrl.u32 %v16061_v28, %v4802_v33  ;;  %vm4822_vm6 = vcmp.lt.s32.totalorder %v4800_v39, 4  ;;  %v4827_v45 = vsel %vm4819_vm5, %v4806_v10, %v4809_v55  ;;  %16512 = vst [vmem:[#allocation33_spill] sm:$0xff] %v12742_v2  ;;  %v4541_v63 = vsub.s32 0, %v12732_v12 }
 0x4ee   :  { %vm12736_vm1 = vcmp.le.f32.partialorder %v16508_v50, 0.7853982  ;;  %vm4821_vm11 = vcmp.lt.s32.totalorder %v4800_v39, 3  ;;  %v4824_v58 = vsel %vm4822_vm6, %v4812_v52, 2102212464  ;;  %vm4820_vm3 = vcmp.lt.s32.totalorder %v4800_v39, 2 }
 0x4ef   :  { %v16510_v0 = vsel %vm12736_vm1, 4294967295, %v16509_v0  ;;  %v4828_v6 = vsel %vm4822_vm6, %v4815_v9, 920167782  ;;  %v4831_v20 = vsel %vm4819_vm5, %v4809_v55, %v4812_v52  ;;  %v4832_v48 = vsel %vm4822_vm6, %v4818_v7, 1326507024 }
 0x4f0   :  { %16511 = vst [vmem:[#allocation21_spill] sm:$0xff] %v16510_v0  ;;  %v4829_v46 = vsel %vm4821_vm11, %v4812_v52, %v4828_v6  ;;  %v4653_v42 = vshrl.u32 %v4635_v56, %v4651_v17  ;;  %v7973_v23 = vmin.u32 %v4541_v63, %v12732_v12  ;;  %v4823_v33 = vsel %vm4819_vm5, %v4803_v4, %v4806_v10  ;;  %v12766_v6 = vpop.f32.mrb[30].mxu1 }
 0x4f1   :  { %v4830_v11 = vsel %vm4820_vm3, %v4827_v45, %v4829_v46  ;;  %v4825_v19 = vsel %vm4821_vm11, %v4809_v55, %v4824_v58  ;;  %v4833_v29 = vsel %vm4821_vm11, %v4815_v9, %v4832_v48  ;;  %8856 = vcosq.f32 %v12707_v3 }
 0x4f2   :  { %v12749_v50 = vmul.u32.u64.low %v4835_v35, %v4830_v11  ;;  %v12750_v14 = vmul.u32.u64.high %v4835_v35, %v4830_v11, %v12749_v50  ;;  %v4456_v52 = vsel %vm15829_vm14, %v4455_v1, %v12684_v62  ;;  %v4652_v56 = vshll.u32 %v12642_v32, %v12674_v38  ;;  %v12772_v38 = vld [vmem:[%s15544_s4] ss:$0 sm:$0xff] }
 0x4f3   :  { %v4834_v17 = vsel %vm4820_vm3, %v4831_v20, %v4833_v29  ;;  %v4658_v10 = vor.u32 4788187, %v4657_v49  ;;  %v7980_v55 = vadd.s32 4294967169, %v4687_v53  ;;  %v4351_v9 = vxor.u32 2147483648, %v12710_v60 }
 0x4f4   :  { %v12760_v7 = vmul.u32.u64.low %v4835_v35, %v4834_v17  ;;  %v12761_v4 = vmul.u32.u64.high %v4835_v35, %v4834_v17, %v12760_v7  ;;  %v4543_v45 = vclz %v7973_v23  ;;  %v4826_v63 = vsel %vm4820_vm3, %v4823_v33, %v4825_v19 }
 0x4f5   :  { %v15803_v58 = vand.u32 2147483647, %v12693_v5  ;;  %v4654_v62 = vor.u32 %v4653_v42, %v4652_v56  ;;  %v4845_v1 = vadd.s32 1, %v12750_v14  ;;  %v4693_v32 = vadd.s32 1, %v7980_v55 }
 0x4f6   :  { %v12776_v53 = vadd.f32 %v12772_v38, %v12418_v47  ;;  %8858 = vsinq.f32 %v12707_v3  ;;  %v4459_v39 = vsel %vm12736_vm1, %v12371_v36, %v4456_v52  ;;  %vm15830_vm15 = vcmp.lt.s32.totalorder %v12416_v25, 0 }
 0x4f7   :  { %v4659_v49 = vand.u32 2147483647, %v4658_v10  ;;  %v4842_v46 = vmul.u32 %v4835_v35, %v4826_v63  ;;  %vm4844_vm12 = vc.u32 %v12761_v4, %v12749_v50  ;;  %vm4694_vm13 = vcmp.gt.s32.totalorder %v4693_v32, 0 }
 0x4f8   :  { %16513 = vst [vmem:[#allocation32_spill] sm:$0xff] %v12776_v53  ;;  %v4352_v20 = vsel %vm15830_vm15, %v4351_v9, %v12710_v60  ;;  %v7974_v47 = vadd.s32 4294967294, %v4543_v45  ;;  %v4846_v48 = vsel %vm4844_vm12, %v4845_v1, %v12750_v14  ;;  %v4690_v3 = vand.u32 8388607, %v15803_v58 }
 0x4f9   :  { %v4661_v42 = vcvt.s32.f32 %v4654_v62  ;;  %v4847_v23 = vadd.s32 %v4846_v48, %v4842_v46  ;;  %v4695_v33 = vsel %vm4694_vm13, %v4693_v32, 0  ;;  %v4998_v11 = vand.u32 2139095040, %v12776_v53 }
 0x4fa   :  { %8860 = vcosq.f32 %v4459_v39  ;;  %v16514_v35 = vand.u32 2147483647, %v12416_v25  ;;  %v16515_v19 = vmov 0  ;;  %v4697_v29 = vand.u32 31, %v4695_v33 }
 0x4fb   :  { %8862 = vsinq.f32 %v4459_v39  ;;  %v12803_v14 = vmul.f32 %v4661_v42, %v4659_v49  ;;  %v4848_v52 = vadd.s32 536870912, %v4847_v23  ;;  %v12805_v56 = vpop.eup %8856  ;;  %vm7975_vm9 = vcmp.lt.s32.totalorder %v7974_v47, 0 }
 0x4fc   :  { %vm12794_vm7 = vcmp.le.f32.partialorder %v16514_v35, 0.7853982  ;;  %16518 = vst [vmem:[#allocation59_spill] sm:$0xff] %v12805_v56  ;;  %v4691_v17 = vor.u32 8388608, %v4690_v3  ;;  %v4698_v10 = vsub.s32 32, %v4697_v29  ;;  %v4696_v9 = vshrl.u32 %v4695_v33, 5 }
 0x4fd   :  { %v16516_v19 = vsel %vm12794_vm7, 4294967295, %v16515_v19  ;;  %v12801_v60 = vsel %vm12794_vm7, %v12416_v25, %v4352_v20  ;;  %v12808_v55 = vshrl.u32 %v4848_v52, 30  ;;  %v4700_v45 = vshll.u32 %v16061_v28, %v4697_v29 }
 0x4fe   :  { %16517 = vst [vmem:[#allocation48_spill] sm:$0xff] %v16516_v19  ;;  %v4999_v63 = vshrl.u32 %v4998_v11, 23  ;;  %v4701_v62 = vshrl.u32 %v16487_v15, %v4698_v10  ;;  %v4703_v1 = vshll.u32 %v16487_v15, %v4697_v29  ;;  %v4706_v32 = vshll.u32 %v16488_v37, %v4697_v29 }
 0x4ff   :  { %16519 = vst [vmem:[#allocation58_spill] sm:$0xff] %v12808_v55  ;;  %v4709_v39 = vshll.u32 %v16489_v54, %v4697_v29  ;;  %v4850_v49 = vshll.u32 %v12808_v55, 30  ;;  %v4704_v46 = vshrl.u32 %v16488_v37, %v4698_v10  ;;  %v4707_v20 = vshrl.u32 %v16489_v54, %v4698_v10 }
 0x500   :  { %v4710_v48 = vshrl.u32 %v16044_v21, %v4698_v10  ;;  %v12819_v3 = vpop.eup %8858  ;;  %v4702_v42 = vor.u32 %v4701_v62, %v4700_v45  ;;  %v4712_v33 = vshll.u32 %v16044_v21, %v4697_v29  ;;  %v4713_v11 = vshrl.u32 %v16028_v43, %v4698_v10 }
 0x501   :  { %16520 = vst [vmem:[#allocation28_spill] sm:$0xff] %v12819_v3  ;;  %v12823_v35 = vshll.u32 %v4691_v17, 8  ;;  %v12825_v52 = vsub.s32 %v4847_v23, %v4850_v49  ;;  %v4705_v58 = vor.u32 %v4704_v46, %v4703_v1  ;;  %v4708_v7 = vor.u32 %v4707_v20, %v4706_v32 }
 0x502   :  { %v4711_v55 = vor.u32 %v4710_v48, %v4709_v39  ;;  %v12828_v0 = vsel %vm7975_vm9, 0, %v7974_v47  ;;  %v4714_v36 = vor.u32 %v4713_v11, %v4712_v33  ;;  %v7992_v19 = vadd.s32 4294967169, %v4999_v63 }
 0x503   :  { %v16521_v25 = vand.u32 2147483647, %v12776_v53  ;;  %v4853_v45 = vsub.s32 0, %v12825_v52  ;;  %v4699_v29 = vshrl.u32 %v16061_v28, %v4698_v10  ;;  %vm4715_vm4 = vcmp.lt.s32.totalorder %v4696_v9, 1 }
 0x504   :  { %vm4718_vm5 = vcmp.lt.s32.totalorder %v4696_v9, 4  ;;  %v12834_v17 = vpop.eup %8860  ;;  %vm4716_vm6 = vcmp.lt.s32.totalorder %v4696_v9, 2  ;;  %vm4717_vm11 = vcmp.lt.s32.totalorder %v4696_v9, 3  ;;  %v4723_v23 = vsel %vm4715_vm4, %v4702_v42, %v4705_v58 }
 0x505   :  { %v5002_v44 = vand.u32 8388607, %v16521_v25  ;;  %16522 = vst [vmem:[#allocation13_spill] sm:$0xff] %v12834_v17  ;;  %v4724_v62 = vsel %vm4718_vm5, %v4711_v55, 920167782  ;;  %v12837_v47 = vpop.eup %8862  ;;  %v7985_v63 = vmin.u32 %v4853_v45, %v12825_v52  ;;  %v4727_v32 = vsel %vm4715_vm4, %v4705_v58, %v4708_v7 }
 0x506   :  { %16523 = vst [vmem:[#allocation43_spill] sm:$0xff] %v12837_v47  ;;  %v4720_v1 = vsel %vm4718_vm5, %v4708_v7, 2102212464  ;;  %v4725_v25 = vsel %vm4717_vm11, %v4708_v7, %v4724_v62  ;;  %v4551_v10 = vsub.s32 4294967266, %v12828_v0  ;;  %v4728_v49 = vsel %vm4718_vm5, %v4714_v36, 1326507024 }
 0x507   :  { %v4726_v39 = vsel %vm4716_vm6, %v4723_v23, %v4725_v25  ;;  %v5005_v46 = vadd.s32 1, %v7992_v19  ;;  %v4547_v20 = vsub.s32 32, %v12828_v0  ;;  %v4855_v48 = vclz %v7985_v63  ;;  %v12854_v47 = vpop.f32.mrb[31].mxu1 }
 0x508   :  { %v4719_v33 = vsel %vm4715_vm4, %v4699_v29, %v4702_v42  ;;  %v4729_v11 = vsel %vm4717_vm11, %v4711_v55, %v4728_v49  ;;  %v4721_v45 = vsel %vm4717_vm11, %v4705_v58, %v4720_v1  ;;  %v5003_v63 = vor.u32 8388608, %v5002_v44 }
 0x509   :  { %v4730_v17 = vsel %vm4716_vm6, %v4727_v32, %v4729_v11  ;;  %v12850_v62 = vmul.u32.u64.low %v12823_v35, %v4726_v39  ;;  %v12851_v7 = vmul.u32.u64.high %v12823_v35, %v4726_v39, %v12850_v62  ;;  %v7986_v36 = vadd.s32 4294967294, %v4855_v48 }
 0x50a   :  { %v12857_v19 = vmul.u32.u64.low %v12823_v35, %v4730_v17  ;;  %v12858_v23 = vmul.u32.u64.high %v12823_v35, %v4730_v17, %v12857_v19  ;;  %8864 = vcosq.f32 %v12801_v60  ;;  %v4531_v58 = vadd.s32 %v12662_v22, %v12668_v30 }
 0x50b   :  { %v4552_v55 = vadd.s32 127, %v4551_v10  ;;  %vm5006_vm3 = vcmp.gt.s32.totalorder %v5005_v46, 0  ;;  %vm7987_vm12 = vcmp.lt.s32.totalorder %v7986_v36, 0  ;;  %v4722_v42 = vsel %vm4716_vm6, %v4719_v33, %v4721_v45 }
 0x50c   :  { %v5007_v29 = vsel %vm5006_vm3, %v5005_v46, 0  ;;  %v12866_v1 = vadd.f32 %v12772_v38, %v12421_v31  ;;  %v12869_v17 = vsel %vm7987_vm12, 0, %v7986_v36  ;;  %v4741_v44 = vadd.s32 1, %v12851_v7 }
 0x50d   :  { %v5009_v32 = vand.u32 31, %v5007_v29  ;;  %v12874_v30 = vshrl.u32 %v4531_v58, %v4547_v20  ;;  %v4843_v9 = vadd.s32 %v12749_v50, %v12761_v4  ;;  %v12878_v10 = vshll.u32 %v5003_v63, 8 }
 0x50e   :  { %16524 = vst [vmem:[#allocation51_spill] sm:$0xff] %v12866_v1  ;;  %v4553_v39 = vshll.u32 %v4552_v55, 23  ;;  %v4738_v31 = vmul.u32 %v12823_v35, %v4722_v42  ;;  %vm4740_vm13 = vc.u32 %v12858_v23, %v12850_v62  ;;  %v4863_v46 = vsub.s32 4294967266, %v12869_v17 }
 0x50f   :  { %v5010_v49 = vsub.s32 32, %v5009_v32  ;;  %v4742_v48 = vsel %vm4740_vm13, %v4741_v44, %v12851_v7  ;;  %v5008_v33 = vshrl.u32 %v5007_v29, 5  ;;  %v4859_v11 = vsub.s32 32, %v12869_v17 }
 0x510   :  { %v4743_v45 = vadd.s32 %v4742_v48, %v4738_v31  ;;  %v5012_v35 = vshll.u32 %v16061_v28, %v5009_v32  ;;  %v5015_v36 = vshll.u32 %v16487_v15, %v5009_v32  ;;  %v5018_v19 = vshll.u32 %v16488_v37, %v5009_v32 }
 0x511   :  { %v5013_v50 = vshrl.u32 %v16487_v15, %v5010_v49  ;;  %v5016_v4 = vshrl.u32 %v16488_v37, %v5010_v49  ;;  %v5019_v63 = vshrl.u32 %v16489_v54, %v5010_v49  ;;  %v12893_v58 = vor.u32 4788187, %v4553_v39 }
 0x512   :  { %v4744_v7 = vadd.s32 536870912, %v4743_v45  ;;  %v5021_v55 = vshll.u32 %v16489_v54, %v5009_v32  ;;  %v5022_v42 = vshrl.u32 %v16044_v21, %v5010_v49  ;;  %v4864_v29 = vadd.s32 127, %v4863_v46 }
 0x513   :  { %v5014_v44 = vor.u32 %v5013_v50, %v5012_v35  ;;  %v5017_v31 = vor.u32 %v5016_v4, %v5015_v36  ;;  %v5020_v48 = vor.u32 %v5019_v63, %v5018_v19  ;;  %v5024_v27 = vshll.u32 %v16044_v21, %v5009_v32 }
 0x514   :  { %v12897_v25 = vpop.eup %8864  ;;  %v12899_v22 = vshrl.u32 %v4744_v7, 30  ;;  %v5023_v20 = vor.u32 %v5022_v42, %v5021_v55  ;;  %v5025_v2 = vshrl.u32 %v16028_v43, %v5010_v49  ;;  %v4861_v39 = vshrl.u32 %v4843_v9, %v4859_v11 }
 0x515   :  { %16525 = vst [vmem:[#allocation50_spill] sm:$0xff] %v12897_v25  ;;  %v5011_v56 = vshrl.u32 %v16061_v28, %v5010_v49  ;;  %vm5030_vm9 = vcmp.lt.s32.totalorder %v5008_v33, 4  ;;  %v4894_v3 = vand.u32 2139095040, %v12866_v1  ;;  %vm15828_vm4 = vcmp.lt.s32.totalorder %v12450_v57, 0 }
 0x516   :  { %16526 = vst [vmem:[#allocation56_spill] sm:$0xff] %v12899_v22  ;;  %v4746_v46 = vshll.u32 %v12899_v22, 30  ;;  %v5026_v50 = vor.u32 %v5025_v2, %v5024_v27  ;;  %vm5027_vm5 = vcmp.lt.s32.totalorder %v5008_v33, 1  ;;  %v5032_v4 = vsel %vm5030_vm9, %v5020_v48, 2102212464 }
 0x517   :  { %v4865_v35 = vshll.u32 %v4864_v29, 23  ;;  %vm5029_vm6 = vcmp.lt.s32.totalorder %v5008_v33, 3  ;;  %v5035_v36 = vsel %vm5027_vm5, %v5014_v44, %v5017_v31  ;;  %v5036_v32 = vsel %vm5030_vm9, %v5023_v20, 920167782 }
 0x518   :  { %v12909_v19 = vsub.s32 %v4743_v45, %v4746_v46  ;;  %vm5028_vm11 = vcmp.lt.s32.totalorder %v5008_v33, 2  ;;  %v5037_v9 = vsel %vm5029_vm6, %v5020_v48, %v5036_v32  ;;  %v5039_v49 = vsel %vm5027_vm5, %v5017_v31, %v5020_v48 }
 0x519   :  { %v5031_v11 = vsel %vm5027_vm5, %v5011_v56, %v5014_v44  ;;  %v5033_v63 = vsel %vm5029_vm6, %v5017_v31, %v5032_v4  ;;  %v5038_v7 = vsel %vm5028_vm11, %v5035_v36, %v5037_v9  ;;  %v5040_v55 = vsel %vm5030_vm9, %v5026_v50, 1326507024 }
 0x51a   :  { %v16527_v27 = vand.u32 2147483647, %v12450_v57  ;;  %v16528_v2 = vmov 0  ;;  %v4749_v42 = vsub.s32 0, %v12909_v19  ;;  %v5041_v29 = vsel %vm5029_vm6, %v5023_v20, %v5040_v55  ;;  %v12944_v55 = vpop.f32.mrb[32].mxu1 }
 0x51b   :  { %v12921_v45 = vmul.u32.u64.low %v12878_v10, %v5038_v7  ;;  %v12922_v46 = vmul.u32.u64.high %v12878_v10, %v5038_v7, %v12921_v45  ;;  %v4866_v56 = vor.u32 4788187, %v4865_v35  ;;  %v5042_v44 = vsel %vm5028_vm11, %v5039_v49, %v5041_v29 }
 0x51c   :  { %vm12915_vm3 = vcmp.le.f32.partialorder %v16527_v27, 0.7853982  ;;  %v4895_v31 = vshrl.u32 %v4894_v3, 23  ;;  %v16531_v48 = vand.u32 2147483647, %v12866_v1  ;;  %v4860_v4 = vshll.u32 %v12825_v52, %v12869_v17 }
 0x51d   :  { %v16529_v2 = vsel %vm12915_vm3, 4294967295, %v16528_v2  ;;  %v7981_v36 = vmin.u32 %v4749_v42, %v12909_v19  ;;  %v12932_v32 = vmul.u32.u64.low %v12878_v10, %v5042_v44  ;;  %v12933_v20 = vmul.u32.u64.high %v12878_v10, %v5042_v44, %v12932_v32 }
 0x51e   :  { %16530 = vst [vmem:[#allocation41_spill] sm:$0xff] %v16529_v2  ;;  %v4898_v50 = vand.u32 8388607, %v16531_v48  ;;  %v16532_v9 = vshll.u32 %v12732_v12, %v12828_v0  ;;  %v5034_v49 = vsel %vm5028_vm11, %v5031_v11, %v5033_v63  ;;  %v7988_v3 = vadd.s32 4294967169, %v4895_v31 }
 0x51f   :  { %v12942_v7 = vadd.f32 %v12772_v38, %v12463_v8  ;;  %8866 = vsinq.f32 %v12801_v60  ;;  %v4862_v52 = vor.u32 %v4861_v39, %v4860_v4  ;;  %v4751_v17 = vclz %v7981_v36 }
 0x520   :  { %v4550_v35 = vor.u32 %v12874_v30, %v16532_v9  ;;  %v5053_v27 = vadd.s32 1, %v12922_v46  ;;  %v16534_v0 = vxor.u32 2147483648, %v12803_v14  ;;  %v4555_v30 = vand.u32 2147483647, %v12893_v58 }
 0x521   :  { %16533 = vst [vmem:[#allocation79_spill] sm:$0xff] %v12942_v7  ;;  %v4867_v33 = vand.u32 2147483647, %v4866_v56  ;;  %v4901_v11 = vadd.s32 1, %v7988_v3  ;;  %v7982_v8 = vadd.s32 4294967294, %v4751_v17  ;;  %v5050_v63 = vmul.u32 %v12878_v10, %v5034_v49 }
 0x522   :  { %v4664_v12 = vsel %vm15828_vm4, %v16534_v0, %v12803_v14  ;;  %vm5052_vm12 = vc.u32 %v12933_v20, %v12921_v45  ;;  %v4899_v60 = vor.u32 8388608, %v4898_v50  ;;  %v4557_v39 = vcvt.s32.f32 %v4550_v35 }
 0x523   :  { %v5054_v42 = vsel %vm5052_vm12, %v5053_v27, %v12922_v46  ;;  %vm4902_vm13 = vcmp.gt.s32.totalorder %v4901_v11, 0  ;;  %v5206_v29 = vand.u32 2139095040, %v12942_v7  ;;  %v4869_v44 = vcvt.s32.f32 %v4862_v52 }
 0x524   :  { %vm7983_vm9 = vcmp.lt.s32.totalorder %v7982_v8, 0  ;;  %v5055_v14 = vadd.s32 %v5054_v42, %v5050_v63  ;;  %v4903_v31 = vsel %vm4902_vm13, %v4901_v11, 0  ;;  %v12962_v58 = vsel %vm12915_vm3, %v12450_v57, %v4664_v12 }
 0x525   :  { %v12964_v10 = vmul.f32 %v4557_v39, %v4555_v30  ;;  %v12966_v56 = vsel %vm7983_vm9, 0, %v7982_v8  ;;  %v4905_v48 = vand.u32 31, %v4903_v31  ;;  %v12968_v50 = vmul.f32 %v4869_v44, %v4867_v33 }
 0x526   :  { %v4739_v46 = vadd.s32 %v12850_v62, %v12858_v23  ;;  %v5056_v4 = vadd.s32 536870912, %v5055_v14  ;;  %v12972_v36 = vshll.u32 %v4899_v60, 8  ;;  %v4755_v32 = vsub.s32 32, %v12966_v56 }
 0x527   :  { %v4906_v9 = vsub.s32 32, %v4905_v48  ;;  %v15834_v35 = vand.u32 2147483647, %v12942_v7  ;;  %v5207_v49 = vshrl.u32 %v5206_v29, 23  ;;  %v4759_v3 = vsub.s32 4294967266, %v12966_v56 }
 0x528   :  { %v12977_v52 = vshrl.u32 %v5056_v4, 30  ;;  %v4908_v17 = vshll.u32 %v16061_v28, %v4905_v48  ;;  %v4911_v27 = vshll.u32 %v16487_v15, %v4905_v48  ;;  %v4914_v23 = vshll.u32 %v16488_v37, %v4905_v48 }
 0x529   :  { %v4909_v0 = vshrl.u32 %v16487_v15, %v4906_v9  ;;  %v4912_v62 = vshrl.u32 %v16488_v37, %v4906_v9  ;;  %v4915_v12 = vshrl.u32 %v16489_v54, %v4906_v9  ;;  %v12985_v30 = vpop.eup %8866  ;;  %v4904_v11 = vshrl.u32 %v4903_v31, 5 }
 0x52a   :  { %16535 = vst [vmem:[#allocation45_spill] sm:$0xff] %v12977_v52  ;;  %16536 = vst [vmem:[#allocation68_spill] sm:$0xff] %v12985_v30  ;;  %v5058_v33 = vshll.u32 %v12977_v52, 30  ;;  %v4917_v8 = vshll.u32 %v16489_v54, %v4905_v48  ;;  %v4918_v63 = vshrl.u32 %v16044_v21, %v4906_v9  ;;  %v5210_v29 = vand.u32 8388607, %v15834_v35 }
 0x52b   :  { %v4910_v60 = vor.u32 %v4909_v0, %v4908_v17  ;;  %v4913_v39 = vor.u32 %v4912_v62, %v4911_v27  ;;  %v4916_v42 = vor.u32 %v4915_v12, %v4914_v23  ;;  %v4756_v44 = vshll.u32 %v12909_v19, %v12966_v56 }
 0x52c   :  { %v12994_v4 = vsub.s32 %v5055_v14, %v5058_v33  ;;  %v4919_v22 = vor.u32 %v4918_v63, %v4917_v8  ;;  %v8000_v2 = vadd.s32 4294967169, %v5207_v49  ;;  %v4757_v57 = vshrl.u32 %v4739_v46, %v4755_v32 }
 0x52d   :  { %v4760_v52 = vadd.s32 127, %v4759_v3  ;;  %v4920_v31 = vshll.u32 %v16044_v21, %v4905_v48  ;;  %v4921_v25 = vshrl.u32 %v16028_v43, %v4906_v9  ;;  %vm4923_vm5 = vcmp.lt.s32.totalorder %v4904_v11, 1 }
 0x52e   :  { %v5061_v17 = vsub.s32 0, %v12994_v4  ;;  %vm4925_vm6 = vcmp.lt.s32.totalorder %v4904_v11, 3  ;;  %vm4926_vm11 = vcmp.lt.s32.totalorder %v4904_v11, 4  ;;  %v4931_v62 = vsel %vm4923_vm5, %v4910_v60, %v4913_v39 }
 0x52f   :  { %v4922_v27 = vor.u32 %v4921_v25, %v4920_v31  ;;  %v4928_v0 = vsel %vm4926_vm11, %v4916_v42, 2102212464  ;;  %v4932_v19 = vsel %vm4926_vm11, %v4919_v22, 920167782  ;;  %v4907_v56 = vshrl.u32 %v16061_v28, %v4906_v9  ;;  %v13014_v31 = vpop.f32.mrb[33].mxu1 }
 0x530   :  { %v7993_v14 = vmin.u32 %v5061_v17, %v12994_v4  ;;  %vm4924_vm12 = vcmp.lt.s32.totalorder %v4904_v11, 2  ;;  %v4933_v46 = vsel %vm4925_vm6, %v4916_v42, %v4932_v19  ;;  %v4761_v48 = vshll.u32 %v4760_v52, 23 }
 0x531   :  { %v4934_v32 = vsel %vm4924_vm12, %v4931_v62, %v4933_v46  ;;  %v4935_v49 = vsel %vm4923_vm5, %v4913_v39, %v4916_v42  ;;  %v4936_v3 = vsel %vm4926_vm11, %v4922_v27, 1326507024  ;;  %v4927_v25 = vsel %vm4923_vm5, %v4907_v56, %v4910_v60 }
 0x532   :  { %v5063_v23 = vclz %v7993_v14  ;;  %v4929_v12 = vsel %vm4925_vm6, %v4913_v39, %v4928_v0  ;;  %v4937_v33 = vsel %vm4925_vm6, %v4919_v22, %v4936_v3  ;;  %v5213_v52 = vadd.s32 1, %v8000_v2 }
 0x533   :  { %v4938_v8 = vsel %vm4924_vm12, %v4935_v49, %v4937_v33  ;;  %v13010_v9 = vmul.u32.u64.low %v12972_v36, %v4934_v32  ;;  %v13011_v63 = vmul.u32.u64.high %v12972_v36, %v4934_v32, %v13010_v9  ;;  %8868 = vcosq.f32 %v12962_v58 }
 0x534   :  { %v7994_v42 = vadd.s32 4294967294, %v5063_v23  ;;  %v13018_v17 = vmul.u32.u64.low %v12972_v36, %v4938_v8  ;;  %v13019_v60 = vmul.u32.u64.high %v12972_v36, %v4938_v8, %v13018_v17  ;;  %v4559_v39 = vxor.u32 2147483648, %v12964_v10 }
 0x535   :  { %v13022_v22 = vor.u32 %v4757_v57, %v4756_v44  ;;  %v5211_v27 = vor.u32 8388608, %v5210_v29  ;;  %vm5214_vm13 = vcmp.gt.s32.totalorder %v5213_v52, 0  ;;  %v13024_v0 = vor.u32 4788187, %v4761_v48 }
 0x536   :  { %vm7995_vm9 = vcmp.lt.s32.totalorder %v7994_v42, 0  ;;  %v4930_v2 = vsel %vm4924_vm12, %v4927_v25, %v4929_v12  ;;  %v5215_v62 = vsel %vm5214_vm13, %v5213_v52, 0  ;;  %v4871_v19 = vxor.u32 2147483648, %v12968_v50 }
 0x537   :  { %v5066_v14 = vsel %vm7995_vm9, 0, %v7994_v42  ;;  %v4949_v56 = vadd.s32 1, %v13011_v63  ;;  %v13029_v46 = vshrl.u32 %v5215_v62, 5  ;;  %v5051_v32 = vadd.s32 %v12921_v45, %v12933_v20 }
 0x538   :  { %v5067_v57 = vsub.s32 32, %v5066_v14  ;;  %v5071_v44 = vsub.s32 4294967266, %v5066_v14  ;;  %v13035_v29 = vadd.f32 %v12772_v38, %v12513_v59  ;;  %v4765_v11 = vcvt.s32.f32 %v13022_v22 }
 0x539   :  { %v4946_v48 = vmul.u32 %v12972_v36, %v4930_v2  ;;  %vm4948_vm5 = vc.u32 %v13019_v60, %v13010_v9  ;;  %v5217_v49 = vand.u32 31, %v5215_v62  ;;  %v4763_v3 = vand.u32 2147483647, %v13024_v0 }
 0x53a   :  { %16537 = vst [vmem:[#allocation74_spill] sm:$0xff] %v13035_v29  ;;  %v5072_v23 = vadd.s32 127, %v5071_v44  ;;  %v4950_v25 = vsel %vm4948_vm5, %v4949_v56, %v13011_v63  ;;  %v13043_v45 = vshll.u32 %v5211_v27, 8  ;;  %v5068_v20 = vshll.u32 %v12994_v4, %v5066_v14 }
 0x53b   :  { %v4951_v12 = vadd.s32 %v4950_v25, %v4946_v48  ;;  %v5218_v59 = vsub.s32 32, %v5217_v49  ;;  %vm5235_vm6 = vcmp.lt.s32.totalorder %v13029_v46, 1  ;;  %v5069_v33 = vshrl.u32 %v5051_v32, %v5067_v57 }
 0x53c   :  { %v5220_v36 = vshll.u32 %v16061_v28, %v5217_v49  ;;  %v5223_v8 = vshll.u32 %v16487_v15, %v5217_v49  ;;  %vm5236_vm11 = vcmp.lt.s32.totalorder %v13029_v46, 2  ;;  %v5073_v52 = vshll.u32 %v5072_v23, 23 }
 0x53d   :  { %v4952_v42 = vadd.s32 536870912, %v4951_v12  ;;  %v5221_v17 = vshrl.u32 %v16487_v15, %v5218_v59  ;;  %v5224_v63 = vshrl.u32 %v16488_v37, %v5218_v59  ;;  %v13052_v22 = vpop.eup %8868  ;;  %v5226_v4 = vshll.u32 %v16488_v37, %v5217_v49 }
 0x53e   :  { %16538 = vst [vmem:[#allocation35_spill] sm:$0xff] %v13052_v22  ;;  %v5227_v27 = vshrl.u32 %v16489_v54, %v5218_v59  ;;  %v5229_v0 = vshll.u32 %v16489_v54, %v5217_v49  ;;  %v5230_v2 = vshrl.u32 %v16044_v21, %v5218_v59  ;;  %vm5237_vm12 = vcmp.lt.s32.totalorder %v13029_v46, 3 }
 0x53f   :  { %v13058_v62 = vshrl.u32 %v4952_v42, 30  ;;  %v5222_v14 = vor.u32 %v5221_v17, %v5220_v36  ;;  %v5225_v56 = vor.u32 %v5224_v63, %v5223_v8  ;;  %vm15849_vm13 = vcmp.lt.s32.totalorder %v12556_v61, 0 }
 0x540   :  { %v5228_v32 = vor.u32 %v5227_v27, %v5226_v4  ;;  %v5231_v57 = vor.u32 %v5230_v2, %v5229_v0  ;;  %v5232_v44 = vshll.u32 %v16044_v21, %v5217_v49  ;;  %v5233_v48 = vshrl.u32 %v16028_v43, %v5218_v59 }
 0x541   :  { %16539 = vst [vmem:[#allocation60_spill] sm:$0xff] %v13058_v62  ;;  %vm15831_vm9 = vcmp.lt.s32.totalorder %v12599_v13, 0  ;;  %v4954_v23 = vshll.u32 %v13058_v62, 30  ;;  %v5219_v25 = vshrl.u32 %v16061_v28, %v5218_v59  ;;  %vm5238_vm5 = vcmp.lt.s32.totalorder %v13029_v46, 4 }
 0x542   :  { %v5243_v36 = vsel %vm5235_vm6, %v5222_v14, %v5225_v56  ;;  %v5074_v8 = vor.u32 4788187, %v5073_v52  ;;  %v5234_v42 = vor.u32 %v5233_v48, %v5232_v44  ;;  %v5240_v17 = vsel %vm5238_vm5, %v5228_v32, 2102212464 }
 0x543   :  { %v5244_v63 = vsel %vm5238_vm5, %v5231_v57, 920167782  ;;  %v16540_v4 = vand.u32 2147483647, %v12556_v61  ;;  %v16541_v49 = vmov 0  ;;  %v5070_v27 = vor.u32 %v5069_v33, %v5068_v20 }
 0x544   :  { %v13076_v0 = vsub.s32 %v4951_v12, %v4954_v23  ;;  %v5245_v59 = vsel %vm5237_vm12, %v5228_v32, %v5244_v63  ;;  %v5247_v2 = vsel %vm5235_vm6, %v5225_v56, %v5228_v32  ;;  %v16544_v52 = vand.u32 2147483647, %v12599_v13 }
 0x545   :  { %vm13072_vm4 = vcmp.le.f32.partialorder %v16540_v4, 0.7853982  ;;  %v16545_v44 = vmov 0  ;;  %v5239_v48 = vsel %vm5235_vm6, %v5219_v25, %v5222_v14  ;;  %v5241_v20 = vsel %vm5237_vm12, %v5225_v56, %v5240_v17 }
 0x546   :  { %v16542_v49 = vsel %vm13072_vm4, 4294967295, %v16541_v49  ;;  %vm13084_vm14 = vcmp.le.f32.partialorder %v16544_v52, 0.7853982  ;;  %v5246_v12 = vsel %vm5236_vm11, %v5243_v36, %v5245_v59  ;;  %v5248_v33 = vsel %vm5238_vm5, %v5234_v42, 1326507024 }
 0x547   :  { %16543 = vst [vmem:[#allocation69_spill] sm:$0xff] %v16542_v49  ;;  %v16546_v44 = vsel %vm13084_vm14, 4294967295, %v16545_v44  ;;  %vm15848_vm15 = vcmp.lt.s32.totalorder %v12693_v5, 0  ;;  %v4957_v32 = vsub.s32 0, %v13076_v0  ;;  %v5249_v23 = vsel %vm5237_vm12, %v5231_v57, %v5248_v33  ;;  %v13123_v33 = vpop.f32.mrb[34].mxu1 }
 0x548   :  { %16547 = vst [vmem:[#allocation78_spill] sm:$0xff] %v16546_v44  ;;  %v13099_v63 = vmul.u32.u64.low %v13043_v45, %v5246_v12  ;;  %v13100_v4 = vmul.u32.u64.high %v13043_v45, %v5246_v12, %v13099_v63  ;;  %v4766_v52 = vmul.f32 %v4765_v11, %v4763_v3  ;;  %v5075_v14 = vand.u32 2147483647, %v5074_v8 }
 0x549   :  { %v5250_v56 = vsel %vm5236_vm11, %v5247_v2, %v5249_v23  ;;  %v5102_v25 = vand.u32 2139095040, %v13035_v29  ;;  %v7989_v36 = vmin.u32 %v4957_v32, %v13076_v0  ;;  %v15833_v59 = vand.u32 2147483647, %v13035_v29 }
 0x54a   :  { %v13107_v42 = vmul.u32.u64.low %v13043_v45, %v5250_v56  ;;  %v13108_v17 = vmul.u32.u64.high %v13043_v45, %v5250_v56, %v13107_v42  ;;  %v16548_v57 = vand.u32 2147483647, %v12693_v5  ;;  %v16549_v12 = vmov 0 }
 0x54b   :  { %v5077_v11 = vcvt.s32.f32 %v5070_v27  ;;  %v5242_v3 = vsel %vm5236_vm11, %v5239_v48, %v5241_v20  ;;  %v5103_v8 = vshrl.u32 %v5102_v25, 23  ;;  %v13121_v2 = vadd.f32 %v12772_v38, %v12608_v18 }
 0x54c   :  { %vm13113_vm6 = vcmp.le.f32.partialorder %v16548_v57, 0.7853982  ;;  %8870 = vsinq.f32 %v12962_v58  ;;  %v4560_v32 = vsel %vm15849_vm13, %v4559_v39, %v12964_v10  ;;  %v4959_v23 = vclz %v7989_v36 }
 0x54d   :  { %v16550_v12 = vsel %vm13113_vm6, 4294967295, %v16549_v12  ;;  %16552 = vst [vmem:[#allocation66_spill] sm:$0xff] %v13121_v2  ;;  %v5261_v27 = vadd.s32 1, %v13100_v4  ;;  %v4872_v18 = vsel %vm15831_vm9, %v4871_v19, %v12968_v50  ;;  %v4767_v46 = vxor.u32 2147483648, %v4766_v52 }
 0x54e   :  { %16551 = vst [vmem:[#allocation67_spill] sm:$0xff] %v16550_v12  ;;  %v5078_v48 = vmul.f32 %v5077_v11, %v5075_v14  ;;  %v7996_v20 = vadd.s32 4294967169, %v5103_v8  ;;  %v7990_v56 = vadd.s32 4294967294, %v4959_v23  ;;  %v5258_v58 = vmul.u32 %v13043_v45, %v5242_v3 }
 0x54f   :  { %vm5260_vm11 = vc.u32 %v13108_v17, %v13099_v63  ;;  %v5106_v10 = vand.u32 8388607, %v15833_v59  ;;  %v4563_v39 = vsel %vm13072_vm4, %v12556_v61, %v4560_v32  ;;  %v5414_v50 = vand.u32 2139095040, %v13121_v2 }
 0x550   :  { %v5262_v25 = vsel %vm5260_vm11, %v5261_v27, %v13100_v4  ;;  %v5109_v36 = vadd.s32 1, %v7996_v20  ;;  %v13149_v19 = vsel %vm13084_vm14, %v12599_v13, %v4872_v18  ;;  %vm15847_vm12 = vcmp.lt.s32.totalorder %v12776_v53, 0 }
 0x551   :  { %vm7991_vm5 = vcmp.lt.s32.totalorder %v7990_v56, 0  ;;  %v5263_v45 = vadd.s32 %v5262_v25, %v5258_v58  ;;  %v4768_v14 = vsel %vm15848_vm15, %v4767_v46, %v4766_v52  ;;  %v5079_v42 = vxor.u32 2147483648, %v5078_v48 }
 0x552   :  { %v13154_v57 = vsel %vm7991_vm5, 0, %v7990_v56  ;;  %vm5110_vm9 = vcmp.gt.s32.totalorder %v5109_v36, 0  ;;  %8872 = vcosq.f32 %v4563_v39  ;;  %v5107_v11 = vor.u32 8388608, %v5106_v10 }
 0x553   :  { %v5264_v4 = vadd.s32 536870912, %v5263_v45  ;;  %v15832_v3 = vand.u32 2147483647, %v13121_v2  ;;  %8874 = vsinq.f32 %v4563_v39  ;;  %v4967_v8 = vsub.s32 4294967266, %v13154_v57 }
 0x554   :  { %v5111_v32 = vsel %vm5110_vm9, %v5109_v36, 0  ;;  %v5415_v23 = vshrl.u32 %v5414_v50, 23  ;;  %8876 = vcosq.f32 %v13149_v19  ;;  %v13162_v52 = vsel %vm13113_vm6, %v12693_v5, %v4768_v14 }
 0x555   :  { %v4947_v27 = vadd.s32 %v13010_v9, %v13019_v60  ;;  %v13166_v18 = vshrl.u32 %v5264_v4, 30  ;;  %v13170_v46 = vsel %vm15847_vm12, %v5079_v42, %v5078_v48  ;;  %v13173_v20 = vadd.s32 %v13099_v63, %v13108_v17 }
 0x556   :  { %v5113_v56 = vand.u32 31, %v5111_v32  ;;  %v13177_v58 = vadd.f32 %v12772_v38, %v12658_v51  ;;  %v13179_v10 = vpop.eup %8870  ;;  %v4963_v39 = vsub.s32 32, %v13154_v57  ;;  %v13183_v60 = vshll.u32 %v5107_v11, 8 }
 0x557   :  { %16553 = vst [vmem:[#allocation54_spill] sm:$0xff] %v13166_v18  ;;  %16554 = vst [vmem:[#allocation95_spill] sm:$0xff] %v13179_v10  ;;  %v5266_v9 = vshll.u32 %v13166_v18, 30  ;;  %v13187_v48 = vand.u32 8388607, %v15832_v3  ;;  %v4964_v63 = vshll.u32 %v13076_v0, %v13154_v57  ;;  %v4968_v17 = vadd.s32 127, %v4967_v8 }
 0x558   :  { %v5114_v25 = vsub.s32 32, %v5113_v56  ;;  %v8008_v36 = vadd.s32 4294967169, %v5415_v23  ;;  %v5112_v38 = vshrl.u32 %v5111_v32, 5  ;;  %v5116_v50 = vshll.u32 %v16061_v28, %v5113_v56 }
 0x559   :  { %v13191_v51 = vsub.s32 %v5263_v45, %v5266_v9  ;;  %v5119_v14 = vshll.u32 %v16487_v15, %v5113_v56  ;;  %v5122_v11 = vshll.u32 %v16488_v37, %v5113_v56  ;;  %v5125_v57 = vshll.u32 %v16489_v54, %v5113_v56 }
 0x55a   :  { %v5117_v42 = vshrl.u32 %v16487_v15, %v5114_v25  ;;  %v5120_v4 = vshrl.u32 %v16488_v37, %v5114_v25  ;;  %v5123_v3 = vshrl.u32 %v16489_v54, %v5114_v25  ;;  %v5126_v45 = vshrl.u32 %v16044_v21, %v5114_v25 }
 0x55b   :  { %v5269_v0 = vsub.s32 0, %v13191_v51  ;;  %v5128_v8 = vshll.u32 %v16044_v21, %v5113_v56  ;;  %v5129_v59 = vshrl.u32 %v16028_v43, %v5114_v25  ;;  %v4965_v18 = vshrl.u32 %v4947_v27, %v4963_v39 }
 0x55c   :  { %v5118_v32 = vor.u32 %v5117_v42, %v5116_v50  ;;  %v5121_v23 = vor.u32 %v5120_v4, %v5119_v14  ;;  %v5124_v9 = vor.u32 %v5123_v3, %v5122_v11  ;;  %v13204_v35 = vpop.eup %8872  ;;  %v5127_v44 = vor.u32 %v5126_v45, %v5125_v57 }
 0x55d   :  { %16555 = vst [vmem:[#allocation80_spill] sm:$0xff] %v13204_v35  ;;  %v8001_v62 = vmin.u32 %v5269_v0, %v13191_v51  ;;  %v5421_v13 = vadd.s32 1, %v8008_v36  ;;  %v13207_v12 = vpop.eup %8874  ;;  %v4969_v5 = vshll.u32 %v4968_v17, 23  ;;  %v5130_v22 = vor.u32 %v5129_v59, %v5128_v8  ;;  %v13215_v17 = vpop.f32.mrb[35].mxu1 }
 0x55e   :  { %16556 = vst [vmem:[#allocation90_spill] sm:$0xff] %v13207_v12  ;;  %vm5131_vm9 = vcmp.lt.s32.totalorder %v5112_v38, 1  ;;  %vm5134_vm11 = vcmp.lt.s32.totalorder %v5112_v38, 4  ;;  %v13209_v10 = vpop.eup %8876  ;;  %v5115_v3 = vshrl.u32 %v16061_v28, %v5114_v25  ;;  %vm5133_vm5 = vcmp.lt.s32.totalorder %v5112_v38, 3 }
 0x55f   :  { %16557 = vst [vmem:[#allocation86_spill] sm:$0xff] %v13209_v10  ;;  %v5271_v56 = vclz %v8001_v62  ;;  %v5136_v50 = vsel %vm5134_vm11, %v5124_v9, 2102212464  ;;  %v5139_v14 = vsel %vm5131_vm9, %v5118_v32, %v5121_v23  ;;  %v5140_v27 = vsel %vm5134_vm11, %v5127_v44, 920167782 }
 0x560   :  { %v5143_v39 = vsel %vm5131_vm9, %v5121_v23, %v5124_v9  ;;  %v5144_v42 = vsel %vm5134_vm11, %v5130_v22, 1326507024  ;;  %v4966_v36 = vor.u32 %v4965_v18, %v4964_v63  ;;  %v5141_v11 = vsel %vm5133_vm5, %v5124_v9, %v5140_v27 }
 0x561   :  { %v8002_v4 = vadd.s32 4294967294, %v5271_v56  ;;  %v5419_v59 = vor.u32 8388608, %v13187_v48  ;;  %vm5132_vm12 = vcmp.lt.s32.totalorder %v5112_v38, 2  ;;  %v5135_v62 = vsel %vm5131_vm9, %v5115_v3, %v5118_v32 }
 0x562   :  { %v5137_v0 = vsel %vm5133_vm5, %v5121_v23, %v5136_v50  ;;  %v5145_v25 = vsel %vm5133_vm5, %v5127_v44, %v5144_v42  ;;  %v5142_v57 = vsel %vm5132_vm12, %v5139_v14, %v5141_v11  ;;  %vm5422_vm13 = vcmp.gt.s32.totalorder %v5421_v13, 0 }
 0x563   :  { %vm8003_vm15 = vcmp.lt.s32.totalorder %v8002_v4, 0  ;;  %v5146_v45 = vsel %vm5132_vm12, %v5143_v39, %v5145_v25  ;;  %v4970_v8 = vor.u32 4788187, %v4969_v5  ;;  %v5138_v48 = vsel %vm5132_vm12, %v5135_v62, %v5137_v0 }
 0x564   :  { %v5274_v10 = vsel %vm8003_vm15, 0, %v8002_v4  ;;  %v13219_v22 = vmul.u32.u64.low %v13183_v60, %v5146_v45  ;;  %v13220_v18 = vmul.u32.u64.high %v13183_v60, %v5146_v45, %v13219_v22  ;;  %v5423_v56 = vsel %vm5422_vm13, %v5421_v13, 0 }
 0x565   :  { %v5275_v63 = vsub.s32 32, %v5274_v10  ;;  %v5279_v9 = vsub.s32 4294967266, %v5274_v10  ;;  %v13223_v27 = vmul.u32.u64.low %v13183_v60, %v5142_v57  ;;  %v13224_v38 = vmul.u32.u64.high %v13183_v60, %v5142_v57, %v13223_v27 }
 0x566   :  { %v5425_v44 = vand.u32 31, %v5423_v56  ;;  %v4973_v23 = vcvt.s32.f32 %v4966_v36  ;;  %v13228_v5 = vshll.u32 %v5419_v59, 8  ;;  %v5310_v50 = vand.u32 2139095040, %v13177_v58 }
 0x567   :  { %v5280_v3 = vadd.s32 127, %v5279_v9  ;;  %v4971_v14 = vand.u32 2147483647, %v4970_v8  ;;  %v5276_v39 = vshll.u32 %v13191_v51, %v5274_v10  ;;  %v5154_v42 = vmul.u32 %v13183_v60, %v5138_v48 }
 0x568   :  { %v5426_v13 = vsub.s32 32, %v5425_v44  ;;  %v5277_v4 = vshrl.u32 %v13173_v20, %v5275_v63  ;;  %vm5156_vm15 = vc.u32 %v13220_v18, %v13223_v27  ;;  %v5424_v11 = vshrl.u32 %v5423_v56, 5 }
 0x569   :  { %v5428_v62 = vshll.u32 %v16061_v28, %v5425_v44  ;;  %v5157_v36 = vadd.s32 1, %v13224_v38  ;;  %v5431_v0 = vshll.u32 %v16487_v15, %v5425_v44  ;;  %v5281_v10 = vshll.u32 %v5280_v3, 23 }
 0x56a   :  { %v5429_v59 = vshrl.u32 %v16487_v15, %v5426_v13  ;;  %v5432_v25 = vshrl.u32 %v16488_v37, %v5426_v13  ;;  %v5434_v60 = vshll.u32 %v16488_v37, %v5425_v44  ;;  %v5435_v51 = vshrl.u32 %v16489_v54, %v5426_v13 }
 0x56b   :  { %v5437_v20 = vshll.u32 %v16489_v54, %v5425_v44  ;;  %v5158_v57 = vsel %vm5156_vm15, %v5157_v36, %v13224_v38  ;;  %v5438_v22 = vshrl.u32 %v16044_v21, %v5426_v13  ;;  %v4974_v63 = vmul.f32 %v4973_v23, %v4971_v14 }
 0x56c   :  { %v5430_v45 = vor.u32 %v5429_v59, %v5428_v62  ;;  %v5433_v8 = vor.u32 %v5432_v25, %v5431_v0  ;;  %v5159_v9 = vadd.s32 %v5158_v57, %v5154_v42  ;;  %v5436_v48 = vor.u32 %v5435_v51, %v5434_v60 }
 0x56d   :  { %v5311_v56 = vshrl.u32 %v5310_v50, 23  ;;  %v5278_v32 = vor.u32 %v5277_v4, %v5276_v39  ;;  %v5439_v35 = vor.u32 %v5438_v22, %v5437_v20  ;;  %v5440_v3 = vshll.u32 %v16044_v21, %v5425_v44 }
 0x56e   :  { %v5441_v49 = vshrl.u32 %v16028_v43, %v5426_v13  ;;  %v16558_v12 = vand.u32 2147483647, %v12776_v53  ;;  %v16559_v61 = vmov 0  ;;  %v5160_v38 = vadd.s32 536870912, %v5159_v9 }
 0x56f   :  { %v5427_v62 = vshrl.u32 %v16061_v28, %v5426_v13  ;;  %vm5443_vm12 = vcmp.lt.s32.totalorder %v5424_v11, 1  ;;  %vm5446_vm9 = vcmp.lt.s32.totalorder %v5424_v11, 4  ;;  %v5282_v23 = vor.u32 4788187, %v5281_v10 }
 0x570   :  { %vm13250_vm13 = vcmp.le.f32.partialorder %v16558_v12, 0.7853982  ;;  %v5442_v14 = vor.u32 %v5441_v49, %v5440_v3  ;;  %v5448_v50 = vsel %vm5446_vm9, %v5436_v48, 2102212464  ;;  %v5451_v39 = vsel %vm5443_vm12, %v5430_v45, %v5433_v8 }
 0x571   :  { %v16560_v61 = vsel %vm13250_vm13, 4294967295, %v16559_v61  ;;  %v13255_v42 = vshrl.u32 %v5160_v38, 30  ;;  %vm5444_vm11 = vcmp.lt.s32.totalorder %v5424_v11, 2  ;;  %vm5445_vm5 = vcmp.lt.s32.totalorder %v5424_v11, 3 }
 0x572   :  { %16561 = vst [vmem:[#allocation84_spill] sm:$0xff] %v16560_v61  ;;  %v5452_v44 = vsel %vm5446_vm9, %v5439_v35, 920167782  ;;  %v5447_v4 = vsel %vm5443_vm12, %v5427_v62, %v5430_v45  ;;  %v5455_v12 = vsel %vm5443_vm12, %v5433_v8, %v5436_v48  ;;  %v5456_v59 = vsel %vm5446_vm9, %v5442_v14, 1326507024 }
 0x573   :  { %16562 = vst [vmem:[#allocation75_spill] sm:$0xff] %v13255_v42  ;;  %v5453_v36 = vsel %vm5445_vm5, %v5436_v48, %v5452_v44  ;;  %v16563_v0 = vand.u32 2147483647, %v12866_v1  ;;  %v16564_v25 = vmov 0  ;;  %v5162_v13 = vshll.u32 %v13255_v42, 30 }
 0x574   :  { %v5449_v49 = vsel %vm5445_vm5, %v5433_v8, %v5448_v50  ;;  %v5454_v10 = vsel %vm5444_vm11, %v5451_v39, %v5453_v36  ;;  %v5457_v60 = vsel %vm5445_vm5, %v5439_v35, %v5456_v59  ;;  %v4975_v51 = vxor.u32 2147483648, %v4974_v63 }
 0x575   :  { %vm13259_vm15 = vcmp.le.f32.partialorder %v16563_v0, 0.7853982  ;;  %v5458_v20 = vsel %vm5444_vm11, %v5455_v12, %v5457_v60  ;;  %v13267_v57 = vmul.u32.u64.low %v13228_v5, %v5454_v10  ;;  %v13268_v45 = vmul.u32.u64.high %v13228_v5, %v5454_v10, %v13267_v57 }
 0x576   :  { %v16565_v25 = vsel %vm13259_vm15, 4294967295, %v16564_v25  ;;  %v5283_v22 = vand.u32 2147483647, %v5282_v23  ;;  %v13271_v48 = vsub.s32 %v5159_v9, %v5162_v13  ;;  %8878 = vsinq.f32 %v13149_v19  ;;  %v13284_v23 = vpop.f32.mrb[36].mxu1 }
 0x577   :  { %16566 = vst [vmem:[#allocation109_spill] sm:$0xff] %v16565_v25  ;;  %v13274_v3 = vmul.u32.u64.low %v13228_v5, %v5458_v20  ;;  %v13275_v38 = vmul.u32.u64.high %v13228_v5, %v5458_v20, %v13274_v3  ;;  %v5450_v8 = vsel %vm5444_vm11, %v5447_v4, %v5449_v49  ;;  %v8004_v35 = vadd.s32 4294967169, %v5311_v56 }
 0x578   :  { %v16567_v62 = vand.u32 2147483647, %v13177_v58  ;;  %8880 = vcosq.f32 %v13162_v52  ;;  %vm15867_vm12 = vcmp.lt.s32.totalorder %v12866_v1, 0  ;;  %v5285_v50 = vcvt.s32.f32 %v5278_v32 }
 0x579   :  { %v5165_v9 = vsub.s32 0, %v13271_v48  ;;  %v13290_v19 = vsel %vm13250_vm13, %v12776_v53, %v13170_v46  ;;  %v4976_v11 = vsel %vm15867_vm12, %v4975_v51, %v4974_v63  ;;  %v5469_v56 = vadd.s32 1, %v13268_v45  ;;  %v13305_v46 = vld [vmem:[%s15544_s4] ss:$0 sm:$0xff] }
 0x57a   :  { %v5314_v14 = vand.u32 8388607, %v16567_v62  ;;  %v5317_v39 = vadd.s32 1, %v8004_v35  ;;  %v13295_v44 = vmul.f32 %v5285_v50, %v5283_v22  ;;  %v5466_v4 = vmul.u32 %v13228_v5, %v5450_v8 }
 0x57b   :  { %v7997_v32 = vmin.u32 %v5165_v9, %v13271_v48  ;;  %vm5468_vm9 = vc.u32 %v13275_v38, %v13267_v57  ;;  %v13309_v63 = vadd.f32 %v13305_v46, %v12766_v6  ;;  %8882 = vsinq.f32 %v13162_v52 }
 0x57c   :  { %v5470_v36 = vsel %vm5468_vm9, %v5469_v56, %v13268_v45  ;;  %v5315_v12 = vor.u32 8388608, %v5314_v14  ;;  %vm5318_vm11 = vcmp.gt.s32.totalorder %v5317_v39, 0  ;;  %8884 = vcosq.f32 %v13290_v19 }
 0x57d   :  { %16568 = vst [vmem:[#allocation94_spill] sm:$0xff] %v13309_v63  ;;  %v5167_v59 = vclz %v7997_v32  ;;  %v5471_v5 = vadd.s32 %v5470_v36, %v5466_v4  ;;  %v5319_v0 = vsel %vm5318_vm11, %v5317_v39, 0  ;;  %v13316_v13 = vsel %vm13259_vm15, %v12866_v1, %v4976_v11 }
 0x57e   :  { %v5155_v49 = vadd.s32 %v13223_v27, %v13220_v18  ;;  %v5321_v10 = vand.u32 31, %v5319_v0  ;;  %v13323_v52 = vadd.f32 %v13305_v46, %v12854_v47  ;;  %v13325_v20 = vshrl.u32 %v5319_v0, 5 }
 0x57f   :  { %v7998_v6 = vadd.s32 4294967294, %v5167_v59  ;;  %v5472_v51 = vadd.s32 536870912, %v5471_v5  ;;  %v13327_v22 = vshll.u32 %v5315_v12, 8  ;;  %v5622_v3 = vand.u32 2139095040, %v13309_v63 }
 0x580   :  { %16569 = vst [vmem:[#allocation102_spill] sm:$0xff] %v13323_v52  ;;  %v5322_v45 = vsub.s32 32, %v5321_v10  ;;  %v5324_v18 = vshll.u32 %v16061_v28, %v5321_v10  ;;  %v5327_v27 = vshll.u32 %v16487_v15, %v5321_v10  ;;  %v13334_v35 = vpop.eup %8878  ;;  %v5330_v50 = vshll.u32 %v16488_v37, %v5321_v10 }
 0x581   :  { %vm7999_vm5 = vcmp.lt.s32.totalorder %v7998_v6, 0  ;;  %v13330_v8 = vshrl.u32 %v5472_v51, 30  ;;  %16571 = vst [vmem:[#allocation103_spill] sm:$0xff] %v13334_v35  ;;  %v5333_v39 = vshll.u32 %v16489_v54, %v5321_v10  ;;  %v5336_v32 = vshll.u32 %v16044_v21, %v5321_v10 }
 0x582   :  { %v5170_v62 = vsel %vm7999_vm5, 0, %v7998_v6  ;;  %v5325_v47 = vshrl.u32 %v16487_v15, %v5322_v45  ;;  %v5328_v14 = vshrl.u32 %v16488_v37, %v5322_v45  ;;  %v13339_v9 = vpop.eup %8880  ;;  %v5331_v12 = vshrl.u32 %v16489_v54, %v5322_v45 }
 0x583   :  { %16570 = vst [vmem:[#allocation101_spill] sm:$0xff] %v13330_v8  ;;  %16572 = vst [vmem:[#allocation88_spill] sm:$0xff] %v13339_v9  ;;  %v5175_v11 = vsub.s32 4294967266, %v5170_v62  ;;  %v5474_v56 = vshll.u32 %v13330_v8, 30  ;;  %v5171_v4 = vsub.s32 32, %v5170_v62  ;;  %v5334_v59 = vshrl.u32 %v16044_v21, %v5322_v45 }
 0x584   :  { %v5326_v36 = vor.u32 %v5325_v47, %v5324_v18  ;;  %v5329_v51 = vor.u32 %v5328_v14, %v5327_v27  ;;  %v5337_v60 = vshrl.u32 %v16028_v43, %v5322_v45  ;;  %v5332_v42 = vor.u32 %v5331_v12, %v5330_v50 }
 0x585   :  { %v5176_v0 = vadd.s32 127, %v5175_v11  ;;  %v13346_v6 = vsub.s32 %v5471_v5, %v5474_v56  ;;  %v5335_v61 = vor.u32 %v5334_v59, %v5333_v39  ;;  %v15869_v8 = vand.u32 2147483647, %v13309_v63  ;;  %v13350_v25 = vpop.eup %8882 }
 0x586   :  { %v5623_v53 = vshrl.u32 %v5622_v3, 23  ;;  %16573 = vst [vmem:[#allocation112_spill] sm:$0xff] %v13350_v25  ;;  %v5323_v47 = vshrl.u32 %v16061_v28, %v5322_v45  ;;  %v5338_v1 = vor.u32 %v5337_v60, %v5336_v32  ;;  %v13354_v35 = vpop.eup %8884  ;;  %v5172_v5 = vshll.u32 %v13271_v48, %v5170_v62 }
 0x587   :  { %v5177_v10 = vshll.u32 %v5176_v0, 23  ;;  %v5477_v18 = vsub.s32 0, %v13346_v6  ;;  %16574 = vst [vmem:[#allocation116_spill] sm:$0xff] %v13354_v35  ;;  %v5173_v27 = vshrl.u32 %v5155_v49, %v5171_v4  ;;  %vm5339_vm9 = vcmp.lt.s32.totalorder %v13325_v20, 1 }
 0x588   :  { %vm5342_vm11 = vcmp.lt.s32.totalorder %v13325_v20, 4  ;;  %vm5340_vm5 = vcmp.lt.s32.totalorder %v13325_v20, 2  ;;  %v5347_v50 = vsel %vm5339_vm9, %v5326_v36, %v5329_v51  ;;  %vm5341_vm12 = vcmp.lt.s32.totalorder %v13325_v20, 3 }
 0x589   :  { %v8009_v14 = vmin.u32 %v5477_v18, %v13346_v6  ;;  %v5344_v3 = vsel %vm5342_vm11, %v5332_v42, 2102212464  ;;  %v5348_v11 = vsel %vm5342_vm11, %v5335_v61, 920167782  ;;  %v5351_v45 = vsel %vm5339_vm9, %v5329_v51, %v5332_v42 }
 0x58a   :  { %v5352_v60 = vsel %vm5342_vm11, %v5338_v1, 1326507024  ;;  %v5178_v56 = vor.u32 4788187, %v5177_v10  ;;  %v5343_v32 = vsel %vm5339_vm9, %v5323_v47, %v5326_v36  ;;  %v5349_v48 = vsel %vm5341_vm12, %v5332_v42, %v5348_v11 }
 0x58b   :  { %v5479_v39 = vclz %v8009_v14  ;;  %v5345_v49 = vsel %vm5341_vm12, %v5329_v51, %v5344_v3  ;;  %v5350_v62 = vsel %vm5340_vm5, %v5347_v50, %v5349_v48  ;;  %v5353_v4 = vsel %vm5341_vm12, %v5335_v61, %v5352_v60  ;;  %v13377_v51 = vpop.f32.mrb[37].mxu1 }
 0x58c   :  { %v8016_v12 = vadd.s32 4294967169, %v5623_v53  ;;  %v5174_v59 = vor.u32 %v5173_v27, %v5172_v5  ;;  %v5354_v18 = vsel %vm5340_vm5, %v5351_v45, %v5353_v4  ;;  %v5626_v35 = vand.u32 8388607, %v15869_v8 }
 0x58d   :  { %v8010_v0 = vadd.s32 4294967294, %v5479_v39  ;;  %v13369_v1 = vmul.u32.u64.low %v13327_v22, %v5354_v18  ;;  %v13370_v10 = vmul.u32.u64.high %v13327_v22, %v5354_v18, %v13369_v1  ;;  %v5179_v61 = vand.u32 2147483647, %v5178_v56 }
 0x58e   :  { %v13373_v42 = vmul.u32.u64.low %v13327_v22, %v5350_v62  ;;  %v13374_v36 = vmul.u32.u64.high %v13327_v22, %v5350_v62, %v13373_v42  ;;  %v5346_v53 = vsel %vm5340_vm5, %v5343_v32, %v5345_v49  ;;  %v5629_v47 = vadd.s32 1, %v8016_v12 }
 0x58f   :  { %vm8011_vm12 = vcmp.lt.s32.totalorder %v8010_v0, 0  ;;  %8886 = vsinq.f32 %v13290_v19  ;;  %vm15875_vm9 = vcmp.lt.s32.totalorder %v12942_v7, 0  ;;  %v5181_v27 = vcvt.s32.f32 %v5174_v59 }
 0x590   :  { %v13382_v5 = vsel %vm8011_vm12, 0, %v8010_v0  ;;  %8888 = vcosq.f32 %v13316_v13  ;;  %v16575_v3 = vxor.u32 2147483648, %v13295_v44  ;;  %v5362_v20 = vmul.u32 %v13327_v22, %v5346_v53 }
 0x591   :  { %v5487_v14 = vsub.s32 4294967266, %v13382_v5  ;;  %vm5364_vm11 = vc.u32 %v13370_v10, %v13373_v42  ;;  %v5365_v19 = vadd.s32 1, %v13374_v36  ;;  %v13396_v11 = vmul.f32 %v5181_v27, %v5179_v61 }
 0x592   :  { %v5288_v50 = vsel %vm15875_vm9, %v16575_v3, %v13295_v44  ;;  %v5627_v45 = vor.u32 8388608, %v5626_v35  ;;  %vm5630_vm5 = vcmp.gt.s32.totalorder %v5629_v47, 0  ;;  %v5518_v60 = vand.u32 2139095040, %v13323_v52 }
 0x593   :  { %v5483_v56 = vsub.s32 32, %v13382_v5  ;;  %v5488_v39 = vadd.s32 127, %v5487_v14  ;;  %v5366_v32 = vsel %vm5364_vm11, %v5365_v19, %v13374_v36  ;;  %v5631_v48 = vsel %vm5630_vm5, %v5629_v47, 0 }
 0x594   :  { %8890 = vsinq.f32 %v13316_v13  ;;  %v16576_v44 = vand.u32 2147483647, %v12942_v7  ;;  %v16577_v22 = vmov 0  ;;  %v5367_v49 = vadd.s32 %v5366_v32, %v5362_v20 }
 0x595   :  { %v5467_v62 = vadd.s32 %v13267_v57, %v13275_v38  ;;  %v5633_v4 = vand.u32 31, %v5631_v48  ;;  %v13417_v12 = vadd.f32 %v13305_v46, %v12944_v55  ;;  %v5183_v13 = vxor.u32 2147483648, %v13396_v11 }
 0x596   :  { %vm13404_vm12 = vcmp.le.f32.partialorder %v16576_v44, 0.7853982  ;;  %v5368_v59 = vadd.s32 536870912, %v5367_v49  ;;  %v13420_v0 = vshll.u32 %v5627_v45, 8  ;;  %v15881_v18 = vand.u32 2147483647, %v13323_v52 }
 0x597   :  { %v16578_v22 = vsel %vm13404_vm12, 4294967295, %v16577_v22  ;;  %v13411_v35 = vsel %vm13404_vm12, %v12942_v7, %v5288_v50  ;;  %16580 = vst [vmem:[#allocation117_spill] sm:$0xff] %v13417_v12  ;;  %v5485_v1 = vshrl.u32 %v5467_v62, %v5483_v56  ;;  %v5489_v36 = vshll.u32 %v5488_v39, 23 }
 0x598   :  { %16579 = vst [vmem:[#allocation115_spill] sm:$0xff] %v16578_v22  ;;  %v5634_v61 = vsub.s32 32, %v5633_v4  ;;  %v5519_v53 = vshrl.u32 %v5518_v60, 23  ;;  %v13423_v47 = vshrl.u32 %v5368_v59, 30  ;;  %v13425_v27 = vshrl.u32 %v5631_v48, 5 }
 0x599   :  { %v5636_v57 = vshll.u32 %v16061_v28, %v5633_v4  ;;  %v5639_v55 = vshll.u32 %v16487_v15, %v5633_v4  ;;  %v13429_v38 = vpop.eup %8886  ;;  %v5642_v50 = vshll.u32 %v16488_v37, %v5633_v4  ;;  %v5645_v60 = vshll.u32 %v16489_v54, %v5633_v4 }
 0x59a   :  { %16581 = vst [vmem:[#allocation7_spill] sm:$0xff] %v13423_v47  ;;  %16582 = vst [vmem:[#allocation3_spill] sm:$0xff] %v13429_v38  ;;  %v5637_v14 = vshrl.u32 %v16487_v15, %v5634_v61  ;;  %v5640_v3 = vshrl.u32 %v16488_v37, %v5634_v61  ;;  %v5643_v20 = vshrl.u32 %v16489_v54, %v5634_v61  ;;  %v13436_v19 = vpop.eup %8888  ;;  %v5370_v45 = vshll.u32 %v13423_v47, 30 }
 0x59b   :  { %16583 = vst [vmem:[#allocation17_spill] sm:$0xff] %v13436_v19  ;;  %v5646_v56 = vshrl.u32 %v16044_v21, %v5634_v61  ;;  %v5649_v39 = vshrl.u32 %v16028_v43, %v5634_v61  ;;  %v5648_v62 = vshll.u32 %v16044_v21, %v5633_v4  ;;  %vm5651_vm5 = vcmp.lt.s32.totalorder %v13425_v27, 1 }
 0x59c   :  { %v5638_v32 = vor.u32 %v5637_v14, %v5636_v57  ;;  %v5641_v48 = vor.u32 %v5640_v3, %v5639_v55  ;;  %v5644_v44 = vor.u32 %v5643_v20, %v5642_v50  ;;  %v13443_v59 = vsub.s32 %v5367_v49, %v5370_v45 }
 0x59d   :  { %v5647_v8 = vor.u32 %v5646_v56, %v5645_v60  ;;  %v5522_v22 = vand.u32 8388607, %v15881_v18  ;;  %v5484_v47 = vshll.u32 %v13346_v6, %v13382_v5  ;;  %v5650_v7 = vor.u32 %v5649_v39, %v5648_v62 }
 0x59e   :  { %vm5654_vm9 = vcmp.lt.s32.totalorder %v13425_v27, 4  ;;  %v5659_v57 = vsel %vm5651_vm5, %v5638_v32, %v5641_v48  ;;  %v13453_v55 = vpop.eup %8890  ;;  %v16585_v49 = vand.u32 2147483647, %v13035_v29  ;;  %v16586_v4 = vmov 0 }
 0x59f   :  { %16584 = vst [vmem:[#allocation26_spill] sm:$0xff] %v13453_v55  ;;  %v5373_v14 = vsub.s32 0, %v13443_v59  ;;  %vm15878_vm8 = vcmp.lt.s32.totalorder %v13425_v27, 3  ;;  %v5660_v6 = vsel %vm5654_vm9, %v5647_v8, 920167782  ;;  %v8012_v5 = vadd.s32 4294967169, %v5519_v53 }
 0x5a0   :  { %vm13457_vm0 = vcmp.le.f32.partialorder %v16585_v49, 0.7853982  ;;  %v5486_v3 = vor.u32 %v5485_v1, %v5484_v47  ;;  %v5490_v50 = vor.u32 4788187, %v5489_v36  ;;  %vm15879_vm11 = vcmp.lt.s32.totalorder %v13425_v27, 2 }
 0x5a1   :  { %v16587_v4 = vsel %vm13457_vm0, 4294967295, %v16586_v4  ;;  %v5661_v20 = vsel %vm15878_vm8, %v5644_v44, %v5660_v6  ;;  %v8005_v45 = vmin.u32 %v5373_v14, %v13443_v59  ;;  %v5656_v60 = vsel %vm5654_vm9, %v5644_v44, 2102212464 }
 0x5a2   :  { %16588 = vst [vmem:[#allocation4_spill] sm:$0xff] %v16587_v4  ;;  %v5662_v56 = vsel %vm15879_vm11, %v5659_v57, %v5661_v20  ;;  %v5663_v39 = vsel %vm5651_vm5, %v5641_v48, %v5644_v44  ;;  %v5635_v53 = vshrl.u32 %v16061_v28, %v5634_v61  ;;  %v5664_v1 = vsel %vm5654_vm9, %v5650_v7, 1326507024  ;;  %v13488_v44 = vpop.f32.mrb[38].mxu1 }
 0x5a3   :  { %v13479_v36 = vmul.u32.u64.low %v13420_v0, %v5662_v56  ;;  %v13480_v47 = vmul.u32.u64.high %v13420_v0, %v5662_v56, %v13479_v36  ;;  %vm16589_vm8 = vcmp.lt.s32.totalorder %v13035_v29, 0  ;;  %v5375_v49 = vclz %v8005_v45 }
 0x5a4   :  { %v5184_v62 = vsel %vm16589_vm8, %v5183_v13, %v13396_v11  ;;  %vm16590_vm11 = vcmp.lt.s32.totalorder %v13425_v27, 3  ;;  %v5525_v14 = vadd.s32 1, %v8012_v5  ;;  %v5491_v61 = vand.u32 2147483647, %v5490_v50 }
 0x5a5   :  { %v5665_v57 = vsel %vm16590_vm11, %v5647_v8, %v5664_v1  ;;  %v5655_v7 = vsel %vm5651_vm5, %v5635_v53, %v5638_v32  ;;  %vm16591_vm9 = vmmov %vm16590_vm11  ;;  %vm16592_vm12 = vcmp.lt.s32.totalorder %v13425_v27, 2  ;;  %v8006_v56 = vadd.s32 4294967294, %v5375_v49 }
 0x5a6   :  { %v5657_v6 = vsel %vm16591_vm9, %v5641_v48, %v5656_v60  ;;  %v5666_v20 = vsel %vm16592_vm12, %v5663_v39, %v5665_v57  ;;  %vm5526_vm8 = vcmp.gt.s32.totalorder %v5525_v14, 0  ;;  %8892 = vcosq.f32 %v13411_v35  ;;  %vm16593_vm5 = vmmov %vm16592_vm12 }
 0x5a7   :  { %v13497_v11 = vmul.u32.u64.low %v13420_v0, %v5666_v20  ;;  %v13498_v13 = vmul.u32.u64.high %v13420_v0, %v5666_v20, %v13497_v11  ;;  %v5493_v8 = vcvt.s32.f32 %v5486_v3  ;;  %v5523_v5 = vor.u32 8388608, %v5522_v22 }
 0x5a8   :  { %v5527_v50 = vsel %vm5526_vm8, %v5525_v14, 0  ;;  %vm8007_vm11 = vcmp.lt.s32.totalorder %v8006_v56, 0  ;;  %v5658_v32 = vsel %vm16593_vm5, %v5655_v7, %v5657_v6  ;;  %v5677_v48 = vadd.s32 1, %v13480_v47 }
 0x5a9   :  { %v5529_v45 = vand.u32 31, %v5527_v50  ;;  %v13507_v60 = vsel %vm13457_vm0, %v13035_v29, %v5184_v62  ;;  %v5363_v39 = vadd.s32 %v13373_v42, %v13370_v10  ;;  %v5378_v53 = vsel %vm8007_vm11, 0, %v8006_v56 }
 0x5aa   :  { %v13513_v22 = vadd.f32 %v13305_v46, %v13014_v31  ;;  %v13515_v3 = vmul.f32 %v5493_v8, %v5491_v61  ;;  %v5379_v27 = vsub.s32 32, %v5378_v53  ;;  %v5383_v1 = vsub.s32 4294967266, %v5378_v53 }
 0x5ab   :  { %v5674_v57 = vmul.u32 %v13420_v0, %v5658_v32  ;;  %vm5676_vm12 = vc.u32 %v13498_v13, %v13479_v36  ;;  %v5530_v62 = vsub.s32 32, %v5529_v45  ;;  %v13521_v14 = vshll.u32 %v5523_v5, 8 }
 0x5ac   :  { %16594 = vst [vmem:[#allocation25_spill] sm:$0xff] %v13513_v22  ;;  %v5384_v10 = vadd.s32 127, %v5383_v1  ;;  %v5678_v42 = vsel %vm5676_vm12, %v5677_v48, %v13480_v47  ;;  %v5528_v7 = vshrl.u32 %v5527_v50, 5  ;;  %v5830_v31 = vand.u32 2139095040, %v13417_v12 }
 0x5ad   :  { %v5679_v61 = vadd.s32 %v5678_v42, %v5674_v57  ;;  %v5532_v6 = vshll.u32 %v16061_v28, %v5529_v45  ;;  %v5533_v20 = vshrl.u32 %v16487_v15, %v5530_v62  ;;  %v5536_v56 = vshrl.u32 %v16488_v37, %v5530_v62 }
 0x5ae   :  { %v5381_v0 = vshrl.u32 %v5363_v39, %v5379_v27  ;;  %v5535_v11 = vshll.u32 %v16487_v15, %v5529_v45  ;;  %v5538_v8 = vshll.u32 %v16488_v37, %v5529_v45  ;;  %v5539_v5 = vshrl.u32 %v16489_v54, %v5530_v62 }
 0x5af   :  { %v5380_v32 = vshll.u32 %v13443_v59, %v5378_v53  ;;  %v5680_v47 = vadd.s32 536870912, %v5679_v61  ;;  %v5541_v50 = vshll.u32 %v16489_v54, %v5529_v45  ;;  %v5542_v48 = vshrl.u32 %v16044_v21, %v5530_v62 }
 0x5b0   :  { %v5385_v1 = vshll.u32 %v5384_v10, 23  ;;  %v5534_v57 = vor.u32 %v5533_v20, %v5532_v6  ;;  %v5537_v42 = vor.u32 %v5536_v56, %v5535_v11  ;;  %v5540_v18 = vor.u32 %v5539_v5, %v5538_v8  ;;  %v13534_v49 = vpop.eup %8892 }
 0x5b1   :  { %16595 = vst [vmem:[#allocation2_spill] sm:$0xff] %v13534_v49  ;;  %v13536_v39 = vshrl.u32 %v5680_v47, 30  ;;  %v5543_v27 = vor.u32 %v5542_v48, %v5541_v50  ;;  %v5544_v4 = vshll.u32 %v16044_v21, %v5529_v45  ;;  %v5545_v29 = vshrl.u32 %v16028_v43, %v5530_v62 }
 0x5b2   :  { %v5382_v38 = vor.u32 %v5381_v0, %v5380_v32  ;;  %v5531_v59 = vshrl.u32 %v16061_v28, %v5530_v62  ;;  %vm5550_vm9 = vcmp.lt.s32.totalorder %v5528_v7, 4  ;;  %v5831_v53 = vshrl.u32 %v5830_v31, 23 }
 0x5b3   :  { %16596 = vst [vmem:[#allocation11_spill] sm:$0xff] %v13536_v39  ;;  %v5682_v19 = vshll.u32 %v13536_v39, 30  ;;  %v5546_v10 = vor.u32 %v5545_v29, %v5544_v4  ;;  %vm5547_vm8 = vcmp.lt.s32.totalorder %v5528_v7, 1  ;;  %v5552_v6 = vsel %vm5550_vm9, %v5540_v18, 2102212464 }
 0x5b4   :  { %v5386_v20 = vor.u32 4788187, %v5385_v1  ;;  %vm5549_vm11 = vcmp.lt.s32.totalorder %v5528_v7, 3  ;;  %v5555_v56 = vsel %vm5547_vm8, %v5534_v57, %v5537_v42  ;;  %v5556_v11 = vsel %vm5550_vm9, %v5543_v27, 920167782 }
 0x5b5   :  { %v13544_v8 = vsub.s32 %v5679_v61, %v5682_v19  ;;  %vm5548_vm5 = vcmp.lt.s32.totalorder %v5528_v7, 2  ;;  %v5557_v45 = vsel %vm5549_vm11, %v5540_v18, %v5556_v11  ;;  %v5559_v0 = vsel %vm5547_vm8, %v5537_v42, %v5540_v18 }
 0x5b6   :  { %v5551_v5 = vsel %vm5547_vm8, %v5531_v59, %v5534_v57  ;;  %v5553_v62 = vsel %vm5549_vm11, %v5537_v42, %v5552_v6  ;;  %v5558_v31 = vsel %vm5548_vm5, %v5555_v56, %v5557_v45  ;;  %v5560_v32 = vsel %vm5550_vm9, %v5546_v10, 1326507024  ;;  %v13557_v57 = vpop.f32.mrb[39].mxu1 }
 0x5b7   :  { %v5685_v29 = vsub.s32 0, %v13544_v8  ;;  %v5561_v4 = vsel %vm5549_vm11, %v5543_v27, %v5560_v32  ;;  %v13550_v47 = vmul.u32.u64.low %v13521_v14, %v5558_v31  ;;  %v13551_v50 = vmul.u32.u64.high %v13521_v14, %v5558_v31, %v13550_v47 }
 0x5b8   :  { %v5387_v48 = vand.u32 2147483647, %v5386_v20  ;;  %v5562_v19 = vsel %vm5548_vm5, %v5559_v0, %v5561_v4  ;;  %v8024_v61 = vadd.s32 4294967169, %v5831_v53  ;;  %v16597_v18 = vand.u32 2147483647, %v13417_v12 }
 0x5b9   :  { %v8017_v42 = vmin.u32 %v5685_v29, %v13544_v8  ;;  %v5554_v59 = vsel %vm5548_vm5, %v5551_v5, %v5553_v62  ;;  %v13562_v27 = vmul.u32.u64.low %v13521_v14, %v5562_v19  ;;  %v13563_v10 = vmul.u32.u64.high %v13521_v14, %v5562_v19, %v13562_v27 }
 0x5ba   :  { %v5834_v1 = vand.u32 8388607, %v16597_v18  ;;  %8894 = vsinq.f32 %v13411_v35  ;;  %v5389_v6 = vcvt.s32.f32 %v5382_v38  ;;  %v5837_v20 = vadd.s32 1, %v8024_v61 }
 0x5bb   :  { %8896 = vcosq.f32 %v13507_v60  ;;  %v5495_v53 = vxor.u32 2147483648, %v13515_v3  ;;  %v5687_v56 = vclz %v8017_v42  ;;  %v5573_v11 = vadd.s32 1, %v13551_v50 }
 0x5bc   :  { %v13569_v45 = vmul.f32 %v5389_v6, %v5387_v48  ;;  %v5570_v7 = vmul.u32 %v13521_v14, %v5554_v59  ;;  %v5835_v0 = vor.u32 8388608, %v5834_v1  ;;  %vm5838_vm12 = vcmp.gt.s32.totalorder %v5837_v20, 0 }
 0x5bd   :  { %v8018_v5 = vadd.s32 4294967294, %v5687_v56  ;;  %vm5572_vm9 = vc.u32 %v13563_v10, %v13550_v47  ;;  %v5839_v35 = vsel %vm5838_vm12, %v5837_v20, 0  ;;  %v5726_v38 = vand.u32 2139095040, %v13513_v22 }
 0x5be   :  { %8898 = vsinq.f32 %v13507_v60  ;;  %vm15892_vm8 = vcmp.lt.s32.totalorder %v13121_v2, 0  ;;  %v5574_v62 = vsel %vm5572_vm9, %v5573_v11, %v13551_v50  ;;  %v5841_v31 = vand.u32 31, %v5839_v35 }
 0x5bf   :  { %v13581_v14 = vsel %vm15892_vm8, %v5495_v53, %v13515_v3  ;;  %vm8019_vm11 = vcmp.lt.s32.totalorder %v8018_v5, 0  ;;  %v5575_v32 = vadd.s32 %v5574_v62, %v5570_v7  ;;  %v5675_v48 = vadd.s32 %v13479_v36, %v13498_v13 }
 0x5c0   :  { %v5690_v60 = vsel %vm8019_vm11, 0, %v8018_v5  ;;  %v5842_v19 = vsub.s32 32, %v5841_v31  ;;  %v13587_v50 = vshll.u32 %v5835_v0, 8  ;;  %v5727_v1 = vshrl.u32 %v5726_v38, 23 }
 0x5c1   :  { %v5695_v61 = vsub.s32 4294967266, %v5690_v60  ;;  %v5576_v18 = vadd.s32 536870912, %v5575_v32  ;;  %v5840_v42 = vshrl.u32 %v5839_v35, 5  ;;  %v5844_v3 = vshll.u32 %v16061_v28, %v5841_v31 }
 0x5c2   :  { %v5845_v59 = vshrl.u32 %v16487_v15, %v5842_v19  ;;  %v5848_v27 = vshrl.u32 %v16488_v37, %v5842_v19  ;;  %v5847_v20 = vshll.u32 %v16487_v15, %v5841_v31  ;;  %v5850_v36 = vshll.u32 %v16488_v37, %v5841_v31 }
 0x5c3   :  { %v13592_v6 = vshrl.u32 %v5576_v18, 30  ;;  %v5851_v13 = vshrl.u32 %v16489_v54, %v5842_v19  ;;  %v5691_v56 = vsub.s32 32, %v5690_v60  ;;  %v5696_v11 = vadd.s32 127, %v5695_v61 }
 0x5c4   :  { %v13597_v53 = vpop.eup %8894  ;;  %v5853_v7 = vshll.u32 %v16489_v54, %v5841_v31  ;;  %v5854_v0 = vshrl.u32 %v16044_v21, %v5842_v19  ;;  %v5846_v38 = vor.u32 %v5845_v59, %v5844_v3  ;;  %v5849_v62 = vor.u32 %v5848_v27, %v5847_v20 }
 0x5c5   :  { %16598 = vst [vmem:[#allocation20_spill] sm:$0xff] %v13592_v6  ;;  %16599 = vst [vmem:[#allocation9_spill] sm:$0xff] %v13597_v53  ;;  %v13601_v5 = vpop.eup %8896  ;;  %v5578_v35 = vshll.u32 %v13592_v6, 30  ;;  %v5852_v18 = vor.u32 %v5851_v13, %v5850_v36  ;;  %v16601_v4 = vand.u32 2147483647, %v13121_v2  ;;  %v16602_v29 = vmov 0 }
 0x5c6   :  { %16600 = vst [vmem:[#allocation22_spill] sm:$0xff] %v13601_v5  ;;  %v5855_v39 = vor.u32 %v5854_v0, %v5853_v7  ;;  %v5856_v61 = vshll.u32 %v16044_v21, %v5841_v31  ;;  %v5857_v49 = vshrl.u32 %v16028_v43, %v5842_v19  ;;  %v16605_v53 = vand.u32 2147483647, %v13513_v22 }
 0x5c7   :  { %vm13606_vm5 = vcmp.le.f32.partialorder %v16601_v4, 0.7853982  ;;  %v5692_v3 = vshll.u32 %v13544_v8, %v5690_v60  ;;  %v13618_v59 = vsub.s32 %v5575_v32, %v5578_v35  ;;  %v5843_v4 = vshrl.u32 %v16061_v28, %v5842_v19 }
 0x5c8   :  { %v16603_v29 = vsel %vm13606_vm5, 4294967295, %v16602_v29  ;;  %v13614_v55 = vand.u32 8388607, %v16605_v53  ;;  %v8020_v27 = vadd.s32 4294967169, %v5727_v1  ;;  %v13621_v20 = vpop.eup %8898  ;;  %v5693_v36 = vshrl.u32 %v5675_v48, %v5691_v56 }
 0x5c9   :  { %16604 = vst [vmem:[#allocation19_spill] sm:$0xff] %v16603_v29  ;;  %16606 = vst [vmem:[#allocation39_spill] sm:$0xff] %v13621_v20  ;;  %v5858_v13 = vor.u32 %v5857_v49, %v5856_v61  ;;  %vm5859_vm9 = vcmp.lt.s32.totalorder %v5840_v42, 1  ;;  %vm5862_vm11 = vcmp.lt.s32.totalorder %v5840_v42, 4  ;;  %v5697_v31 = vshll.u32 %v5696_v11, 23 }
 0x5ca   :  { %v5581_v7 = vsub.s32 0, %v13618_v59  ;;  %v5864_v53 = vsel %vm5862_vm11, %v5852_v18, 2102212464  ;;  %v5867_v0 = vsel %vm5859_vm9, %v5846_v38, %v5849_v62  ;;  %vm5861_vm8 = vcmp.lt.s32.totalorder %v5840_v42, 3 }
 0x5cb   :  { %v5868_v6 = vsel %vm5862_vm11, %v5855_v39, 920167782  ;;  %v5871_v5 = vsel %vm5859_vm9, %v5849_v62, %v5852_v18  ;;  %v5872_v8 = vsel %vm5862_vm11, %v5858_v13, 1326507024  ;;  %vm5860_vm12 = vcmp.lt.s32.totalorder %v5840_v42, 2 }
 0x5cc   :  { %v8013_v32 = vmin.u32 %v5581_v7, %v13618_v59  ;;  %v5863_v60 = vsel %vm5859_vm9, %v5843_v4, %v5846_v38  ;;  %v5869_v19 = vsel %vm5861_vm8, %v5852_v18, %v5868_v6  ;;  %v5865_v1 = vsel %vm5861_vm8, %v5849_v62, %v5864_v53  ;;  %v13640_v38 = vpop.f32.mrb[40].mxu1 }
 0x5cd   :  { %v5870_v35 = vsel %vm5860_vm12, %v5867_v0, %v5869_v19  ;;  %v5873_v48 = vsel %vm5861_vm8, %v5855_v39, %v5872_v8  ;;  %v5733_v49 = vadd.s32 1, %v8020_v27  ;;  %v5694_v56 = vor.u32 %v5693_v36, %v5692_v3 }
 0x5ce   :  { %v5698_v61 = vor.u32 4788187, %v5697_v31  ;;  %v5583_v11 = vclz %v8013_v32  ;;  %v5874_v20 = vsel %vm5860_vm12, %v5871_v5, %v5873_v48  ;;  %v13638_v42 = vsel %vm13606_vm5, %v13121_v2, %v13581_v14 }
 0x5cf   :  { %v13626_v9 = vmul.u32.u64.low %v13587_v50, %v5874_v20  ;;  %v13627_v25 = vmul.u32.u64.high %v13587_v50, %v5874_v20, %v13626_v9  ;;  %v13630_v30 = vmul.u32.u64.low %v13587_v50, %v5870_v35  ;;  %v13631_v13 = vmul.u32.u64.high %v13587_v50, %v5870_v35, %v13630_v30 }
 0x5d0   :  { %v8014_v39 = vadd.s32 4294967294, %v5583_v11  ;;  %v5866_v6 = vsel %vm5860_vm12, %v5863_v60, %v5865_v1  ;;  %vm5734_vm8 = vcmp.gt.s32.totalorder %v5733_v49, 0  ;;  %v16607_v5 = vxor.u32 2147483648, %v13569_v45 }
 0x5d1   :  { %vm16608_vm9 = vcmp.lt.s32.totalorder %v13177_v58, 0  ;;  %v5571_v62 = vadd.s32 %v13550_v47, %v13563_v10  ;;  %v5735_v18 = vsel %vm5734_vm8, %v5733_v49, 0  ;;  %v13653_v14 = vadd.f32 %v13305_v46, %v13123_v33 }
 0x5d2   :  { %v13647_v9 = vsel %vm16608_vm9, %v16607_v5, %v13569_v45  ;;  %v5701_v3 = vcvt.s32.f32 %v5694_v56  ;;  %vm8015_vm12 = vcmp.lt.s32.totalorder %v8014_v39, 0  ;;  %v5731_v4 = vor.u32 8388608, %v13614_v55 }
 0x5d3   :  { %16609 = vst [vmem:[#allocation47_spill] sm:$0xff] %v13653_v14  ;;  %v5737_v27 = vand.u32 31, %v5735_v18  ;;  %v5699_v20 = vand.u32 2147483647, %v5698_v61  ;;  %v5586_v36 = vsel %vm8015_vm12, 0, %v8014_v39  ;;  %v5882_v31 = vmul.u32 %v13587_v50, %v5866_v6 }
 0x5d4   :  { %vm5884_vm11 = vc.u32 %v13627_v25, %v13630_v30  ;;  %v5587_v45 = vsub.s32 32, %v5586_v36  ;;  %v5591_v7 = vsub.s32 4294967266, %v5586_v36  ;;  %v5885_v47 = vadd.s32 1, %v13631_v13 }
 0x5d5   :  { %v13660_v10 = vshrl.u32 %v5735_v18, 5  ;;  %v5588_v33 = vshll.u32 %v13618_v59, %v5586_v36  ;;  %v5738_v53 = vsub.s32 32, %v5737_v27  ;;  %v5740_v0 = vshll.u32 %v16061_v28, %v5737_v27 }
 0x5d6   :  { %v5743_v55 = vshll.u32 %v16487_v15, %v5737_v27  ;;  %v5589_v8 = vshrl.u32 %v5571_v62, %v5587_v45  ;;  %v5592_v32 = vadd.s32 127, %v5591_v7  ;;  %v5886_v50 = vsel %vm5884_vm11, %v5885_v47, %v13631_v13 }
 0x5d7   :  { %v5746_v60 = vshll.u32 %v16488_v37, %v5737_v27  ;;  %v5887_v19 = vadd.s32 %v5886_v50, %v5882_v31  ;;  %v5741_v1 = vshrl.u32 %v16487_v15, %v5738_v53  ;;  %v5744_v35 = vshrl.u32 %v16488_v37, %v5738_v53 }
 0x5d8   :  { %v5749_v48 = vshll.u32 %v16489_v54, %v5737_v27  ;;  %v5590_v49 = vor.u32 %v5589_v8, %v5588_v33  ;;  %v5593_v59 = vshll.u32 %v5592_v32, 23  ;;  %v5747_v56 = vshrl.u32 %v16489_v54, %v5738_v53 }
 0x5d9   :  { %v5750_v61 = vshrl.u32 %v16044_v21, %v5738_v53  ;;  %v5702_v11 = vmul.f32 %v5701_v3, %v5699_v20  ;;  %v5888_v39 = vadd.s32 536870912, %v5887_v19  ;;  %v5742_v6 = vor.u32 %v5741_v1, %v5740_v0 }
 0x5da   :  { %v5745_v5 = vor.u32 %v5744_v35, %v5743_v55  ;;  %v5748_v13 = vor.u32 %v5747_v56, %v5746_v60  ;;  %v5771_v18 = vshll.u32 %v5731_v4, 8  ;;  %v6038_v36 = vand.u32 2139095040, %v13653_v14 }
 0x5db   :  { %v5751_v62 = vor.u32 %v5750_v61, %v5749_v48  ;;  %v16610_v31 = vand.u32 2147483647, %v13177_v58  ;;  %v16611_v45 = vmov 0  ;;  %v5594_v7 = vor.u32 4788187, %v5593_v59 }
 0x5dc   :  { %v13679_v47 = vshrl.u32 %v5888_v39, 30  ;;  %v5752_v33 = vshll.u32 %v16044_v21, %v5737_v27  ;;  %v5753_v3 = vshrl.u32 %v16028_v43, %v5738_v53  ;;  %v5597_v20 = vcvt.s32.f32 %v5590_v49 }
 0x5dd   :  { %vm13675_vm8 = vcmp.le.f32.partialorder %v16610_v31, 0.7853982  ;;  %v5739_v0 = vshrl.u32 %v16061_v28, %v5738_v53  ;;  %vm5755_vm9 = vcmp.lt.s32.totalorder %v13660_v10, 1  ;;  %vm5758_vm12 = vcmp.lt.s32.totalorder %v13660_v10, 4 }
 0x5de   :  { %v16612_v45 = vsel %vm13675_vm8, 4294967295, %v16611_v45  ;;  %16613 = vst [vmem:[#allocation46_spill] sm:$0xff] %v13679_v47  ;;  %v5890_v4 = vshll.u32 %v13679_v47, 30  ;;  %v5754_v55 = vor.u32 %v5753_v3, %v5752_v33  ;;  %v5760_v8 = vsel %vm5758_vm12, %v5748_v13, 2102212464 }
 0x5df   :  { %v5763_v32 = vsel %vm5755_vm9, %v5742_v6, %v5745_v5  ;;  %vm5756_vm5 = vcmp.lt.s32.totalorder %v13660_v10, 2  ;;  %vm5757_vm0 = vcmp.lt.s32.totalorder %v13660_v10, 3  ;;  %v5764_v27 = vsel %vm5758_vm12, %v5751_v62, 920167782 }
 0x5e0   :  { %v5767_v53 = vsel %vm5755_vm9, %v5745_v5, %v5748_v13  ;;  %v5595_v50 = vand.u32 2147483647, %v5594_v7  ;;  %v13694_v60 = vsub.s32 %v5887_v19, %v5890_v4  ;;  %v5765_v1 = vsel %vm5757_vm0, %v5748_v13, %v5764_v27 }
 0x5e1   :  { %v5768_v35 = vsel %vm5758_vm12, %v5754_v55, 1326507024  ;;  %v16614_v48 = vand.u32 2147483647, %v13309_v63  ;;  %v16615_v49 = vmov 0  ;;  %v5759_v59 = vsel %vm5755_vm9, %v5739_v0, %v5742_v6  ;;  %v13716_v6 = vpop.f32.mrb[41].mxu1 }
 0x5e2   :  { %v5761_v56 = vsel %vm5757_vm0, %v5745_v5, %v5760_v8  ;;  %v5766_v61 = vsel %vm5756_vm5, %v5763_v32, %v5765_v1  ;;  %v5769_v39 = vsel %vm5757_vm0, %v5751_v62, %v5768_v35  ;;  %v5893_v31 = vsub.s32 0, %v13694_v60 }
 0x5e3   :  { %vm13698_vm11 = vcmp.le.f32.partialorder %v16614_v48, 0.7853982  ;;  %v5770_v19 = vsel %vm5756_vm5, %v5767_v53, %v5769_v39  ;;  %v13709_v13 = vmul.u32.u64.low %v5771_v18, %v5766_v61  ;;  %v13710_v7 = vmul.u32.u64.high %v5771_v18, %v5766_v61, %v13709_v13 }
 0x5e4   :  { %v16616_v49 = vsel %vm13698_vm11, 4294967295, %v16615_v49  ;;  %v5703_v33 = vxor.u32 2147483648, %v5702_v11  ;;  %v13713_v3 = vmul.u32.u64.low %v5771_v18, %v5770_v19  ;;  %v13714_v4 = vmul.u32.u64.high %v5771_v18, %v5770_v19, %v13713_v3 }
 0x5e5   :  { %16617 = vst [vmem:[#allocation10_spill] sm:$0xff] %v16616_v49  ;;  %v6039_v55 = vshrl.u32 %v6038_v36, 23  ;;  %8900 = vcosq.f32 %v13638_v42  ;;  %v5598_v5 = vmul.f32 %v5597_v20, %v5595_v50  ;;  %v8025_v62 = vmin.u32 %v5893_v31, %v13694_v60 }
 0x5e6   :  { %v5762_v0 = vsel %vm5756_vm5, %v5759_v59, %v5761_v56  ;;  %v5395_v8 = vsel %vm13675_vm8, %v13177_v58, %v13647_v9  ;;  %v15902_v32 = vand.u32 2147483647, %v13653_v14  ;;  %v13729_v36 = vadd.f32 %v13305_v46, %v13215_v17 }
 0x5e7   :  { %v8032_v27 = vadd.s32 4294967169, %v6039_v55  ;;  %8902 = vsinq.f32 %v13638_v42  ;;  %vm15908_vm0 = vcmp.lt.s32.totalorder %v13323_v52, 0  ;;  %v5895_v20 = vclz %v8025_v62 }
 0x5e8   :  { %16618 = vst [vmem:[#allocation6_spill] sm:$0xff] %v13729_v36  ;;  %v5781_v10 = vadd.s32 1, %v13710_v7  ;;  %vm16619_vm5 = vcmp.lt.s32.totalorder %v13309_v63, 0  ;;  %v5778_v50 = vmul.u32 %v5771_v18, %v5762_v0  ;;  %vm5780_vm9 = vc.u32 %v13714_v4, %v13709_v13 }
 0x5e9   :  { %v5704_v53 = vsel %vm16619_vm5, %v5703_v33, %v5702_v11  ;;  %v6045_v9 = vadd.s32 1, %v8032_v27  ;;  %8904 = vcosq.f32 %v5395_v8  ;;  %v5599_v1 = vxor.u32 2147483648, %v5598_v5 }
 0x5ea   :  { %v8026_v35 = vadd.s32 4294967294, %v5895_v20  ;;  %v5782_v17 = vsel %vm5780_vm9, %v5781_v10, %v13710_v7  ;;  %v6042_v42 = vand.u32 8388607, %v15902_v32  ;;  %v5934_v48 = vand.u32 2139095040, %v13729_v36 }
 0x5eb   :  { %v5783_v46 = vadd.s32 %v5782_v17, %v5778_v50  ;;  %vm6046_vm12 = vcmp.gt.s32.totalorder %v6045_v9, 0  ;;  %8906 = vsinq.f32 %v5395_v8  ;;  %v13745_v11 = vsel %vm13698_vm11, %v13309_v63, %v5704_v53 }
 0x5ec   :  { %vm8027_vm5 = vcmp.lt.s32.totalorder %v8026_v35, 0  ;;  %v6047_v18 = vsel %vm6046_vm12, %v6045_v9, 0  ;;  %v5883_v59 = vadd.s32 %v13630_v30, %v13627_v25  ;;  %v13751_v31 = vsel %vm15908_vm0, %v5599_v1, %v5598_v5 }
 0x5ed   :  { %v5898_v56 = vsel %vm8027_vm5, 0, %v8026_v35  ;;  %v5784_v61 = vadd.s32 536870912, %v5783_v46  ;;  %v6049_v39 = vand.u32 31, %v6047_v18  ;;  %v6043_v55 = vor.u32 8388608, %v6042_v42 }
 0x5ee   :  { %v5899_v19 = vsub.s32 32, %v5898_v56  ;;  %v5903_v7 = vsub.s32 4294967266, %v5898_v56  ;;  %v5935_v0 = vshrl.u32 %v5934_v48, 23  ;;  %v6048_v30 = vshrl.u32 %v6047_v18, 5 }
 0x5ef   :  { %v13754_v3 = vshrl.u32 %v5784_v61, 30  ;;  %v6050_v62 = vsub.s32 32, %v6049_v39  ;;  %v13756_v8 = vpop.eup %8900  ;;  %v6052_v25 = vshll.u32 %v16061_v28, %v6049_v39  ;;  %v6055_v20 = vshll.u32 %v16487_v15, %v6049_v39 }
 0x5f0   :  { %16621 = vst [vmem:[#allocation27_spill] sm:$0xff] %v13756_v8  ;;  %v5904_v27 = vadd.s32 127, %v5903_v7  ;;  %v5901_v10 = vshrl.u32 %v5883_v59, %v5899_v19  ;;  %v6058_v1 = vshll.u32 %v16488_v37, %v6049_v39  ;;  %v6061_v17 = vshll.u32 %v16489_v54, %v6049_v39 }
 0x5f1   :  { %16620 = vst [vmem:[#allocation42_spill] sm:$0xff] %v13754_v3  ;;  %v5786_v5 = vshll.u32 %v13754_v3, 30  ;;  %v6053_v53 = vshrl.u32 %v16487_v15, %v6050_v62  ;;  %v6056_v50 = vshrl.u32 %v16488_v37, %v6050_v62  ;;  %v13763_v9 = vpop.eup %8902  ;;  %v6059_v35 = vshrl.u32 %v16489_v54, %v6050_v62 }
 0x5f2   :  { %16622 = vst [vmem:[#allocation30_spill] sm:$0xff] %v13763_v9  ;;  %v6062_v42 = vshrl.u32 %v16044_v21, %v6050_v62  ;;  %v13771_v61 = vshll.u32 %v6043_v55, 8  ;;  %v16624_v7 = vand.u32 2147483647, %v13323_v52  ;;  %v16625_v32 = vmov 0 }
 0x5f3   :  { %v13769_v48 = vsub.s32 %v5783_v46, %v5786_v5  ;;  %v6054_v18 = vor.u32 %v6053_v53, %v6052_v25  ;;  %v6057_v59 = vor.u32 %v6056_v50, %v6055_v20  ;;  %v13773_v19 = vpop.eup %8904  ;;  %v5900_v33 = vshll.u32 %v13694_v60, %v5898_v56 }
 0x5f4   :  { %16623 = vst [vmem:[#allocation36_spill] sm:$0xff] %v13773_v19  ;;  %vm13777_vm9 = vcmp.le.f32.partialorder %v16624_v7, 0.7853982  ;;  %v5905_v47 = vshll.u32 %v5904_v27, 23  ;;  %v6060_v49 = vor.u32 %v6059_v35, %v6058_v1  ;;  %v6063_v63 = vor.u32 %v6062_v42, %v6061_v17 }
 0x5f5   :  { %v16626_v32 = vsel %vm13777_vm9, 4294967295, %v16625_v32  ;;  %v5789_v46 = vsub.s32 0, %v13769_v48  ;;  %v6064_v25 = vshll.u32 %v16044_v21, %v6049_v39  ;;  %v6065_v55 = vshrl.u32 %v16028_v43, %v6050_v62  ;;  %v13785_v5 = vpop.eup %8906 }
 0x5f6   :  { %16627 = vst [vmem:[#allocation34_spill] sm:$0xff] %v16626_v32  ;;  %v8028_v20 = vadd.s32 4294967169, %v5935_v0  ;;  %v5902_v53 = vor.u32 %v5901_v10, %v5900_v33  ;;  %v6051_v50 = vshrl.u32 %v16061_v28, %v6050_v62  ;;  %vm6067_vm12 = vcmp.lt.s32.totalorder %v6048_v30, 1 }
 0x5f7   :  { %vm6070_vm5 = vcmp.lt.s32.totalorder %v6048_v30, 4  ;;  %v8021_v7 = vmin.u32 %v5789_v46, %v13769_v48  ;;  %v6066_v60 = vor.u32 %v6065_v55, %v6064_v25  ;;  %v6075_v27 = vsel %vm6067_vm12, %v6054_v18, %v6057_v59 }
 0x5f8   :  { %v6072_v56 = vsel %vm6070_vm5, %v6060_v49, 2102212464  ;;  %v5906_v1 = vor.u32 4788187, %v5905_v47  ;;  %vm6069_vm0 = vcmp.lt.s32.totalorder %v6048_v30, 3  ;;  %v6079_v17 = vsel %vm6067_vm12, %v6057_v59, %v6060_v49 }
 0x5f9   :  { %v6076_v35 = vsel %vm6070_vm5, %v6063_v63, 920167782  ;;  %v5791_v39 = vclz %v8021_v7  ;;  %vm6068_vm11 = vcmp.lt.s32.totalorder %v6048_v30, 2  ;;  %v6080_v0 = vsel %vm6070_vm5, %v6066_v60, 1326507024 }
 0x5fa   :  { %v6077_v42 = vsel %vm6069_vm0, %v6060_v49, %v6076_v35  ;;  %v6071_v3 = vsel %vm6067_vm12, %v6051_v50, %v6054_v18  ;;  %v6073_v8 = vsel %vm6069_vm0, %v6057_v59, %v6072_v56  ;;  %v6081_v62 = vsel %vm6069_vm0, %v6063_v63, %v6080_v0  ;;  %v13809_v56 = vpop.f32.mrb[42].mxu1 }
 0x5fb   :  { %v6078_v33 = vsel %vm6068_vm11, %v6075_v27, %v6077_v42  ;;  %v8022_v10 = vadd.s32 4294967294, %v5791_v39  ;;  %v6082_v29 = vsel %vm6068_vm11, %v6079_v17, %v6081_v62  ;;  %v5907_v47 = vand.u32 2147483647, %v5906_v1  ;;  %v13825_v42 = vld [vmem:[%s15544_s4] ss:$0 sm:$0xff] }
 0x5fc   :  { %v13792_v46 = vmul.u32.u64.low %v13771_v61, %v6078_v33  ;;  %v13793_v25 = vmul.u32.u64.high %v13771_v61, %v6078_v33, %v13792_v46  ;;  %v13797_v55 = vmul.u32.u64.low %v13771_v61, %v6082_v29  ;;  %v13798_v7 = vmul.u32.u64.high %v13771_v61, %v6082_v29, %v13797_v55 }
 0x5fd   :  { %v5941_v49 = vadd.s32 1, %v8028_v20  ;;  %8908 = vcosq.f32 %v13745_v11  ;;  %v13806_v63 = vsel %vm13777_vm9, %v13323_v52, %v13751_v31  ;;  %vm8023_vm0 = vcmp.lt.s32.totalorder %v8022_v10, 0 }
 0x5fe   :  { %v5909_v59 = vcvt.s32.f32 %v5902_v53  ;;  %v5794_v50 = vsel %vm8023_vm0, 0, %v8022_v10  ;;  %v6074_v60 = vsel %vm6068_vm11, %v6071_v3, %v6073_v8  ;;  %v5779_v29 = vadd.s32 %v13709_v13, %v13714_v4 }
 0x5ff   :  { %vm5942_vm12 = vcmp.gt.s32.totalorder %v5941_v49, 0  ;;  %v5795_v20 = vsub.s32 32, %v5794_v50  ;;  %v5799_v27 = vsub.s32 4294967266, %v5794_v50  ;;  %v16628_v1 = vand.u32 2147483647, %v13729_v36 }
 0x600   :  { %vm15922_vm5 = vcmp.lt.s32.totalorder %v13417_v12, 0  ;;  %v5910_v31 = vmul.f32 %v5909_v59, %v5907_v47  ;;  %vm6092_vm9 = vc.u32 %v13798_v7, %v13792_v46  ;;  %v6093_v30 = vadd.s32 1, %v13793_v25 }
 0x601   :  { %v5938_v35 = vand.u32 8388607, %v16628_v1  ;;  %v5943_v3 = vsel %vm5942_vm12, %v5941_v49, 0  ;;  %v5797_v8 = vshrl.u32 %v5779_v29, %v5795_v20  ;;  %v5800_v53 = vadd.s32 127, %v5799_v27 }
 0x602   :  { %v6090_v17 = vmul.u32 %v13771_v61, %v6074_v60  ;;  %v5945_v39 = vand.u32 31, %v5943_v3  ;;  %v5796_v13 = vshll.u32 %v13769_v48, %v5794_v50  ;;  %v6094_v4 = vsel %vm6092_vm9, %v6093_v30, %v13793_v25 }
 0x603   :  { %v13829_v0 = vadd.f32 %v13825_v42, %v13284_v23  ;;  %v13833_v33 = vadd.f32 %v13825_v42, %v13377_v51  ;;  %v5801_v62 = vshll.u32 %v5800_v53, 23  ;;  %v5939_v10 = vor.u32 8388608, %v5938_v35 }
 0x604   :  { %v6095_v61 = vadd.s32 %v6094_v4, %v6090_v17  ;;  %v5946_v47 = vsub.s32 32, %v5945_v39  ;;  %v5911_v48 = vxor.u32 2147483648, %v5910_v31  ;;  %v5798_v55 = vor.u32 %v5797_v8, %v5796_v13 }
 0x605   :  { %16629 = vst [vmem:[#allocation55_spill] sm:$0xff] %v13829_v0  ;;  %v13835_v25 = vshrl.u32 %v5943_v3, 5  ;;  %v5948_v49 = vshll.u32 %v16061_v28, %v5945_v39  ;;  %v5951_v50 = vshll.u32 %v16487_v15, %v5945_v39  ;;  %v5954_v23 = vshll.u32 %v16488_v37, %v5945_v39 }
 0x606   :  { %v6096_v59 = vadd.s32 536870912, %v6095_v61  ;;  %v5957_v60 = vshll.u32 %v16489_v54, %v5945_v39  ;;  %v5949_v51 = vshrl.u32 %v16487_v15, %v5946_v47  ;;  %v5952_v29 = vshrl.u32 %v16488_v37, %v5946_v47 }
 0x607   :  { %v5955_v20 = vshrl.u32 %v16489_v54, %v5946_v47  ;;  %v5958_v27 = vshrl.u32 %v16044_v21, %v5946_v47  ;;  %v13845_v1 = vpop.eup %8908  ;;  %v5802_v35 = vor.u32 4788187, %v5801_v62  ;;  %v5960_v3 = vshll.u32 %v16044_v21, %v5945_v39 }
 0x608   :  { %16630 = vst [vmem:[#allocation31_spill] sm:$0xff] %v13845_v1  ;;  %v13847_v30 = vshrl.u32 %v6096_v59, 30  ;;  %v5961_v8 = vshrl.u32 %v16028_v43, %v5946_v47  ;;  %v5950_v53 = vor.u32 %v5949_v51, %v5948_v49  ;;  %v5953_v17 = vor.u32 %v5952_v29, %v5951_v50 }
 0x609   :  { %v5956_v13 = vor.u32 %v5955_v20, %v5954_v23  ;;  %v5959_v4 = vor.u32 %v5958_v27, %v5957_v60  ;;  %v5912_v18 = vsel %vm15922_vm5, %v5911_v48, %v5910_v31  ;;  %v5979_v9 = vshll.u32 %v5939_v10, 8 }
 0x60a   :  { %16631 = vst [vmem:[#allocation65_spill] sm:$0xff] %v13847_v30  ;;  %v6098_v32 = vshll.u32 %v13847_v30, 30  ;;  %v5962_v52 = vor.u32 %v5961_v8, %v5960_v3  ;;  %v5805_v2 = vcvt.s32.f32 %v5798_v55  ;;  %vm5963_vm11 = vcmp.lt.s32.totalorder %v13835_v25, 1 }
 0x60b   :  { %v15924_v62 = vand.u32 2147483647, %v13829_v0  ;;  %v6246_v39 = vand.u32 2139095040, %v13829_v0  ;;  %v5803_v59 = vand.u32 2147483647, %v5802_v35  ;;  %vm5966_vm9 = vcmp.lt.s32.totalorder %v13835_v25, 4 }
 0x60c   :  { %v13857_v1 = vsub.s32 %v6095_v61, %v6098_v32  ;;  %v5971_v49 = vsel %vm5963_vm11, %v5950_v53, %v5953_v17  ;;  %vm5965_vm0 = vcmp.lt.s32.totalorder %v13835_v25, 3  ;;  %v5972_v31 = vsel %vm5966_vm9, %v5959_v4, 920167782  ;;  %v13869_v61 = vpop.f32.mrb[43].mxu1 }
 0x60d   :  { %v5975_v10 = vsel %vm5963_vm11, %v5953_v17, %v5956_v13  ;;  %v5976_v48 = vsel %vm5966_vm9, %v5962_v52, 1326507024  ;;  %vm5964_vm12 = vcmp.lt.s32.totalorder %v13835_v25, 2  ;;  %v5968_v50 = vsel %vm5966_vm9, %v5956_v13, 2102212464 }
 0x60e   :  { %v6101_v55 = vsub.s32 0, %v13857_v1  ;;  %v5973_v32 = vsel %vm5965_vm0, %v5956_v13, %v5972_v31  ;;  %v5947_v23 = vshrl.u32 %v16061_v28, %v5946_v47  ;;  %v5977_v51 = vsel %vm5965_vm0, %v5959_v4, %v5976_v48 }
 0x60f   :  { %v5974_v60 = vsel %vm5964_vm12, %v5971_v49, %v5973_v32  ;;  %v6250_v52 = vand.u32 8388607, %v15924_v62  ;;  %v5806_v29 = vmul.f32 %v5805_v2, %v5803_v59  ;;  %v5978_v27 = vsel %vm5964_vm12, %v5975_v10, %v5977_v51 }
 0x610   :  { %v8033_v20 = vmin.u32 %v6101_v55, %v13857_v1  ;;  %v6247_v35 = vshrl.u32 %v6246_v39, 23  ;;  %v5967_v3 = vsel %vm5963_vm11, %v5947_v23, %v5950_v53  ;;  %v5969_v47 = vsel %vm5965_vm0, %v5953_v17, %v5968_v50 }
 0x611   :  { %v13885_v8 = vmul.u32.u64.low %v5979_v9, %v5978_v27  ;;  %v13886_v13 = vmul.u32.u64.high %v5979_v9, %v5978_v27, %v13885_v8  ;;  %v13888_v49 = vmul.u32.u64.low %v5979_v9, %v5974_v60  ;;  %v13889_v31 = vmul.u32.u64.high %v5979_v9, %v5974_v60, %v13888_v49 }
 0x612   :  { %v6103_v4 = vclz %v8033_v20  ;;  %v8040_v2 = vadd.s32 4294967169, %v6247_v35  ;;  %v16632_v59 = vsub.s32 4, %v12403_v16  ;;  %vm16633_vm9 = vcmp.lt.s32.totalorder %v12310_v24, 0 }
 0x613   :  { %8910 = vsinq.f32 %v13745_v11  ;;  %v16634_v53 = vand.u32 2147483647, %v13417_v12  ;;  %v16635_v17 = vmov 0  ;;  %v6142_v10 = vand.u32 2139095040, %v13833_v33 }
 0x614   :  { %v13897_v39 = vsel %vm16633_vm9, %v16632_v59, %v12403_v16  ;;  %8912 = vcosq.f32 %v13806_v63  ;;  %v8034_v48 = vadd.s32 4294967294, %v6103_v4  ;;  %v5970_v55 = vsel %vm5964_vm12, %v5967_v3, %v5969_v47 }
 0x615   :  { %vm13902_vm11 = vcmp.le.f32.partialorder %v16634_v53, 0.7853982  ;;  %v6253_v50 = vadd.s32 1, %v8040_v2  ;;  %v5807_v11 = vxor.u32 2147483648, %v5806_v29  ;;  %vm5988_vm0 = vc.u32 %v13886_v13, %v13888_v49 }
 0x616   :  { %v16636_v17 = vsel %vm13902_vm11, 4294967295, %v16635_v17  ;;  %v13913_v16 = vsel %vm13902_vm11, %v13417_v12, %v5912_v18  ;;  %v6251_v32 = vor.u32 8388608, %v6250_v52  ;;  %vm8035_vm9 = vcmp.lt.s32.totalorder %v8034_v48, 0 }
 0x617   :  { %16637 = vst [vmem:[#allocation62_spill] sm:$0xff] %v16636_v17  ;;  %v5989_v23 = vadd.s32 1, %v13889_v31  ;;  %vm6254_vm5 = vcmp.gt.s32.totalorder %v6253_v50, 0  ;;  %v15923_v60 = vand.u32 2147483647, %v13833_v33  ;;  %v6106_v51 = vsel %vm8035_vm9, 0, %v8034_v48 }
 0x618   :  { %v5986_v25 = vmul.u32 %v5979_v9, %v5970_v55  ;;  %v6255_v20 = vsel %vm6254_vm5, %v6253_v50, 0  ;;  %v6143_v27 = vshrl.u32 %v6142_v10, 23  ;;  %8914 = vsinq.f32 %v13806_v63 }
 0x619   :  { %vm15932_vm12 = vcmp.lt.s32.totalorder %v13513_v22, 0  ;;  %v6111_v18 = vsub.s32 4294967266, %v6106_v51  ;;  %v5990_v35 = vsel %vm5988_vm0, %v5989_v23, %v13889_v31  ;;  %8916 = vcosq.f32 %v13913_v16 }
 0x61a   :  { %v6091_v52 = vadd.s32 %v13792_v46, %v13798_v7  ;;  %v5991_v3 = vadd.s32 %v5990_v35, %v5986_v25  ;;  %v6257_v47 = vand.u32 31, %v6255_v20  ;;  %v13927_v8 = vsel %vm15932_vm12, %v5807_v11, %v5806_v29 }
 0x61b   :  { %v6112_v9 = vadd.s32 127, %v6111_v18  ;;  %v13929_v4 = vshll.u32 %v6251_v32, 8  ;;  %v13933_v63 = vand.u32 8388607, %v15923_v60  ;;  %v6107_v2 = vsub.s32 32, %v6106_v51 }
 0x61c   :  { %v5992_v31 = vadd.s32 536870912, %v5991_v3  ;;  %v6258_v59 = vsub.s32 32, %v6257_v47  ;;  %v8036_v53 = vadd.s32 4294967169, %v6143_v27  ;;  %v6108_v10 = vshll.u32 %v13857_v1, %v6106_v51 }
 0x61d   :  { %v6256_v46 = vshrl.u32 %v6255_v20, 5  ;;  %v6260_v7 = vshll.u32 %v16061_v28, %v6257_v47  ;;  %v6263_v48 = vshll.u32 %v16487_v15, %v6257_v47  ;;  %v13938_v29 = vpop.eup %8910  ;;  %v6113_v55 = vshll.u32 %v6112_v9, 23 }
 0x61e   :  { %16638 = vst [vmem:[#allocation63_spill] sm:$0xff] %v13938_v29  ;;  %v13940_v50 = vshrl.u32 %v5992_v31, 30  ;;  %v6261_v11 = vshrl.u32 %v16487_v15, %v6258_v59  ;;  %v6264_v32 = vshrl.u32 %v16488_v37, %v6258_v59  ;;  %v13944_v23 = vpop.eup %8912  ;;  %v6266_v25 = vshll.u32 %v16488_v37, %v6257_v47 }
 0x61f   :  { %16640 = vst [vmem:[#allocation49_spill] sm:$0xff] %v13944_v23  ;;  %v6267_v1 = vshrl.u32 %v16489_v54, %v6258_v59  ;;  %v6269_v51 = vshll.u32 %v16489_v54, %v6257_v47  ;;  %v6270_v20 = vshrl.u32 %v16044_v21, %v6258_v59  ;;  %v6109_v27 = vshrl.u32 %v6091_v52, %v6107_v2 }
 0x620   :  { %16639 = vst [vmem:[#allocation18_spill] sm:$0xff] %v13940_v50  ;;  %v5994_v18 = vshll.u32 %v13940_v50, 30  ;;  %v6262_v35 = vor.u32 %v6261_v11, %v6260_v7  ;;  %v6265_v9 = vor.u32 %v6264_v32, %v6263_v48  ;;  %v6272_v62 = vshll.u32 %v16044_v21, %v6257_v47 }
 0x621   :  { %v6268_v31 = vor.u32 %v6267_v1, %v6266_v25  ;;  %v6271_v60 = vor.u32 %v6270_v20, %v6269_v51  ;;  %v6273_v30 = vshrl.u32 %v16028_v43, %v6258_v59  ;;  %v16641_v17 = vand.u32 2147483647, %v13513_v22 }
 0x622   :  { %v16642_v12 = vmov 0  ;;  %v6114_v29 = vor.u32 4788187, %v6113_v55  ;;  %v13959_v23 = vsub.s32 %v5991_v3, %v5994_v18  ;;  %v6259_v52 = vshrl.u32 %v16061_v28, %v6258_v59  ;;  %v13962_v7 = vpop.eup %8914 }
 0x623   :  { %vm13955_vm5 = vcmp.le.f32.partialorder %v16641_v17, 0.7853982  ;;  %v6149_v2 = vadd.s32 1, %v8036_v53  ;;  %16645 = vst [vmem:[#allocation57_spill] sm:$0xff] %v13962_v7  ;;  %v6274_v48 = vor.u32 %v6273_v30, %v6272_v62  ;;  %vm6275_vm0 = vcmp.lt.s32.totalorder %v6256_v46, 1  ;;  %v13964_v47 = vpop.eup %8916 }
 0x624   :  { %v16643_v12 = vsel %vm13955_vm5, 4294967295, %v16642_v12  ;;  %vm6277_vm9 = vcmp.lt.s32.totalorder %v6256_v46, 3  ;;  %vm6278_vm12 = vcmp.lt.s32.totalorder %v6256_v46, 4  ;;  %16646 = vst [vmem:[#allocation76_spill] sm:$0xff] %v13964_v47  ;;  %v5997_v11 = vsub.s32 0, %v13959_v23 }
 0x625   :  { %16644 = vst [vmem:[#allocation44_spill] sm:$0xff] %v16643_v12  ;;  %v6280_v17 = vsel %vm6278_vm12, %v6268_v31, 2102212464  ;;  %v6283_v32 = vsel %vm6275_vm0, %v6262_v35, %v6265_v9  ;;  %v6284_v25 = vsel %vm6278_vm12, %v6271_v60, 920167782  ;;  %v6110_v1 = vor.u32 %v6109_v27, %v6108_v10 }
 0x626   :  { %vm6276_vm11 = vcmp.lt.s32.totalorder %v6256_v46, 2  ;;  %v6285_v3 = vsel %vm6277_vm9, %v6268_v31, %v6284_v25  ;;  %v6287_v55 = vsel %vm6275_vm0, %v6265_v9, %v6268_v31  ;;  %v8029_v59 = vmin.u32 %v5997_v11, %v13959_v23 }
 0x627   :  { %v6279_v53 = vsel %vm6275_vm0, %v6259_v52, %v6262_v35  ;;  %v6286_v30 = vsel %vm6276_vm11, %v6283_v32, %v6285_v3  ;;  %v6288_v62 = vsel %vm6278_vm12, %v6274_v48, 1326507024  ;;  %v6281_v51 = vsel %vm6277_vm9, %v6265_v9, %v6280_v17 }
 0x628   :  { %v6289_v20 = vsel %vm6277_vm9, %v6271_v60, %v6288_v62  ;;  %v13973_v18 = vmul.u32.u64.low %v13929_v4, %v6286_v30  ;;  %v13974_v47 = vmul.u32.u64.high %v13929_v4, %v6286_v30, %v13973_v18  ;;  %v6115_v10 = vand.u32 2147483647, %v6114_v29  ;;  %v13988_v29 = vpop.f32.mrb[44].mxu1 }
 0x629   :  { %v5999_v27 = vclz %v8029_v59  ;;  %v6290_v25 = vsel %vm6276_vm11, %v6287_v55, %v6289_v20  ;;  %v13980_v31 = vadd.f32 %v13825_v42, %v13488_v44  ;;  %v6147_v9 = vor.u32 8388608, %v13933_v63 }
 0x62a   :  { %v13983_v35 = vmul.u32.u64.low %v13929_v4, %v6290_v25  ;;  %v13984_v52 = vmul.u32.u64.high %v13929_v4, %v6290_v25, %v13983_v35  ;;  %vm6150_vm12 = vcmp.gt.s32.totalorder %v6149_v2, 0  ;;  %v6117_v60 = vcvt.s32.f32 %v6110_v1 }
 0x62b   :  { %16647 = vst [vmem:[#allocation53_spill] sm:$0xff] %v13980_v31  ;;  %v8030_v48 = vadd.s32 4294967294, %v5999_v27  ;;  %v6282_v11 = vsel %vm6276_vm11, %v6279_v53, %v6281_v51  ;;  %v6151_v17 = vsel %vm6150_vm12, %v6149_v2, 0  ;;  %v13994_v44 = vsel %vm13955_vm5, %v13513_v22, %v13927_v8 }
 0x62c   :  { %v6301_v32 = vadd.s32 1, %v13974_v47  ;;  %v6153_v3 = vand.u32 31, %v6151_v17  ;;  %v13999_v63 = vadd.f32 %v13825_v42, %v13557_v57  ;;  %v14001_v1 = vmul.f32 %v6117_v60, %v6115_v10 }
 0x62d   :  { %v5987_v46 = vadd.s32 %v13888_v49, %v13886_v13  ;;  %vm8031_vm11 = vcmp.lt.s32.totalorder %v8030_v48, 0  ;;  %v6298_v59 = vmul.u32 %v13929_v4, %v6282_v11  ;;  %vm6300_vm0 = vc.u32 %v13984_v52, %v13973_v18 }
 0x62e   :  { %16648 = vst [vmem:[#allocation52_spill] sm:$0xff] %v13999_v63  ;;  %v6002_v55 = vsel %vm8031_vm11, 0, %v8030_v48  ;;  %v6154_v8 = vsub.s32 32, %v6153_v3  ;;  %v6302_v57 = vsel %vm6300_vm0, %v6301_v32, %v13974_v47  ;;  %v14010_v62 = vshll.u32 %v6147_v9, 8 }
 0x62f   :  { %v6003_v53 = vsub.s32 32, %v6002_v55  ;;  %v6007_v30 = vsub.s32 4294967266, %v6002_v55  ;;  %v6004_v51 = vshll.u32 %v13959_v23, %v6002_v55  ;;  %v6303_v20 = vadd.s32 %v6302_v57, %v6298_v59 }
 0x630   :  { %v6156_v13 = vshll.u32 %v16061_v28, %v6153_v3  ;;  %v6157_v49 = vshrl.u32 %v16487_v15, %v6154_v8  ;;  %v6159_v4 = vshll.u32 %v16487_v15, %v6153_v3  ;;  %v6160_v25 = vshrl.u32 %v16488_v37, %v6154_v8 }
 0x631   :  { %v6005_v10 = vshrl.u32 %v5987_v46, %v6003_v53  ;;  %v6008_v27 = vadd.s32 127, %v6007_v30  ;;  %v6304_v35 = vadd.s32 536870912, %v6303_v20  ;;  %v6152_v60 = vshrl.u32 %v6151_v17, 5 }
 0x632   :  { %v6162_v48 = vshll.u32 %v16488_v37, %v6153_v3  ;;  %v6163_v47 = vshrl.u32 %v16489_v54, %v6154_v8  ;;  %v6158_v23 = vor.u32 %v6157_v49, %v6156_v13  ;;  %v6161_v32 = vor.u32 %v6160_v25, %v6159_v4 }
 0x633   :  { %v6006_v9 = vor.u32 %v6005_v10, %v6004_v51  ;;  %v6009_v11 = vshll.u32 %v6008_v27, 23  ;;  %v14019_v55 = vshrl.u32 %v6304_v35, 30  ;;  %v6165_v46 = vshll.u32 %v16489_v54, %v6153_v3 }
 0x634   :  { %v6164_v59 = vor.u32 %v6163_v47, %v6162_v48  ;;  %v6166_v53 = vshrl.u32 %v16044_v21, %v6154_v8  ;;  %v6168_v57 = vshll.u32 %v16044_v21, %v6153_v3  ;;  %v6169_v17 = vshrl.u32 %v16028_v43, %v6154_v8 }
 0x635   :  { %16649 = vst [vmem:[#allocation85_spill] sm:$0xff] %v14019_v55  ;;  %v6010_v30 = vor.u32 4788187, %v6009_v11  ;;  %v6454_v2 = vand.u32 2139095040, %v13980_v31  ;;  %v6013_v50 = vcvt.s32.f32 %v6006_v9  ;;  %v6306_v51 = vshll.u32 %v14019_v55, 30 }
 0x636   :  { %v6155_v13 = vshrl.u32 %v16061_v28, %v6154_v8  ;;  %v6167_v49 = vor.u32 %v6166_v53, %v6165_v46  ;;  %v6170_v10 = vor.u32 %v6169_v17, %v6168_v57  ;;  %vm6171_vm9 = vcmp.lt.s32.totalorder %v6152_v60, 1 }
 0x637   :  { %vm6173_vm12 = vcmp.lt.s32.totalorder %v6152_v60, 3  ;;  %vm6174_vm11 = vcmp.lt.s32.totalorder %v6152_v60, 4  ;;  %v14028_v27 = vsub.s32 %v6303_v20, %v6306_v51  ;;  %v6179_v25 = vsel %vm6171_vm9, %v6158_v23, %v6161_v32 }
 0x638   :  { %v6176_v4 = vsel %vm6174_vm11, %v6164_v59, 2102212464  ;;  %v6180_v35 = vsel %vm6174_vm11, %v6167_v49, 920167782  ;;  %v6011_v3 = vand.u32 2147483647, %v6010_v30  ;;  %v6183_v47 = vsel %vm6171_vm9, %v6161_v32, %v6164_v59 }
 0x639   :  { %vm6172_vm0 = vcmp.lt.s32.totalorder %v6152_v60, 2  ;;  %v6181_v48 = vsel %vm6173_vm12, %v6164_v59, %v6180_v35  ;;  %v6309_v9 = vsub.s32 0, %v14028_v27  ;;  %v6175_v11 = vsel %vm6171_vm9, %v6155_v13, %v6158_v23 }
 0x63a   :  { %v6182_v8 = vsel %vm6172_vm0, %v6179_v25, %v6181_v48  ;;  %v6184_v46 = vsel %vm6174_vm11, %v6170_v10, 1326507024  ;;  %v16650_v53 = vand.u32 2147483647, %v13653_v14  ;;  %v16651_v57 = vmov 0  ;;  %v14049_v25 = vpop.f32.mrb[45].mxu1 }
 0x63b   :  { %v6177_v20 = vsel %vm6173_vm12, %v6161_v32, %v6176_v4  ;;  %v6185_v30 = vsel %vm6173_vm12, %v6167_v49, %v6184_v46  ;;  %v14042_v17 = vmul.u32.u64.low %v14010_v62, %v6182_v8  ;;  %v14043_v51 = vmul.u32.u64.high %v14010_v62, %v6182_v8, %v14042_v17 }
 0x63c   :  { %vm14035_vm5 = vcmp.le.f32.partialorder %v16650_v53, 0.7853982  ;;  %v6119_v23 = vxor.u32 2147483648, %v14001_v1  ;;  %v8041_v59 = vmin.u32 %v6309_v9, %v14028_v27  ;;  %v6186_v13 = vsel %vm6172_vm0, %v6183_v47, %v6185_v30 }
 0x63d   :  { %v16652_v57 = vsel %vm14035_vm5, 4294967295, %v16651_v57  ;;  %v6455_v10 = vshrl.u32 %v6454_v2, 23  ;;  %8918 = vsinq.f32 %v13913_v16  ;;  %v6014_v35 = vmul.f32 %v6013_v50, %v6011_v3 }
 0x63e   :  { %16653 = vst [vmem:[#allocation81_spill] sm:$0xff] %v16652_v57  ;;  %v14053_v32 = vmul.u32.u64.low %v14010_v62, %v6186_v13  ;;  %v14054_v49 = vmul.u32.u64.high %v14010_v62, %v6186_v13, %v14053_v32  ;;  %v6311_v4 = vclz %v8041_v59  ;;  %v6178_v48 = vsel %vm6172_vm0, %v6175_v11, %v6177_v20 }
 0x63f   :  { %v8048_v8 = vadd.s32 4294967169, %v6455_v10  ;;  %v16654_v46 = vand.u32 2147483647, %v13980_v31  ;;  %8920 = vcosq.f32 %v13994_v44  ;;  %vm15938_vm9 = vcmp.lt.s32.totalorder %v13653_v14, 0 }
 0x640   :  { %v6197_v16 = vadd.s32 1, %v14043_v51  ;;  %v6120_v50 = vsel %vm15938_vm9, %v6119_v23, %v14001_v1  ;;  %v8042_v2 = vadd.s32 4294967294, %v6311_v4  ;;  %v6350_v60 = vand.u32 2139095040, %v13999_v63 }
 0x641   :  { %v6458_v53 = vand.u32 8388607, %v16654_v46  ;;  %v6461_v3 = vadd.s32 1, %v8048_v8  ;;  %v6015_v47 = vxor.u32 2147483648, %v6014_v35  ;;  %v6194_v9 = vmul.u32 %v14010_v62, %v6178_v48 }
 0x642   :  { %vm6196_vm11 = vc.u32 %v14054_v49, %v14042_v17  ;;  %v15939_v11 = vand.u32 2147483647, %v13999_v63  ;;  %vm8043_vm0 = vcmp.lt.s32.totalorder %v8042_v2, 0  ;;  %8922 = vsinq.f32 %v13994_v44 }
 0x643   :  { %v6198_v20 = vsel %vm6196_vm11, %v6197_v16, %v14043_v51  ;;  %v6459_v30 = vor.u32 8388608, %v6458_v53  ;;  %vm6462_vm12 = vcmp.gt.s32.totalorder %v6461_v3, 0  ;;  %v6314_v1 = vsel %vm8043_vm0, 0, %v8042_v2 }
 0x644   :  { %v6199_v23 = vadd.s32 %v6198_v20, %v6194_v9  ;;  %v6463_v59 = vsel %vm6462_vm12, %v6461_v3, 0  ;;  %v14076_v13 = vsel %vm14035_vm5, %v13653_v14, %v6120_v50  ;;  %v6315_v62 = vsub.s32 32, %v6314_v1 }
 0x645   :  { %v6319_v10 = vsub.s32 4294967266, %v6314_v1  ;;  %v6351_v32 = vshrl.u32 %v6350_v60, 23  ;;  %vm16655_vm9 = vcmp.lt.s32.totalorder %v13729_v36, 0  ;;  %v6299_v51 = vadd.s32 %v13973_v18, %v13984_v52 }
 0x646   :  { %v14080_v4 = vsel %vm16655_vm9, %v6015_v47, %v6014_v35  ;;  %v6200_v48 = vadd.s32 536870912, %v6199_v23  ;;  %v6465_v44 = vand.u32 31, %v6463_v59  ;;  %v14084_v46 = vshll.u32 %v6459_v30, 8 }
 0x647   :  { %v6320_v8 = vadd.s32 127, %v6319_v10  ;;  %v14088_v53 = vand.u32 8388607, %v15939_v11  ;;  %v14092_v16 = vadd.f32 %v13825_v42, %v13640_v38  ;;  %v14094_v50 = vpop.eup %8918  ;;  %v6316_v35 = vshll.u32 %v14028_v27, %v6314_v1 }
 0x648   :  { %16657 = vst [vmem:[#allocation73_spill] sm:$0xff] %v14094_v50  ;;  %v14097_v2 = vshrl.u32 %v6200_v48, 30  ;;  %v6464_v18 = vshrl.u32 %v6463_v59, 5  ;;  %v6466_v52 = vsub.s32 32, %v6465_v44  ;;  %v6317_v3 = vshrl.u32 %v6299_v51, %v6315_v62 }
 0x649   :  { %16656 = vst [vmem:[#allocation40_spill] sm:$0xff] %v14092_v16  ;;  %v6321_v60 = vshll.u32 %v6320_v8, 23  ;;  %v6468_v47 = vshll.u32 %v16061_v28, %v6465_v44  ;;  %v8044_v9 = vadd.s32 4294967169, %v6351_v32  ;;  %v14100_v20 = vpop.eup %8920  ;;  %v6471_v10 = vshll.u32 %v16487_v15, %v6465_v44 }
 0x64a   :  { %16658 = vst [vmem:[#allocation82_spill] sm:$0xff] %v14097_v2  ;;  %16659 = vst [vmem:[#allocation64_spill] sm:$0xff] %v14100_v20  ;;  %v6202_v30 = vshll.u32 %v14097_v2, 30  ;;  %v6469_v38 = vshrl.u32 %v16487_v15, %v6466_v52  ;;  %v6472_v11 = vshrl.u32 %v16488_v37, %v6466_v52  ;;  %v6474_v27 = vshll.u32 %v16488_v37, %v6465_v44 }
 0x64b   :  { %v6475_v1 = vshrl.u32 %v16489_v54, %v6466_v52  ;;  %v6477_v59 = vshll.u32 %v16489_v54, %v6465_v44  ;;  %v6478_v62 = vshrl.u32 %v16044_v21, %v6466_v52  ;;  %v16660_v32 = vand.u32 2147483647, %v13729_v36 }
 0x64c   :  { %v16661_v51 = vmov 0  ;;  %v6322_v48 = vor.u32 4788187, %v6321_v60  ;;  %v14116_v8 = vsub.s32 %v6199_v23, %v6202_v30  ;;  %v6470_v55 = vor.u32 %v6469_v38, %v6468_v47  ;;  %v14120_v12 = vpop.eup %8922 }
 0x64d   :  { %vm14112_vm9 = vcmp.le.f32.partialorder %v16660_v32, 0.7853982  ;;  %v6473_v57 = vor.u32 %v6472_v11, %v6471_v10  ;;  %v6476_v14 = vor.u32 %v6475_v1, %v6474_v27  ;;  %v6479_v2 = vor.u32 %v6478_v62, %v6477_v59  ;;  %16664 = vst [vmem:[#allocation71_spill] sm:$0xff] %v14120_v12 }
 0x64e   :  { %v16662_v51 = vsel %vm14112_vm9, 4294967295, %v16661_v51  ;;  %v6480_v50 = vshll.u32 %v16044_v21, %v6465_v44  ;;  %v6481_v20 = vshrl.u32 %v16028_v43, %v6466_v52  ;;  %v6205_v22 = vsub.s32 0, %v14116_v8 }
 0x64f   :  { %16663 = vst [vmem:[#allocation70_spill] sm:$0xff] %v16662_v51  ;;  %v6467_v32 = vshrl.u32 %v16061_v28, %v6466_v52  ;;  %vm6483_vm12 = vcmp.lt.s32.totalorder %v6464_v18, 1  ;;  %vm6484_vm11 = vcmp.lt.s32.totalorder %v6464_v18, 2  ;;  %vm6485_vm0 = vcmp.lt.s32.totalorder %v6464_v18, 3 }
 0x650   :  { %v6482_v7 = vor.u32 %v6481_v20, %v6480_v50  ;;  %vm6486_vm5 = vcmp.lt.s32.totalorder %v6464_v18, 4  ;;  %v6491_v23 = vsel %vm6483_vm12, %v6470_v55, %v6473_v57  ;;  %v8037_v11 = vmin.u32 %v6205_v22, %v14116_v8 }
 0x651   :  { %v6488_v60 = vsel %vm6486_vm5, %v6476_v14, 2102212464  ;;  %v6492_v47 = vsel %vm6486_vm5, %v6479_v2, 920167782  ;;  %v6495_v30 = vsel %vm6483_vm12, %v6473_v57, %v6476_v14  ;;  %v6318_v44 = vor.u32 %v6317_v3, %v6316_v35 }
 0x652   :  { %v6323_v38 = vand.u32 2147483647, %v6322_v48  ;;  %v6493_v10 = vsel %vm6485_vm0, %v6476_v14, %v6492_v47  ;;  %v6496_v27 = vsel %vm6486_vm5, %v6482_v7, 1326507024  ;;  %v6207_v1 = vclz %v8037_v11  ;;  %v14137_v7 = vpop.f32.mrb[46].mxu1 }
 0x653   :  { %v6487_v59 = vsel %vm6483_vm12, %v6467_v32, %v6470_v55  ;;  %v6494_v62 = vsel %vm6484_vm11, %v6491_v23, %v6493_v10  ;;  %v6497_v52 = vsel %vm6485_vm0, %v6479_v2, %v6496_v27  ;;  %v6489_v12 = vsel %vm6485_vm0, %v6473_v57, %v6488_v60 }
 0x654   :  { %v6498_v50 = vsel %vm6484_vm11, %v6495_v30, %v6497_v52  ;;  %v14128_v20 = vmul.u32.u64.low %v14084_v46, %v6494_v62  ;;  %v14129_v19 = vmul.u32.u64.high %v14084_v46, %v6494_v62, %v14128_v20  ;;  %8924 = vcosq.f32 %v14076_v13 }
 0x655   :  { %v8038_v22 = vadd.s32 4294967294, %v6207_v1  ;;  %v14134_v35 = vmul.u32.u64.low %v14084_v46, %v6498_v50  ;;  %v14135_v14 = vmul.u32.u64.high %v14084_v46, %v6498_v50, %v14134_v35  ;;  %8926 = vsinq.f32 %v14076_v13 }
 0x656   :  { %v14144_v55 = vsel %vm14112_vm9, %v13729_v36, %v14080_v4  ;;  %v6325_v57 = vcvt.s32.f32 %v6318_v44  ;;  %v6357_v2 = vadd.s32 1, %v8044_v9  ;;  %v6490_v3 = vsel %vm6484_vm11, %v6487_v59, %v6489_v12 }
 0x657   :  { %vm8039_vm5 = vcmp.lt.s32.totalorder %v8038_v22, 0  ;;  %v6355_v48 = vor.u32 8388608, %v14088_v53  ;;  %v6662_v32 = vand.u32 2139095040, %v14092_v16  ;;  %v6509_v13 = vadd.s32 1, %v14129_v19 }
 0x658   :  { %v14149_v23 = vmul.f32 %v6325_v57, %v6323_v38  ;;  %v6210_v11 = vsel %vm8039_vm5, 0, %v8038_v22  ;;  %vm6358_vm12 = vcmp.gt.s32.totalorder %v6357_v2, 0  ;;  %v6195_v60 = vadd.s32 %v14042_v17, %v14054_v49 }
 0x659   :  { %v6211_v4 = vsub.s32 32, %v6210_v11  ;;  %v6215_v47 = vsub.s32 4294967266, %v6210_v11  ;;  %v15956_v9 = vand.u32 2147483647, %v14092_v16  ;;  %v6506_v18 = vmul.u32 %v14084_v46, %v6490_v3 }
 0x65a   :  { %vm6508_vm11 = vc.u32 %v14135_v14, %v14128_v20  ;;  %v6359_v12 = vsel %vm6358_vm12, %v6357_v2, 0  ;;  %v6663_v53 = vshrl.u32 %v6662_v32, 23  ;;  %v6212_v30 = vshll.u32 %v14116_v8, %v6210_v11 }
 0x65b   :  { %v6213_v44 = vshrl.u32 %v6195_v60, %v6211_v4  ;;  %v6216_v38 = vadd.s32 127, %v6215_v47  ;;  %v6510_v10 = vsel %vm6508_vm11, %v6509_v13, %v14129_v19  ;;  %v6327_v27 = vxor.u32 2147483648, %v14149_v23 }
 0x65c   :  { %v6511_v17 = vadd.s32 %v6510_v10, %v6506_v18  ;;  %v6361_v49 = vand.u32 31, %v6359_v12  ;;  %v14161_v1 = vshll.u32 %v6355_v48, 8  ;;  %v6360_v46 = vshrl.u32 %v6359_v12, 5 }
 0x65d   :  { %v6214_v59 = vor.u32 %v6213_v44, %v6212_v30  ;;  %v6217_v62 = vshll.u32 %v6216_v38, 23  ;;  %v14165_v52 = vand.u32 8388607, %v15956_v9  ;;  %v8056_v35 = vadd.s32 4294967169, %v6663_v53 }
 0x65e   :  { %v6512_v50 = vadd.s32 536870912, %v6511_v17  ;;  %v6362_v22 = vsub.s32 32, %v6361_v49  ;;  %v6364_v8 = vshll.u32 %v16061_v28, %v6361_v49  ;;  %v14168_v57 = vpop.eup %8924  ;;  %v6367_v3 = vshll.u32 %v16487_v15, %v6361_v49 }
 0x65f   :  { %16665 = vst [vmem:[#allocation93_spill] sm:$0xff] %v14168_v57  ;;  %v6218_v19 = vor.u32 4788187, %v6217_v62  ;;  %v6221_v2 = vcvt.s32.f32 %v6214_v59  ;;  %v6370_v48 = vshll.u32 %v16488_v37, %v6361_v49  ;;  %v14173_v32 = vpop.eup %8926  ;;  %v6373_v4 = vshll.u32 %v16489_v54, %v6361_v49 }
 0x660   :  { %16666 = vst [vmem:[#allocation100_spill] sm:$0xff] %v14173_v32  ;;  %v14175_v11 = vshrl.u32 %v6512_v50, 30  ;;  %v6365_v13 = vshrl.u32 %v16487_v15, %v6362_v22  ;;  %v6368_v60 = vshrl.u32 %v16488_v37, %v6362_v22  ;;  %v6371_v18 = vshrl.u32 %v16489_v54, %v6362_v22 }
 0x661   :  { %v6219_v47 = vand.u32 2147483647, %v6218_v19  ;;  %v6374_v12 = vshrl.u32 %v16044_v21, %v6362_v22  ;;  %v6376_v53 = vshll.u32 %v16044_v21, %v6361_v49  ;;  %v6377_v10 = vshrl.u32 %v16028_v43, %v6362_v22 }
 0x662   :  { %16667 = vst [vmem:[#allocation72_spill] sm:$0xff] %v14175_v11  ;;  %v6514_v30 = vshll.u32 %v14175_v11, 30  ;;  %v6366_v44 = vor.u32 %v6365_v13, %v6364_v8  ;;  %v6369_v38 = vor.u32 %v6368_v60, %v6367_v3  ;;  %v16668_v59 = vand.u32 2147483647, %v13829_v0 }
 0x663   :  { %v16669_v62 = vmov 0  ;;  %v6363_v50 = vshrl.u32 %v16061_v28, %v6362_v22  ;;  %v6372_v19 = vor.u32 %v6371_v18, %v6370_v48  ;;  %v6375_v9 = vor.u32 %v6374_v12, %v6373_v4 }
 0x664   :  { %vm14187_vm5 = vcmp.le.f32.partialorder %v16668_v59, 0.7853982  ;;  %vm6379_vm12 = vcmp.lt.s32.totalorder %v6360_v46, 1  ;;  %v6222_v57 = vmul.f32 %v6221_v2, %v6219_v47  ;;  %v14192_v32 = vsub.s32 %v6511_v17, %v6514_v30 }
 0x665   :  { %v16670_v62 = vsel %vm14187_vm5, 4294967295, %v16669_v62  ;;  %v6378_v49 = vor.u32 %v6377_v10, %v6376_v53  ;;  %vm6382_vm11 = vcmp.lt.s32.totalorder %v6360_v46, 4  ;;  %vm6381_vm0 = vcmp.lt.s32.totalorder %v6360_v46, 3 }
 0x666   :  { %16671 = vst [vmem:[#allocation99_spill] sm:$0xff] %v16670_v62  ;;  %v6384_v8 = vsel %vm6382_vm11, %v6372_v19, 2102212464  ;;  %v6387_v3 = vsel %vm6379_vm12, %v6366_v44, %v6369_v38  ;;  %v6388_v13 = vsel %vm6382_vm11, %v6375_v9, 920167782  ;;  %v6517_v60 = vsub.s32 0, %v14192_v32 }
 0x667   :  { %vm6380_vm9 = vcmp.lt.s32.totalorder %v6360_v46, 2  ;;  %v6389_v59 = vsel %vm6381_vm0, %v6372_v19, %v6388_v13  ;;  %v6391_v11 = vsel %vm6379_vm12, %v6369_v38, %v6372_v19  ;;  %v6383_v51 = vsel %vm6379_vm12, %v6363_v50, %v6366_v44  ;;  %v7387_v44 = vld [vmem:[%s15545_s5] sm:$0xff]  ;;  %v14231_v19 = vpop.f32.mrb[47].mxu1 }
 0x668   :  { %v6385_v36 = vsel %vm6381_vm0, %v6369_v38, %v6384_v8  ;;  %v6390_v22 = vsel %vm6380_vm9, %v6387_v3, %v6389_v59  ;;  %v6392_v48 = vsel %vm6382_vm11, %v6378_v49, 1326507024  ;;  %vm16672_vm8 = vcmp.lt.s32.totalorder %v13829_v0, 0 }
 0x669   :  { %v6328_v17 = vsel %vm16672_vm8, %v6327_v27, %v14149_v23  ;;  %v8049_v2 = vmin.u32 %v6517_v60, %v14192_v32  ;;  %v6393_v4 = vsel %vm6381_vm0, %v6375_v9, %v6392_v48  ;;  %v6667_v47 = vor.u32 8388608, %v14165_v52  ;;  %v7388_v23 = vld [vmem:[%s15545_s5 + $0x8] sm:$0xff] }
 0x66a   :  { %v6223_v18 = vxor.u32 2147483648, %v6222_v57  ;;  %v6394_v12 = vsel %vm6380_vm9, %v6391_v11, %v6393_v4  ;;  %v14203_v53 = vmul.u32.u64.low %v14161_v1, %v6390_v22  ;;  %v14204_v30 = vmul.u32.u64.high %v14161_v1, %v6390_v22, %v14203_v53 }
 0x66b   :  { %v6519_v27 = vclz %v8049_v2  ;;  %v6386_v9 = vsel %vm6380_vm9, %v6383_v51, %v6385_v36  ;;  %v14215_v52 = vmul.u32.u64.low %v14161_v1, %v6394_v12  ;;  %v14216_v38 = vmul.u32.u64.high %v14161_v1, %v6394_v12, %v14215_v52 }
 0x66c   :  { %8928 = vcosq.f32 %v14144_v55  ;;  %vm15967_vm8 = vcmp.lt.s32.totalorder %v13833_v33, 0  ;;  %v6669_v11 = vadd.s32 1, %v8056_v35  ;;  %v14222_v10 = vadd.f32 %v13825_v42, %v13716_v6 }
 0x66d   :  { %v14227_v50 = vsel %vm14187_vm5, %v13829_v0, %v6328_v17  ;;  %v6507_v36 = vadd.s32 %v14128_v20, %v14135_v14  ;;  %v8050_v51 = vadd.s32 4294967294, %v6519_v27  ;;  %v8440_v46 = vpack.c.bf16 %v7388_v23, %v7387_v44 }
 0x66e   :  { %v14235_v49 = vsel %vm15967_vm8, %v6223_v18, %v6222_v57  ;;  %v6402_v35 = vmul.u32 %v14161_v1, %v6386_v9  ;;  %v6405_v6 = vadd.s32 1, %v14204_v30  ;;  %vm6670_vm9 = vcmp.gt.s32.totalorder %v6669_v11, 0 }
 0x66f   :  { %vm8051_vm0 = vcmp.lt.s32.totalorder %v8050_v51, 0  ;;  %vm6404_vm12 = vc.u32 %v14216_v38, %v14203_v53  ;;  %v6671_v8 = vsel %vm6670_vm9, %v6669_v11, 0  ;;  %v14241_v3 = vshll.u32 %v6667_v47, 8  ;;  %8441 = vmatprep.subr.bf16.mxu0 %v8440_v46 }
 0x670   :  { %v6522_v20 = vsel %vm8051_vm0, 0, %v8050_v51  ;;  %v6406_v14 = vsel %vm6404_vm12, %v6405_v6, %v14204_v30  ;;  %v6673_v13 = vand.u32 31, %v6671_v8  ;;  %8443 = vmatpush3.bf16.msra.mxu0 %v8440_v46  ;;  %v6558_v22 = vand.u32 2139095040, %v14222_v10 }
 0x671   :  { %v6523_v60 = vsub.s32 32, %v6522_v20  ;;  %v6527_v1 = vsub.s32 4294967266, %v6522_v20  ;;  %v6407_v59 = vadd.s32 %v6406_v14, %v6402_v35  ;;  %v6524_v48 = vshll.u32 %v14192_v32, %v6522_v20 }
 0x672   :  { %v6672_v17 = vshrl.u32 %v6671_v8, 5  ;;  %v6674_v2 = vsub.s32 32, %v6673_v13  ;;  %v6676_v4 = vshll.u32 %v16061_v28, %v6673_v13  ;;  %v6679_v30 = vshll.u32 %v16487_v15, %v6673_v13 }
 0x673   :  { %v6525_v47 = vshrl.u32 %v6507_v36, %v6523_v60  ;;  %v6528_v18 = vadd.s32 127, %v6527_v1  ;;  %v6408_v12 = vadd.s32 536870912, %v6407_v59  ;;  %v6682_v27 = vshll.u32 %v16488_v37, %v6673_v13 }
 0x674   :  { %v6677_v44 = vshrl.u32 %v16487_v15, %v6674_v2  ;;  %v6680_v23 = vshrl.u32 %v16488_v37, %v6674_v2  ;;  %v6683_v9 = vshrl.u32 %v16489_v54, %v6674_v2  ;;  %v6685_v32 = vshll.u32 %v16489_v54, %v6673_v13 }
 0x675   :  { %v6529_v52 = vshll.u32 %v6528_v18, 23  ;;  %v14253_v11 = vshrl.u32 %v6408_v12, 30  ;;  %v6686_v51 = vshrl.u32 %v16044_v21, %v6674_v2  ;;  %v14261_v8 = vadd.f32 %v13825_v42, %v13809_v56 }
 0x676   :  { %v14257_v36 = vpop.eup %8928  ;;  %v6678_v46 = vor.u32 %v6677_v44, %v6676_v4  ;;  %v6681_v35 = vor.u32 %v6680_v23, %v6679_v30  ;;  %v6684_v6 = vor.u32 %v6683_v9, %v6682_v27  ;;  %v6526_v20 = vor.u32 %v6525_v47, %v6524_v48 }
 0x677   :  { %16673 = vst [vmem:[#allocation61_spill] sm:$0xff] %v14253_v11  ;;  %16674 = vst [vmem:[#allocation83_spill] sm:$0xff] %v14261_v8  ;;  %v6530_v14 = vor.u32 4788187, %v6529_v52  ;;  %v6410_v60 = vshll.u32 %v14253_v11, 30  ;;  %v6687_v1 = vor.u32 %v6686_v51, %v6685_v32  ;;  %v6675_v18 = vshrl.u32 %v16061_v28, %v6674_v2 }
 0x678   :  { %v6688_v12 = vshll.u32 %v16044_v21, %v6673_v13  ;;  %v6689_v57 = vshrl.u32 %v16028_v43, %v6674_v2  ;;  %vm6691_vm11 = vcmp.lt.s32.totalorder %v6672_v17, 1  ;;  %vm6693_vm9 = vcmp.lt.s32.totalorder %v6672_v17, 3 }
 0x679   :  { %v6531_v62 = vand.u32 2147483647, %v6530_v14  ;;  %v14267_v4 = vsub.s32 %v6407_v59, %v6410_v60  ;;  %vm6694_vm0 = vcmp.lt.s32.totalorder %v6672_v17, 4  ;;  %v6699_v42 = vsel %vm6691_vm11, %v6678_v46, %v6681_v35 }
 0x67a   :  { %v6690_v30 = vor.u32 %v6689_v57, %v6688_v12  ;;  %v6696_v56 = vsel %vm6694_vm0, %v6684_v6, 2102212464  ;;  %v6700_v48 = vsel %vm6694_vm0, %v6687_v1, 920167782  ;;  %v6533_v47 = vcvt.s32.f32 %v6526_v20 }
 0x67b   :  { %v6413_v44 = vsub.s32 0, %v14267_v4  ;;  %vm6692_vm12 = vcmp.lt.s32.totalorder %v6672_v17, 2  ;;  %v6701_v23 = vsel %vm6693_vm9, %v6684_v6, %v6700_v48  ;;  %v6695_v27 = vsel %vm6691_vm11, %v6675_v18, %v6678_v46 }
 0x67c   :  { %v6702_v13 = vsel %vm6692_vm12, %v6699_v42, %v6701_v23  ;;  %v6703_v2 = vsel %vm6691_vm11, %v6681_v35, %v6684_v6  ;;  %v6704_v9 = vsel %vm6694_vm0, %v6690_v30, 1326507024  ;;  %v6534_v52 = vmul.f32 %v6533_v47, %v6531_v62 }
 0x67d   :  { %v8045_v59 = vmin.u32 %v6413_v44, %v14267_v4  ;;  %v6697_v32 = vsel %vm6693_vm9, %v6681_v35, %v6696_v56  ;;  %v6705_v57 = vsel %vm6693_vm9, %v6687_v1, %v6704_v9  ;;  %v6559_v60 = vshrl.u32 %v6558_v22, 23 }
 0x67e   :  { %v6706_v51 = vsel %vm6692_vm12, %v6703_v2, %v6705_v57  ;;  %v14277_v20 = vmul.u32.u64.low %v14241_v3, %v6702_v13  ;;  %v14278_v14 = vmul.u32.u64.high %v14241_v3, %v6702_v13, %v14277_v20  ;;  %v16675_v62 = vand.u32 2147483647, %v14222_v10 }
 0x67f   :  { %v6415_v46 = vclz %v8045_v59  ;;  %v14282_v18 = vmul.u32.u64.low %v14241_v3, %v6706_v51  ;;  %v14283_v6 = vmul.u32.u64.high %v14241_v3, %v6706_v51, %v14282_v18  ;;  %8930 = vsinq.f32 %v14144_v55 }
 0x680   :  { %v6562_v12 = vand.u32 8388607, %v16675_v62  ;;  %v16676_v35 = vand.u32 2147483647, %v13833_v33  ;;  %v16677_v1 = vmov 0  ;;  %v6698_v30 = vsel %vm6692_vm12, %v6695_v27, %v6697_v32 }
 0x681   :  { %v8052_v56 = vadd.s32 4294967169, %v6559_v60  ;;  %8932 = vcosq.f32 %v14227_v50  ;;  %v8046_v42 = vadd.s32 4294967294, %v6415_v46  ;;  %v6870_v48 = vand.u32 2139095040, %v14261_v8 }
 0x682   :  { %vm14290_vm11 = vcmp.le.f32.partialorder %v16676_v35, 0.7853982  ;;  %v6535_v55 = vxor.u32 2147483648, %v6534_v52  ;;  %v6403_v47 = vadd.s32 %v14203_v53, %v14216_v38  ;;  %v6717_v44 = vadd.s32 1, %v14278_v14 }
 0x683   :  { %v16678_v1 = vsel %vm14290_vm11, 4294967295, %v16677_v1  ;;  %v6227_v22 = vsel %vm14290_vm11, %v13833_v33, %v14235_v49  ;;  %v6565_v23 = vadd.s32 1, %v8052_v56  ;;  %vm8047_vm9 = vcmp.lt.s32.totalorder %v8046_v42, 0 }
 0x684   :  { %v6714_v17 = vmul.u32 %v14241_v3, %v6698_v30  ;;  %vm6716_vm0 = vc.u32 %v14283_v6, %v14277_v20  ;;  %v6563_v27 = vor.u32 8388608, %v6562_v12  ;;  %v6418_v13 = vsel %vm8047_vm9, 0, %v8046_v42 }
 0x685   :  { %v6718_v49 = vsel %vm6716_vm0, %v6717_v44, %v14278_v14  ;;  %vm6566_vm12 = vcmp.gt.s32.totalorder %v6565_v23, 0  ;;  %v6871_v2 = vshrl.u32 %v6870_v48, 23  ;;  %v6419_v9 = vsub.s32 32, %v6418_v13 }
 0x686   :  { %v6423_v59 = vsub.s32 4294967266, %v6418_v13  ;;  %v6719_v32 = vadd.s32 %v6718_v49, %v6714_v17  ;;  %v15968_v53 = vand.u32 2147483647, %v14261_v8  ;;  %8934 = vsinq.f32 %v14227_v50 }
 0x687   :  { %vm15972_vm8 = vcmp.lt.s32.totalorder %v13980_v31, 0  ;;  %v6567_v38 = vsel %vm6566_vm12, %v6565_v23, 0  ;;  %v8064_v3 = vadd.s32 4294967169, %v6871_v2  ;;  %8936 = vcosq.f32 %v6227_v22 }
 0x688   :  { %v6421_v57 = vshrl.u32 %v6403_v47, %v6419_v9  ;;  %v6424_v51 = vadd.s32 127, %v6423_v59  ;;  %v6720_v60 = vadd.s32 536870912, %v6719_v32  ;;  %8938 = vsinq.f32 %v6227_v22 }
 0x689   :  { %v14313_v14 = vsel %vm15972_vm8, %v6535_v55, %v6534_v52  ;;  %v6420_v46 = vshll.u32 %v14267_v4, %v6418_v13  ;;  %v6569_v18 = vand.u32 31, %v6567_v38  ;;  %v14318_v50 = vshll.u32 %v6563_v27, 8  ;;  %v14324_v30 = vpop.eup %8930 }
 0x68a   :  { %v6425_v62 = vshll.u32 %v6424_v51, 23  ;;  %v14316_v12 = vshrl.u32 %v6720_v60, 30  ;;  %v14322_v35 = vand.u32 8388607, %v15968_v53  ;;  %v6568_v22 = vshrl.u32 %v6567_v38, 5 }
 0x68b   :  { %v6422_v56 = vor.u32 %v6421_v57, %v6420_v46  ;;  %v6570_v42 = vsub.s32 32, %v6569_v18  ;;  %v6877_v48 = vadd.s32 1, %v8064_v3  ;;  %v14326_v52 = vpop.eup %8932  ;;  %v6572_v55 = vshll.u32 %v16061_v28, %v6569_v18 }
 0x68c   :  { %16679 = vst [vmem:[#allocation98_spill] sm:$0xff] %v14316_v12  ;;  %16680 = vst [vmem:[#allocation87_spill] sm:$0xff] %v14326_v52  ;;  %v6722_v4 = vshll.u32 %v14316_v12, 30  ;;  %v6575_v47 = vshll.u32 %v16487_v15, %v6569_v18  ;;  %v6578_v44 = vshll.u32 %v16488_v37, %v6569_v18  ;;  %v6426_v23 = vor.u32 4788187, %v6425_v62 }
 0x68d   :  { %v6573_v17 = vshrl.u32 %v16487_v15, %v6570_v42  ;;  %v6576_v27 = vshrl.u32 %v16488_v37, %v6570_v42  ;;  %v6579_v13 = vshrl.u32 %v16489_v54, %v6570_v42  ;;  %v6581_v2 = vshll.u32 %v16489_v54, %v6569_v18 }
 0x68e   :  { %v14335_v49 = vsub.s32 %v6719_v32, %v6722_v4  ;;  %v6582_v9 = vshrl.u32 %v16044_v21, %v6570_v42  ;;  %v6584_v59 = vshll.u32 %v16044_v21, %v6569_v18  ;;  %v6585_v51 = vshrl.u32 %v16028_v43, %v6570_v42 }
 0x68f   :  { %v6574_v38 = vor.u32 %v6573_v17, %v6572_v55  ;;  %v6577_v3 = vor.u32 %v6576_v27, %v6575_v47  ;;  %v6580_v57 = vor.u32 %v6579_v13, %v6578_v44  ;;  %v6429_v60 = vcvt.s32.f32 %v6422_v56 }
 0x690   :  { %v6725_v46 = vsub.s32 0, %v14335_v49  ;;  %v6583_v62 = vor.u32 %v6582_v9, %v6581_v2  ;;  %vm6587_vm9 = vcmp.lt.s32.totalorder %v6568_v22, 1  ;;  %v14342_v53 = vpop.eup %8934  ;;  %v6427_v32 = vand.u32 2147483647, %v6426_v23 }
 0x691   :  { %16681 = vst [vmem:[#allocation92_spill] sm:$0xff] %v14342_v53  ;;  %v6571_v4 = vshrl.u32 %v16061_v28, %v6570_v42  ;;  %v6586_v12 = vor.u32 %v6585_v51, %v6584_v59  ;;  %vm6590_vm0 = vcmp.lt.s32.totalorder %v6568_v22, 4  ;;  %v14345_v52 = vpop.eup %8936  ;;  %vm6588_vm12 = vcmp.lt.s32.totalorder %v6568_v22, 2 }
 0x692   :  { %v8057_v18 = vmin.u32 %v6725_v46, %v14335_v49  ;;  %v6592_v55 = vsel %vm6590_vm0, %v6580_v57, 2102212464  ;;  %v6595_v47 = vsel %vm6587_vm9, %v6574_v38, %v6577_v3  ;;  %v14349_v56 = vpop.eup %8938  ;;  %vm6589_vm8 = vcmp.lt.s32.totalorder %v6568_v22, 3  ;;  %v14359_v46 = vld [vmem:[%s15544_s4] ss:$0 sm:$0xff] }
 0x693   :  { %v6596_v44 = vsel %vm6590_vm0, %v6583_v62, 920167782  ;;  %v6599_v17 = vsel %vm6587_vm9, %v6577_v3, %v6580_v57  ;;  %v6600_v27 = vsel %vm6590_vm0, %v6586_v12, 1326507024  ;;  %v6591_v42 = vsel %vm6587_vm9, %v6571_v4, %v6574_v38 }
 0x694   :  { %v6727_v23 = vclz %v8057_v18  ;;  %v6593_v13 = vsel %vm6589_vm8, %v6577_v3, %v6592_v55  ;;  %v6597_v2 = vsel %vm6589_vm8, %v6580_v57, %v6596_v44  ;;  %v14353_v9 = vmul.f32 %v6429_v60, %v6427_v32 }
 0x695   :  { %v6598_v59 = vsel %vm6588_vm12, %v6595_v47, %v6597_v2  ;;  %v6601_v51 = vsel %vm6589_vm8, %v6583_v62, %v6600_v27  ;;  %v14363_v53 = vadd.f32 %v14359_v46, %v13869_v61  ;;  %v6875_v38 = vor.u32 8388608, %v14322_v35 }
 0x696   :  { %v8058_v12 = vadd.s32 4294967294, %v6727_v23  ;;  %v6602_v18 = vsel %vm6588_vm12, %v6599_v17, %v6601_v51  ;;  %vm6878_vm9 = vcmp.gt.s32.totalorder %v6877_v48, 0  ;;  %v6594_v3 = vsel %vm6588_vm12, %v6591_v42, %v6593_v13 }
 0x697   :  { %v14369_v57 = vmul.u32.u64.low %v14318_v50, %v6602_v18  ;;  %v14370_v60 = vmul.u32.u64.high %v14318_v50, %v6602_v18, %v14369_v57  ;;  %v6879_v62 = vsel %vm6878_vm9, %v6877_v48, 0  ;;  %v6715_v32 = vadd.s32 %v14277_v20, %v14283_v6 }
 0x698   :  { %vm8059_vm8 = vcmp.lt.s32.totalorder %v8058_v12, 0  ;;  %v14375_v61 = vmul.u32.u64.low %v14318_v50, %v6598_v59  ;;  %v14376_v4 = vmul.u32.u64.high %v14318_v50, %v6598_v59, %v14375_v61  ;;  %v6881_v47 = vand.u32 31, %v6879_v62 }
 0x699   :  { %v6730_v35 = vsel %vm8059_vm8, 0, %v8058_v12  ;;  %v6610_v27 = vmul.u32 %v14318_v50, %v6594_v3  ;;  %v14382_v48 = vshrl.u32 %v6879_v62, 5  ;;  %v14387_v23 = vshll.u32 %v6875_v38, 8 }
 0x69a   :  { %v6731_v44 = vsub.s32 32, %v6730_v35  ;;  %v6735_v17 = vsub.s32 4294967266, %v6730_v35  ;;  %v6732_v20 = vshll.u32 %v14335_v49, %v6730_v35  ;;  %vm6612_vm0 = vc.u32 %v14370_v60, %v14375_v61 }
 0x69b   :  { %v6882_v6 = vsub.s32 32, %v6881_v47  ;;  %v6613_v2 = vadd.s32 1, %v14376_v4  ;;  %v6884_v59 = vshll.u32 %v16061_v28, %v6881_v47  ;;  %v6887_v50 = vshll.u32 %v16487_v15, %v6881_v47 }
 0x69c   :  { %v6733_v42 = vshrl.u32 %v6715_v32, %v6731_v44  ;;  %v6736_v13 = vadd.s32 127, %v6735_v17  ;;  %v6890_v49 = vshll.u32 %v16488_v37, %v6881_v47  ;;  %v16682_v62 = vand.u32 2147483647, %v13980_v31 }
 0x69d   :  { %v6885_v51 = vshrl.u32 %v16487_v15, %v6882_v6  ;;  %v6888_v12 = vshrl.u32 %v16488_v37, %v6882_v6  ;;  %v6614_v57 = vsel %vm6612_vm0, %v6613_v2, %v14376_v4  ;;  %v6891_v38 = vshrl.u32 %v16489_v54, %v6882_v6 }
 0x69e   :  { %v6734_v18 = vor.u32 %v6733_v42, %v6732_v20  ;;  %v6737_v3 = vshll.u32 %v6736_v13, 23  ;;  %vm14399_vm12 = vcmp.le.f32.partialorder %v16682_v62, 0.7853982  ;;  %v16683_v32 = vmov 0 }
 0x69f   :  { %v16684_v32 = vsel %vm14399_vm12, 4294967295, %v16683_v32  ;;  %v6615_v35 = vadd.s32 %v6614_v57, %v6610_v27  ;;  %v6886_v44 = vor.u32 %v6885_v51, %v6884_v59  ;;  %v6889_v17 = vor.u32 %v6888_v12, %v6887_v50 }
 0x6a0   :  { %16685 = vst [vmem:[#allocation91_spill] sm:$0xff] %v16684_v32  ;;  %v6738_v22 = vor.u32 4788187, %v6737_v3  ;;  %v6892_v20 = vor.u32 %v6891_v38, %v6890_v49  ;;  %v6893_v42 = vshll.u32 %v16489_v54, %v6881_v47  ;;  %v6894_v4 = vshrl.u32 %v16044_v21, %v6882_v6 }
 0x6a1   :  { %v6616_v13 = vadd.s32 536870912, %v6615_v35  ;;  %v6883_v2 = vshrl.u32 %v16061_v28, %v6882_v6  ;;  %v6896_v62 = vshll.u32 %v16044_v21, %v6881_v47  ;;  %v6897_v55 = vshrl.u32 %v16028_v43, %v6882_v6 }
 0x6a2   :  { %v16686_v27 = vand.u32 2147483647, %v13999_v63  ;;  %v16687_v59 = vmov 0  ;;  %v6739_v51 = vand.u32 2147483647, %v6738_v22  ;;  %v6741_v50 = vcvt.s32.f32 %v6734_v18 }
 0x6a3   :  { %v6895_v12 = vor.u32 %v6894_v4, %v6893_v42  ;;  %vm6902_vm8 = vcmp.lt.s32.totalorder %v14382_v48, 4  ;;  %v14418_v49 = vshrl.u32 %v6616_v13, 30  ;;  %v6898_v3 = vor.u32 %v6897_v55, %v6896_v62 }
 0x6a4   :  { %vm14413_vm9 = vcmp.le.f32.partialorder %v16686_v27, 0.7853982  ;;  %v6904_v47 = vsel %vm6902_vm8, %v6892_v20, 2102212464  ;;  %v6742_v6 = vmul.f32 %v6741_v50, %v6739_v51  ;;  %vm6901_vm5 = vcmp.lt.s32.totalorder %v14382_v48, 3 }
 0x6a5   :  { %v16688_v59 = vsel %vm14413_vm9, 4294967295, %v16687_v59  ;;  %16690 = vst [vmem:[#allocation111_spill] sm:$0xff] %v14418_v49  ;;  %vm16691_vm11 = vcmp.lt.s32.totalorder %v14382_v48, 1  ;;  %v6908_v22 = vsel %vm6902_vm8, %v6895_v12, 920167782  ;;  %v6618_v18 = vshll.u32 %v14418_v49, 30 }
 0x6a6   :  { %16689 = vst [vmem:[#allocation104_spill] sm:$0xff] %v16688_v59  ;;  %v6907_v57 = vsel %vm16691_vm11, %v6886_v44, %v6889_v17  ;;  %vm16692_vm13 = vmmov %vm16691_vm11  ;;  %v6909_v55 = vsel %vm6901_vm5, %v6892_v20, %v6908_v22  ;;  %v6743_v4 = vxor.u32 2147483648, %v6742_v6  ;;  %v6905_v13 = vsel %vm6901_vm5, %v6889_v17, %v6904_v47 }
 0x6a7   :  { %v6903_v38 = vsel %vm16692_vm13, %v6883_v2, %v6886_v44  ;;  %vm16693_vm0 = vmmov %vm16691_vm11  ;;  %vm16694_vm15 = vcmp.lt.s32.totalorder %v14382_v48, 2  ;;  %v6912_v27 = vsel %vm6902_vm8, %v6898_v3, 1326507024  ;;  %v14437_v51 = vsub.s32 %v6615_v35, %v6618_v18 }
 0x6a8   :  { %v6911_v42 = vsel %vm16693_vm0, %v6889_v17, %v6892_v20  ;;  %v6910_v62 = vsel %vm16694_vm15, %v6907_v57, %v6909_v55  ;;  %v6913_v50 = vsel %vm6901_vm5, %v6895_v12, %v6912_v27  ;;  %v6539_v44 = vsel %vm14399_vm12, %v13980_v31, %v14313_v14  ;;  %vm16697_vm5 = vmmov %vm16694_vm15 }
 0x6a9   :  { %v14440_v49 = vmul.u32.u64.low %v14387_v23, %v6910_v62  ;;  %v14441_v0 = vmul.u32.u64.high %v14387_v23, %v6910_v62, %v14440_v49  ;;  %v16695_v17 = vxor.u32 2147483648, %v14353_v9  ;;  %vm16696_vm13 = vcmp.lt.s32.totalorder %v13999_v63, 0 }
 0x6aa   :  { %v6914_v35 = vsel %vm16694_vm15, %v6911_v42, %v6913_v50  ;;  %v6766_v2 = vand.u32 2139095040, %v14363_v53  ;;  %v6621_v12 = vsub.s32 0, %v14437_v51  ;;  %v6906_v3 = vsel %vm16697_vm5, %v6903_v38, %v6905_v13 }
 0x6ab   :  { %v6432_v20 = vsel %vm16696_vm13, %v16695_v17, %v14353_v9  ;;  %v14460_v47 = vmul.u32.u64.low %v14387_v23, %v6914_v35  ;;  %v14461_v57 = vmul.u32.u64.high %v14387_v23, %v6914_v35, %v14460_v47  ;;  %vm16698_vm11 = vcmp.lt.s32.totalorder %v14092_v16, 0 }
 0x6ac   :  { %v6744_v14 = vsel %vm16698_vm11, %v6743_v4, %v6742_v6  ;;  %v6767_v22 = vshrl.u32 %v6766_v2, 23  ;;  %v16699_v9 = vand.u32 2147483647, %v14363_v53  ;;  %v14469_v55 = vadd.f32 %v14359_v46, %v13988_v29 }
 0x6ad   :  { %8940 = vcosq.f32 %v6539_v44  ;;  %v6435_v48 = vsel %vm14413_vm9, %v13999_v63, %v6432_v20  ;;  %v8053_v38 = vmin.u32 %v6621_v12, %v14437_v51  ;;  %v6925_v42 = vadd.s32 1, %v14441_v0 }
 0x6ae   :  { %v6770_v18 = vand.u32 8388607, %v16699_v9  ;;  %8942 = vsinq.f32 %v6539_v44  ;;  %v16700_v6 = vand.u32 2147483647, %v14092_v16  ;;  %v16701_v4 = vmov 0 }
 0x6af   :  { %v6922_v13 = vmul.u32 %v14387_v23, %v6906_v3  ;;  %v8060_v29 = vadd.s32 4294967169, %v6767_v22  ;;  %v6623_v27 = vclz %v8053_v38  ;;  %vm6924_vm0 = vc.u32 %v14461_v57, %v14440_v49 }
 0x6b0   :  { %vm14478_vm8 = vcmp.le.f32.partialorder %v16700_v6, 0.7853982  ;;  %v7078_v50 = vand.u32 2139095040, %v14469_v55  ;;  %8944 = vcosq.f32 %v6435_v48  ;;  %v6926_v44 = vsel %vm6924_vm0, %v6925_v42, %v14441_v0 }
 0x6b1   :  { %v16702_v4 = vsel %vm14478_vm8, 4294967295, %v16701_v4  ;;  %v14486_v62 = vsel %vm14478_vm8, %v14092_v16, %v6744_v14  ;;  %v6771_v17 = vor.u32 8388608, %v6770_v18  ;;  %v6773_v20 = vadd.s32 1, %v8060_v29 }
 0x6b2   :  { %16703 = vst [vmem:[#allocation110_spill] sm:$0xff] %v16702_v4  ;;  %8946 = vsinq.f32 %v6435_v48  ;;  %v8054_v35 = vadd.s32 4294967294, %v6623_v27  ;;  %v6927_v23 = vadd.s32 %v6926_v44, %v6922_v13  ;;  %v7079_v2 = vshrl.u32 %v7078_v50, 23 }
 0x6b3   :  { %8948 = vcosq.f32 %v14486_v62  ;;  %v6611_v3 = vadd.s32 %v14375_v61, %v14370_v60  ;;  %vm6774_vm13 = vcmp.gt.s32.totalorder %v6773_v20, 0  ;;  %v14499_v18 = vshll.u32 %v6771_v17, 8 }
 0x6b4   :  { %vm8055_vm15 = vcmp.lt.s32.totalorder %v8054_v35, 0  ;;  %v6928_v47 = vadd.s32 536870912, %v6927_v23  ;;  %v6775_v14 = vsel %vm6774_vm13, %v6773_v20, 0  ;;  %v8072_v48 = vadd.s32 4294967169, %v7079_v2 }
 0x6b5   :  { %v6626_v22 = vsel %vm8055_vm15, 0, %v8054_v35  ;;  %v6777_v9 = vand.u32 31, %v6775_v14  ;;  %v6776_v13 = vshrl.u32 %v6775_v14, 5  ;;  %8950 = vsinq.f32 %v14486_v62 }
 0x6b6   :  { %v6627_v38 = vsub.s32 32, %v6626_v22  ;;  %v6631_v42 = vsub.s32 4294967266, %v6626_v22  ;;  %v14501_v6 = vshrl.u32 %v6928_v47, 30  ;;  %v6628_v29 = vshll.u32 %v14437_v51, %v6626_v22 }
 0x6b7   :  { %v6778_v27 = vsub.s32 32, %v6777_v9  ;;  %v6780_v60 = vshll.u32 %v16061_v28, %v6777_v9  ;;  %v6783_v61 = vshll.u32 %v16487_v15, %v6777_v9  ;;  %v14506_v50 = vpop.eup %8940  ;;  %v6786_v35 = vshll.u32 %v16488_v37, %v6777_v9 }
 0x6b8   :  { %16704 = vst [vmem:[#allocation89_spill] sm:$0xff] %v14501_v6  ;;  %16705 = vst [vmem:[#allocation77_spill] sm:$0xff] %v14506_v50  ;;  %v6629_v44 = vshrl.u32 %v6611_v3, %v6627_v38  ;;  %v6632_v20 = vadd.s32 127, %v6631_v42  ;;  %v6930_v17 = vshll.u32 %v14501_v6, 30  ;;  %v14510_v2 = vpop.eup %8942  ;;  %v6789_v22 = vshll.u32 %v16489_v54, %v6777_v9 }
 0x6b9   :  { %16706 = vst [vmem:[#allocation114_spill] sm:$0xff] %v14510_v2  ;;  %v6781_v47 = vshrl.u32 %v16487_v15, %v6778_v27  ;;  %v6784_v14 = vshrl.u32 %v16488_v37, %v6778_v27  ;;  %v6787_v51 = vshrl.u32 %v16489_v54, %v6778_v27  ;;  %v6790_v3 = vshrl.u32 %v16044_v21, %v6778_v27 }
 0x6ba   :  { %v6630_v12 = vor.u32 %v6629_v44, %v6628_v29  ;;  %v6633_v0 = vshll.u32 %v6632_v20, 23  ;;  %v14516_v4 = vsub.s32 %v6927_v23, %v6930_v17  ;;  %v14519_v38 = vpop.eup %8944  ;;  %v6779_v42 = vshrl.u32 %v16061_v28, %v6778_v27 }
 0x6bb   :  { %16707 = vst [vmem:[#allocation97_spill] sm:$0xff] %v14519_v38  ;;  %v6782_v6 = vor.u32 %v6781_v47, %v6780_v60  ;;  %v6785_v16 = vor.u32 %v6784_v14, %v6783_v61  ;;  %v6788_v50 = vor.u32 %v6787_v51, %v6786_v35  ;;  %v6791_v59 = vor.u32 %v6790_v3, %v6789_v22 }
 0x6bc   :  { %v14522_v2 = vpop.eup %8946  ;;  %v6634_v32 = vor.u32 4788187, %v6633_v0  ;;  %v6933_v31 = vsub.s32 0, %v14516_v4  ;;  %v6792_v29 = vshll.u32 %v16044_v21, %v6777_v9  ;;  %v6637_v23 = vcvt.s32.f32 %v6630_v12 }
 0x6bd   :  { %16708 = vst [vmem:[#allocation108_spill] sm:$0xff] %v14522_v2  ;;  %v14526_v44 = vpop.eup %8948  ;;  %v6793_v20 = vshrl.u32 %v16028_v43, %v6778_v27  ;;  %vm6795_vm5 = vcmp.lt.s32.totalorder %v6776_v13, 1  ;;  %vm6796_vm11 = vcmp.lt.s32.totalorder %v6776_v13, 2  ;;  %vm6797_vm0 = vcmp.lt.s32.totalorder %v6776_v13, 3 }
 0x6be   :  { %16709 = vst [vmem:[#allocation107_spill] sm:$0xff] %v14526_v44  ;;  %v6635_v17 = vand.u32 2147483647, %v6634_v32  ;;  %v8065_v60 = vmin.u32 %v6933_v31, %v14516_v4  ;;  %vm6798_vm13 = vcmp.lt.s32.totalorder %v6776_v13, 4  ;;  %v6803_v0 = vsel %vm6795_vm5, %v6782_v6, %v6785_v16 }
 0x6bf   :  { %v6794_v61 = vor.u32 %v6793_v20, %v6792_v29  ;;  %v6800_v35 = vsel %vm6798_vm13, %v6788_v50, 2102212464  ;;  %v6804_v47 = vsel %vm6798_vm13, %v6791_v59, 920167782  ;;  %v6799_v12 = vsel %vm6795_vm5, %v6779_v42, %v6782_v6 }
 0x6c0   :  { %v6638_v9 = vmul.f32 %v6637_v23, %v6635_v17  ;;  %v6935_v14 = vclz %v8065_v60  ;;  %v6805_v27 = vsel %vm6797_vm0, %v6788_v50, %v6804_v47  ;;  %v6801_v51 = vsel %vm6797_vm0, %v6785_v16, %v6800_v35 }
 0x6c1   :  { %v6806_v32 = vsel %vm6796_vm11, %v6803_v0, %v6805_v27  ;;  %v6807_v31 = vsel %vm6795_vm5, %v6785_v16, %v6788_v50  ;;  %v6808_v22 = vsel %vm6798_vm13, %v6794_v61, 1326507024  ;;  %v14541_v23 = vadd.f32 %v14359_v46, %v14049_v25 }
 0x6c2   :  { %v8066_v3 = vadd.s32 4294967294, %v6935_v14  ;;  %v6809_v29 = vsel %vm6797_vm0, %v6791_v59, %v6808_v22  ;;  %v14545_v42 = vmul.u32.u64.low %v14499_v18, %v6806_v32  ;;  %v14546_v20 = vmul.u32.u64.high %v14499_v18, %v6806_v32, %v14545_v42 }
 0x6c3   :  { %v6810_v6 = vsel %vm6796_vm11, %v6807_v31, %v6809_v29  ;;  %v7085_v17 = vadd.s32 1, %v8072_v48  ;;  %v6802_v16 = vsel %vm6796_vm11, %v6799_v12, %v6801_v51  ;;  %v6639_v59 = vxor.u32 2147483648, %v6638_v9 }
 0x6c4   :  { %vm8067_vm15 = vcmp.lt.s32.totalorder %v8066_v3, 0  ;;  %v14551_v62 = vmul.u32.u64.low %v14499_v18, %v6810_v6  ;;  %v14552_v50 = vmul.u32.u64.high %v14499_v18, %v6810_v6, %v14551_v62  ;;  %v16710_v25 = vand.u32 2147483647, %v14469_v55 }
 0x6c5   :  { %v6938_v60 = vsel %vm8067_vm15, 0, %v8066_v3  ;;  %vm7086_vm5 = vcmp.gt.s32.totalorder %v7085_v17, 0  ;;  %v6923_v35 = vadd.s32 %v14440_v49, %v14461_v57  ;;  %v6818_v13 = vmul.u32 %v14499_v18, %v6802_v16 }
 0x6c6   :  { %v14556_v61 = vand.u32 8388607, %v16710_v25  ;;  %v6939_v0 = vsub.s32 32, %v6938_v60  ;;  %v6943_v47 = vsub.s32 4294967266, %v6938_v60  ;;  %v6821_v14 = vadd.s32 1, %v14546_v20  ;;  %v14573_v25 = vpop.eup %8950 }
 0x6c7   :  { %v7087_v12 = vsel %vm7086_vm5, %v7085_v17, 0  ;;  %v6974_v27 = vand.u32 2139095040, %v14541_v23  ;;  %v6940_v51 = vshll.u32 %v14516_v4, %v6938_v60  ;;  %vm6820_vm11 = vc.u32 %v14552_v50, %v14545_v42  ;;  %16712 = vst [vmem:[#allocation105_spill] sm:$0xff] %v14573_v25 }
 0x6c8   :  { %v6941_v32 = vshrl.u32 %v6923_v35, %v6939_v0  ;;  %v6944_v31 = vadd.s32 127, %v6943_v47  ;;  %vm16711_vm0 = vcmp.lt.s32.totalorder %v14222_v10, 0  ;;  %v6822_v57 = vsel %vm6820_vm11, %v6821_v14, %v14546_v20 }
 0x6c9   :  { %v6640_v49 = vsel %vm16711_vm0, %v6639_v59, %v6638_v9  ;;  %v7083_v22 = vor.u32 8388608, %v14556_v61  ;;  %v7089_v18 = vand.u32 31, %v7087_v12  ;;  %v6823_v6 = vadd.s32 %v6822_v57, %v6818_v13 }
 0x6ca   :  { %v6942_v3 = vor.u32 %v6941_v32, %v6940_v51  ;;  %v6945_v29 = vshll.u32 %v6944_v31, 23  ;;  %v7088_v17 = vshrl.u32 %v7087_v12, 5  ;;  %v6975_v60 = vshrl.u32 %v6974_v27, 23 }
 0x6cb   :  { %v7090_v16 = vsub.s32 32, %v7089_v18  ;;  %v7092_v4 = vshll.u32 %v16061_v28, %v7089_v18  ;;  %v7095_v62 = vshll.u32 %v16487_v15, %v7089_v18  ;;  %v16713_v35 = vand.u32 2147483647, %v14222_v10 }
 0x6cc   :  { %v16714_v9 = vmov 0  ;;  %v6946_v20 = vor.u32 4788187, %v6945_v29  ;;  %v6949_v59 = vcvt.s32.f32 %v6942_v3  ;;  %v6824_v61 = vadd.s32 536870912, %v6823_v6 }
 0x6cd   :  { %vm14577_vm13 = vcmp.le.f32.partialorder %v16713_v35, 0.7853982  ;;  %v7098_v0 = vshll.u32 %v16488_v37, %v7089_v18  ;;  %v7093_v47 = vshrl.u32 %v16487_v15, %v7090_v16  ;;  %v7096_v13 = vshrl.u32 %v16488_v37, %v7090_v16 }
 0x6ce   :  { %v16715_v9 = vsel %vm14577_vm13, 4294967295, %v16714_v9  ;;  %v7099_v14 = vshrl.u32 %v16489_v54, %v7090_v16  ;;  %v7101_v12 = vshll.u32 %v16489_v54, %v7089_v18  ;;  %v6947_v27 = vand.u32 2147483647, %v6946_v20 }
 0x6cf   :  { %v14587_v51 = vshrl.u32 %v6824_v61, 30  ;;  %v7102_v32 = vshrl.u32 %v16044_v21, %v7090_v16  ;;  %v7104_v31 = vshll.u32 %v16044_v21, %v7089_v18  ;;  %v7094_v57 = vor.u32 %v7093_v47, %v7092_v4 }
 0x6d0   :  { %v7097_v3 = vor.u32 %v7096_v13, %v7095_v62  ;;  %v7100_v29 = vor.u32 %v7099_v14, %v7098_v0  ;;  %v7105_v35 = vshrl.u32 %v16028_v43, %v7090_v16  ;;  %v6950_v48 = vmul.f32 %v6949_v59, %v6947_v27 }
 0x6d1   :  { %v6826_v44 = vshll.u32 %v14587_v51, 30  ;;  %v7103_v25 = vor.u32 %v7102_v32, %v7101_v12  ;;  %v16716_v38 = vand.u32 2147483647, %v14541_v23  ;;  %v7091_v20 = vshrl.u32 %v16061_v28, %v7090_v16 }
 0x6d2   :  { %v7106_v61 = vor.u32 %v7105_v35, %v7104_v31  ;;  %vm7107_vm5 = vcmp.lt.s32.totalorder %v7088_v17, 1  ;;  %vm7110_vm11 = vcmp.lt.s32.totalorder %v7088_v17, 4  ;;  %v6951_v63 = vxor.u32 2147483648, %v6950_v48 }
 0x6d3   :  { %v6978_v2 = vand.u32 8388607, %v16716_v38  ;;  %v14596_v11 = vsub.s32 %v6823_v6, %v6826_v44  ;;  %vm7108_vm0 = vcmp.lt.s32.totalorder %v7088_v17, 2  ;;  %v7112_v18 = vsel %vm7110_vm11, %v7100_v29, 2102212464 }
 0x6d4   :  { %vm7109_vm15 = vcmp.lt.s32.totalorder %v7088_v17, 3  ;;  %v7111_v4 = vsel %vm7107_vm5, %v7091_v20, %v7094_v57  ;;  %v7115_v62 = vsel %vm7107_vm5, %v7094_v57, %v7097_v3  ;;  %v7116_v59 = vsel %vm7110_vm11, %v7103_v25, 920167782  ;;  %v7389_v57 = vld [vmem:[%s15545_s5 + $0x10] sm:$0xff] }
 0x6d5   :  { %v6829_v0 = vsub.s32 0, %v14596_v11  ;;  %v7113_v47 = vsel %vm7109_vm15, %v7097_v3, %v7112_v18  ;;  %v7117_v13 = vsel %vm7109_vm15, %v7100_v29, %v7116_v59  ;;  %v7119_v14 = vsel %vm7107_vm5, %v7097_v3, %v7100_v29 }
 0x6d6   :  { %v14602_v38 = vsel %vm14577_vm13, %v14222_v10, %v6640_v49  ;;  %v7118_v16 = vsel %vm7108_vm0, %v7115_v62, %v7117_v13  ;;  %v7120_v44 = vsel %vm7110_vm11, %v7106_v61, 1326507024  ;;  %v7123_v6 = vshll.u32 %v7083_v22, 8  ;;  %v7390_v49 = vld [vmem:[%s15545_s5 + $0x18] sm:$0xff]  ;;  %v7393_v13 = vld [vmem:[%s15545_s5 + $0x30] sm:$0xff] }
 0x6d7   :  { %vm16717_vm8 = vcmp.lt.s32.totalorder %v14261_v8, 0  ;;  %v8061_v27 = vmin.u32 %v6829_v0, %v14596_v11  ;;  %v7121_v32 = vsel %vm7109_vm15, %v7103_v25, %v7120_v44  ;;  %v8068_v31 = vadd.s32 4294967169, %v6975_v60 }
 0x6d8   :  { %v6952_v12 = vsel %vm16717_vm8, %v6951_v63, %v6950_v48  ;;  %v7114_v3 = vsel %vm7108_vm0, %v7111_v4, %v7113_v47  ;;  %v7122_v29 = vsel %vm7108_vm0, %v7119_v14, %v7121_v32  ;;  %v7391_v63 = vld [vmem:[%s15545_s5 + $0x20] sm:$0xff]  ;;  %v7392_v48 = vld [vmem:[%s15545_s5 + $0x28] sm:$0xff]  ;;  %v6979_v61 = vor.u32 8388608, %v6978_v2  ;;  %v7394_v14 = vld [vmem:[%s15545_s5 + $0x38] sm:$0xff] }
 0x6d9   :  { %v14616_v22 = vmul.u32.u64.low %v7123_v6, %v7118_v16  ;;  %v14617_v35 = vmul.u32.u64.high %v7123_v6, %v7118_v16, %v14616_v22  ;;  %v6831_v60 = vclz %v8061_v27  ;;  %8952 = vcosq.f32 %v14602_v38 }
 0x6da   :  { %v14626_v25 = vmul.u32.u64.low %v7123_v6, %v7122_v29  ;;  %v14627_v20 = vmul.u32.u64.high %v7123_v6, %v7122_v29, %v14626_v25  ;;  %v16718_v17 = vand.u32 2147483647, %v14261_v8  ;;  %v16719_v18 = vmov 0 }
 0x6db   :  { %v6981_v4 = vadd.s32 1, %v8068_v31  ;;  %v8444_v62 = vpack.c.bf16 %v7390_v49, %v7389_v57  ;;  %v6819_v0 = vadd.s32 %v14545_v42, %v14552_v50  ;;  %v8062_v47 = vadd.s32 4294967294, %v6831_v60 }
 0x6dc   :  { %vm14632_vm8 = vcmp.le.f32.partialorder %v16718_v17, 0.7853982  ;;  %v8448_v2 = vpack.c.bf16 %v7392_v48, %v7391_v63  ;;  %v7130_v16 = vmul.u32 %v7123_v6, %v7114_v3  ;;  %v7133_v44 = vadd.s32 1, %v14617_v35 }
 0x6dd   :  { %v16720_v18 = vsel %vm14632_vm8, 4294967295, %v16719_v18  ;;  %v14639_v59 = vsel %vm14632_vm8, %v14261_v8, %v6952_v12  ;;  %vm6982_vm15 = vcmp.gt.s32.totalorder %v6981_v4, 0  ;;  %8445 = vmatprep.subr.bf16.mxu0 %v8444_v62  ;;  %v14652_v12 = vadd.f32 %v14359_v46, %v14137_v7 }
 0x6de   :  { %16721 = vst [vmem:[#allocation120_spill] sm:$0xff] %v16720_v18  ;;  %vm8063_vm5 = vcmp.lt.s32.totalorder %v8062_v47, 0  ;;  %vm7132_vm11 = vc.u32 %v14627_v20, %v14616_v22  ;;  %v6983_v42 = vsel %vm6982_vm15, %v6981_v4, 0  ;;  %v14656_v50 = vshll.u32 %v6979_v61, 8  ;;  %8447 = vmatpush3.bf16.msra.mxu0 %v8444_v62 }
 0x6df   :  { %v6834_v27 = vsel %vm8063_vm5, 0, %v8062_v47  ;;  %v7134_v32 = vsel %vm7132_vm11, %v7133_v44, %v14617_v35  ;;  %v6985_v6 = vand.u32 31, %v6983_v42  ;;  %8449 = vmatprep.subr.bf16.mxu0 %v8448_v2  ;;  %v8452_v31 = vpack.c.bf16 %v7394_v14, %v7393_v13 }
 0x6e0   :  { %v6835_v57 = vsub.s32 32, %v6834_v27  ;;  %v6839_v49 = vsub.s32 4294967266, %v6834_v27  ;;  %v7135_v3 = vadd.s32 %v7134_v32, %v7130_v16  ;;  %v14659_v29 = vshrl.u32 %v6983_v42, 5 }
 0x6e1   :  { %v6836_v7 = vshll.u32 %v14596_v11, %v6834_v27  ;;  %v6986_v63 = vsub.s32 32, %v6985_v6  ;;  %v6988_v48 = vshll.u32 %v16061_v28, %v6985_v6  ;;  %v6991_v60 = vshll.u32 %v16487_v15, %v6985_v6 }
 0x6e2   :  { %v6837_v25 = vshrl.u32 %v6819_v0, %v6835_v57  ;;  %v6840_v61 = vadd.s32 127, %v6839_v49  ;;  %v7136_v17 = vadd.s32 536870912, %v7135_v3  ;;  %v6994_v35 = vshll.u32 %v16488_v37, %v6985_v6  ;;  %8451 = vmatpush3.bf16.msra.mxu0 %v8448_v2 }
 0x6e3   :  { %v6989_v4 = vshrl.u32 %v16487_v15, %v6986_v63  ;;  %v6992_v62 = vshrl.u32 %v16488_v37, %v6986_v63  ;;  %v6995_v47 = vshrl.u32 %v16489_v54, %v6986_v63  ;;  %v6997_v13 = vshll.u32 %v16489_v54, %v6985_v6  ;;  %8453 = vmatprep.subr.bf16.mxu0 %v8452_v31  ;;  %v14672_v44 = vpop.eup %8952 }
 0x6e4   :  { %v6838_v11 = vor.u32 %v6837_v25, %v6836_v7  ;;  %v6841_v14 = vshll.u32 %v6840_v61, 23  ;;  %v14669_v16 = vshrl.u32 %v7136_v17, 30  ;;  %v6998_v0 = vshrl.u32 %v16044_v21, %v6986_v63 }
 0x6e5   :  { %v6990_v42 = vor.u32 %v6989_v4, %v6988_v48  ;;  %v6993_v27 = vor.u32 %v6992_v62, %v6991_v60  ;;  %v6996_v2 = vor.u32 %v6995_v47, %v6994_v35  ;;  %v16007_v32 = vand.u32 2147483647, %v14652_v12 }
 0x6e6   :  { %16722 = vst [vmem:[#allocation106_spill] sm:$0xff] %v14669_v16  ;;  %v6842_v57 = vor.u32 4788187, %v6841_v14  ;;  %v7138_v49 = vshll.u32 %v14669_v16, 30  ;;  %v6987_v18 = vshrl.u32 %v16061_v28, %v6986_v63  ;;  %v6999_v8 = vor.u32 %v6998_v0, %v6997_v13  ;;  %8455 = vmatpush3.bf16.msra.mxu0 %v8452_v31 }
 0x6e7   :  { %v6845_v7 = vcvt.s32.f32 %v6838_v11  ;;  %v7000_v25 = vshll.u32 %v16044_v21, %v6985_v6  ;;  %v7001_v61 = vshrl.u32 %v16028_v43, %v6986_v63  ;;  %vm7003_vm0 = vcmp.lt.s32.totalorder %v14659_v29, 1 }
 0x6e8   :  { %v6843_v17 = vand.u32 2147483647, %v6842_v57  ;;  %v14680_v48 = vsub.s32 %v7135_v3, %v7138_v49  ;;  %vm7005_vm15 = vcmp.lt.s32.totalorder %v14659_v29, 3  ;;  %vm7006_vm5 = vcmp.lt.s32.totalorder %v14659_v29, 4 }
 0x6e9   :  { %v7002_v60 = vor.u32 %v7001_v61, %v7000_v25  ;;  %v7008_v35 = vsel %vm7006_vm5, %v6996_v2, 2102212464  ;;  %v7011_v4 = vsel %vm7003_vm0, %v6990_v42, %v6993_v27  ;;  %v7012_v31 = vsel %vm7006_vm5, %v6999_v8, 920167782 }
 0x6ea   :  { %v16723_v62 = vand.u32 2147483647, %v14363_v53  ;;  %v16724_v6 = vmov 0  ;;  %v6846_v63 = vmul.f32 %v6845_v7, %v6843_v17  ;;  %v7141_v3 = vsub.s32 0, %v14680_v48 }
 0x6eb   :  { %vm7004_vm8 = vcmp.lt.s32.totalorder %v14659_v29, 2  ;;  %v7013_v47 = vsel %vm7005_vm15, %v6996_v2, %v7012_v31  ;;  %v7007_v13 = vsel %vm7003_vm0, %v6987_v18, %v6990_v42  ;;  %v7015_v14 = vsel %vm7003_vm0, %v6993_v27, %v6996_v2 }
 0x6ec   :  { %vm14688_vm11 = vcmp.le.f32.partialorder %v16723_v62, 0.7853982  ;;  %v7014_v11 = vsel %vm7004_vm8, %v7011_v4, %v7013_v47  ;;  %v7016_v0 = vsel %vm7006_vm5, %v7002_v60, 1326507024  ;;  %v6847_v57 = vxor.u32 2147483648, %v6846_v63 }
 0x6ed   :  { %v16725_v6 = vsel %vm14688_vm11, 4294967295, %v16724_v6  ;;  %v8073_v49 = vmin.u32 %v7141_v3, %v14680_v48  ;;  %v7009_v7 = vsel %vm7005_vm15, %v6993_v27, %v7008_v35  ;;  %v7017_v25 = vsel %vm7005_vm15, %v6999_v8, %v7016_v0 }
 0x6ee   :  { %v7018_v61 = vsel %vm7004_vm8, %v7015_v14, %v7017_v25  ;;  %v14710_v18 = vmul.u32.u64.low %v14656_v50, %v7014_v11  ;;  %v14711_v42 = vmul.u32.u64.high %v14656_v50, %v7014_v11, %v14710_v18  ;;  %v14715_v2 = vadd.f32 %v14359_v46, %v14231_v19 }
 0x6ef   :  { %8954 = vsinq.f32 %v14602_v38  ;;  %v7143_v17 = vclz %v8073_v49  ;;  %v14719_v60 = vmul.u32.u64.low %v14656_v50, %v7018_v61  ;;  %v14720_v27 = vmul.u32.u64.high %v14656_v50, %v7018_v61, %v14719_v60 }
 0x6f0   :  { %8956 = vcosq.f32 %v14639_v59  ;;  %vm16011_vm0 = vcmp.lt.s32.totalorder %v14363_v53, 0  ;;  %v7010_v8 = vsel %vm7004_vm8, %v7007_v13, %v7009_v7  ;;  %v7286_v35 = vand.u32 2139095040, %v14652_v12 }
 0x6f1   :  { %8958 = vsinq.f32 %v14639_v59  ;;  %v6848_v19 = vsel %vm16011_vm0, %v6847_v57, %v6846_v63  ;;  %v8074_v46 = vadd.s32 4294967294, %v7143_v17  ;;  %v7290_v38 = vand.u32 8388607, %v16007_v32  ;;  %v7395_v63 = vld [vmem:[%s15545_s5 + $0x40] sm:$0xff] }
 0x6f2   :  { %v7131_v4 = vadd.s32 %v14616_v22, %v14627_v20  ;;  %v7029_v31 = vadd.s32 1, %v14711_v42  ;;  %v7287_v62 = vshrl.u32 %v7286_v35, 23  ;;  %v7182_v29 = vand.u32 2139095040, %v14715_v2  ;;  %v7396_v22 = vld [vmem:[%s15545_s5 + $0x48] sm:$0xff] }
 0x6f3   :  { %vm8075_vm8 = vcmp.lt.s32.totalorder %v8074_v46, 0  ;;  %v7026_v3 = vmul.u32 %v14656_v50, %v7010_v8  ;;  %vm7028_vm15 = vc.u32 %v14720_v27, %v14710_v18  ;;  %v16006_v59 = vand.u32 2147483647, %v14715_v2 }
 0x6f4   :  { %v6851_v20 = vsel %vm14688_vm11, %v14363_v53, %v6848_v19  ;;  %v7146_v47 = vsel %vm8075_vm8, 0, %v8074_v46  ;;  %v7030_v13 = vsel %vm7028_vm15, %v7029_v31, %v14711_v42  ;;  %v8080_v50 = vadd.s32 4294967169, %v7287_v62 }
 0x6f5   :  { %v7147_v11 = vsub.s32 32, %v7146_v47  ;;  %v7151_v14 = vsub.s32 4294967266, %v7146_v47  ;;  %v7031_v0 = vadd.s32 %v7030_v13, %v7026_v3  ;;  %v7291_v57 = vor.u32 8388608, %v7290_v38 }
 0x6f6   :  { %v7148_v49 = vshll.u32 %v14680_v48, %v7146_v47  ;;  %v7293_v7 = vadd.s32 1, %v8080_v50  ;;  %v7183_v25 = vshrl.u32 %v7182_v29, 23  ;;  %v8456_v61 = vpack.c.bf16 %v7396_v22, %v7395_v63 }
 0x6f7   :  { %v7149_v17 = vshrl.u32 %v7131_v4, %v7147_v11  ;;  %v7152_v60 = vadd.s32 127, %v7151_v14  ;;  %v7032_v8 = vadd.s32 536870912, %v7031_v0  ;;  %v7186_v35 = vand.u32 8388607, %v16006_v59 }
 0x6f8   :  { %v16726_v42 = vsel %vm12585_vm10, 0, %v13897_v39  ;;  %8960 = vcosq.f32 %v6851_v20  ;;  %vm7294_vm5 = vcmp.gt.s32.totalorder %v7293_v7, 0  ;;  %8457 = vmatprep.subr.bf16.mxu0 %v8456_v61  ;;  %v14765_v34 = vadd.s32 %v14710_v18, %v14720_v27 }
 0x6f9   :  { %v14756_v19 = vadd.s32 3, %v16726_v42  ;;  %v14758_v46 = vpop.eup %8954  ;;  %v7150_v48 = vor.u32 %v7149_v17, %v7148_v49  ;;  %v7153_v38 = vshll.u32 %v7152_v60, 23  ;;  %v14760_v31 = vshrl.u32 %v7032_v8, 30  ;;  %8459 = vmatpush3.bf16.msra.mxu0 %v8456_v61 }
 0x6fa   :  { %v7295_v4 = vsel %vm7294_vm5, %v7293_v7, 0  ;;  %v14762_v62 = vpop.eup %8956  ;;  %8962 = vsinq.f32 %v6851_v20  ;;  %v14767_v29 = vshll.u32 %v7291_v57, 8  ;;  %v8076_v47 = vadd.s32 4294967169, %v7183_v25 }
 0x6fb   :  { %16727 = vst [vmem:[#allocation96_spill] sm:$0xff] %v14760_v31  ;;  %16728 = vst [vmem:[#allocation113_spill] sm:$0xff] %v14762_v62  ;;  %v7297_v39 = vand.u32 31, %v7295_v4  ;;  %v14769_v3 = vpop.eup %8958  ;;  %v7154_v63 = vor.u32 4788187, %v7153_v38  ;;  %v7034_v22 = vshll.u32 %v14760_v31, 30  ;;  %v7157_v50 = vcvt.s32.f32 %v7150_v48 }
 0x6fc   :  { %16729 = vst [vmem:[#allocation119_spill] sm:$0xff] %v14769_v3  ;;  %v7187_v13 = vor.u32 8388608, %v7186_v35  ;;  %v7296_v11 = vshrl.u32 %v7295_v4, 5  ;;  %v4145_v32 = vsub.s32 4, %v12426_v40  ;;  %vm16734_vm11 = vcmp.lt.s32.totalorder %v14469_v55, 0 }
 0x6fd   :  { %v7298_v14 = vsub.s32 32, %v7297_v39  ;;  %v7300_v49 = vshll.u32 %v16061_v28, %v7297_v39  ;;  %v7155_v20 = vand.u32 2147483647, %v7154_v63  ;;  %v14774_v18 = vsub.s32 %v7031_v0, %v7034_v22 }
 0x6fe   :  { %v7303_v27 = vshll.u32 %v16487_v15, %v7297_v39  ;;  %v7306_v57 = vshll.u32 %v16488_v37, %v7297_v39  ;;  %v7309_v17 = vshll.u32 %v16489_v54, %v7297_v39  ;;  %v7312_v4 = vshll.u32 %v16044_v21, %v7297_v39 }
 0x6ff   :  { %v7301_v7 = vshrl.u32 %v16487_v15, %v7298_v14  ;;  %v7304_v61 = vshrl.u32 %v16488_v37, %v7298_v14  ;;  %v7307_v25 = vshrl.u32 %v16489_v54, %v7298_v14  ;;  %v7158_v60 = vmul.f32 %v7157_v50, %v7155_v20 }
 0x700   :  { %v7037_v8 = vsub.s32 0, %v14774_v18  ;;  %v7310_v35 = vshrl.u32 %v16044_v21, %v7298_v14  ;;  %v7313_v0 = vshrl.u32 %v16028_v43, %v7298_v14  ;;  %v16730_v63 = vand.u32 2147483647, %v14469_v55 }
 0x701   :  { %v7302_v42 = vor.u32 %v7301_v7, %v7300_v49  ;;  %v7305_v48 = vor.u32 %v7304_v61, %v7303_v27  ;;  %v7308_v38 = vor.u32 %v7307_v25, %v7306_v57  ;;  %v7189_v20 = vadd.s32 1, %v8076_v47 }
 0x702   :  { %vm14788_vm8 = vcmp.le.f32.partialorder %v16730_v63, 0.7853982  ;;  %v8069_v59 = vmin.u32 %v7037_v8, %v14774_v18  ;;  %v7311_v50 = vor.u32 %v7310_v35, %v7309_v17  ;;  %v14794_v16 = vpop.eup %8960  ;;  %v7159_v62 = vxor.u32 2147483648, %v7158_v60 }
 0x703   :  { %16733 = vst [vmem:[#allocation118_spill] sm:$0xff] %v14794_v16  ;;  %v7314_v49 = vor.u32 %v7313_v0, %v7312_v4  ;;  %vm7315_vm15 = vcmp.lt.s32.totalorder %v7296_v11, 1  ;;  %vm7318_vm5 = vcmp.lt.s32.totalorder %v7296_v11, 4  ;;  %v7299_v39 = vshrl.u32 %v16061_v28, %v7298_v14 }
 0x704   :  { %v7039_v27 = vclz %v8069_v59  ;;  %v7320_v57 = vsel %vm7318_vm5, %v7308_v38, 2102212464  ;;  %v7323_v7 = vsel %vm7315_vm15, %v7302_v42, %v7305_v48  ;;  %v14798_v61 = vpop.eup %8962  ;;  %vm7316_vm0 = vcmp.lt.s32.totalorder %v7296_v11, 2 }
 0x705   :  { %vm7317_vm10 = vcmp.lt.s32.totalorder %v7296_v11, 3  ;;  %v7324_v47 = vsel %vm7318_vm5, %v7311_v50, 920167782  ;;  %v14801_v25 = vshll.u32 %v7187_v13, 8  ;;  %v7319_v8 = vsel %vm7315_vm15, %v7299_v39, %v7302_v42 }
 0x706   :  { %v8070_v17 = vadd.s32 4294967294, %v7039_v27  ;;  %v7325_v35 = vsel %vm7317_vm10, %v7308_v38, %v7324_v47  ;;  %v7327_v0 = vsel %vm7315_vm15, %v7305_v48, %v7308_v38  ;;  %v7160_v59 = vsel %vm16734_vm11, %v7159_v62, %v7158_v60 }
 0x707   :  { %v7321_v4 = vsel %vm7317_vm10, %v7305_v48, %v7320_v57  ;;  %v7326_v14 = vsel %vm7316_vm0, %v7323_v7, %v7325_v35  ;;  %v7328_v63 = vsel %vm7318_vm5, %v7314_v49, 1326507024  ;;  %vm7190_vm12 = vcmp.gt.s32.totalorder %v7189_v20, 0 }
 0x708   :  { %vm8071_vm13 = vcmp.lt.s32.totalorder %v8070_v17, 0  ;;  %v7329_v3 = vsel %vm7317_vm10, %v7311_v50, %v7328_v63  ;;  %v14808_v31 = vmul.u32.u64.low %v14767_v29, %v7326_v14  ;;  %v14809_v16 = vmul.u32.u64.high %v14767_v29, %v7326_v14, %v14808_v31 }
 0x709   :  { %v7042_v13 = vsel %vm8071_vm13, 0, %v8070_v17  ;;  %v7330_v42 = vsel %vm7316_vm0, %v7327_v0, %v7329_v3  ;;  %vm16735_vm15 = vcmp.lt.s32.totalorder %v12313_v26, 0  ;;  %v7322_v38 = vsel %vm7316_vm0, %v7319_v8, %v7321_v4 }
 0x70a   :  { %v4146_v62 = vsel %vm16735_vm15, %v4145_v32, %v12426_v40  ;;  %v7043_v60 = vsub.s32 32, %v7042_v13  ;;  %v7047_v48 = vsub.s32 4294967266, %v7042_v13  ;;  %v7191_v49 = vsel %vm7190_vm12, %v7189_v20, 0 }
 0x70b   :  { %v14820_v50 = vsel %vm14788_vm8, %v14469_v55, %v7160_v59  ;;  %v14823_v27 = vmul.u32.u64.low %v14767_v29, %v7330_v42  ;;  %v14824_v39 = vmul.u32.u64.high %v14767_v29, %v7330_v42, %v14823_v27  ;;  %v7193_v3 = vand.u32 31, %v7191_v49 }
 0x70c   :  { %v7044_v57 = vshll.u32 %v14774_v18, %v7042_v13  ;;  %v7045_v7 = vshrl.u32 %v14765_v34, %v7043_v60  ;;  %v7048_v40 = vadd.s32 127, %v7047_v48  ;;  %v7341_v32 = vadd.s32 1, %v14809_v16 }
 0x70d   :  { %v7338_v11 = vmul.u32 %v14767_v29, %v7322_v38  ;;  %v14830_v20 = vshrl.u32 %v7191_v49, 5  ;;  %v7194_v47 = vsub.s32 32, %v7193_v3  ;;  %v4148_v17 = vsel %vm12700_vm2, 0, %v4146_v62 }
 0x70e   :  { %v7046_v8 = vor.u32 %v7045_v7, %v7044_v57  ;;  %v7049_v35 = vshll.u32 %v7048_v40, 23  ;;  %v7196_v0 = vshll.u32 %v16061_v28, %v7193_v3  ;;  %v7199_v59 = vshll.u32 %v16487_v15, %v7193_v3 }
 0x70f   :  { %vm7340_vm12 = vc.u32 %v14824_v39, %v14808_v31  ;;  %v7197_v34 = vshrl.u32 %v16487_v15, %v7194_v47  ;;  %v7202_v18 = vshll.u32 %v16488_v37, %v7193_v3  ;;  %v7205_v29 = vshll.u32 %v16489_v54, %v7193_v3 }
 0x710   :  { %v7050_v4 = vor.u32 4788187, %v7049_v35  ;;  %v7342_v14 = vsel %vm7340_vm12, %v7341_v32, %v14809_v16  ;;  %v7200_v41 = vshrl.u32 %v16488_v37, %v7194_v47  ;;  %v7208_v63 = vshll.u32 %v16044_v21, %v7193_v3 }
 0x711   :  { %v7343_v13 = vadd.s32 %v7342_v14, %v7338_v11  ;;  %v7198_v42 = vor.u32 %v7197_v34, %v7196_v0  ;;  %v7203_v62 = vshrl.u32 %v16489_v54, %v7194_v47  ;;  %v7206_v60 = vshrl.u32 %v16044_v21, %v7194_v47 }
 0x712   :  { %v7051_v48 = vand.u32 2147483647, %v7050_v4  ;;  %v7053_v38 = vcvt.s32.f32 %v7046_v8  ;;  %v7201_v15 = vor.u32 %v7200_v41, %v7199_v59  ;;  %v7209_v49 = vshrl.u32 %v16028_v43, %v7194_v47 }
 0x713   :  { %8964 = vcosq.f32 %v14820_v50  ;;  %vm16019_vm2 = vcmp.lt.s32.totalorder %v14541_v23, 0  ;;  %v7344_v16 = vadd.s32 536870912, %v7343_v13  ;;  %v7204_v27 = vor.u32 %v7203_v62, %v7202_v18  ;;  %v16739_v62 = vld [vmem:[#allocation28_spill] sm:$0xff] }
 0x714   :  { %v7207_v37 = vor.u32 %v7206_v60, %v7205_v29  ;;  %v7054_v57 = vmul.f32 %v7053_v38, %v7051_v48  ;;  %v7210_v3 = vor.u32 %v7209_v49, %v7208_v63  ;;  %vm7211_vm13 = vcmp.lt.s32.totalorder %v14830_v20, 1 }
 0x715   :  { %v4152_v7 = vadd.s32 3, %v4148_v17  ;;  %v14850_v54 = vshrl.u32 %v7344_v16, 30  ;;  %v7195_v21 = vshrl.u32 %v16061_v28, %v7194_v47  ;;  %vm7214_vm11 = vcmp.lt.s32.totalorder %v14830_v20, 4  ;;  %v16740_v16 = vld [vmem:[#allocation59_spill] sm:$0xff] }
 0x716   :  { %v7219_v43 = vsel %vm7211_vm13, %v7198_v42, %v7201_v15  ;;  %vm7213_vm0 = vcmp.lt.s32.totalorder %v14830_v20, 3  ;;  %v7216_v40 = vsel %vm7214_vm11, %v7204_v27, 2102212464  ;;  %v7220_v32 = vsel %vm7214_vm11, %v7207_v37, 920167782 }
 0x717   :  { %v7223_v11 = vsel %vm7211_vm13, %v7201_v15, %v7204_v27  ;;  %v7346_v8 = vshll.u32 %v14850_v54, 30  ;;  %vm7212_vm10 = vcmp.lt.s32.totalorder %v14830_v20, 2  ;;  %v7221_v17 = vsel %vm7213_vm0, %v7204_v27, %v7220_v32  ;;  %v16741_v20 = vld [vmem:[#allocation33_spill] sm:$0xff] }
 0x718   :  { %v7224_v35 = vsel %vm7214_vm11, %v7210_v3, 1326507024  ;;  %vm4151_vm5 = vweird.f32 %v12313_v26  ;;  %v7055_v28 = vxor.u32 2147483648, %v7054_v57  ;;  %v7215_v47 = vsel %vm7211_vm13, %v7195_v21, %v7198_v42 }
 0x719   :  { %v7222_v0 = vsel %vm7212_vm10, %v7219_v43, %v7221_v17  ;;  %v7225_v59 = vsel %vm7213_vm0, %v7207_v37, %v7224_v35  ;;  %v16736_v34 = vand.u32 2147483647, %v14541_v23  ;;  %v14872_v29 = vsub.s32 %v7343_v13, %v7346_v8 }
 0x71a   :  { %v7217_v4 = vsel %vm7213_vm0, %v7201_v15, %v7216_v40  ;;  %v7226_v14 = vsel %vm7212_vm10, %v7223_v11, %v7225_v59  ;;  %v4153_v41 = vand.u32 3, %v4152_v7  ;;  %8966 = vsinq.f32 %v14820_v50 }
 0x71b   :  { %vm14868_vm15 = vcmp.le.f32.partialorder %v16736_v34, 0.7853982  ;;  %v14878_v63 = vmul.u32.u64.low %v14801_v25, %v7226_v14  ;;  %v14879_v42 = vmul.u32.u64.high %v14801_v25, %v7226_v14, %v14878_v63  ;;  %v4156_v60 = vxor.u32 2147483648, %v16739_v62 }
 0x71c   :  { %v7339_v48 = vadd.s32 %v14808_v31, %v14824_v39  ;;  %v7349_v38 = vsub.s32 0, %v14872_v29  ;;  %v14886_v13 = vmul.u32.u64.low %v14801_v25, %v7222_v0  ;;  %v14887_v15 = vmul.u32.u64.high %v14801_v25, %v7222_v0, %v14886_v13 }
 0x71d   :  { %v7056_v49 = vsel %vm16019_vm2, %v7055_v28, %v7054_v57  ;;  %v7218_v50 = vsel %vm7212_vm10, %v7215_v47, %v7217_v4  ;;  %vm4155_vm12 = vcmp.eq.s32.totalorder %v4153_v41, 0  ;;  %v4159_v27 = vxor.u32 2147483648, %v16740_v16  ;;  %v14895_v37 = vpop.eup %8964  ;;  %v16744_v47 = vld [vmem:[#allocation8_spill] sm:$0xff]  ;;  %v16745_v4 = vld [vmem:[#allocation23_spill] sm:$0xff] }
 0x71e   :  { %v8081_v31 = vmin.u32 %v7349_v38, %v14872_v29  ;;  %v4157_v39 = vsel %vm4155_vm12, %v16740_v16, %v4156_v60  ;;  %vm4158_vm13 = vcmp.eq.s32.totalorder %v4153_v41, 2  ;;  %v4257_v3 = vand.u32 3, %v14756_v19  ;;  %v16742_v19 = vld [vmem:[#allocation37_spill] sm:$0xff]  ;;  %v16749_v16 = vld [vmem:[#allocation68_spill] sm:$0xff] }
 0x71f   :  { %vm7236_vm11 = vc.u32 %v14879_v42, %v14886_v13  ;;  %vm4154_vm0 = vcmp.lt.s32.totalorder %v4153_v41, 2  ;;  %v4160_v57 = vsel %vm4158_vm13, %v4159_v27, %v16739_v62  ;;  %v4260_v7 = vxor.u32 2147483648, %v16741_v20 }
 0x720   :  { %v7351_v21 = vclz %v8081_v31  ;;  %v7234_v43 = vmul.u32 %v14801_v25, %v7218_v50  ;;  %v7237_v40 = vadd.s32 1, %v14887_v15  ;;  %v4161_v32 = vsel %vm4154_vm0, %v4157_v39, %v4160_v57 }
 0x721   :  { %v4162_v11 = vsel %vm4151_vm5, nan, %v4161_v32  ;;  %vm4259_vm10 = vcmp.eq.s32.totalorder %v4257_v3, 0  ;;  %vm4262_vm12 = vcmp.eq.s32.totalorder %v4257_v3, 2  ;;  %v4263_v8 = vxor.u32 2147483648, %v16742_v19  ;;  %v16752_v32 = vld [vmem:[#allocation43_spill] sm:$0xff] }
 0x722   :  { %v8082_v17 = vadd.s32 4294967294, %v7351_v21  ;;  %v7238_v35 = vsel %vm7236_vm11, %v7237_v40, %v14887_v15  ;;  %vm16743_vm2 = vcmask 654336   ;;  %v4261_v28 = vsel %vm4259_vm10, %v16742_v19, %v4260_v7 }
 0x723   :  { %8372 = vmatprep.mubr.msk.f32.mxu0 %vm16743_vm2, %v4162_v11  ;;  %v4353_v0 = vsub.s32 4, %v16744_v47  ;;  %v14916_v25 = vsel %vm14868_vm15, %v14541_v23, %v7056_v49  ;;  %v7239_v26 = vadd.s32 %v7238_v35, %v7234_v43  ;;  %vm4258_vm5 = vcmp.lt.s32.totalorder %v4257_v3, 2  ;;  %v16750_v3 = vld [vmem:[#allocation50_spill] sm:$0xff]  ;;  %v16755_v35 = vld [vmem:[#allocation13_spill] sm:$0xff] }
 0x724   :  { %v4264_v59 = vsel %vm4262_vm12, %v4263_v8, %v16741_v20  ;;  %vm8083_vm13 = vcmp.lt.s32.totalorder %v8082_v17, 0  ;;  %vm4255_vm0 = vweird.f32 %v12310_v24  ;;  %vm16746_vm2 = vcmp.lt.s32.totalorder %v16745_v4, 0  ;;  %v14923_v41 = vpop.eup %8966  ;;  %v16751_v20 = vld [vmem:[#allocation12_spill] sm:$0xff] }
 0x725   :  { %v4265_v34 = vsel %vm4258_vm5, %v4261_v28, %v4264_v59  ;;  %v4354_v14 = vsel %vm16746_vm2, %v4353_v0, %v16744_v47  ;;  %v7354_v63 = vsel %vm8083_vm13, 0, %v8082_v17  ;;  %v7240_v62 = vadd.s32 536870912, %v7239_v26  ;;  %v16753_v8 = vld [vmem:[#allocation16_spill] sm:$0xff] }
 0x726   :  { %v4266_v60 = vsel %vm4255_vm0, nan, %v4265_v34  ;;  %v4356_v15 = vsel %vm12794_vm7, 0, %v4354_v14  ;;  %vm4359_vm11 = vweird.f32 %v16745_v4  ;;  %v7355_v49 = vsub.s32 32, %v7354_v63 }
 0x727   :  { %v7359_v50 = vsub.s32 4294967266, %v7354_v63  ;;  %vm16748_vm10 = vcmask 654336   ;;  %v4360_v24 = vadd.s32 3, %v4356_v15  ;;  %v4364_v27 = vxor.u32 2147483648, %v16749_v16 }
 0x728   :  { %8373 = vmatmul.mubr.msk.f32.vlgmr.msra.gmra.mrb[16].mxu0 %vm16748_vm10, %v4266_v60  ;;  %v7356_v31 = vshll.u32 %v14872_v29, %v7354_v63  ;;  %v14931_v39 = vshrl.u32 %v7240_v62, 30  ;;  %v4367_v57 = vxor.u32 2147483648, %v16750_v3  ;;  %v4457_v7 = vsub.s32 4, %v16751_v20  ;;  %v16756_v29 = vld [vmem:[#allocation24_spill] sm:$0xff] }
 0x729   :  { %v7357_v21 = vshrl.u32 %v7339_v48, %v7355_v49  ;;  %v7360_v43 = vadd.s32 127, %v7359_v50  ;;  %v4361_v40 = vand.u32 3, %v4360_v24  ;;  %v4468_v11 = vxor.u32 2147483648, %v16752_v32  ;;  %v16758_v24 = vld [vmem:[#allocation15_spill] sm:$0xff] }
 0x72a   :  { %v7242_v19 = vshll.u32 %v14931_v39, 30  ;;  %vm16754_vm7 = vcmp.lt.s32.totalorder %v16753_v8, 0  ;;  %v4471_v28 = vxor.u32 2147483648, %v16755_v35  ;;  %v4561_v47 = vsub.s32 4, %v16756_v29 }
 0x72b   :  { %v4458_v17 = vsel %vm16754_vm7, %v4457_v7, %v16751_v20  ;;  %v7358_v0 = vor.u32 %v7357_v21, %v7356_v31  ;;  %v7361_v59 = vshll.u32 %v7360_v43, 23  ;;  %vm4362_vm12 = vcmp.lt.s32.totalorder %v4361_v40, 2  ;;  %v16760_v31 = vld [vmem:[#allocation90_spill] sm:$0xff] }
 0x72c   :  { %vm4363_vm5 = vcmp.eq.s32.totalorder %v4361_v40, 0  ;;  %v14942_v34 = vsub.s32 %v7239_v26, %v7242_v19  ;;  %vm4366_vm13 = vcmp.eq.s32.totalorder %v4361_v40, 2  ;;  %v4460_v63 = vsel %vm12736_vm1, 0, %v4458_v17  ;;  %vm16762_vm1 = vmmov %vm16748_vm10  ;;  %v16763_v40 = vld [vmem:[#allocation80_spill] sm:$0xff]  ;;  %v16764_v17 = vld [vmem:[#allocation5_spill] sm:$0xff] }
 0x72d   :  { %v4365_v48 = vsel %vm4363_vm5, %v16750_v3, %v4364_v27  ;;  %v7362_v62 = vor.u32 4788187, %v7361_v59  ;;  %v7365_v60 = vcvt.s32.f32 %v7358_v0  ;;  %v4368_v38 = vsel %vm4366_vm13, %v4367_v57, %v16749_v16 }
 0x72e   :  { %v4464_v15 = vadd.s32 3, %v4460_v63  ;;  %vm16020_vm0 = vcmp.lt.s32.totalorder %v14652_v12, 0  ;;  %v7245_v49 = vsub.s32 0, %v14942_v34  ;;  %v4369_v50 = vsel %vm4362_vm12, %v4365_v48, %v4368_v38 }
 0x72f   :  { %vm16759_vm2 = vcmp.lt.s32.totalorder %v16758_v24, 0  ;;  %v4572_v27 = vxor.u32 2147483648, %v16760_v31  ;;  %v7363_v3 = vand.u32 2147483647, %v7362_v62  ;;  %v4370_v20 = vsel %vm4359_vm11, nan, %v4369_v50 }
 0x730   :  { %v4562_v26 = vsel %vm16759_vm2, %v4561_v47, %v16756_v29  ;;  %v4465_v7 = vand.u32 3, %v4464_v15  ;;  %v8077_v57 = vmin.u32 %v7245_v49, %v14942_v34  ;;  %8375 = vmatprep.mubr.msk.f32.mxu0 %vm16762_vm1, %v4370_v20  ;;  %v4575_v19 = vxor.u32 2147483648, %v16763_v40  ;;  %v16768_v15 = vld [vmem:[#allocation14_spill] sm:$0xff]  ;;  %vm16770_vm2 = vmmov %vm16762_vm1 }
 0x731   :  { %v4564_v16 = vsel %vm13072_vm4, 0, %v4562_v26  ;;  %v4665_v0 = vsub.s32 4, %v16764_v17  ;;  %v16765_v29 = vand.u32 2147483647, %v14652_v12  ;;  %v7366_v4 = vmul.f32 %v7365_v60, %v7363_v3 }
 0x732   :  { %v4568_v43 = vadd.s32 3, %v4564_v16  ;;  %vm4466_vm11 = vcmp.lt.s32.totalorder %v4465_v7, 2  ;;  %vm4467_vm7 = vcmp.eq.s32.totalorder %v4465_v7, 0  ;;  %vm4470_vm12 = vcmp.eq.s32.totalorder %v4465_v7, 2 }
 0x733   :  { %vm14964_vm10 = vcmp.le.f32.partialorder %v16765_v29, 0.7853982  ;;  %v7247_v59 = vclz %v8077_v57  ;;  %v4469_v48 = vsel %vm4467_vm7, %v16755_v35, %v4468_v11  ;;  %v4472_v14 = vsel %vm4470_vm12, %v4471_v28, %v16752_v32 }
 0x734   :  { %v4569_v63 = vand.u32 3, %v4568_v43  ;;  %v7367_v62 = vxor.u32 2147483648, %v7366_v4  ;;  %vm4463_vm4 = vweird.f32 %v16753_v8  ;;  %v4473_v38 = vsel %vm4466_vm11, %v4469_v48, %v4472_v14 }
 0x735   :  { %vm16769_vm5 = vcmp.lt.s32.totalorder %v16768_v15, 0  ;;  %8968 = vcosq.f32 %v14916_v25  ;;  %v8078_v60 = vadd.s32 4294967294, %v7247_v59  ;;  %v4474_v50 = vsel %vm4463_vm4, nan, %v4473_v38 }
 0x736   :  { %v4666_v49 = vsel %vm16769_vm5, %v4665_v0, %v16764_v17  ;;  %vm4571_vm13 = vcmp.eq.s32.totalorder %v4569_v63, 0  ;;  %8970 = vsinq.f32 %v14916_v25  ;;  %8376 = vmatmul.mubr.msk.f32.gmra.mrb[18].mxu0 %vm16770_vm2, %v4474_v50  ;;  %vm4574_vm1 = vcmp.eq.s32.totalorder %v4569_v63, 2 }
 0x737   :  { %v4573_v32 = vsel %vm4571_vm13, %v16763_v40, %v4572_v27  ;;  %v4668_v8 = vsel %vm12915_vm3, 0, %v4666_v49  ;;  %vm8079_vm11 = vcmp.lt.s32.totalorder %v8078_v60, 0  ;;  %vm4570_vm7 = vcmp.lt.s32.totalorder %v4569_v63, 2  ;;  %v16772_v27 = vld [vmem:[#allocation95_spill] sm:$0xff]  ;;  %vm16775_vm3 = vmmov %vm16770_vm2  ;;  %v16779_v49 = vld [vmem:[#allocation58_spill] sm:$0xff] }
 0x738   :  { %v4576_v35 = vsel %vm4574_vm1, %v4575_v19, %v16760_v31  ;;  %v4672_v28 = vadd.s32 3, %v4668_v8  ;;  %v7368_v26 = vsel %vm16020_vm0, %v7367_v62, %v7366_v4  ;;  %v7235_v3 = vadd.s32 %v14886_v13, %v14879_v42  ;;  %v16773_v40 = vld [vmem:[#allocation35_spill] sm:$0xff]  ;;  %v16774_v31 = vld [vmem:[#allocation56_spill] sm:$0xff] }
 0x739   :  { %v7250_v25 = vsel %vm8079_vm11, 0, %v8078_v60  ;;  %v4577_v20 = vsel %vm4570_vm7, %v4573_v32, %v4576_v35  ;;  %vm4567_vm12 = vweird.f32 %v16758_v24  ;;  %v4676_v16 = vxor.u32 2147483648, %v16772_v27  ;;  %v16776_v24 = vld [vmem:[#allocation38_spill] sm:$0xff]  ;;  %vm16780_vm11 = vmmov %vm16775_vm3 }
 0x73a   :  { %v7251_v7 = vsub.s32 32, %v7250_v25  ;;  %v7255_v21 = vsub.s32 4294967266, %v7250_v25  ;;  %v4578_v57 = vsel %vm4567_vm12, nan, %v4577_v20  ;;  %v4673_v43 = vand.u32 3, %v4672_v28  ;;  %v16783_v20 = vld [vmem:[#allocation29_spill] sm:$0xff] }
 0x73b   :  { %v4679_v17 = vxor.u32 2147483648, %v16773_v40  ;;  %v4769_v19 = vsub.s32 4, %v16774_v31  ;;  %v14992_v0 = vsel %vm14964_vm10, %v14652_v12, %v7368_v26  ;;  %v7252_v42 = vshll.u32 %v14942_v34, %v7250_v25  ;;  %8378 = vmatprep.mubr.msk.f32.mxu0 %vm16775_vm3, %v4578_v57  ;;  %v16781_v26 = vld [vmem:[#allocation112_spill] sm:$0xff] }
 0x73c   :  { %v7253_v13 = vshrl.u32 %v7235_v3, %v7251_v7  ;;  %v7256_v29 = vadd.s32 127, %v7255_v21  ;;  %vm4674_vm4 = vcmp.lt.s32.totalorder %v4673_v43, 2  ;;  %vm4675_vm5 = vcmp.eq.s32.totalorder %v4673_v43, 0  ;;  %v16782_v3 = vld [vmem:[#allocation88_spill] sm:$0xff] }
 0x73d   :  { %vm4678_vm13 = vcmp.eq.s32.totalorder %v4673_v43, 2  ;;  %vm16777_vm2 = vcmp.lt.s32.totalorder %v16776_v24, 0  ;;  %v4677_v14 = vsel %vm4675_vm5, %v16773_v40, %v4676_v16  ;;  %vm4671_vm1 = vweird.f32 %v16768_v15  ;;  %v16786_v43 = vld [vmem:[#allocation60_spill] sm:$0xff] }
 0x73e   :  { %v4770_v4 = vsel %vm16777_vm2, %v4769_v19, %v16774_v31  ;;  %v7254_v59 = vor.u32 %v7253_v13, %v7252_v42  ;;  %v7257_v48 = vshll.u32 %v7256_v29, 23  ;;  %v4680_v63 = vsel %vm4678_vm13, %v4679_v17, %v16772_v27  ;;  %v16787_v31 = vld [vmem:[#allocation103_spill] sm:$0xff]  ;;  %v16788_v42 = vld [vmem:[#allocation86_spill] sm:$0xff] }
 0x73f   :  { %v4681_v34 = vsel %vm4674_vm4, %v4677_v14, %v4680_v63  ;;  %v4772_v38 = vsel %vm13113_vm6, 0, %v4770_v4  ;;  %v4873_v60 = vsub.s32 4, %v16779_v49  ;;  %v15005_v50 = vpop.eup %8968  ;;  %8972 = vcosq.f32 %v14992_v0 }
 0x740   :  { %v7258_v32 = vor.u32 4788187, %v7257_v48  ;;  %v4682_v11 = vsel %vm4671_vm1, nan, %v4681_v34  ;;  %v4776_v8 = vadd.s32 3, %v4772_v38  ;;  %v15008_v35 = vpop.eup %8970  ;;  %v7261_v28 = vcvt.s32.f32 %v7254_v59  ;;  %v16792_v34 = vld [vmem:[#allocation51_spill] sm:$0xff] }
 0x741   :  { %8379 = vmatmul.mubr.msk.f32.gmra.mrb[20].mxu0 %vm16780_vm11, %v4682_v11  ;;  %v4780_v15 = vxor.u32 2147483648, %v16781_v26  ;;  %v4783_v25 = vxor.u32 2147483648, %v16782_v3  ;;  %vm16784_vm6 = vcmp.lt.s32.totalorder %v16783_v20, 0  ;;  %vm7181_vm7 = vcmp.lt.s32.totalorder %v14715_v2, 0 }
 0x742   :  { %v4874_v7 = vsel %vm16784_vm6, %v4873_v60, %v16779_v49  ;;  %v7259_v21 = vand.u32 2147483647, %v7258_v32  ;;  %v4777_v27 = vand.u32 3, %v4776_v8  ;;  %v4977_v40 = vsub.s32 4, %v16786_v43  ;;  %v16794_v49 = vld [vmem:[#allocation109_spill] sm:$0xff] }
 0x743   :  { %v4876_v57 = vsel %vm13084_vm14, 0, %v4874_v7  ;;  %vm4775_vm12 = vweird.f32 %v16776_v24  ;;  %v4884_v19 = vxor.u32 2147483648, %v16787_v31  ;;  %v4887_v13 = vxor.u32 2147483648, %v16788_v42  ;;  %v16796_v32 = vld [vmem:[#allocation45_spill] sm:$0xff]  ;;  %v16798_v7 = vld [vmem:[#allocation26_spill] sm:$0xff] }
 0x744   :  { %v4880_v17 = vadd.s32 3, %v4876_v57  ;;  %v7262_v29 = vmul.f32 %v7261_v28, %v7259_v21  ;;  %vm4778_vm3 = vcmp.lt.s32.totalorder %v4777_v27, 2  ;;  %vm4779_vm4 = vcmp.eq.s32.totalorder %v4777_v27, 0  ;;  %v16800_v57 = vld [vmem:[#allocation32_spill] sm:$0xff] }
 0x745   :  { %vm4782_vm5 = vcmp.eq.s32.totalorder %v4777_v27, 2  ;;  %v16789_v4 = vand.u32 2147483647, %v14715_v2  ;;  %v4781_v48 = vsel %vm4779_vm4, %v16782_v3, %v4780_v15  ;;  %vm16793_vm14 = vcmp.lt.s32.totalorder %v16792_v34, 0  ;;  %v16799_v27 = vld [vmem:[#allocation17_spill] sm:$0xff] }
 0x746   :  { %v4784_v14 = vsel %vm4782_vm5, %v4783_v25, %v16781_v26  ;;  %v4881_v63 = vand.u32 3, %v4880_v17  ;;  %v4978_v62 = vsel %vm16793_vm14, %v4977_v40, %v16786_v43  ;;  %vm4879_vm2 = vweird.f32 %v16783_v20  ;;  %v16807_v20 = vld [vmem:[#allocation75_spill] sm:$0xff] }
 0x747   :  { %vm15025_vm13 = vcmp.le.f32.partialorder %v16789_v4, 0.7853982  ;;  %v4785_v38 = vsel %vm4778_vm3, %v4781_v48, %v4784_v14  ;;  %vm16795_vm1 = vnez %v16794_v49  ;;  %v5081_v11 = vsub.s32 4, %v16796_v32  ;;  %v16805_v4 = vld [vmem:[#allocation3_spill] sm:$0xff] }
 0x748   :  { %v4980_v60 = vsel %vm16795_vm1, 0, %v4978_v62  ;;  %v7263_v8 = vxor.u32 2147483648, %v7262_v29  ;;  %v4786_v28 = vsel %vm4775_vm12, nan, %v4785_v38  ;;  %vm4883_vm11 = vcmp.eq.s32.totalorder %v4881_v63, 0 }
 0x749   :  { %vm4886_vm6 = vcmp.eq.s32.totalorder %v4881_v63, 2  ;;  %vm16797_vm4 = vcmask 654336   ;;  %vm4882_vm5 = vcmp.lt.s32.totalorder %v4881_v63, 2  ;;  %v4885_v26 = vsel %vm4883_vm11, %v16788_v42, %v4884_v19  ;;  %v15048_v43 = vpop.eup %8972  ;;  %v16802_v19 = vld [vmem:[#allocation84_spill] sm:$0xff] }
 0x74a   :  { %8381 = vmatprep.mubr.msk.f32.mxu0 %vm16797_vm4, %v4786_v28  ;;  %v4888_v15 = vsel %vm4886_vm6, %v4887_v13, %v16787_v31  ;;  %v4984_v3 = vadd.s32 3, %v4980_v60  ;;  %v4988_v21 = vxor.u32 2147483648, %v16798_v7  ;;  %v4991_v16 = vxor.u32 2147483648, %v16799_v27  ;;  %vm16804_vm14 = vmmov %vm16797_vm4  ;;  %v16808_v60 = vld [vmem:[#allocation74_spill] sm:$0xff] }
 0x74b   :  { %v4889_v25 = vsel %vm4882_vm5, %v4885_v26, %v4888_v15  ;;  %vm16801_vm3 = vcmp.lt.s32.totalorder %v16800_v57, 0  ;;  %8974 = vsinq.f32 %v14992_v0  ;;  %vm16803_vm12 = vnez %v16802_v19  ;;  %v16806_v0 = vld [vmem:[#allocation116_spill] sm:$0xff]  ;;  %v16816_v19 = vld [vmem:[#allocation79_spill] sm:$0xff] }
 0x74c   :  { %v5082_v24 = vsel %vm16801_vm3, %v5081_v11, %v16796_v32  ;;  %v4890_v40 = vsel %vm4879_vm2, nan, %v4889_v25  ;;  %v4985_v17 = vand.u32 3, %v4984_v3  ;;  %v7264_v42 = vsel %vm7181_vm7, %v7263_v8, %v7262_v29  ;;  %v16811_v26 = vld [vmem:[#allocation4_spill] sm:$0xff]  ;;  %v16813_v3 = vld [vmem:[#allocation54_spill] sm:$0xff] }
 0x74d   :  { %v5084_v31 = vsel %vm16803_vm12, 0, %v5082_v24  ;;  %8382 = vmatmul.mubr.msk.f32.gmra.mrb[22].mxu0 %vm16804_vm14, %v4890_v40  ;;  %vm4983_vm1 = vweird.f32 %v16792_v34  ;;  %v5092_v48 = vxor.u32 2147483648, %v16805_v4  ;;  %v5095_v14 = vxor.u32 2147483648, %v16806_v0  ;;  %v16815_v24 = vld [vmem:[#allocation22_spill] sm:$0xff] }
 0x74e   :  { %v5088_v13 = vadd.s32 3, %v5084_v31  ;;  %vm4987_vm11 = vcmp.eq.s32.totalorder %v4985_v17, 0  ;;  %vm4990_vm6 = vcmp.eq.s32.totalorder %v4985_v17, 2  ;;  %v5185_v63 = vsub.s32 4, %v16807_v20 }
 0x74f   :  { %vm4986_vm2 = vcmp.lt.s32.totalorder %v4985_v17, 2  ;;  %v4989_v62 = vsel %vm4987_vm11, %v16799_v27, %v4988_v21  ;;  %v4992_v38 = vsel %vm4990_vm6, %v4991_v16, %v16798_v7  ;;  %v15067_v29 = vsel %vm15025_vm13, %v14715_v2, %v7264_v42  ;;  %v16814_v27 = vld [vmem:[#allocation39_spill] sm:$0xff] }
 0x750   :  { %v5089_v49 = vand.u32 3, %v5088_v13  ;;  %v4993_v34 = vsel %vm4986_vm2, %v4989_v62, %v4992_v38  ;;  %vm5087_vm4 = vweird.f32 %v16800_v57  ;;  %vm16809_vm5 = vcmp.lt.s32.totalorder %v16808_v60, 0  ;;  %v16818_v42 = vld [vmem:[#allocation7_spill] sm:$0xff] }
 0x751   :  { %v5186_v32 = vsel %vm16809_vm5, %v5185_v63, %v16807_v20  ;;  %v4994_v11 = vsel %vm4983_vm1, nan, %v4993_v34  ;;  %vm5191_vm11 = vweird.f32 %v16808_v60  ;;  %vm16810_vm6 = vcmask 654336   ;;  %v16823_v63 = vld [vmem:[#allocation2_spill] sm:$0xff] }
 0x752   :  { %vm5090_vm3 = vcmp.lt.s32.totalorder %v5089_v49, 2  ;;  %vm5091_vm12 = vcmp.eq.s32.totalorder %v5089_v49, 0  ;;  %vm5094_vm14 = vcmp.eq.s32.totalorder %v5089_v49, 2  ;;  %8384 = vmatprep.mubr.msk.f32.mxu0 %vm16810_vm6, %v4994_v11  ;;  %vm16812_vm2 = vnez %v16811_v26 }
 0x753   :  { %v5093_v8 = vsel %vm5091_vm12, %v16806_v0, %v5092_v48  ;;  %v5096_v28 = vsel %vm5094_vm14, %v5095_v14, %v16805_v4  ;;  %v5188_v15 = vsel %vm16812_vm2, 0, %v5186_v32  ;;  %v5289_v25 = vsub.s32 4, %v16813_v3  ;;  %vm16819_vm12 = vmmov %vm16810_vm6  ;;  %v16820_v48 = vld [vmem:[#allocation115_spill] sm:$0xff]  ;;  %v16822_v14 = vld [vmem:[#allocation9_spill] sm:$0xff] }
 0x754   :  { %v5097_v7 = vsel %vm5090_vm3, %v5093_v8, %v5096_v28  ;;  %v5192_v21 = vadd.s32 3, %v5188_v15  ;;  %v5196_v16 = vxor.u32 2147483648, %v16814_v27  ;;  %v5199_v40 = vxor.u32 2147483648, %v16815_v24  ;;  %v16825_v32 = vld [vmem:[#allocation101_spill] sm:$0xff] }
 0x755   :  { %v5098_v17 = vsel %vm5087_vm4, nan, %v5097_v7  ;;  %vm16817_vm1 = vcmp.lt.s32.totalorder %v16816_v19, 0  ;;  %vm5295_vm5 = vweird.f32 %v16816_v19  ;;  %v5393_v13 = vsub.s32 4, %v16818_v42  ;;  %v15094_v57 = vpop.eup %8974  ;;  %v16827_v7 = vld [vmem:[#allocation36_spill] sm:$0xff] }
 0x756   :  { %v5290_v31 = vsel %vm16817_vm1, %v5289_v25, %v16813_v3  ;;  %8385 = vmatmul.mubr.msk.f32.gmra.mrb[24].mxu0 %vm16819_vm12, %v5098_v17  ;;  %v5193_v4 = vand.u32 3, %v5192_v21  ;;  %vm16821_vm3 = vnez %v16820_v48  ;;  %v5300_v20 = vxor.u32 2147483648, %v16822_v14  ;;  %v16828_v17 = vld [vmem:[#allocation66_spill] sm:$0xff] }
 0x757   :  { %v5292_v0 = vsel %vm16821_vm3, 0, %v5290_v31  ;;  %v5303_v62 = vxor.u32 2147483648, %v16823_v63  ;;  %vm16824_vm4 = vcmp.lt.s32.totalorder %v13177_v58, 0  ;;  %v5404_v34 = vxor.u32 2147483648, %v13785_v5 }
 0x758   :  { %v5296_v38 = vadd.s32 3, %v5292_v0  ;;  %v5394_v49 = vsel %vm16824_vm4, %v5393_v13, %v16818_v42  ;;  %v5497_v11 = vsub.s32 4, %v16825_v32  ;;  %vm5194_vm14 = vcmp.lt.s32.totalorder %v5193_v4, 2  ;;  %v16830_v42 = vld [vmem:[#allocation30_spill] sm:$0xff] }
 0x759   :  { %vm5195_vm6 = vcmp.eq.s32.totalorder %v5193_v4, 0  ;;  %vm5198_vm2 = vcmp.eq.s32.totalorder %v5193_v4, 2  ;;  %vm16826_vm1 = vnez %v16612_v45  ;;  %v5407_v21 = vxor.u32 2147483648, %v16827_v7 }
 0x75a   :  { %v5396_v8 = vsel %vm16826_vm1, 0, %v5394_v49  ;;  %v5197_v28 = vsel %vm5195_vm6, %v16815_v24, %v5196_v16  ;;  %v5200_v26 = vsel %vm5198_vm2, %v5199_v40, %v16814_v27  ;;  %v5297_v15 = vand.u32 3, %v5296_v38  ;;  %v16832_v24 = vld [vmem:[#allocation19_spill] sm:$0xff] }
 0x75b   :  { %v5400_v3 = vadd.s32 3, %v5396_v8  ;;  %v5201_v25 = vsel %vm5194_vm14, %v5197_v28, %v5200_v26  ;;  %vm16829_vm12 = vcmp.lt.s32.totalorder %v16828_v17, 0  ;;  %v5508_v13 = vxor.u32 2147483648, %v16830_v42  ;;  %v16834_v38 = vld [vmem:[#allocation27_spill] sm:$0xff]  ;;  %v16838_v28 = vld [vmem:[#allocation34_spill] sm:$0xff] }
 0x75c   :  { %v5498_v31 = vsel %vm16829_vm12, %v5497_v11, %v16825_v32  ;;  %v5202_v4 = vsel %vm5191_vm11, nan, %v5201_v25  ;;  %vm5298_vm3 = vcmp.lt.s32.totalorder %v5297_v15, 2  ;;  %vm5299_vm4 = vcmp.eq.s32.totalorder %v5297_v15, 0  ;;  %v16835_v32 = vld [vmem:[#allocation20_spill] sm:$0xff] }
 0x75d   :  { %vm5302_vm1 = vcmp.eq.s32.totalorder %v5297_v15, 2  ;;  %vm16831_vm6 = vcmask 654336   ;;  %v5301_v45 = vsel %vm5299_vm4, %v16823_v63, %v5300_v20  ;;  %v5401_v16 = vand.u32 3, %v5400_v3 }
 0x75e   :  { %8387 = vmatprep.mubr.msk.f32.mxu0 %vm16831_vm6, %v5202_v4  ;;  %v5304_v27 = vsel %vm5302_vm1, %v5303_v62, %v16822_v14  ;;  %vm16833_vm14 = vnez %v16832_v24  ;;  %v5511_v49 = vxor.u32 2147483648, %v16834_v38  ;;  %v5601_v60 = vsub.s32 4, %v16835_v32  ;;  %v16836_v62 = vld [vmem:[#allocation102_spill] sm:$0xff]  ;;  %v16842_v4 = vld [vmem:[#allocation11_spill] sm:$0xff] }
 0x75f   :  { %v5500_v40 = vsel %vm16833_vm14, 0, %v5498_v31  ;;  %v5305_v48 = vsel %vm5298_vm3, %v5301_v45, %v5304_v27  ;;  %vm5402_vm11 = vcmp.lt.s32.totalorder %v5401_v16, 2  ;;  %vm5403_vm2 = vcmp.eq.s32.totalorder %v5401_v16, 0 }
 0x760   :  { %v5504_v0 = vadd.s32 3, %v5500_v40  ;;  %v5306_v11 = vsel %vm5295_vm5, nan, %v5305_v48  ;;  %vm5406_vm12 = vcmp.eq.s32.totalorder %v5401_v16, 2  ;;  %v5405_v14 = vsel %vm5403_vm2, %v16827_v7, %v5404_v34  ;;  %v16840_v7 = vld [vmem:[#allocation57_spill] sm:$0xff]  ;;  %v16843_v16 = vld [vmem:[#allocation42_spill] sm:$0xff]  ;;  %v16847_v40 = vld [vmem:[#allocation63_spill] sm:$0xff] }
 0x761   :  { %8388 = vmatmul.mubr.msk.f32.gmra.mrb[26].mxu0 %vm16831_vm6, %v5306_v11  ;;  %v5408_v20 = vsel %vm5406_vm12, %v5407_v21, %v13785_v5  ;;  %vm16837_vm3 = vcmp.lt.s32.totalorder %v16836_v62, 0  ;;  %8976 = vcosq.f32 %v15067_v29  ;;  %vm5399_vm4 = vweird.f32 %v13177_v58  ;;  %v16841_v21 = vld [vmem:[#allocation49_spill] sm:$0xff] }
 0x762   :  { %v5505_v63 = vand.u32 3, %v5504_v0  ;;  %v5602_v8 = vsel %vm16837_vm3, %v5601_v60, %v16835_v32  ;;  %v5409_v19 = vsel %vm5402_vm11, %v5405_v14, %v5408_v20  ;;  %vm16839_vm5 = vnez %v16838_v28  ;;  %vm16844_vm11 = vmmov %vm16831_vm6  ;;  %v16850_v60 = vld [vmem:[#allocation25_spill] sm:$0xff]  ;;  %v16852_v20 = vld [vmem:[#allocation31_spill] sm:$0xff] }
 0x763   :  { %v5604_v26 = vsel %vm16839_vm5, 0, %v5602_v8  ;;  %v5410_v15 = vsel %vm5399_vm4, nan, %v5409_v19  ;;  %vm5503_vm1 = vweird.f32 %v16828_v17  ;;  %v5612_v58 = vxor.u32 2147483648, %v16840_v7  ;;  %v16853_v8 = vld [vmem:[#allocation44_spill] sm:$0xff]  ;;  %v16855_v28 = vld [vmem:[#allocation46_spill] sm:$0xff] }
 0x764   :  { %vm5507_vm14 = vcmp.eq.s32.totalorder %v5505_v63, 0  ;;  %vm5510_vm2 = vcmp.eq.s32.totalorder %v5505_v63, 2  ;;  %8390 = vmatprep.mubr.msk.f32.mxu0 %vm16831_vm6, %v5410_v15  ;;  %vm5506_vm12 = vcmp.lt.s32.totalorder %v5505_v63, 2  ;;  %v5608_v3 = vadd.s32 3, %v5604_v26 }
 0x765   :  { %v5509_v5 = vsel %vm5507_vm14, %v16834_v38, %v5508_v13  ;;  %v5512_v34 = vsel %vm5510_vm2, %v5511_v49, %v16830_v42  ;;  %v5615_v31 = vxor.u32 2147483648, %v16841_v21  ;;  %v5705_v45 = vsub.s32 4, %v16842_v4  ;;  %v16845_v42 = vld [vmem:[#allocation94_spill] sm:$0xff] }
 0x766   :  { %v5513_v25 = vsel %vm5506_vm12, %v5509_v5, %v5512_v34  ;;  %8978 = vsinq.f32 %v15067_v29  ;;  %v5609_v27 = vand.u32 3, %v5608_v3  ;;  %v5809_v24 = vsub.s32 4, %v16843_v16  ;;  %v16848_v29 = vld [vmem:[#allocation10_spill] sm:$0xff] }
 0x767   :  { %v5514_v17 = vsel %vm5503_vm1, nan, %v5513_v25  ;;  %vm5607_vm3 = vweird.f32 %v16836_v62  ;;  %vm16846_vm4 = vcmp.lt.s32.totalorder %v16845_v42, 0  ;;  %vm5711_vm5 = vweird.f32 %v16845_v42  ;;  %v16857_v25 = vld [vmem:[#allocation71_spill] sm:$0xff] }
 0x768   :  { %8391 = vmatmul.mubr.msk.f32.gmra.mrb[28].mxu0 %vm16844_vm11, %v5514_v17  ;;  %v5706_v13 = vsel %vm16846_vm4, %v5705_v45, %v16842_v4  ;;  %v5716_v48 = vxor.u32 2147483648, %v16847_v40  ;;  %vm5610_vm14 = vcmp.lt.s32.totalorder %v5609_v27, 2  ;;  %vm5611_vm2 = vcmp.eq.s32.totalorder %v5609_v27, 0  ;;  %v16861_v45 = vld [vmem:[#allocation18_spill] sm:$0xff] }
 0x769   :  { %vm5614_vm6 = vcmp.eq.s32.totalorder %v5609_v27, 2  ;;  %vm16849_vm1 = vnez %v16848_v29  ;;  %v5613_v38 = vsel %vm5611_vm2, %v16841_v21, %v5612_v58  ;;  %vm16851_vm12 = vcmp.lt.s32.totalorder %v16850_v60, 0  ;;  %v16858_v58 = vld [vmem:[#allocation64_spill] sm:$0xff]  ;;  %v16864_v29 = vld [vmem:[#allocation6_spill] sm:$0xff] }
 0x76a   :  { %v5708_v0 = vsel %vm16849_vm1, 0, %v5706_v13  ;;  %v5616_v49 = vsel %vm5614_vm6, %v5615_v31, %v16840_v7  ;;  %v5810_v11 = vsel %vm16851_vm12, %v5809_v24, %v16843_v16  ;;  %v5719_v63 = vxor.u32 2147483648, %v16852_v20  ;;  %v16859_v31 = vld [vmem:[#allocation117_spill] sm:$0xff]  ;;  %v16862_v24 = vld [vmem:[#allocation62_spill] sm:$0xff] }
 0x76b   :  { %v5712_v32 = vadd.s32 3, %v5708_v0  ;;  %v5617_v14 = vsel %vm5610_vm14, %v5613_v38, %v5616_v49  ;;  %vm16854_vm11 = vnez %v16853_v8  ;;  %v5913_v26 = vsub.s32 4, %v16855_v28  ;;  %v15161_v3 = vpop.eup %8976  ;;  %v16868_v8 = vld [vmem:[#allocation76_spill] sm:$0xff] }
 0x76c   :  { %v5812_v19 = vsel %vm16854_vm11, 0, %v5810_v11  ;;  %v5618_v15 = vsel %vm5607_vm3, nan, %v5617_v14  ;;  %vm5815_vm4 = vweird.f32 %v16850_v60  ;;  %vm16856_vm2 = vcmask 654336  }
 0x76d   :  { %v5713_v5 = vand.u32 3, %v5712_v32  ;;  %v5816_v34 = vadd.s32 3, %v5812_v19  ;;  %8393 = vmatprep.mubr.msk.f32.mxu0 %vm16856_vm2, %v5618_v15  ;;  %v5820_v7 = vxor.u32 2147483648, %v16857_v25  ;;  %v5823_v21 = vxor.u32 2147483648, %v16858_v58 }
 0x76e   :  { %vm16860_vm14 = vcmp.lt.s32.totalorder %v16859_v31, 0  ;;  %v6017_v17 = vsub.s32 4, %v16861_v45  ;;  %vm16863_vm12 = vnez %v16862_v24  ;;  %vm16865_vm11 = vcmp.lt.s32.totalorder %v16864_v29, 0 }
 0x76f   :  { %v5914_v4 = vsel %vm16860_vm14, %v5913_v26, %v16855_v28  ;;  %vm5714_vm6 = vcmp.lt.s32.totalorder %v5713_v5, 2  ;;  %vm5715_vm3 = vcmp.eq.s32.totalorder %v5713_v5, 0  ;;  %vm5718_vm1 = vcmp.eq.s32.totalorder %v5713_v5, 2  ;;  %v16869_v28 = vld [vmem:[#allocation70_spill] sm:$0xff] }
 0x770   :  { %v5817_v62 = vand.u32 3, %v5816_v34  ;;  %v5717_v27 = vsel %vm5715_vm3, %v16852_v20, %v5716_v48  ;;  %v5720_v16 = vsel %vm5718_vm1, %v5719_v63, %v16847_v40  ;;  %v5916_v13 = vsel %vm16863_vm12, 0, %v5914_v4  ;;  %v15177_v49 = vpop.eup %8978  ;;  %v16867_v20 = vld [vmem:[#allocation73_spill] sm:$0xff] }
 0x771   :  { %v6018_v0 = vsel %vm16865_vm11, %v6017_v17, %v16861_v45  ;;  %v5721_v38 = vsel %vm5714_vm6, %v5717_v27, %v5720_v16  ;;  %v5920_v11 = vadd.s32 3, %v5916_v13  ;;  %vm16866_vm3 = vcmask 654336   ;;  %v16871_v34 = vld [vmem:[#allocation65_spill] sm:$0xff] }
 0x772   :  { %vm5818_vm2 = vcmp.lt.s32.totalorder %v5817_v62, 2  ;;  %vm5819_vm14 = vcmp.eq.s32.totalorder %v5817_v62, 0  ;;  %vm5822_vm0 = vcmp.eq.s32.totalorder %v5817_v62, 2  ;;  %v5722_v32 = vsel %vm5711_vm5, nan, %v5721_v38  ;;  %vm16872_vm5 = vmmov %vm16866_vm3  ;;  %v16874_v62 = vld [vmem:[#allocation47_spill] sm:$0xff] }
 0x773   :  { %v5821_v48 = vsel %vm5819_vm14, %v16858_v58, %v5820_v7  ;;  %v5824_v40 = vsel %vm5822_vm0, %v5823_v21, %v16857_v25  ;;  %8394 = vmatmul.mubr.msk.f32.gmra.mrb[30].mxu0 %vm16866_vm3, %v5722_v32  ;;  %v5924_v63 = vxor.u32 2147483648, %v16867_v20  ;;  %v5927_v19 = vxor.u32 2147483648, %v16868_v8  ;;  %v16873_v21 = vld [vmem:[#allocation82_spill] sm:$0xff]  ;;  %v16877_v32 = vld [vmem:[#allocation81_spill] sm:$0xff] }
 0x774   :  { %v5825_v14 = vsel %vm5818_vm2, %v5821_v48, %v5824_v40  ;;  %vm16870_vm6 = vnez %v16869_v28  ;;  %v5921_v42 = vand.u32 3, %v5920_v11  ;;  %v6121_v7 = vsub.s32 4, %v16871_v34 }
 0x775   :  { %v6020_v26 = vsel %vm16870_vm6, 0, %v6018_v0  ;;  %v5826_v15 = vsel %vm5815_vm4, nan, %v5825_v14  ;;  %vm5919_vm0 = vweird.f32 %v16859_v31  ;;  %v6028_v25 = vxor.u32 2147483648, %v14324_v30 }
 0x776   :  { %v6024_v5 = vadd.s32 3, %v6020_v26  ;;  %8396 = vmatprep.mubr.msk.f32.mxu0 %vm16872_vm5, %v5826_v15  ;;  %v6031_v58 = vxor.u32 2147483648, %v14257_v36  ;;  %v6225_v4 = vsub.s32 4, %v16873_v21  ;;  %vm5922_vm1 = vcmp.lt.s32.totalorder %v5921_v42, 2  ;;  %v16884_v26 = vld [vmem:[#allocation85_spill] sm:$0xff] }
 0x777   :  { %vm5923_vm12 = vcmp.eq.s32.totalorder %v5921_v42, 0  ;;  %vm5926_vm11 = vcmp.eq.s32.totalorder %v5921_v42, 2  ;;  %vm16875_vm4 = vcmp.lt.s32.totalorder %v16874_v62, 0  ;;  %vm16876_vm2 = vcmp.lt.s32.totalorder %v13833_v33, 0  ;;  %v16885_v42 = vld [vmem:[#allocation61_spill] sm:$0xff] }
 0x778   :  { %v6025_v45 = vand.u32 3, %v6024_v5  ;;  %v5925_v60 = vsel %vm5923_vm12, %v16868_v8, %v5924_v63  ;;  %v5928_v17 = vsel %vm5926_vm11, %v5927_v19, %v16867_v20  ;;  %v6122_v27 = vsel %vm16875_vm4, %v6121_v7, %v16871_v34  ;;  %v16881_v63 = vld [vmem:[#allocation100_spill] sm:$0xff]  ;;  %v16882_v8 = vld [vmem:[#allocation93_spill] sm:$0xff]  ;;  %v16886_v34 = vld [vmem:[#allocation55_spill] sm:$0xff] }
 0x779   :  { %v6226_v16 = vsel %vm16876_vm2, %v6225_v4, %v16873_v21  ;;  %v5929_v24 = vsel %vm5922_vm1, %v5925_v60, %v5928_v17  ;;  %vm16878_vm5 = vnez %v16877_v32  ;;  %vm16879_vm12 = vcmask 654336  }
 0x77a   :  { %vm6026_vm14 = vcmp.lt.s32.totalorder %v6025_v45, 2  ;;  %vm6027_vm3 = vcmp.eq.s32.totalorder %v6025_v45, 0  ;;  %vm6030_vm6 = vcmp.eq.s32.totalorder %v6025_v45, 2  ;;  %v5930_v13 = vsel %vm5919_vm0, nan, %v5929_v24  ;;  %vm16883_vm0 = vmmov %vm16879_vm12  ;;  %v16888_v45 = vld [vmem:[#allocation99_spill] sm:$0xff]  ;;  %v16890_v24 = vld [vmem:[#allocation52_spill] sm:$0xff] }
 0x77b   :  { %v6029_v0 = vsel %vm6027_vm3, %v14257_v36, %v6028_v25  ;;  %v6032_v38 = vsel %vm6030_vm6, %v6031_v58, %v14324_v30  ;;  %v6124_v48 = vsel %vm16878_vm5, 0, %v6122_v27  ;;  %8397 = vmatmul.mubr.msk.f32.gmra.mrb[32].mxu0 %vm16879_vm12, %v5930_v13  ;;  %vm6023_vm11 = vweird.f32 %v16864_v29 }
 0x77c   :  { %v6033_v40 = vsel %vm6026_vm14, %v6029_v0, %v6032_v38  ;;  %v6128_v11 = vadd.s32 3, %v6124_v48  ;;  %vm16880_vm1 = vnez %v16678_v1  ;;  %v6132_v31 = vxor.u32 2147483648, %v16881_v63  ;;  %v16893_v38 = vld [vmem:[#allocation92_spill] sm:$0xff] }
 0x77d   :  { %v6228_v14 = vsel %vm16880_vm1, 0, %v6226_v16  ;;  %v6034_v20 = vsel %vm6023_vm11, nan, %v6033_v40  ;;  %v6135_v19 = vxor.u32 2147483648, %v16882_v8  ;;  %vm6127_vm4 = vweird.f32 %v16874_v62 }
 0x77e   :  { %v6232_v36 = vadd.s32 3, %v6228_v14  ;;  %8399 = vmatprep.mubr.msk.f32.mxu0 %vm16883_vm0, %v6034_v20  ;;  %v6129_v30 = vand.u32 3, %v6128_v11  ;;  %v6236_v28 = vxor.u32 2147483648, %v14349_v56  ;;  %v6329_v29 = vsub.s32 4, %v16884_v26  ;;  %v16896_v20 = vld [vmem:[#allocation72_spill] sm:$0xff] }
 0x77f   :  { %vm6231_vm2 = vweird.f32 %v13833_v33  ;;  %v6239_v1 = vxor.u32 2147483648, %v14345_v52  ;;  %v6433_v5 = vsub.s32 4, %v16885_v42  ;;  %vm16887_vm5 = vcmp.lt.s32.totalorder %v16886_v34, 0 }
 0x780   :  { %v6233_v15 = vand.u32 3, %v6232_v36  ;;  %vm6130_vm14 = vcmp.lt.s32.totalorder %v6129_v30, 2  ;;  %vm6131_vm3 = vcmp.eq.s32.totalorder %v6129_v30, 0  ;;  %vm6134_vm6 = vcmp.eq.s32.totalorder %v6129_v30, 2  ;;  %v16900_v30 = vld [vmem:[#allocation111_spill] sm:$0xff] }
 0x781   :  { %v6330_v7 = vsel %vm16887_vm5, %v6329_v29, %v16884_v26  ;;  %v6133_v25 = vsel %vm6131_vm3, %v16882_v8, %v6132_v31  ;;  %v6136_v58 = vsel %vm6134_vm6, %v6135_v19, %v16881_v63  ;;  %vm16889_vm0 = vnez %v16888_v45  ;;  %v16898_v31 = vld [vmem:[#allocation108_spill] sm:$0xff]  ;;  %v16899_v19 = vld [vmem:[#allocation97_spill] sm:$0xff] }
 0x782   :  { %vm6234_vm12 = vcmp.lt.s32.totalorder %v6233_v15, 2  ;;  %vm6235_vm11 = vcmp.eq.s32.totalorder %v6233_v15, 0  ;;  %v6137_v21 = vsel %vm6130_vm14, %v6133_v25, %v6136_v58  ;;  %vm6238_vm1 = vcmp.eq.s32.totalorder %v6233_v15, 2  ;;  %v16901_v15 = vld [vmem:[#allocation53_spill] sm:$0xff] }
 0x783   :  { %v6237_v4 = vsel %vm6235_vm11, %v14345_v52, %v6236_v28  ;;  %v6332_v60 = vsel %vm16889_vm0, 0, %v6330_v7  ;;  %v6138_v17 = vsel %vm6127_vm4, nan, %v6137_v21  ;;  %v6240_v27 = vsel %vm6238_vm1, %v6239_v1, %v14349_v56  ;;  %v16894_v52 = vld [vmem:[#allocation87_spill] sm:$0xff] }
 0x784   :  { %v6336_v16 = vadd.s32 3, %v6332_v60  ;;  %vm16891_vm3 = vcmp.lt.s32.totalorder %v16890_v24, 0  ;;  %vm16892_vm6 = vcmask 654336   ;;  %v6241_v0 = vsel %vm6234_vm12, %v6237_v4, %v6240_v27  ;;  %v16904_v21 = vld [vmem:[#allocation91_spill] sm:$0xff] }
 0x785   :  { %v6434_v13 = vsel %vm16891_vm3, %v6433_v5, %v16885_v42  ;;  %8400 = vmatmul.mubr.msk.f32.gmra.mrb[34].mxu0 %vm16892_vm6, %v6138_v17  ;;  %v6340_v32 = vxor.u32 2147483648, %v16893_v38  ;;  %v6343_v48 = vxor.u32 2147483648, %v16894_v52  ;;  %v6242_v62 = vsel %vm6231_vm2, nan, %v6241_v0  ;;  %vm16897_vm4 = vmmov %vm16892_vm6 }
 0x786   :  { %v6436_v11 = vsel %vm14413_vm9, 0, %v6434_v13  ;;  %v6337_v14 = vand.u32 3, %v6336_v16  ;;  %v6537_v63 = vsub.s32 4, %v16896_v20  ;;  %8402 = vmatprep.mubr.msk.f32.mxu0 %vm16897_vm4, %v6242_v62  ;;  %vm6335_vm14 = vweird.f32 %v16886_v34  ;;  %v16907_v16 = vld [vmem:[#allocation114_spill] sm:$0xff]  ;;  %v16908_v13 = vld [vmem:[#allocation77_spill] sm:$0xff]  ;;  %v16911_v62 = vld [vmem:[#allocation40_spill] sm:$0xff] }
 0x787   :  { %v6440_v56 = vadd.s32 3, %v6436_v11  ;;  %v6444_v8 = vxor.u32 2147483648, %v16898_v31  ;;  %v6447_v36 = vxor.u32 2147483648, %v16899_v19  ;;  %v6641_v28 = vsub.s32 4, %v16900_v30 }
 0x788   :  { %vm6338_vm5 = vcmp.lt.s32.totalorder %v6337_v14, 2  ;;  %vm6339_vm12 = vcmp.eq.s32.totalorder %v6337_v14, 0  ;;  %vm6342_vm9 = vcmp.eq.s32.totalorder %v6337_v14, 2  ;;  %vm16902_vm2 = vcmp.lt.s32.totalorder %v16901_v15, 0 }
 0x789   :  { %v6441_v26 = vand.u32 3, %v6440_v56  ;;  %v6341_v33 = vsel %vm6339_vm12, %v16894_v52, %v6340_v32  ;;  %v6344_v29 = vsel %vm6342_vm9, %v6343_v48, %v16893_v38  ;;  %v6538_v1 = vsel %vm16902_vm2, %v6537_v63, %v16896_v20  ;;  %v16910_v48 = vld [vmem:[#allocation98_spill] sm:$0xff] }
 0x78a   :  { %vm16903_vm11 = vcmp.lt.s32.totalorder %v14222_v10, 0  ;;  %v6345_v5 = vsel %vm6338_vm5, %v6341_v33, %v6344_v29  ;;  %vm16905_vm6 = vnez %v16904_v21  ;;  %vm6439_vm12 = vweird.f32 %v16890_v24  ;;  %v16917_v29 = vld [vmem:[#allocation105_spill] sm:$0xff]  ;;  %v16922_v21 = vld [vmem:[#allocation118_spill] sm:$0xff] }
 0x78b   :  { %v6642_v42 = vsel %vm16903_vm11, %v6641_v28, %v16900_v30  ;;  %vm6442_vm1 = vcmp.lt.s32.totalorder %v6441_v26, 2  ;;  %vm6443_vm0 = vcmp.eq.s32.totalorder %v6441_v26, 0  ;;  %vm6446_vm3 = vcmp.eq.s32.totalorder %v6441_v26, 2 }
 0x78c   :  { %v6346_v7 = vsel %vm6335_vm14, nan, %v6345_v5  ;;  %v6445_v25 = vsel %vm6443_vm0, %v16899_v19, %v6444_v8  ;;  %v6448_v58 = vsel %vm6446_vm3, %v6447_v36, %v16898_v31  ;;  %v6540_v4 = vsel %vm16905_vm6, 0, %v6538_v1  ;;  %vm16909_vm14 = vmmov %vm16897_vm4  ;;  %v16913_v8 = vld [vmem:[#allocation110_spill] sm:$0xff] }
 0x78d   :  { %8403 = vmatmul.mubr.msk.f32.gmra.mrb[36].mxu0 %vm16897_vm4, %v6346_v7  ;;  %v6449_v45 = vsel %vm6442_vm1, %v6445_v25, %v6448_v58  ;;  %v6544_v60 = vadd.s32 3, %v6540_v4  ;;  %vm16906_vm5 = vnez %v16715_v9  ;;  %v6548_v34 = vxor.u32 2147483648, %v16907_v16  ;;  %v16920_v25 = vld [vmem:[#allocation89_spill] sm:$0xff] }
 0x78e   :  { %v6644_v17 = vsel %vm16906_vm5, 0, %v6642_v42  ;;  %v6450_v27 = vsel %vm6439_vm12, nan, %v6449_v45  ;;  %v6551_v0 = vxor.u32 2147483648, %v16908_v13  ;;  %vm6543_vm9 = vweird.f32 %v16901_v15  ;;  %v16923_v45 = vld [vmem:[#allocation96_spill] sm:$0xff] }
 0x78f   :  { %v6648_v38 = vadd.s32 3, %v6644_v17  ;;  %8405 = vmatprep.mubr.msk.f32.mxu0 %vm16909_vm14, %v6450_v27  ;;  %v6545_v32 = vand.u32 3, %v6544_v60  ;;  %v6652_v52 = vxor.u32 2147483648, %v14758_v46  ;;  %v6745_v24 = vsub.s32 4, %v16910_v48  ;;  %v16924_v27 = vld [vmem:[#allocation83_spill] sm:$0xff] }
 0x790   :  { %vm6647_vm2 = vweird.f32 %v14222_v10  ;;  %v6655_v9 = vxor.u32 2147483648, %v14672_v44  ;;  %v6849_v11 = vsub.s32 4, %v14587_v51  ;;  %vm16912_vm3 = vcmp.lt.s32.totalorder %v16911_v62, 0 }
 0x791   :  { %v6649_v40 = vand.u32 3, %v6648_v38  ;;  %vm6546_vm11 = vcmp.lt.s32.totalorder %v6545_v32, 2  ;;  %vm6547_vm1 = vcmp.eq.s32.totalorder %v6545_v32, 0  ;;  %vm6550_vm0 = vcmp.eq.s32.totalorder %v6545_v32, 2 }
 0x792   :  { %v6746_v14 = vsel %vm16912_vm3, %v6745_v24, %v16910_v48  ;;  %v6549_v56 = vsel %vm6547_vm1, %v16908_v13, %v6548_v34  ;;  %v6552_v20 = vsel %vm6550_vm0, %v6551_v0, %v16907_v16  ;;  %vm16914_vm5 = vnez %v16913_v8  ;;  %v16932_v8 = vld [vmem:[#allocation106_spill] sm:$0xff] }
 0x793   :  { %vm6650_vm6 = vcmp.lt.s32.totalorder %v6649_v40, 2  ;;  %vm6651_vm4 = vcmp.eq.s32.totalorder %v6649_v40, 0  ;;  %v6553_v63 = vsel %vm6546_vm11, %v6549_v56, %v6552_v20  ;;  %vm6654_vm12 = vcmp.eq.s32.totalorder %v6649_v40, 2  ;;  %v16930_v56 = vld [vmem:[#allocation113_spill] sm:$0xff] }
 0x794   :  { %v6653_v31 = vsel %vm6651_vm4, %v14672_v44, %v6652_v52  ;;  %v6748_v19 = vsel %vm16914_vm5, 0, %v6746_v14  ;;  %v6554_v36 = vsel %vm6543_vm9, nan, %v6553_v63  ;;  %v6656_v30 = vsel %vm6654_vm12, %v6655_v9, %v14758_v46  ;;  %v16918_v44 = vld [vmem:[#allocation107_spill] sm:$0xff]  ;;  %v16927_v52 = vld [vmem:[#allocation120_spill] sm:$0xff] }
 0x795   :  { %v6752_v28 = vadd.s32 3, %v6748_v19  ;;  %vm16915_vm14 = vcmp.lt.s32.totalorder %v14363_v53, 0  ;;  %vm16916_vm1 = vcmask 654336   ;;  %v6657_v33 = vsel %vm6650_vm6, %v6653_v31, %v6656_v30  ;;  %v16929_v14 = vld [vmem:[#allocation119_spill] sm:$0xff] }
 0x796   :  { %v6850_v26 = vsel %vm16915_vm14, %v6849_v11, %v14587_v51  ;;  %8406 = vmatmul.mubr.msk.f32.gmra.mrb[38].mxu0 %vm16916_vm1, %v6554_v36  ;;  %v6756_v1 = vxor.u32 2147483648, %v16917_v29  ;;  %v6759_v42 = vxor.u32 2147483648, %v16918_v44  ;;  %vm16919_vm11 = vnez %v16725_v6  ;;  %vm16921_vm9 = vmmov %vm16916_vm1 }
 0x797   :  { %v6852_v5 = vsel %vm16919_vm11, 0, %v6850_v26  ;;  %v6658_v15 = vsel %vm6647_vm2, nan, %v6657_v33  ;;  %v6753_v7 = vand.u32 3, %v6752_v28  ;;  %v6953_v58 = vsub.s32 4, %v16920_v25 }
 0x798   :  { %v6856_v46 = vadd.s32 3, %v6852_v5  ;;  %8408 = vmatprep.mubr.msk.f32.mxu0 %vm16921_vm9, %v6658_v15  ;;  %vm6751_vm0 = vweird.f32 %v16911_v62  ;;  %v6860_v51 = vxor.u32 2147483648, %v14798_v61  ;;  %v6863_v4 = vxor.u32 2147483648, %v16922_v21 }
 0x799   :  { %v7057_v60 = vsub.s32 4, %v16923_v45  ;;  %vm6754_vm3 = vcmp.lt.s32.totalorder %v6753_v7, 2  ;;  %vm6755_vm6 = vcmp.eq.s32.totalorder %v6753_v7, 0  ;;  %vm6758_vm4 = vcmp.eq.s32.totalorder %v6753_v7, 2 }
 0x79a   :  { %v6857_v6 = vand.u32 3, %v6856_v46  ;;  %v6757_v10 = vsel %vm6755_vm6, %v16918_v44, %v6756_v1  ;;  %v6760_v17 = vsel %vm6758_vm4, %v6759_v42, %v16917_v29  ;;  %vm16925_vm2 = vcmp.lt.s32.totalorder %v16924_v27, 0 }
 0x79b   :  { %v6954_v16 = vsel %vm16925_vm2, %v6953_v58, %v16920_v25  ;;  %vm16926_vm12 = vcmp.lt.s32.totalorder %v14541_v23, 0  ;;  %v6761_v13 = vsel %vm6754_vm3, %v6757_v10, %v6760_v17  ;;  %vm16928_vm11 = vnez %v16927_v52 }
 0x79c   :  { %v7058_v34 = vsel %vm16926_vm12, %v7057_v60, %v16923_v45  ;;  %vm6858_vm5 = vcmp.lt.s32.totalorder %v6857_v6, 2  ;;  %vm6859_vm14 = vcmp.eq.s32.totalorder %v6857_v6, 0  ;;  %vm6862_vm1 = vcmp.eq.s32.totalorder %v6857_v6, 2 }
 0x79d   :  { %v6762_v0 = vsel %vm6751_vm0, nan, %v6761_v13  ;;  %v6861_v38 = vsel %vm6859_vm14, %v16922_v21, %v6860_v51  ;;  %v6864_v32 = vsel %vm6862_vm1, %v6863_v4, %v14798_v61  ;;  %v6956_v48 = vsel %vm16928_vm11, 0, %v6954_v16  ;;  %vm16931_vm0 = vmmov %vm16921_vm9  ;;  %v15378_v13 = vld [vmem:[%s15546_s6] ss:$0 sm:$0xff] }
 0x79e   :  { %8409 = vmatmul.mubr.msk.f32.gmra.mrb[40].mxu0 %vm16921_vm9, %v6762_v0  ;;  %vm6855_vm6 = vweird.f32 %v14363_v53  ;;  %v6865_v24 = vsel %vm6858_vm5, %v6861_v38, %v6864_v32  ;;  %v6960_v40 = vadd.s32 3, %v6956_v48  ;;  %v7060_v9 = vsel %vm14868_vm15, 0, %v7058_v34  ;;  %vm16934_vm9 = vmmov %vm16931_vm0 }
 0x79f   :  { %v6866_v11 = vsel %vm6855_vm6, nan, %v6865_v24  ;;  %v6964_v62 = vxor.u32 2147483648, %v16929_v14  ;;  %v6967_v20 = vxor.u32 2147483648, %v16930_v56  ;;  %v7064_v63 = vadd.s32 3, %v7060_v9 }
 0x7a0   :  { %8411 = vmatprep.mubr.msk.f32.mxu0 %vm16931_vm0, %v6866_v11  ;;  %vm6959_vm3 = vweird.f32 %v16924_v27  ;;  %v6961_v61 = vand.u32 3, %v6960_v40  ;;  %v7068_v31 = vxor.u32 2147483648, %v15008_v35  ;;  %v7161_v53 = vsub.s32 4, %v16932_v8 }
 0x7a1   :  { %vm7063_vm4 = vweird.f32 %v14541_v23  ;;  %v7065_v19 = vand.u32 3, %v7064_v63  ;;  %v7071_v18 = vxor.u32 2147483648, %v15005_v50  ;;  %v7265_v36 = vsub.s32 4, %v14931_v39 }
 0x7a2   :  { %vm6962_vm15 = vcmp.lt.s32.totalorder %v6961_v61, 2  ;;  %vm6963_vm2 = vcmp.eq.s32.totalorder %v6961_v61, 0  ;;  %vm6966_vm12 = vcmp.eq.s32.totalorder %v6961_v61, 2  ;;  %vm16933_vm5 = vcmp.lt.s32.totalorder %v14469_v55, 0 }
 0x7a3   :  { %v7162_v30 = vsel %vm16933_vm5, %v7161_v53, %v16932_v8  ;;  %v6965_v28 = vsel %vm6963_vm2, %v16930_v56, %v6964_v62  ;;  %v6968_v26 = vsel %vm6966_vm12, %v6967_v20, %v16929_v14  ;;  %vm7066_vm14 = vcmp.lt.s32.totalorder %v7065_v19, 2 }
 0x7a4   :  { %vm7067_vm1 = vcmp.eq.s32.totalorder %v7065_v19, 0  ;;  %v6969_v33 = vsel %vm6962_vm15, %v6965_v28, %v6968_v26  ;;  %vm7070_vm11 = vcmp.eq.s32.totalorder %v7065_v19, 2  ;;  %v7164_v1 = vsel %vm14788_vm8, 0, %v7162_v30  ;;  %vm16935_vm8 = vmmov %vm16931_vm0 }
 0x7a5   :  { %v7069_v29 = vsel %vm7067_vm1, %v15005_v50, %v7068_v31  ;;  %v6970_v44 = vsel %vm6959_vm3, nan, %v6969_v33  ;;  %v7072_v42 = vsel %vm7070_vm11, %v7071_v18, %v15008_v35  ;;  %v7168_v5 = vadd.s32 3, %v7164_v1  ;;  %vm16937_vm12 = vmmov %vm16935_vm8 }
 0x7a6   :  { %v7266_v15 = vsel %vm7181_vm7, %v7265_v36, %v14931_v39  ;;  %8412 = vmatmul.mubr.msk.f32.gmra.mrb[42].mxu0 %vm16934_vm9, %v6970_v44  ;;  %v7073_v7 = vsel %vm7066_vm14, %v7069_v29, %v7072_v42  ;;  %v7172_v46 = vxor.u32 2147483648, %v14923_v41  ;;  %v7175_v50 = vxor.u32 2147483648, %v14895_v37  ;;  %vm16938_vm14 = vmmov %vm16935_vm8 }
 0x7a7   :  { %v7268_v22 = vsel %vm15025_vm13, 0, %v7266_v15  ;;  %v7074_v25 = vsel %vm7063_vm4, nan, %v7073_v7  ;;  %v7169_v58 = vand.u32 3, %v7168_v5  ;;  %v7369_v51 = vsub.s32 4, %v14850_v54 }
 0x7a8   :  { %v7272_v35 = vadd.s32 3, %v7268_v22  ;;  %8414 = vmatprep.mubr.msk.f32.mxu0 %vm16935_vm8, %v7074_v25  ;;  %v7276_v39 = vxor.u32 2147483648, %v15177_v49  ;;  %v7279_v21 = vxor.u32 2147483648, %v15161_v3  ;;  %vm7167_vm7 = vweird.f32 %v14469_v55 }
 0x7a9   :  { %vm7171_vm6 = vcmp.eq.s32.totalorder %v7169_v58, 0  ;;  %vm7174_vm0 = vcmp.eq.s32.totalorder %v7169_v58, 2  ;;  %vm7170_vm3 = vcmp.lt.s32.totalorder %v7169_v58, 2  ;;  %vm16936_vm13 = vcmp.lt.s32.totalorder %v14652_v12, 0 }
 0x7aa   :  { %v7273_v4 = vand.u32 3, %v7272_v35  ;;  %v7173_v59 = vsel %vm7171_vm6, %v14895_v37, %v7172_v46  ;;  %v7176_v23 = vsel %vm7174_vm0, %v7175_v50, %v14923_v41  ;;  %v7370_v45 = vsel %vm16936_vm13, %v7369_v51, %v14850_v54 }
 0x7ab   :  { %v7177_v60 = vsel %vm7170_vm3, %v7173_v59, %v7176_v23  ;;  %v7372_v17 = vsel %vm14964_vm10, 0, %v7370_v45  ;;  %vm7271_vm5 = vweird.f32 %v14715_v2  ;;  %v7380_v54 = vxor.u32 2147483648, %v15094_v57 }
 0x7ac   :  { %vm7274_vm4 = vcmp.lt.s32.totalorder %v7273_v4, 2  ;;  %vm7275_vm15 = vcmp.eq.s32.totalorder %v7273_v4, 0  ;;  %vm7278_vm2 = vcmp.eq.s32.totalorder %v7273_v4, 2  ;;  %v7178_v6 = vsel %vm7167_vm7, nan, %v7177_v60  ;;  %vm16939_vm7 = vmmov %vm16935_vm8 }
 0x7ad   :  { %v7277_v10 = vsel %vm7275_vm15, %v15161_v3, %v7276_v39  ;;  %v7280_v55 = vsel %vm7278_vm2, %v7279_v21, %v15177_v49  ;;  %8415 = vmatmul.mubr.msk.f32.gmra.mrb[44].mxu0 %vm16937_vm12, %v7178_v6  ;;  %v7376_v41 = vadd.s32 3, %v7372_v17  ;;  %v7383_v16 = vxor.u32 2147483648, %v15048_v43  ;;  %vm16940_vm6 = vmmov %vm16939_vm7 }
 0x7ae   :  { %v7281_v37 = vsel %vm7274_vm4, %v7277_v10, %v7280_v55  ;;  %vm7375_vm10 = vweird.f32 %v14652_v12  ;;  %vm16941_vm0 = vmmov %vm16940_vm6 }
 0x7af   :  { %v7282_v27 = vsel %vm7271_vm5, nan, %v7281_v37  ;;  %v7377_v34 = vand.u32 3, %v7376_v41  ;;  %vm16942_vm3 = vmmov %vm16941_vm0 }
 0x7b0   :  { %8417 = vmatprep.mubr.msk.f32.mxu0 %vm16938_vm14, %v7282_v27  ;;  %vm16943_vm13 = vmmov %vm16941_vm0 }
 0x7b1   :  { %vm7379_vm1 = vcmp.eq.s32.totalorder %v7377_v34, 0  ;;  %vm7382_vm11 = vcmp.eq.s32.totalorder %v7377_v34, 2  ;;  %vm7378_vm9 = vcmp.lt.s32.totalorder %v7377_v34, 2  ;;  %vm16944_vm4 = vmmov %vm16941_vm0 }
 0x7b2   :  { %v7381_v47 = vsel %vm7379_vm1, %v15048_v43, %v7380_v54  ;;  %v7384_v3 = vsel %vm7382_vm11, %v7383_v16, %v15094_v57  ;;  %vm16945_vm15 = vmmov %vm16941_vm0 }
 0x7b3   :  { %v7385_v2 = vsel %vm7378_vm9, %v7381_v47, %v7384_v3  ;;  %vm16946_vm2 = vmmov %vm16941_vm0 }
 0x7b4   :  { %v7386_v49 = vsel %vm7375_vm10, nan, %v7385_v2  ;;  %vm16947_vm12 = vmmov %vm16941_vm0 }
 0x7b5   :  { %8418 = vmatmul.mubr.msk.f32.gmra.mrb[46].mxu0 %vm16935_vm8, %v7386_v49  ;;  %vm16948_vm5 = vmmov %vm16941_vm0 }
 0x7b6   :  { %vm16949_vm14 = vmmov %vm16941_vm0 }
 0x7b7   :  { %vm16950_vm1 = vmmov %vm16941_vm0 }
 0x7b8   :  { %vm16951_vm11 = vmmov %vm16941_vm0 }
 0x7b9   :  { %vm16952_vm9 = vmmov %vm16941_vm0 }
 0x7ba   :  { %vm16953_vm10 = vmmov %vm16941_vm0 }
 0x7bb   :  { %vm16954_vm8 = vmmov %vm16941_vm0 }
 0x7fb   :  { %v8374_v0 = vpop.f32.mrb[16].mxu0 }
 0x7fc   :  { %v7572_v38 = vadd.f32 %v8374_v0, %v15378_v13  ;;  %v7566_v32 = vpop.f32.mrb[17].mxu0 }
 0x7fd   :  { %v7567_v52 = vadd.f32 %v15378_v13, %v7566_v32 }
 0x7fe   :  { %7726 = vst.msk [vmem:[%s15547_s7 + $0x8] sm:$0xff] %vm16939_vm7, %v7572_v38  ;;  %vm16955_vm7 = vmmov %vm16941_vm0 }
 0x7ff   :  { %7725 = vst.msk [vmem:[%s15547_s7] sm:$0xff] %vm16940_vm6, %v7567_v52  ;;  %vm16956_vm6 = vmmov %vm16941_vm0 }
 0x809   :  { %v8377_v12 = vpop.f32.mrb[18].mxu0 }
 0x80a   :  { %v7582_v43 = vadd.f32 %v8377_v12, %v15378_v13  ;;  %v7576_v57 = vpop.f32.mrb[19].mxu0 }
 0x80b   :  { %v7577_v48 = vadd.f32 %v15378_v13, %v7576_v57 }
 0x80c   :  { %7728 = vst.msk [vmem:[%s15547_s7 + $0x18] sm:$0xff] %vm16941_vm0, %v7582_v43 }
 0x80d   :  { %7727 = vst.msk [vmem:[%s15547_s7 + $0x10] sm:$0xff] %vm16942_vm3, %v7577_v48  ;;  %vm16957_vm3 = vmmov %vm16941_vm0 }
 0x814   :  { %v8380_v24 = vpop.f32.mrb[20].mxu0 }
 0x815   :  { %v7592_v40 = vadd.f32 %v8380_v24, %v15378_v13  ;;  %v7586_v9 = vpop.f32.mrb[21].mxu0 }
 0x816   :  { %v7587_v11 = vadd.f32 %v15378_v13, %v7586_v9 }
 0x817   :  { %7730 = vst.msk [vmem:[%s15547_s7 + $0x28] sm:$0xff] %vm16943_vm13, %v7592_v40  ;;  %vm16958_vm13 = vmmov %vm16941_vm0 }
 0x818   :  { %7729 = vst.msk [vmem:[%s15547_s7 + $0x20] sm:$0xff] %vm16944_vm4, %v7587_v11  ;;  %vm16959_vm4 = vmmov %vm16941_vm0 }
 0x820   :  { %v8383_v14 = vpop.f32.mrb[22].mxu0 }
 0x821   :  { %v7602_v62 = vadd.f32 %v8383_v14, %v15378_v13  ;;  %v7596_v56 = vpop.f32.mrb[23].mxu0 }
 0x822   :  { %v7597_v20 = vadd.f32 %v15378_v13, %v7596_v56 }
 0x823   :  { %7732 = vst.msk [vmem:[%s15547_s7 + $0x38] sm:$0xff] %vm16945_vm15, %v7602_v62  ;;  %vm16960_vm15 = vmmov %vm16941_vm0 }
 0x824   :  { %7731 = vst.msk [vmem:[%s15547_s7 + $0x30] sm:$0xff] %vm16946_vm2, %v7597_v20  ;;  %vm16961_vm2 = vmmov %vm16941_vm0 }
 0x829   :  { %v8386_v63 = vpop.f32.mrb[24].mxu0 }
 0x82a   :  { %v7612_v61 = vadd.f32 %v8386_v63, %v15378_v13  ;;  %v7606_v31 = vpop.f32.mrb[25].mxu0 }
 0x82b   :  { %v7607_v8 = vadd.f32 %v15378_v13, %v7606_v31 }
 0x82c   :  { %7734 = vst.msk [vmem:[%s15547_s7 + $0x48] sm:$0xff] %vm16947_vm12, %v7612_v61  ;;  %vm16962_vm12 = vmmov %vm16941_vm0 }
 0x82d   :  { %7733 = vst.msk [vmem:[%s15547_s7 + $0x40] sm:$0xff] %vm16948_vm5, %v7607_v8  ;;  %vm16963_vm5 = vmmov %vm16941_vm0 }
 0x834   :  { %v8389_v53 = vpop.f32.mrb[26].mxu0 }
 0x835   :  { %v7622_v19 = vadd.f32 %v8389_v53, %v15378_v13  ;;  %v7616_v18 = vpop.f32.mrb[27].mxu0 }
 0x836   :  { %v7617_v36 = vadd.f32 %v15378_v13, %v7616_v18 }
 0x837   :  { %7736 = vst.msk [vmem:[%s15547_s7 + $0x58] sm:$0xff] %vm16949_vm14, %v7622_v19  ;;  %vm16964_vm14 = vmmov %vm16941_vm0 }
 0x838   :  { %7735 = vst.msk [vmem:[%s15547_s7 + $0x50] sm:$0xff] %vm16950_vm1, %v7617_v36  ;;  %vm16965_vm1 = vmmov %vm16941_vm0 }
 0x83b   :  { %v8392_v30 = vpop.f32.mrb[28].mxu0 }
 0x83c   :  { %v7632_v28 = vadd.f32 %v8392_v30, %v15378_v13  ;;  %v7626_v26 = vpop.f32.mrb[29].mxu0 }
 0x83d   :  { %v7627_v33 = vadd.f32 %v15378_v13, %v7626_v26 }
 0x83e   :  { %7738 = vst.msk [vmem:[%s15547_s7 + $0x68] sm:$0xff] %vm16951_vm11, %v7632_v28  ;;  %vm16966_vm11 = vmmov %vm16941_vm0 }
 0x83f   :  { %7737 = vst.msk [vmem:[%s15547_s7 + $0x60] sm:$0xff] %vm16952_vm9, %v7627_v33  ;;  %vm16967_vm9 = vmmov %vm16941_vm0 }
 0x846   :  { %v8395_v29 = vpop.f32.mrb[30].mxu0 }
 0x847   :  { %v7642_v1 = vadd.f32 %v8395_v29, %v15378_v13  ;;  %v7636_v44 = vpop.f32.mrb[31].mxu0 }
 0x848   :  { %v7637_v42 = vadd.f32 %v15378_v13, %v7636_v44 }
 0x849   :  { %7740 = vst.msk [vmem:[%s15547_s7 + $0x78] sm:$0xff] %vm16953_vm10, %v7642_v1  ;;  %vm16968_vm10 = vmmov %vm16941_vm0 }
 0x84a   :  { %7739 = vst.msk [vmem:[%s15547_s7 + $0x70] sm:$0xff] %vm16954_vm8, %v7637_v42  ;;  %vm16969_vm8 = vmmov %vm16941_vm0 }
 0x84e   :  { %v8398_v5 = vpop.f32.mrb[32].mxu0 }
 0x84f   :  { %v7652_v15 = vadd.f32 %v8398_v5, %v15378_v13  ;;  %v7646_v7 = vpop.f32.mrb[33].mxu0 }
 0x850   :  { %v7647_v46 = vadd.f32 %v15378_v13, %v7646_v7 }
 0x851   :  { %7742 = vst.msk [vmem:[%s15547_s7 + $0x88] sm:$0xff] %vm16955_vm7, %v7652_v15 }
 0x852   :  { %7741 = vst.msk [vmem:[%s15547_s7 + $0x80] sm:$0xff] %vm16956_vm6, %v7647_v46 }
 0x858   :  { %v8401_v50 = vpop.f32.mrb[34].mxu0 }
 0x859   :  { %v7662_v22 = vadd.f32 %v8401_v50, %v15378_v13  ;;  %v7656_v25 = vpop.f32.mrb[35].mxu0 }
 0x85a   :  { %v7657_v58 = vadd.f32 %v15378_v13, %v7656_v25 }
 0x85b   :  { %7744 = vst.msk [vmem:[%s15547_s7 + $0x98] sm:$0xff] %vm16941_vm0, %v7662_v22 }
 0x85c   :  { %7743 = vst.msk [vmem:[%s15547_s7 + $0x90] sm:$0xff] %vm16957_vm3, %v7657_v58 }
 0x860   :  { %v8404_v35 = vpop.f32.mrb[36].mxu0 }
 0x861   :  { %v7672_v51 = vadd.f32 %v8404_v35, %v15378_v13  ;;  %v7666_v39 = vpop.f32.mrb[37].mxu0 }
 0x862   :  { %v7667_v21 = vadd.f32 %v15378_v13, %v7666_v39 }
 0x863   :  { %7746 = vst.msk [vmem:[%s15547_s7 + $0xa8] sm:$0xff] %vm16958_vm13, %v7672_v51 }
 0x864   :  { %7745 = vst.msk [vmem:[%s15547_s7 + $0xa0] sm:$0xff] %vm16959_vm4, %v7667_v21 }
 0x869   :  { %v8407_v4 = vpop.f32.mrb[38].mxu0 }
 0x86a   :  { %v7682_v59 = vadd.f32 %v8407_v4, %v15378_v13  ;;  %v7676_v23 = vpop.f32.mrb[39].mxu0 }
 0x86b   :  { %v7677_v45 = vadd.f32 %v15378_v13, %v7676_v23 }
 0x86c   :  { %7748 = vst.msk [vmem:[%s15547_s7 + $0xb8] sm:$0xff] %vm16960_vm15, %v7682_v59 }
 0x86d   :  { %7747 = vst.msk [vmem:[%s15547_s7 + $0xb0] sm:$0xff] %vm16961_vm2, %v7677_v45 }
 0x871   :  { %v8410_v60 = vpop.f32.mrb[40].mxu0 }
 0x872   :  { %v7692_v6 = vadd.f32 %v8410_v60, %v15378_v13  ;;  %v7686_v10 = vpop.f32.mrb[41].mxu0 }
 0x873   :  { %v7687_v55 = vadd.f32 %v15378_v13, %v7686_v10 }
 0x874   :  { %7750 = vst.msk [vmem:[%s15547_s7 + $0xc8] sm:$0xff] %vm16962_vm12, %v7692_v6 }
 0x875   :  { %7749 = vst.msk [vmem:[%s15547_s7 + $0xc0] sm:$0xff] %vm16963_vm5, %v7687_v55 }
 0x879   :  { %v8413_v17 = vpop.f32.mrb[42].mxu0 }
 0x87a   :  { %v7702_v37 = vadd.f32 %v8413_v17, %v15378_v13  ;;  %v7696_v41 = vpop.f32.mrb[43].mxu0 }
 0x87b   :  { %v7697_v27 = vadd.f32 %v15378_v13, %v7696_v41 }
 0x87c   :  { %7752 = vst.msk [vmem:[%s15547_s7 + $0xd8] sm:$0xff] %vm16964_vm14, %v7702_v37 }
 0x87d   :  { %7751 = vst.msk [vmem:[%s15547_s7 + $0xd0] sm:$0xff] %vm16965_vm1, %v7697_v27 }
 0x880   :  { %v8416_v54 = vpop.f32.mrb[44].mxu0 }
 0x881   :  { %v7712_v16 = vadd.f32 %v8416_v54, %v15378_v13  ;;  %v7706_v34 = vpop.f32.mrb[45].mxu0 }
 0x882   :  { %v7707_v47 = vadd.f32 %v15378_v13, %v7706_v34 }
 0x883   :  { %7754 = vst.msk [vmem:[%s15547_s7 + $0xe8] sm:$0xff] %vm16966_vm11, %v7712_v16 }
 0x884   :  { %7753 = vst.msk [vmem:[%s15547_s7 + $0xe0] sm:$0xff] %vm16967_vm9, %v7707_v47 }
 0x888   :  { %v8419_v3 = vpop.f32.mrb[46].mxu0 }
 0x889   :  { %v7722_v2 = vadd.f32 %v8419_v3, %v15378_v13  ;;  %v7716_v49 = vpop.f32.mrb[47].mxu0 }
 0x88a   :  { %v7717_v0 = vadd.f32 %v15378_v13, %v7716_v49 }
 0x88b   :  { %7756 = vst.msk [vmem:[%s15547_s7 + $0xf8] sm:$0xff] %vm16968_vm10, %v7722_v2 }
 0x88c   :  { %7755 = vst.msk [vmem:[%s15547_s7 + $0xf0] sm:$0xff] %vm16969_vm8, %v7717_v0 }

</bundles_post_ra>
